<compile_context>
chip_gen: v7x
topology: tpu7x:2x2x1
jax: 0.10.0
libtpu: 0.0.40
codegen_flags: <defaults>
</compile_context>

<pallas_src>
import functools

import jax
import jax.numpy as jnp
from jax.experimental import pallas as pl
from jax.experimental.pallas import tpu as pltpu

# ----------------------------- small config ---------------------------------
B = 2            # batch
T_FRAMES = 2     # video frames (t)
C, H, W = 3, 16, 16
PATCH = 8
N_PATCH = (H // PATCH) * (W // PATCH)            # 4
L_VIS = N_PATCH + 1                               # +cls -> 5 real tokens
L_VIS_PAD = 8                                     # sublane-aligned token count

D_VIS = 128
VIS_HEADS = 4
VIS_MLP = 256
N_VIS_LAYERS = 2

VOCAB_TOK = 256       # resized text-encoder vocab (synthetic)
D_TEXT = 128          # BLIP text embed_dim
TEXT_HEADS = 4
TEXT_MLP = 256
MAX_POS = 32
N_TEXT_LAYERS = 2

D_LLAMA = 128         # llama hidden_size (synthetic)
LLAMA_HEADS = 4
LLAMA_MLP = 256
N_LLAMA_LAYERS = 2
LM_VOCAB = 256

SEQ = 8
NEG_INF = -1e9

N_VIS_SEQ = B * T_FRAMES                          # 4 frame-sequences through the ViT

# --------------------------- in-kernel helpers -------------------------------


def _mm(x, w_bf16):
    """bf16 x bf16 matmul with f32 accumulation (MXU-friendly)."""
    return jnp.dot(x.astype(jnp.bfloat16), w_bf16,
                   preferred_element_type=jnp.float32)


def _ln(x, g, b, eps=1e-5):
    mu = jnp.mean(x, axis=-1, keepdims=True)
    var = jnp.mean(jnp.square(x - mu), axis=-1, keepdims=True)
    return (x - mu) * jax.lax.rsqrt(var + eps) * g + b


def _rms(x, g, eps=1e-6):
    ms = jnp.mean(jnp.square(x), axis=-1, keepdims=True)
    return x * jax.lax.rsqrt(ms + eps) * g


def _mha_merged(q, k, v, heads, bias):
    """All-heads, all-sequences attention as two MXU matmuls.

    q: (Rq, heads*dh), k/v: (Rk, heads*dh), bias: (heads*Rq, heads*Rk) additive
    (encodes head-block-diagonal, sequence-block-diagonal, padding and causal
    structure; precomputed outside).  Scale is already folded into q's weights.
    """
    rq = q.shape[0]
    dh = q.shape[-1] // heads
    qm = jnp.concatenate([q[:, h * dh:(h + 1) * dh] for h in range(heads)], axis=0)
    km = jnp.concatenate([k[:, h * dh:(h + 1) * dh] for h in range(heads)], axis=0)
    vm = jnp.concatenate([v[:, h * dh:(h + 1) * dh] for h in range(heads)], axis=0)
    s = jax.lax.dot_general(qm.astype(jnp.bfloat16), km.astype(jnp.bfloat16),
                            (((1,), (1,)), ((), ())),
                            preferred_element_type=jnp.float32)
    s = s + bias
    s = s - jnp.max(s, axis=-1, keepdims=True)
    p = jnp.exp(s)
    p = p * pl.reciprocal(jnp.sum(p, axis=-1, keepdims=True), approx=True)
    om = jnp.dot(p.astype(jnp.bfloat16), vm.astype(jnp.bfloat16),
                 preferred_element_type=jnp.float32)
    return jnp.concatenate([om[h * rq:(h + 1) * rq, :] for h in range(heads)],
                           axis=1)


# ------------------------- kernel 1: vision stack ----------------------------


def _vision_kernel(patches, patch_w, tok_add, attn_bias, pre_g, pre_b,
                   ln1_g, ln1_b, wqkv, bqkv, wo, bo,
                   ln2_g, ln2_b, fc1_w, fc1_b, fc2_w, fc2_b, o_ref):
    D = D_VIS
    S = L_VIS_PAD
    # patch embedding (conv == im2col matmul) + cls/pos add, all sequences folded
    x = _mm(patches[...], patch_w[...]) + tok_add[...]          # (N*S, D)
    x = _ln(x, pre_g[...], pre_b[...])
    bias = attn_bias[...]
    for l in range(N_VIS_LAYERS):
        h = _ln(x, ln1_g[l], ln1_b[l])
        qkv = _mm(h, wqkv[l]) + bqkv[l]
        attn = _mha_merged(qkv[:, :D], qkv[:, D:2 * D], qkv[:, 2 * D:],
                           VIS_HEADS, bias)
        x = x + _mm(attn, wo[l]) + bo[l]
        h = _ln(x, ln2_g[l], ln2_b[l])
        # TODO(synk): XCLIP/BLIP use exact erf-GELU; tanh approximation kept here.
        ff = jax.nn.gelu(_mm(h, fc1_w[l]) + fc1_b[l], approximate=True)
        x = x + _mm(ff, fc2_w[l]) + fc2_b[l]
    # temporal mean over frames (.mean(dim=1)), static slices per (b, t)
    outs = []
    for b in range(B):
        acc = x[(b * T_FRAMES) * S:(b * T_FRAMES + 1) * S]
        for t in range(1, T_FRAMES):
            acc = acc + x[(b * T_FRAMES + t) * S:(b * T_FRAMES + t + 1) * S]
        outs.append(acc * (1.0 / T_FRAMES))
    o_ref[...] = jnp.concatenate(outs, axis=0).astype(o_ref.dtype)


_vision_call = pl.pallas_call(
    _vision_kernel,
    out_shape=jax.ShapeDtypeStruct((B * L_VIS_PAD, D_VIS), jnp.bfloat16))


# ------------------- kernel 2: BLIP text + Llama stacks ----------------------


def _textllama_kernel(x_emb, emb_g, emb_b, enc, self_bias, cross_bias,
                      sa_wqkv, sa_bqkv, sa_wo, sa_bo, ln1_g, ln1_b,
                      ca_wq, ca_bq, ca_wkv, ca_bkv, ca_wo, ca_bo, ln2_g, ln2_b,
                      fc1_w, fc1_b, fc2_w, fc2_b, ln3_g, ln3_b,
                      blip2llama,
                      llama_bias, rope_cos, rope_sinf, rope_sinb,
                      l_ln1g, l_wqkv, l_wo, l_ln2g, l_wgu, l_wdown,
                      fin_g, lm_w, o_ref):
    D = D_TEXT
    x = _ln(x_emb[...], emb_g[...], emb_b[...])                  # (B*S, D)
    enc_v = enc[...]                                             # (B*Lv, Dv) bf16
    sb = self_bias[...]
    cb = cross_bias[...]
    # --- BLIP text (BERT post-LN, self-attn + cross-attn to video) -----------
    for l in range(N_TEXT_LAYERS):
        qkv = _mm(x, sa_wqkv[l]) + sa_bqkv[l]
        sa = _mha_merged(qkv[:, :D], qkv[:, D:2 * D], qkv[:, 2 * D:],
                         TEXT_HEADS, sb)
        x = _ln(x + _mm(sa, sa_wo[l]) + sa_bo[l], ln1_g[l], ln1_b[l])
        cq = _mm(x, ca_wq[l]) + ca_bq[l]
        ckv = _mm(enc_v, ca_wkv[l]) + ca_bkv[l]
        ca = _mha_merged(cq, ckv[:, :D], ckv[:, D:], TEXT_HEADS, cb)
        x = _ln(x + _mm(ca, ca_wo[l]) + ca_bo[l], ln2_g[l], ln2_b[l])
        ff = jax.nn.gelu(_mm(x, fc1_w[l]) + fc1_b[l], approximate=True)
        x = _ln(x + _mm(ff, fc2_w[l]) + fc2_b[l], ln3_g[l], ln3_b[l])

    # --- blip -> llama projection (glue absorbed) -----------------------------
    x = _mm(x, blip2llama[...])                                  # (B*S, D_LLAMA)

    # --- Llama decoder stack ---------------------------------------------------
    Dl = D_LLAMA
    half = (Dl // LLAMA_HEADS) // 2
    lb = llama_bias[...]
    cos = rope_cos[...]
    sinf = rope_sinf[...]
    sinb = rope_sinb[...]

    def rope(t):
        # rotate_half via XLU lane rolls; cross-head wrap lanes are pre-zeroed
        # in the sin_fwd / sin_bwd tables.
        return (t * cos
                + pltpu.roll(t, half, 1) * sinf
                + pltpu.roll(t, Dl - half, 1) * sinb)

    for l in range(N_LLAMA_LAYERS):
        h = _rms(x, l_ln1g[l])
        qkv = _mm(h, l_wqkv[l])
        q = rope(qkv[:, :Dl])
        k = rope(qkv[:, Dl:2 * Dl])
        v = qkv[:, 2 * Dl:]
        attn = _mha_merged(q, k, v, LLAMA_HEADS, lb)
        x = x + _mm(attn, l_wo[l])
        h = _rms(x, l_ln2g[l])
        gu = _mm(h, l_wgu[l])                                    # gate | up fused
        ff = jax.nn.silu(gu[:, :LLAMA_MLP]) * gu[:, LLAMA_MLP:]
        x = x + _mm(ff, l_wdown[l])

    # --- final RMSNorm + lm_head (glue absorbed) -------------------------------
    h = _rms(x, fin_g[...])
    o_ref[...] = _mm(h, lm_w[...]).astype(o_ref.dtype)


_textllama_call = pl.pallas_call(
    _textllama_kernel,
    out_shape=jax.ShapeDtypeStruct((B * SEQ, LM_VOCAB), jnp.float32))


# --------------------------- wrapper-side helpers -----------------------------


def merged_attn_bias(heads, n_seq, s_q, s_k, *, causal=False,
                     key_valid=None, key_mask=None):
    """Additive bias for merged-head attention rows/cols laid out as
    (head, sequence, position)."""
    rq, rk = n_seq * s_q, n_seq * s_k
    qi = jnp.arange(heads * rq)
    ki = jnp.arange(heads * rk)
    qh, kh = qi // rq, ki // rk
    qb, kb = (qi % rq) // s_q, (ki % rk) // s_k
    qp, kp = qi % s_q, ki % s_k
    ok = (qh[:, None] == kh[None, :]) & (qb[:, None] == kb[None, :])
    if causal:
        ok = ok & (kp[None, :] <= qp[:, None])
    if key_valid is not None:
        ok = ok & (kp[None, :] < key_valid)
    bias = jnp.where(ok, 0.0, NEG_INF).astype(jnp.float32)
    if key_mask is not None:                       # (n_seq, s_k), 1 = keep
        km = jnp.tile(key_mask.reshape(-1).astype(jnp.float32), (heads,))
        bias = bias + (1.0 - km)[None, :] * NEG_INF
    return bias


def rope_tables(batch, S, d_model, heads, base=10000.0):
    """cos plus pre-signed sin tables for rotate_half-by-lane-roll."""
    dh = d_model // heads
    half = dh // 2
    inv_freq = 1.0 / (base ** (jnp.arange(0, dh, 2, dtype=jnp.float32) / dh))
    pos = jnp.arange(S, dtype=jnp.float32)
    freqs = jnp.outer(pos, inv_freq)                          # (S, half)
    emb = jnp.concatenate([freqs, freqs], axis=-1)            # (S, dh)
    cos, sin = jnp.cos(emb), jnp.sin(emb)
    first = (jnp.arange(dh) < half)[None, :]
    sinf = jnp.where(first, 0.0, sin)        # multiplies t[j - half] (second half)
    sinb = jnp.where(first, -sin, 0.0)       # multiplies t[j + half] (first half)

    def full(t):
        return jnp.tile(jnp.tile(t, (1, heads)), (batch, 1))  # (batch*S, d_model)

    return full(cos), full(sinf), full(sinb)


# ------------------------------- model glue ----------------------------------


def forward(params, video, qa_input_ids, qa_att_mask):
    b, t, c, h, w = video.shape
    n = b * t
    gh, gw = h // PATCH, w // PATCH

    # im2col patches, placed at token slots 1..N_PATCH of each padded sequence
    patches = video.reshape(n, c, gh, PATCH, gw, PATCH).transpose(0, 2, 4, 1, 3, 5)
    patches = patches.reshape(n, gh * gw, c * PATCH * PATCH)
    patches_placed = jnp.pad(patches, ((0, 0), (1, L_VIS_PAD - 1 - N_PATCH), (0, 0)))
    patches_placed = patches_placed.reshape(n * L_VIS_PAD, c * PATCH * PATCH)

    vp = params["vision"]
    tok_add = jnp.concatenate([
        vp["cls"][None, :] + vp["pos"][0:1],
        vp["pos"][1:L_VIS],
        jnp.zeros((L_VIS_PAD - L_VIS, D_VIS), jnp.float32)], axis=0)
    tok_add = jnp.tile(tok_add, (n, 1))                        # (n*L_VIS_PAD, D)

    vis_bias = merged_attn_bias(VIS_HEADS, n, L_VIS_PAD, L_VIS_PAD,
                                key_valid=L_VIS)

    video_embeds = _vision_call(
        patches_placed, vp["patch_w"], tok_add, vis_bias,
        vp["pre_ln_g"], vp["pre_ln_b"],
        vp["ln1_g"], vp["ln1_b"], vp["wqkv"], vp["bqkv"], vp["wo"], vp["bo"],
        vp["ln2_g"], vp["ln2_b"], vp["fc1_w"], vp["fc1_b"],
        vp["fc2_w"], vp["fc2_b"])                              # (B*L_VIS_PAD, D_VIS)

    tp = params["text"]
    lp = params["llama"]
    bb, S = qa_input_ids.shape
    x_emb = jnp.take(tp["word_emb"], qa_input_ids, axis=0) + tp["pos_emb"][:S][None]
    x_emb = x_emb.reshape(bb * S, D_TEXT)

    self_bias = merged_attn_bias(TEXT_HEADS, bb, S, S, key_mask=qa_att_mask)
    cross_bias = merged_attn_bias(TEXT_HEADS, bb, S, L_VIS_PAD, key_valid=L_VIS)
    llama_bias = merged_attn_bias(LLAMA_HEADS, bb, S, S, causal=True,
                                  key_mask=qa_att_mask)
    rope_cos, rope_sinf, rope_sinb = rope_tables(bb, S, D_LLAMA, LLAMA_HEADS)

    logits = _textllama_call(
        x_emb, tp["emb_ln_g"], tp["emb_ln_b"], video_embeds, self_bias, cross_bias,
        tp["sa_wqkv"], tp["sa_bqkv"], tp["sa_wo"], tp["sa_bo"],
        tp["ln1_g"], tp["ln1_b"],
        tp["ca_wq"], tp["ca_bq"], tp["ca_wkv"], tp["ca_bkv"],
        tp["ca_wo"], tp["ca_bo"], tp["ln2_g"], tp["ln2_b"],
        tp["fc1_w"], tp["fc1_b"], tp["fc2_w"], tp["fc2_b"],
        tp["ln3_g"], tp["ln3_b"],
        params["blip2llama"],
        llama_bias, rope_cos, rope_sinf, rope_sinb,
        lp["ln1_g"], lp["wqkv"], lp["wo"], lp["ln2_g"], lp["wgu"], lp["wdown"],
        lp["final_ln_g"], lp["lm_head"])
    return logits.reshape(bb, S, LM_VOCAB)


# ------------------------------ param init ----------------------------------


class KeyGen:
    def __init__(self, key):
        self.key = key

    def __call__(self):
        self.key, sub = jax.random.split(self.key)
        return sub


def _fold_q_scale(w, d, scale):
    """Fold the attention scale (dh**-0.5) into the query slice of a fused tensor."""
    return jnp.concatenate([w[..., :d] * scale, w[..., d:]], axis=-1)


def init_params(key):
    kg = KeyGen(key)

    def rnd(shape):
        return 0.02 * jax.random.normal(kg(), shape, jnp.float32)

    def bf(x):
        return x.astype(jnp.bfloat16)

    def ones(*shape):
        return jnp.ones(shape, jnp.float32)

    def zeros(*shape):
        return jnp.zeros(shape, jnp.float32)

    lv, lt, ll = N_VIS_LAYERS, N_TEXT_LAYERS, N_LLAMA_LAYERS

    vis_scale = (D_VIS // VIS_HEADS) ** -0.5
    vision = {
        "patch_w": bf(rnd((C * PATCH * PATCH, D_VIS))),
        "cls": rnd((D_VIS,)),
        "pos": rnd((L_VIS, D_VIS)),
        "pre_ln_g": ones(1, D_VIS), "pre_ln_b": zeros(1, D_VIS),
        "ln1_g": ones(lv, 1, D_VIS), "ln1_b": zeros(lv, 1, D_VIS),
        "wqkv": bf(_fold_q_scale(rnd((lv, D_VIS, 3 * D_VIS)), D_VIS, vis_scale)),
        "bqkv": _fold_q_scale(rnd((lv, 1, 3 * D_VIS)), D_VIS, vis_scale),
        "wo": bf(rnd((lv, D_VIS, D_VIS))), "bo": rnd((lv, 1, D_VIS)),
        "ln2_g": ones(lv, 1, D_VIS), "ln2_b": zeros(lv, 1, D_VIS),
        "fc1_w": bf(rnd((lv, D_VIS, VIS_MLP))), "fc1_b": rnd((lv, 1, VIS_MLP)),
        "fc2_w": bf(rnd((lv, VIS_MLP, D_VIS))), "fc2_b": rnd((lv, 1, D_VIS)),
    }

    txt_scale = (D_TEXT // TEXT_HEADS) ** -0.5
    text = {
        "word_emb": rnd((VOCAB_TOK, D_TEXT)),
        "pos_emb": rnd((MAX_POS, D_TEXT)),
        "emb_ln_g": ones(1, D_TEXT), "emb_ln_b": zeros(1, D_TEXT),
        "sa_wqkv": bf(_fold_q_scale(rnd((lt, D_TEXT, 3 * D_TEXT)), D_TEXT, txt_scale)),
        "sa_bqkv": _fold_q_scale(rnd((lt, 1, 3 * D_TEXT)), D_TEXT, txt_scale),
        "sa_wo": bf(rnd((lt, D_TEXT, D_TEXT))), "sa_bo": rnd((lt, 1, D_TEXT)),
        "ln1_g": ones(lt, 1, D_TEXT), "ln1_b": zeros(lt, 1, D_TEXT),
        "ca_wq": bf(rnd((lt, D_TEXT, D_TEXT)) * txt_scale),
        "ca_bq": rnd((lt, 1, D_TEXT)) * txt_scale,
        "ca_wkv": bf(rnd((lt, D_VIS, 2 * D_TEXT))),
        "ca_bkv": rnd((lt, 1, 2 * D_TEXT)),
        "ca_wo": bf(rnd((lt, D_TEXT, D_TEXT))), "ca_bo": rnd((lt, 1, D_TEXT)),
        "ln2_g": ones(lt, 1, D_TEXT), "ln2_b": zeros(lt, 1, D_TEXT),
        "fc1_w": bf(rnd((lt, D_TEXT, TEXT_MLP))), "fc1_b": rnd((lt, 1, TEXT_MLP)),
        "fc2_w": bf(rnd((lt, TEXT_MLP, D_TEXT))), "fc2_b": rnd((lt, 1, D_TEXT)),
        "ln3_g": ones(lt, 1, D_TEXT), "ln3_b": zeros(lt, 1, D_TEXT),
    }

    llama_scale = (D_LLAMA // LLAMA_HEADS) ** -0.5
    llama = {
        "ln1_g": ones(ll, 1, D_LLAMA),
        "wqkv": bf(_fold_q_scale(rnd((ll, D_LLAMA, 3 * D_LLAMA)), D_LLAMA, llama_scale)),
        "wo": bf(rnd((ll, D_LLAMA, D_LLAMA))),
        "ln2_g": ones(ll, 1, D_LLAMA),
        "wgu": bf(rnd((ll, D_LLAMA, 2 * LLAMA_MLP))),
        "wdown": bf(rnd((ll, LLAMA_MLP, D_LLAMA))),
        "final_ln_g": ones(1, D_LLAMA),
        "lm_head": bf(rnd((D_LLAMA, LM_VOCAB))),
    }

    # TODO(synk): pretrained XCLIP/BLIP/Llama weights + PEFT(LoRA) adapters are not
    # loadable here; parameters are synthetic and LoRA reduces to the base forward.
    return {"vision": vision, "text": text,
            "blip2llama": bf(rnd((D_TEXT, D_LLAMA))), "llama": llama}


# --------------------------------- main --------------------------------------

if __name__ == "__main__":
    key = jax.random.PRNGKey(0)
    k_video, k_ids, k_params = jax.random.split(key, 3)

    video = jax.random.normal(k_video, (B, T_FRAMES, C, H, W), jnp.float32)
    qa_input_ids = jax.random.randint(k_ids, (B, SEQ), 0, VOCAB_TOK,
                                      dtype=jnp.int32)
    qa_att_mask = jnp.array([[1, 1, 1, 1, 1, 1, 1, 1],
                             [1, 1, 1, 1, 1, 1, 0, 0]], dtype=jnp.int32)

    params = init_params(k_params)

    logits = jax.jit(forward)(params, video, qa_input_ids, qa_att_mask)
    logits = jax.block_until_ready(logits)

    assert logits.shape == (B, SEQ, LM_VOCAB), logits.shape
    assert bool(jnp.all(jnp.isfinite(logits)))
    print("KERNEL_OK")
</pallas_src>

<mosaic_0001>
module attributes {stable_mosaic.version = 11 : i64} {
  func.func @_vision_kernel(%arg0: memref<32x192xf32, #tpu.memory_space<vmem>>, %arg1: memref<192x128xbf16, #tpu.memory_space<vmem>>, %arg2: memref<32x128xf32, #tpu.memory_space<vmem>>, %arg3: memref<128x128xf32, #tpu.memory_space<vmem>>, %arg4: memref<1x128xf32, #tpu.memory_space<vmem>>, %arg5: memref<1x128xf32, #tpu.memory_space<vmem>>, %arg6: memref<2x1x128xf32, #tpu.memory_space<vmem>>, %arg7: memref<2x1x128xf32, #tpu.memory_space<vmem>>, %arg8: memref<2x128x384xbf16, #tpu.memory_space<vmem>>, %arg9: memref<2x1x384xf32, #tpu.memory_space<vmem>>, %arg10: memref<2x128x128xbf16, #tpu.memory_space<vmem>>, %arg11: memref<2x1x128xf32, #tpu.memory_space<vmem>>, %arg12: memref<2x1x128xf32, #tpu.memory_space<vmem>>, %arg13: memref<2x1x128xf32, #tpu.memory_space<vmem>>, %arg14: memref<2x128x256xbf16, #tpu.memory_space<vmem>>, %arg15: memref<2x1x256xf32, #tpu.memory_space<vmem>>, %arg16: memref<2x256x128xbf16, #tpu.memory_space<vmem>>, %arg17: memref<2x1x128xf32, #tpu.memory_space<vmem>>, %arg18: memref<16x128xbf16, #tpu.memory_space<vmem>>) attributes {dimension_semantics = [], scalar_prefetch = 0 : i64, scratch_operands = 0 : i64, tpu.core_type = #tpu.core_type<tc>} {
    %c0 = arith.constant 0 : index
    %c0_0 = arith.constant 0 : index
    %0 = vector.load %arg0[%c0, %c0_0] : memref<32x192xf32, #tpu.memory_space<vmem>>, vector<32x192xf32>
    %c0_1 = arith.constant 0 : index
    %c0_2 = arith.constant 0 : index
    %1 = vector.load %arg1[%c0_1, %c0_2] : memref<192x128xbf16, #tpu.memory_space<vmem>>, vector<192x128xbf16>
    %2 = arith.truncf %0 : vector<32x192xf32> to vector<32x192xbf16>
    %cst = arith.constant dense<0.000000e+00> : vector<32x128xf32>
    %3 = tpu.matmul %2, %1, %cst {dimension_numbers = #tpu.dot_dimension_numbers<[1], [0], [0], [1], [0, 0, 1, 1], [], []>} : vector<32x192xbf16>, vector<192x128xbf16>, vector<32x128xf32> -> vector<32x128xf32>
    %c0_3 = arith.constant 0 : index
    %c0_4 = arith.constant 0 : index
    %4 = vector.load %arg2[%c0_3, %c0_4] : memref<32x128xf32, #tpu.memory_space<vmem>>, vector<32x128xf32>
    %5 = arith.addf %3, %4 : vector<32x128xf32>
    %c0_5 = arith.constant 0 : index
    %c0_6 = arith.constant 0 : index
    %6 = vector.load %arg4[%c0_5, %c0_6] : memref<1x128xf32, #tpu.memory_space<vmem>>, vector<1x128xf32>
    %c0_7 = arith.constant 0 : index
    %c0_8 = arith.constant 0 : index
    %7 = vector.load %arg5[%c0_7, %c0_8] : memref<1x128xf32, #tpu.memory_space<vmem>>, vector<1x128xf32>
    %cst_9 = arith.constant dense<0.000000e+00> : vector<32xf32>
    %8 = vector.multi_reduction <add>, %5, %cst_9 [1] : vector<32x128xf32> to vector<32xf32>
    %9 = vector.shape_cast %8 : vector<32xf32> to vector<32x1xf32>
    %cst_10 = arith.constant 1.280000e+02 : f32
    %10 = vector.broadcast %cst_10 : f32 to vector<32x1xf32>
    %11 = arith.divf %9, %10 : vector<32x1xf32>
    %12 = vector.broadcast %11 : vector<32x1xf32> to vector<32x128xf32>
    %13 = arith.subf %5, %12 : vector<32x128xf32>
    %14 = arith.mulf %13, %13 : vector<32x128xf32>
    %cst_11 = arith.constant dense<0.000000e+00> : vector<32xf32>
    %15 = vector.multi_reduction <add>, %14, %cst_11 [1] : vector<32x128xf32> to vector<32xf32>
    %16 = vector.shape_cast %15 : vector<32xf32> to vector<32x1xf32>
    %cst_12 = arith.constant 1.280000e+02 : f32
    %17 = vector.broadcast %cst_12 : f32 to vector<32x1xf32>
    %18 = arith.divf %16, %17 : vector<32x1xf32>
    %19 = vector.broadcast %11 : vector<32x1xf32> to vector<32x128xf32>
    %20 = arith.subf %5, %19 : vector<32x128xf32>
    %cst_13 = arith.constant 9.99999974E-6 : f32
    %21 = vector.broadcast %cst_13 : f32 to vector<32x1xf32>
    %22 = arith.addf %18, %21 : vector<32x1xf32>
    %23 = math.rsqrt %22 : vector<32x1xf32>
    %24 = vector.broadcast %23 : vector<32x1xf32> to vector<32x128xf32>
    %25 = arith.mulf %20, %24 : vector<32x128xf32>
    %26 = vector.broadcast %6 : vector<1x128xf32> to vector<32x128xf32>
    %27 = arith.mulf %25, %26 : vector<32x128xf32>
    %28 = vector.broadcast %7 : vector<1x128xf32> to vector<32x128xf32>
    %29 = arith.addf %27, %28 : vector<32x128xf32>
    %c0_14 = arith.constant 0 : index
    %c0_15 = arith.constant 0 : index
    %30 = vector.load %arg3[%c0_14, %c0_15] : memref<128x128xf32, #tpu.memory_space<vmem>>, vector<128x128xf32>
    %c0_16 = arith.constant 0 : index
    %c0_17 = arith.constant 0 : index
    %c0_18 = arith.constant 0 : index
    %31 = vector.load %arg6[%c0_16, %c0_17, %c0_18] : memref<2x1x128xf32, #tpu.memory_space<vmem>>, vector<1x1x128xf32>
    %32 = vector.shape_cast %31 : vector<1x1x128xf32> to vector<1x128xf32>
    %c0_19 = arith.constant 0 : index
    %c0_20 = arith.constant 0 : index
    %c0_21 = arith.constant 0 : index
    %33 = vector.load %arg7[%c0_19, %c0_20, %c0_21] : memref<2x1x128xf32, #tpu.memory_space<vmem>>, vector<1x1x128xf32>
    %34 = vector.shape_cast %33 : vector<1x1x128xf32> to vector<1x128xf32>
    %cst_22 = arith.constant dense<0.000000e+00> : vector<32xf32>
    %35 = vector.multi_reduction <add>, %29, %cst_22 [1] : vector<32x128xf32> to vector<32xf32>
    %36 = vector.shape_cast %35 : vector<32xf32> to vector<32x1xf32>
    %cst_23 = arith.constant 1.280000e+02 : f32
    %37 = vector.broadcast %cst_23 : f32 to vector<32x1xf32>
    %38 = arith.divf %36, %37 : vector<32x1xf32>
    %39 = vector.broadcast %38 : vector<32x1xf32> to vector<32x128xf32>
    %40 = arith.subf %29, %39 : vector<32x128xf32>
    %41 = arith.mulf %40, %40 : vector<32x128xf32>
    %cst_24 = arith.constant dense<0.000000e+00> : vector<32xf32>
    %42 = vector.multi_reduction <add>, %41, %cst_24 [1] : vector<32x128xf32> to vector<32xf32>
    %43 = vector.shape_cast %42 : vector<32xf32> to vector<32x1xf32>
    %cst_25 = arith.constant 1.280000e+02 : f32
    %44 = vector.broadcast %cst_25 : f32 to vector<32x1xf32>
    %45 = arith.divf %43, %44 : vector<32x1xf32>
    %46 = vector.broadcast %38 : vector<32x1xf32> to vector<32x128xf32>
    %47 = arith.subf %29, %46 : vector<32x128xf32>
    %cst_26 = arith.constant 9.99999974E-6 : f32
    %48 = vector.broadcast %cst_26 : f32 to vector<32x1xf32>
    %49 = arith.addf %45, %48 : vector<32x1xf32>
    %50 = math.rsqrt %49 : vector<32x1xf32>
    %51 = vector.broadcast %50 : vector<32x1xf32> to vector<32x128xf32>
    %52 = arith.mulf %47, %51 : vector<32x128xf32>
    %53 = vector.broadcast %32 : vector<1x128xf32> to vector<32x128xf32>
    %54 = arith.mulf %52, %53 : vector<32x128xf32>
    %55 = vector.broadcast %34 : vector<1x128xf32> to vector<32x128xf32>
    %56 = arith.addf %54, %55 : vector<32x128xf32>
    %c0_27 = arith.constant 0 : index
    %c0_28 = arith.constant 0 : index
    %c0_29 = arith.constant 0 : index
    %57 = vector.load %arg8[%c0_27, %c0_28, %c0_29] : memref<2x128x384xbf16, #tpu.memory_space<vmem>>, vector<1x128x384xbf16>
    %58 = vector.shape_cast %57 : vector<1x128x384xbf16> to vector<128x384xbf16>
    %59 = arith.truncf %56 : vector<32x128xf32> to vector<32x128xbf16>
    %cst_30 = arith.constant dense<0.000000e+00> : vector<32x384xf32>
    %60 = tpu.matmul %59, %58, %cst_30 {dimension_numbers = #tpu.dot_dimension_numbers<[1], [0], [0], [1], [0, 0, 1, 1], [], []>} : vector<32x128xbf16>, vector<128x384xbf16>, vector<32x384xf32> -> vector<32x384xf32>
    %c0_31 = arith.constant 0 : index
    %c0_32 = arith.constant 0 : index
    %c0_33 = arith.constant 0 : index
    %61 = vector.load %arg9[%c0_31, %c0_32, %c0_33] : memref<2x1x384xf32, #tpu.memory_space<vmem>>, vector<1x1x384xf32>
    %62 = vector.shape_cast %61 : vector<1x1x384xf32> to vector<1x384xf32>
    %63 = vector.broadcast %62 : vector<1x384xf32> to vector<32x384xf32>
    %64 = arith.addf %60, %63 : vector<32x384xf32>
    %65 = vector.extract_strided_slice %64 {offsets = [0, 0], sizes = [32, 128], strides = [1, 1]} : vector<32x384xf32> to vector<32x128xf32>
    %66 = vector.extract_strided_slice %64 {offsets = [0, 128], sizes = [32, 128], strides = [1, 1]} : vector<32x384xf32> to vector<32x128xf32>
    %67 = vector.extract_strided_slice %64 {offsets = [0, 256], sizes = [32, 128], strides = [1, 1]} : vector<32x384xf32> to vector<32x128xf32>
    %68 = vector.extract_strided_slice %65 {offsets = [0, 0], sizes = [32, 32], strides = [1, 1]} : vector<32x128xf32> to vector<32x32xf32>
    %69 = vector.extract_strided_slice %65 {offsets = [0, 32], sizes = [32, 32], strides = [1, 1]} : vector<32x128xf32> to vector<32x32xf32>
    %70 = vector.extract_strided_slice %65 {offsets = [0, 64], sizes = [32, 32], strides = [1, 1]} : vector<32x128xf32> to vector<32x32xf32>
    %71 = vector.extract_strided_slice %65 {offsets = [0, 96], sizes = [32, 32], strides = [1, 1]} : vector<32x128xf32> to vector<32x32xf32>
    %72 = tpu.concatenate %68, %69, %70, %71 in 0 : vector<32x32xf32>, vector<32x32xf32>, vector<32x32xf32>, vector<32x32xf32> -> vector<128x32xf32>
    %73 = vector.extract_strided_slice %66 {offsets = [0, 0], sizes = [32, 32], strides = [1, 1]} : vector<32x128xf32> to vector<32x32xf32>
    %74 = vector.extract_strided_slice %66 {offsets = [0, 32], sizes = [32, 32], strides = [1, 1]} : vector<32x128xf32> to vector<32x32xf32>
    %75 = vector.extract_strided_slice %66 {offsets = [0, 64], sizes = [32, 32], strides = [1, 1]} : vector<32x128xf32> to vector<32x32xf32>
    %76 = vector.extract_strided_slice %66 {offsets = [0, 96], sizes = [32, 32], strides = [1, 1]} : vector<32x128xf32> to vector<32x32xf32>
    %77 = tpu.concatenate %73, %74, %75, %76 in 0 : vector<32x32xf32>, vector<32x32xf32>, vector<32x32xf32>, vector<32x32xf32> -> vector<128x32xf32>
    %78 = vector.extract_strided_slice %67 {offsets = [0, 0], sizes = [32, 32], strides = [1, 1]} : vector<32x128xf32> to vector<32x32xf32>
    %79 = vector.extract_strided_slice %67 {offsets = [0, 32], sizes = [32, 32], strides = [1, 1]} : vector<32x128xf32> to vector<32x32xf32>
    %80 = vector.extract_strided_slice %67 {offsets = [0, 64], sizes = [32, 32], strides = [1, 1]} : vector<32x128xf32> to vector<32x32xf32>
    %81 = vector.extract_strided_slice %67 {offsets = [0, 96], sizes = [32, 32], strides = [1, 1]} : vector<32x128xf32> to vector<32x32xf32>
    %82 = tpu.concatenate %78, %79, %80, %81 in 0 : vector<32x32xf32>, vector<32x32xf32>, vector<32x32xf32>, vector<32x32xf32> -> vector<128x32xf32>
    %83 = arith.truncf %72 : vector<128x32xf32> to vector<128x32xbf16>
    %84 = arith.truncf %77 : vector<128x32xf32> to vector<128x32xbf16>
    %cst_34 = arith.constant dense<0.000000e+00> : vector<128x128xf32>
    %85 = tpu.matmul %83, %84, %cst_34 {dimension_numbers = #tpu.dot_dimension_numbers<[1], [1], [0], [0], [0, 0, 1, 0], [], []>} : vector<128x32xbf16>, vector<128x32xbf16>, vector<128x128xf32> -> vector<128x128xf32>
    %86 = arith.addf %85, %30 : vector<128x128xf32>
    %cst_35 = arith.constant dense<0xFF800000> : vector<128xf32>
    %87 = vector.multi_reduction <maximumf>, %86, %cst_35 [1] : vector<128x128xf32> to vector<128xf32>
    %88 = vector.shape_cast %87 : vector<128xf32> to vector<128x1xf32>
    %89 = vector.broadcast %88 : vector<128x1xf32> to vector<128x128xf32>
    %90 = arith.subf %86, %89 : vector<128x128xf32>
    %91 = math.exp %90 : vector<128x128xf32>
    %cst_36 = arith.constant dense<0.000000e+00> : vector<128xf32>
    %92 = vector.multi_reduction <add>, %91, %cst_36 [1] : vector<128x128xf32> to vector<128xf32>
    %93 = vector.shape_cast %92 : vector<128xf32> to vector<128x1xf32>
    %94 = tpu.reciprocal %93 {approx = true} : vector<128x1xf32> -> vector<128x1xf32>
    %95 = vector.broadcast %94 : vector<128x1xf32> to vector<128x128xf32>
    %96 = arith.mulf %91, %95 : vector<128x128xf32>
    %97 = arith.truncf %96 : vector<128x128xf32> to vector<128x128xbf16>
    %98 = arith.truncf %82 : vector<128x32xf32> to vector<128x32xbf16>
    %cst_37 = arith.constant dense<0.000000e+00> : vector<128x32xf32>
    %99 = tpu.matmul %97, %98, %cst_37 {dimension_numbers = #tpu.dot_dimension_numbers<[1], [0], [0], [1], [0, 0, 1, 1], [], []>} : vector<128x128xbf16>, vector<128x32xbf16>, vector<128x32xf32> -> vector<128x32xf32>
    %100 = vector.extract_strided_slice %99 {offsets = [0, 0], sizes = [32, 32], strides = [1, 1]} : vector<128x32xf32> to vector<32x32xf32>
    %101 = vector.extract_strided_slice %99 {offsets = [32, 0], sizes = [32, 32], strides = [1, 1]} : vector<128x32xf32> to vector<32x32xf32>
    %102 = vector.extract_strided_slice %99 {offsets = [64, 0], sizes = [32, 32], strides = [1, 1]} : vector<128x32xf32> to vector<32x32xf32>
    %103 = vector.extract_strided_slice %99 {offsets = [96, 0], sizes = [32, 32], strides = [1, 1]} : vector<128x32xf32> to vector<32x32xf32>
    %104 = tpu.concatenate %100, %101, %102, %103 in 1 : vector<32x32xf32>, vector<32x32xf32>, vector<32x32xf32>, vector<32x32xf32> -> vector<32x128xf32>
    %c0_38 = arith.constant 0 : index
    %c0_39 = arith.constant 0 : index
    %c0_40 = arith.constant 0 : index
    %105 = vector.load %arg10[%c0_38, %c0_39, %c0_40] : memref<2x128x128xbf16, #tpu.memory_space<vmem>>, vector<1x128x128xbf16>
    %106 = vector.shape_cast %105 : vector<1x128x128xbf16> to vector<128x128xbf16>
    %107 = arith.truncf %104 : vector<32x128xf32> to vector<32x128xbf16>
    %cst_41 = arith.constant dense<0.000000e+00> : vector<32x128xf32>
    %108 = tpu.matmul %107, %106, %cst_41 {dimension_numbers = #tpu.dot_dimension_numbers<[1], [0], [0], [1], [0, 0, 1, 1], [], []>} : vector<32x128xbf16>, vector<128x128xbf16>, vector<32x128xf32> -> vector<32x128xf32>
    %109 = arith.addf %29, %108 : vector<32x128xf32>
    %c0_42 = arith.constant 0 : index
    %c0_43 = arith.constant 0 : index
    %c0_44 = arith.constant 0 : index
    %110 = vector.load %arg11[%c0_42, %c0_43, %c0_44] : memref<2x1x128xf32, #tpu.memory_space<vmem>>, vector<1x1x128xf32>
    %111 = vector.shape_cast %110 : vector<1x1x128xf32> to vector<1x128xf32>
    %112 = vector.broadcast %111 : vector<1x128xf32> to vector<32x128xf32>
    %113 = arith.addf %109, %112 : vector<32x128xf32>
    %c0_45 = arith.constant 0 : index
    %c0_46 = arith.constant 0 : index
    %c0_47 = arith.constant 0 : index
    %114 = vector.load %arg12[%c0_45, %c0_46, %c0_47] : memref<2x1x128xf32, #tpu.memory_space<vmem>>, vector<1x1x128xf32>
    %115 = vector.shape_cast %114 : vector<1x1x128xf32> to vector<1x128xf32>
    %c0_48 = arith.constant 0 : index
    %c0_49 = arith.constant 0 : index
    %c0_50 = arith.constant 0 : index
    %116 = vector.load %arg13[%c0_48, %c0_49, %c0_50] : memref<2x1x128xf32, #tpu.memory_space<vmem>>, vector<1x1x128xf32>
    %117 = vector.shape_cast %116 : vector<1x1x128xf32> to vector<1x128xf32>
    %cst_51 = arith.constant dense<0.000000e+00> : vector<32xf32>
    %118 = vector.multi_reduction <add>, %113, %cst_51 [1] : vector<32x128xf32> to vector<32xf32>
    %119 = vector.shape_cast %118 : vector<32xf32> to vector<32x1xf32>
    %cst_52 = arith.constant 1.280000e+02 : f32
    %120 = vector.broadcast %cst_52 : f32 to vector<32x1xf32>
    %121 = arith.divf %119, %120 : vector<32x1xf32>
    %122 = vector.broadcast %121 : vector<32x1xf32> to vector<32x128xf32>
    %123 = arith.subf %113, %122 : vector<32x128xf32>
    %124 = arith.mulf %123, %123 : vector<32x128xf32>
    %cst_53 = arith.constant dense<0.000000e+00> : vector<32xf32>
    %125 = vector.multi_reduction <add>, %124, %cst_53 [1] : vector<32x128xf32> to vector<32xf32>
    %126 = vector.shape_cast %125 : vector<32xf32> to vector<32x1xf32>
    %cst_54 = arith.constant 1.280000e+02 : f32
    %127 = vector.broadcast %cst_54 : f32 to vector<32x1xf32>
    %128 = arith.divf %126, %127 : vector<32x1xf32>
    %129 = vector.broadcast %121 : vector<32x1xf32> to vector<32x128xf32>
    %130 = arith.subf %113, %129 : vector<32x128xf32>
    %cst_55 = arith.constant 9.99999974E-6 : f32
    %131 = vector.broadcast %cst_55 : f32 to vector<32x1xf32>
    %132 = arith.addf %128, %131 : vector<32x1xf32>
    %133 = math.rsqrt %132 : vector<32x1xf32>
    %134 = vector.broadcast %133 : vector<32x1xf32> to vector<32x128xf32>
    %135 = arith.mulf %130, %134 : vector<32x128xf32>
    %136 = vector.broadcast %115 : vector<1x128xf32> to vector<32x128xf32>
    %137 = arith.mulf %135, %136 : vector<32x128xf32>
    %138 = vector.broadcast %117 : vector<1x128xf32> to vector<32x128xf32>
    %139 = arith.addf %137, %138 : vector<32x128xf32>
    %c0_56 = arith.constant 0 : index
    %c0_57 = arith.constant 0 : index
    %c0_58 = arith.constant 0 : index
    %140 = vector.load %arg14[%c0_56, %c0_57, %c0_58] : memref<2x128x256xbf16, #tpu.memory_space<vmem>>, vector<1x128x256xbf16>
    %141 = vector.shape_cast %140 : vector<1x128x256xbf16> to vector<128x256xbf16>
    %142 = arith.truncf %139 : vector<32x128xf32> to vector<32x128xbf16>
    %cst_59 = arith.constant dense<0.000000e+00> : vector<32x256xf32>
    %143 = tpu.matmul %142, %141, %cst_59 {dimension_numbers = #tpu.dot_dimension_numbers<[1], [0], [0], [1], [0, 0, 1, 1], [], []>} : vector<32x128xbf16>, vector<128x256xbf16>, vector<32x256xf32> -> vector<32x256xf32>
    %c0_60 = arith.constant 0 : index
    %c0_61 = arith.constant 0 : index
    %c0_62 = arith.constant 0 : index
    %144 = vector.load %arg15[%c0_60, %c0_61, %c0_62] : memref<2x1x256xf32, #tpu.memory_space<vmem>>, vector<1x1x256xf32>
    %145 = vector.shape_cast %144 : vector<1x1x256xf32> to vector<1x256xf32>
    %146 = vector.broadcast %145 : vector<1x256xf32> to vector<32x256xf32>
    %147 = arith.addf %143, %146 : vector<32x256xf32>
    %148 = arith.mulf %147, %147 : vector<32x256xf32>
    %149 = arith.mulf %147, %148 : vector<32x256xf32>
    %cst_63 = arith.constant 4.471500e-02 : f32
    %150 = vector.broadcast %cst_63 : f32 to vector<32x256xf32>
    %151 = arith.mulf %150, %149 : vector<32x256xf32>
    %152 = arith.addf %147, %151 : vector<32x256xf32>
    %cst_64 = arith.constant 0.797884583 : f32
    %153 = vector.broadcast %cst_64 : f32 to vector<32x256xf32>
    %154 = arith.mulf %153, %152 : vector<32x256xf32>
    %155 = math.tanh %154 : vector<32x256xf32>
    %cst_65 = arith.constant 1.000000e+00 : f32
    %156 = vector.broadcast %cst_65 : f32 to vector<32x256xf32>
    %157 = arith.addf %156, %155 : vector<32x256xf32>
    %cst_66 = arith.constant 5.000000e-01 : f32
    %158 = vector.broadcast %cst_66 : f32 to vector<32x256xf32>
    %159 = arith.mulf %158, %157 : vector<32x256xf32>
    %160 = arith.mulf %147, %159 : vector<32x256xf32>
    %c0_67 = arith.constant 0 : index
    %c0_68 = arith.constant 0 : index
    %c0_69 = arith.constant 0 : index
    %161 = vector.load %arg16[%c0_67, %c0_68, %c0_69] : memref<2x256x128xbf16, #tpu.memory_space<vmem>>, vector<1x256x128xbf16>
    %162 = vector.shape_cast %161 : vector<1x256x128xbf16> to vector<256x128xbf16>
    %163 = arith.truncf %160 : vector<32x256xf32> to vector<32x256xbf16>
    %cst_70 = arith.constant dense<0.000000e+00> : vector<32x128xf32>
    %164 = tpu.matmul %163, %162, %cst_70 {dimension_numbers = #tpu.dot_dimension_numbers<[1], [0], [0], [1], [0, 0, 1, 1], [], []>} : vector<32x256xbf16>, vector<256x128xbf16>, vector<32x128xf32> -> vector<32x128xf32>
    %165 = arith.addf %113, %164 : vector<32x128xf32>
    %c0_71 = arith.constant 0 : index
    %c0_72 = arith.constant 0 : index
    %c0_73 = arith.constant 0 : index
    %166 = vector.load %arg17[%c0_71, %c0_72, %c0_73] : memref<2x1x128xf32, #tpu.memory_space<vmem>>, vector<1x1x128xf32>
    %167 = vector.shape_cast %166 : vector<1x1x128xf32> to vector<1x128xf32>
    %168 = vector.broadcast %167 : vector<1x128xf32> to vector<32x128xf32>
    %169 = arith.addf %165, %168 : vector<32x128xf32>
    %c1 = arith.constant 1 : index
    %c0_74 = arith.constant 0 : index
    %c0_75 = arith.constant 0 : index
    %170 = vector.load %arg6[%c1, %c0_74, %c0_75] : memref<2x1x128xf32, #tpu.memory_space<vmem>>, vector<1x1x128xf32>
    %171 = vector.shape_cast %170 : vector<1x1x128xf32> to vector<1x128xf32>
    %c1_76 = arith.constant 1 : index
    %c0_77 = arith.constant 0 : index
    %c0_78 = arith.constant 0 : index
    %172 = vector.load %arg7[%c1_76, %c0_77, %c0_78] : memref<2x1x128xf32, #tpu.memory_space<vmem>>, vector<1x1x128xf32>
    %173 = vector.shape_cast %172 : vector<1x1x128xf32> to vector<1x128xf32>
    %cst_79 = arith.constant dense<0.000000e+00> : vector<32xf32>
    %174 = vector.multi_reduction <add>, %169, %cst_79 [1] : vector<32x128xf32> to vector<32xf32>
    %175 = vector.shape_cast %174 : vector<32xf32> to vector<32x1xf32>
    %cst_80 = arith.constant 1.280000e+02 : f32
    %176 = vector.broadcast %cst_80 : f32 to vector<32x1xf32>
    %177 = arith.divf %175, %176 : vector<32x1xf32>
    %178 = vector.broadcast %177 : vector<32x1xf32> to vector<32x128xf32>
    %179 = arith.subf %169, %178 : vector<32x128xf32>
    %180 = arith.mulf %179, %179 : vector<32x128xf32>
    %cst_81 = arith.constant dense<0.000000e+00> : vector<32xf32>
    %181 = vector.multi_reduction <add>, %180, %cst_81 [1] : vector<32x128xf32> to vector<32xf32>
    %182 = vector.shape_cast %181 : vector<32xf32> to vector<32x1xf32>
    %cst_82 = arith.constant 1.280000e+02 : f32
    %183 = vector.broadcast %cst_82 : f32 to vector<32x1xf32>
    %184 = arith.divf %182, %183 : vector<32x1xf32>
    %185 = vector.broadcast %177 : vector<32x1xf32> to vector<32x128xf32>
    %186 = arith.subf %169, %185 : vector<32x128xf32>
    %cst_83 = arith.constant 9.99999974E-6 : f32
    %187 = vector.broadcast %cst_83 : f32 to vector<32x1xf32>
    %188 = arith.addf %184, %187 : vector<32x1xf32>
    %189 = math.rsqrt %188 : vector<32x1xf32>
    %190 = vector.broadcast %189 : vector<32x1xf32> to vector<32x128xf32>
    %191 = arith.mulf %186, %190 : vector<32x128xf32>
    %192 = vector.broadcast %171 : vector<1x128xf32> to vector<32x128xf32>
    %193 = arith.mulf %191, %192 : vector<32x128xf32>
    %194 = vector.broadcast %173 : vector<1x128xf32> to vector<32x128xf32>
    %195 = arith.addf %193, %194 : vector<32x128xf32>
    %c1_84 = arith.constant 1 : index
    %c0_85 = arith.constant 0 : index
    %c0_86 = arith.constant 0 : index
    %196 = vector.load %arg8[%c1_84, %c0_85, %c0_86] : memref<2x128x384xbf16, #tpu.memory_space<vmem>>, vector<1x128x384xbf16>
    %197 = vector.shape_cast %196 : vector<1x128x384xbf16> to vector<128x384xbf16>
    %198 = arith.truncf %195 : vector<32x128xf32> to vector<32x128xbf16>
    %cst_87 = arith.constant dense<0.000000e+00> : vector<32x384xf32>
    %199 = tpu.matmul %198, %197, %cst_87 {dimension_numbers = #tpu.dot_dimension_numbers<[1], [0], [0], [1], [0, 0, 1, 1], [], []>} : vector<32x128xbf16>, vector<128x384xbf16>, vector<32x384xf32> -> vector<32x384xf32>
    %c1_88 = arith.constant 1 : index
    %c0_89 = arith.constant 0 : index
    %c0_90 = arith.constant 0 : index
    %200 = vector.load %arg9[%c1_88, %c0_89, %c0_90] : memref<2x1x384xf32, #tpu.memory_space<vmem>>, vector<1x1x384xf32>
    %201 = vector.shape_cast %200 : vector<1x1x384xf32> to vector<1x384xf32>
    %202 = vector.broadcast %201 : vector<1x384xf32> to vector<32x384xf32>
    %203 = arith.addf %199, %202 : vector<32x384xf32>
    %204 = vector.extract_strided_slice %203 {offsets = [0, 0], sizes = [32, 128], strides = [1, 1]} : vector<32x384xf32> to vector<32x128xf32>
    %205 = vector.extract_strided_slice %203 {offsets = [0, 128], sizes = [32, 128], strides = [1, 1]} : vector<32x384xf32> to vector<32x128xf32>
    %206 = vector.extract_strided_slice %203 {offsets = [0, 256], sizes = [32, 128], strides = [1, 1]} : vector<32x384xf32> to vector<32x128xf32>
    %207 = vector.extract_strided_slice %204 {offsets = [0, 0], sizes = [32, 32], strides = [1, 1]} : vector<32x128xf32> to vector<32x32xf32>
    %208 = vector.extract_strided_slice %204 {offsets = [0, 32], sizes = [32, 32], strides = [1, 1]} : vector<32x128xf32> to vector<32x32xf32>
    %209 = vector.extract_strided_slice %204 {offsets = [0, 64], sizes = [32, 32], strides = [1, 1]} : vector<32x128xf32> to vector<32x32xf32>
    %210 = vector.extract_strided_slice %204 {offsets = [0, 96], sizes = [32, 32], strides = [1, 1]} : vector<32x128xf32> to vector<32x32xf32>
    %211 = tpu.concatenate %207, %208, %209, %210 in 0 : vector<32x32xf32>, vector<32x32xf32>, vector<32x32xf32>, vector<32x32xf32> -> vector<128x32xf32>
    %212 = vector.extract_strided_slice %205 {offsets = [0, 0], sizes = [32, 32], strides = [1, 1]} : vector<32x128xf32> to vector<32x32xf32>
    %213 = vector.extract_strided_slice %205 {offsets = [0, 32], sizes = [32, 32], strides = [1, 1]} : vector<32x128xf32> to vector<32x32xf32>
    %214 = vector.extract_strided_slice %205 {offsets = [0, 64], sizes = [32, 32], strides = [1, 1]} : vector<32x128xf32> to vector<32x32xf32>
    %215 = vector.extract_strided_slice %205 {offsets = [0, 96], sizes = [32, 32], strides = [1, 1]} : vector<32x128xf32> to vector<32x32xf32>
    %216 = tpu.concatenate %212, %213, %214, %215 in 0 : vector<32x32xf32>, vector<32x32xf32>, vector<32x32xf32>, vector<32x32xf32> -> vector<128x32xf32>
    %217 = vector.extract_strided_slice %206 {offsets = [0, 0], sizes = [32, 32], strides = [1, 1]} : vector<32x128xf32> to vector<32x32xf32>
    %218 = vector.extract_strided_slice %206 {offsets = [0, 32], sizes = [32, 32], strides = [1, 1]} : vector<32x128xf32> to vector<32x32xf32>
    %219 = vector.extract_strided_slice %206 {offsets = [0, 64], sizes = [32, 32], strides = [1, 1]} : vector<32x128xf32> to vector<32x32xf32>
    %220 = vector.extract_strided_slice %206 {offsets = [0, 96], sizes = [32, 32], strides = [1, 1]} : vector<32x128xf32> to vector<32x32xf32>
    %221 = tpu.concatenate %217, %218, %219, %220 in 0 : vector<32x32xf32>, vector<32x32xf32>, vector<32x32xf32>, vector<32x32xf32> -> vector<128x32xf32>
    %222 = arith.truncf %211 : vector<128x32xf32> to vector<128x32xbf16>
    %223 = arith.truncf %216 : vector<128x32xf32> to vector<128x32xbf16>
    %cst_91 = arith.constant dense<0.000000e+00> : vector<128x128xf32>
    %224 = tpu.matmul %222, %223, %cst_91 {dimension_numbers = #tpu.dot_dimension_numbers<[1], [1], [0], [0], [0, 0, 1, 0], [], []>} : vector<128x32xbf16>, vector<128x32xbf16>, vector<128x128xf32> -> vector<128x128xf32>
    %225 = arith.addf %224, %30 : vector<128x128xf32>
    %cst_92 = arith.constant dense<0xFF800000> : vector<128xf32>
    %226 = vector.multi_reduction <maximumf>, %225, %cst_92 [1] : vector<128x128xf32> to vector<128xf32>
    %227 = vector.shape_cast %226 : vector<128xf32> to vector<128x1xf32>
    %228 = vector.broadcast %227 : vector<128x1xf32> to vector<128x128xf32>
    %229 = arith.subf %225, %228 : vector<128x128xf32>
    %230 = math.exp %229 : vector<128x128xf32>
    %cst_93 = arith.constant dense<0.000000e+00> : vector<128xf32>
    %231 = vector.multi_reduction <add>, %230, %cst_93 [1] : vector<128x128xf32> to vector<128xf32>
    %232 = vector.shape_cast %231 : vector<128xf32> to vector<128x1xf32>
    %233 = tpu.reciprocal %232 {approx = true} : vector<128x1xf32> -> vector<128x1xf32>
    %234 = vector.broadcast %233 : vector<128x1xf32> to vector<128x128xf32>
    %235 = arith.mulf %230, %234 : vector<128x128xf32>
    %236 = arith.truncf %235 : vector<128x128xf32> to vector<128x128xbf16>
    %237 = arith.truncf %221 : vector<128x32xf32> to vector<128x32xbf16>
    %cst_94 = arith.constant dense<0.000000e+00> : vector<128x32xf32>
    %238 = tpu.matmul %236, %237, %cst_94 {dimension_numbers = #tpu.dot_dimension_numbers<[1], [0], [0], [1], [0, 0, 1, 1], [], []>} : vector<128x128xbf16>, vector<128x32xbf16>, vector<128x32xf32> -> vector<128x32xf32>
    %239 = vector.extract_strided_slice %238 {offsets = [0, 0], sizes = [32, 32], strides = [1, 1]} : vector<128x32xf32> to vector<32x32xf32>
    %240 = vector.extract_strided_slice %238 {offsets = [32, 0], sizes = [32, 32], strides = [1, 1]} : vector<128x32xf32> to vector<32x32xf32>
    %241 = vector.extract_strided_slice %238 {offsets = [64, 0], sizes = [32, 32], strides = [1, 1]} : vector<128x32xf32> to vector<32x32xf32>
    %242 = vector.extract_strided_slice %238 {offsets = [96, 0], sizes = [32, 32], strides = [1, 1]} : vector<128x32xf32> to vector<32x32xf32>
    %243 = tpu.concatenate %239, %240, %241, %242 in 1 : vector<32x32xf32>, vector<32x32xf32>, vector<32x32xf32>, vector<32x32xf32> -> vector<32x128xf32>
    %c1_95 = arith.constant 1 : index
    %c0_96 = arith.constant 0 : index
    %c0_97 = arith.constant 0 : index
    %244 = vector.load %arg10[%c1_95, %c0_96, %c0_97] : memref<2x128x128xbf16, #tpu.memory_space<vmem>>, vector<1x128x128xbf16>
    %245 = vector.shape_cast %244 : vector<1x128x128xbf16> to vector<128x128xbf16>
    %246 = arith.truncf %243 : vector<32x128xf32> to vector<32x128xbf16>
    %cst_98 = arith.constant dense<0.000000e+00> : vector<32x128xf32>
    %247 = tpu.matmul %246, %245, %cst_98 {dimension_numbers = #tpu.dot_dimension_numbers<[1], [0], [0], [1], [0, 0, 1, 1], [], []>} : vector<32x128xbf16>, vector<128x128xbf16>, vector<32x128xf32> -> vector<32x128xf32>
    %248 = arith.addf %169, %247 : vector<32x128xf32>
    %c1_99 = arith.constant 1 : index
    %c0_100 = arith.constant 0 : index
    %c0_101 = arith.constant 0 : index
    %249 = vector.load %arg11[%c1_99, %c0_100, %c0_101] : memref<2x1x128xf32, #tpu.memory_space<vmem>>, vector<1x1x128xf32>
    %250 = vector.shape_cast %249 : vector<1x1x128xf32> to vector<1x128xf32>
    %251 = vector.broadcast %250 : vector<1x128xf32> to vector<32x128xf32>
    %252 = arith.addf %248, %251 : vector<32x128xf32>
    %c1_102 = arith.constant 1 : index
    %c0_103 = arith.constant 0 : index
    %c0_104 = arith.constant 0 : index
    %253 = vector.load %arg12[%c1_102, %c0_103, %c0_104] : memref<2x1x128xf32, #tpu.memory_space<vmem>>, vector<1x1x128xf32>
    %254 = vector.shape_cast %253 : vector<1x1x128xf32> to vector<1x128xf32>
    %c1_105 = arith.constant 1 : index
    %c0_106 = arith.constant 0 : index
    %c0_107 = arith.constant 0 : index
    %255 = vector.load %arg13[%c1_105, %c0_106, %c0_107] : memref<2x1x128xf32, #tpu.memory_space<vmem>>, vector<1x1x128xf32>
    %256 = vector.shape_cast %255 : vector<1x1x128xf32> to vector<1x128xf32>
    %cst_108 = arith.constant dense<0.000000e+00> : vector<32xf32>
    %257 = vector.multi_reduction <add>, %252, %cst_108 [1] : vector<32x128xf32> to vector<32xf32>
    %258 = vector.shape_cast %257 : vector<32xf32> to vector<32x1xf32>
    %cst_109 = arith.constant 1.280000e+02 : f32
    %259 = vector.broadcast %cst_109 : f32 to vector<32x1xf32>
    %260 = arith.divf %258, %259 : vector<32x1xf32>
    %261 = vector.broadcast %260 : vector<32x1xf32> to vector<32x128xf32>
    %262 = arith.subf %252, %261 : vector<32x128xf32>
    %263 = arith.mulf %262, %262 : vector<32x128xf32>
    %cst_110 = arith.constant dense<0.000000e+00> : vector<32xf32>
    %264 = vector.multi_reduction <add>, %263, %cst_110 [1] : vector<32x128xf32> to vector<32xf32>
    %265 = vector.shape_cast %264 : vector<32xf32> to vector<32x1xf32>
    %cst_111 = arith.constant 1.280000e+02 : f32
    %266 = vector.broadcast %cst_111 : f32 to vector<32x1xf32>
    %267 = arith.divf %265, %266 : vector<32x1xf32>
    %268 = vector.broadcast %260 : vector<32x1xf32> to vector<32x128xf32>
    %269 = arith.subf %252, %268 : vector<32x128xf32>
    %cst_112 = arith.constant 9.99999974E-6 : f32
    %270 = vector.broadcast %cst_112 : f32 to vector<32x1xf32>
    %271 = arith.addf %267, %270 : vector<32x1xf32>
    %272 = math.rsqrt %271 : vector<32x1xf32>
    %273 = vector.broadcast %272 : vector<32x1xf32> to vector<32x128xf32>
    %274 = arith.mulf %269, %273 : vector<32x128xf32>
    %275 = vector.broadcast %254 : vector<1x128xf32> to vector<32x128xf32>
    %276 = arith.mulf %274, %275 : vector<32x128xf32>
    %277 = vector.broadcast %256 : vector<1x128xf32> to vector<32x128xf32>
    %278 = arith.addf %276, %277 : vector<32x128xf32>
    %c1_113 = arith.constant 1 : index
    %c0_114 = arith.constant 0 : index
    %c0_115 = arith.constant 0 : index
    %279 = vector.load %arg14[%c1_113, %c0_114, %c0_115] : memref<2x128x256xbf16, #tpu.memory_space<vmem>>, vector<1x128x256xbf16>
    %280 = vector.shape_cast %279 : vector<1x128x256xbf16> to vector<128x256xbf16>
    %281 = arith.truncf %278 : vector<32x128xf32> to vector<32x128xbf16>
    %cst_116 = arith.constant dense<0.000000e+00> : vector<32x256xf32>
    %282 = tpu.matmul %281, %280, %cst_116 {dimension_numbers = #tpu.dot_dimension_numbers<[1], [0], [0], [1], [0, 0, 1, 1], [], []>} : vector<32x128xbf16>, vector<128x256xbf16>, vector<32x256xf32> -> vector<32x256xf32>
    %c1_117 = arith.constant 1 : index
    %c0_118 = arith.constant 0 : index
    %c0_119 = arith.constant 0 : index
    %283 = vector.load %arg15[%c1_117, %c0_118, %c0_119] : memref<2x1x256xf32, #tpu.memory_space<vmem>>, vector<1x1x256xf32>
    %284 = vector.shape_cast %283 : vector<1x1x256xf32> to vector<1x256xf32>
    %285 = vector.broadcast %284 : vector<1x256xf32> to vector<32x256xf32>
    %286 = arith.addf %282, %285 : vector<32x256xf32>
    %287 = arith.mulf %286, %286 : vector<32x256xf32>
    %288 = arith.mulf %286, %287 : vector<32x256xf32>
    %cst_120 = arith.constant 4.471500e-02 : f32
    %289 = vector.broadcast %cst_120 : f32 to vector<32x256xf32>
    %290 = arith.mulf %289, %288 : vector<32x256xf32>
    %291 = arith.addf %286, %290 : vector<32x256xf32>
    %cst_121 = arith.constant 0.797884583 : f32
    %292 = vector.broadcast %cst_121 : f32 to vector<32x256xf32>
    %293 = arith.mulf %292, %291 : vector<32x256xf32>
    %294 = math.tanh %293 : vector<32x256xf32>
    %cst_122 = arith.constant 1.000000e+00 : f32
    %295 = vector.broadcast %cst_122 : f32 to vector<32x256xf32>
    %296 = arith.addf %295, %294 : vector<32x256xf32>
    %cst_123 = arith.constant 5.000000e-01 : f32
    %297 = vector.broadcast %cst_123 : f32 to vector<32x256xf32>
    %298 = arith.mulf %297, %296 : vector<32x256xf32>
    %299 = arith.mulf %286, %298 : vector<32x256xf32>
    %c1_124 = arith.constant 1 : index
    %c0_125 = arith.constant 0 : index
    %c0_126 = arith.constant 0 : index
    %300 = vector.load %arg16[%c1_124, %c0_125, %c0_126] : memref<2x256x128xbf16, #tpu.memory_space<vmem>>, vector<1x256x128xbf16>
    %301 = vector.shape_cast %300 : vector<1x256x128xbf16> to vector<256x128xbf16>
    %302 = arith.truncf %299 : vector<32x256xf32> to vector<32x256xbf16>
    %cst_127 = arith.constant dense<0.000000e+00> : vector<32x128xf32>
    %303 = tpu.matmul %302, %301, %cst_127 {dimension_numbers = #tpu.dot_dimension_numbers<[1], [0], [0], [1], [0, 0, 1, 1], [], []>} : vector<32x256xbf16>, vector<256x128xbf16>, vector<32x128xf32> -> vector<32x128xf32>
    %304 = arith.addf %252, %303 : vector<32x128xf32>
    %c1_128 = arith.constant 1 : index
    %c0_129 = arith.constant 0 : index
    %c0_130 = arith.constant 0 : index
    %305 = vector.load %arg17[%c1_128, %c0_129, %c0_130] : memref<2x1x128xf32, #tpu.memory_space<vmem>>, vector<1x1x128xf32>
    %306 = vector.shape_cast %305 : vector<1x1x128xf32> to vector<1x128xf32>
    %307 = vector.broadcast %306 : vector<1x128xf32> to vector<32x128xf32>
    %308 = arith.addf %304, %307 : vector<32x128xf32>
    %309 = vector.extract_strided_slice %308 {offsets = [0, 0], sizes = [8, 128], strides = [1, 1]} : vector<32x128xf32> to vector<8x128xf32>
    %310 = vector.extract_strided_slice %308 {offsets = [8, 0], sizes = [8, 128], strides = [1, 1]} : vector<32x128xf32> to vector<8x128xf32>
    %311 = arith.addf %309, %310 : vector<8x128xf32>
    %cst_131 = arith.constant 5.000000e-01 : f32
    %312 = vector.broadcast %cst_131 : f32 to vector<8x128xf32>
    %313 = arith.mulf %311, %312 : vector<8x128xf32>
    %314 = vector.extract_strided_slice %308 {offsets = [16, 0], sizes = [8, 128], strides = [1, 1]} : vector<32x128xf32> to vector<8x128xf32>
    %315 = vector.extract_strided_slice %308 {offsets = [24, 0], sizes = [8, 128], strides = [1, 1]} : vector<32x128xf32> to vector<8x128xf32>
    %316 = arith.addf %314, %315 : vector<8x128xf32>
    %cst_132 = arith.constant 5.000000e-01 : f32
    %317 = vector.broadcast %cst_132 : f32 to vector<8x128xf32>
    %318 = arith.mulf %316, %317 : vector<8x128xf32>
    %319 = tpu.concatenate %313, %318 in 0 : vector<8x128xf32>, vector<8x128xf32> -> vector<16x128xf32>
    %320 = arith.truncf %319 : vector<16x128xf32> to vector<16x128xbf16>
    %c0_133 = arith.constant 0 : index
    %c0_134 = arith.constant 0 : index
    %321 = vector.load %arg18[%c0_133, %c0_134] : memref<16x128xbf16, #tpu.memory_space<vmem>>, vector<16x128xbf16>
    tpu.vector_store %arg18[%c0_133, %c0_134], %320 {strides = array<i32>} : memref<16x128xbf16, #tpu.memory_space<vmem>>, vector<16x128xbf16>,
    return
  }
}

module attributes {stable_mosaic.version = 11 : i64} {
  func.func @_textllama_kernel(%arg0: memref<16x128xf32, #tpu.memory_space<vmem>>, %arg1: memref<1x128xf32, #tpu.memory_space<vmem>>, %arg2: memref<1x128xf32, #tpu.memory_space<vmem>>, %arg3: memref<16x128xbf16, #tpu.memory_space<vmem>>, %arg4: memref<64x64xf32, #tpu.memory_space<vmem>>, %arg5: memref<64x64xf32, #tpu.memory_space<vmem>>, %arg6: memref<2x128x384xbf16, #tpu.memory_space<vmem>>, %arg7: memref<2x1x384xf32, #tpu.memory_space<vmem>>, %arg8: memref<2x128x128xbf16, #tpu.memory_space<vmem>>, %arg9: memref<2x1x128xf32, #tpu.memory_space<vmem>>, %arg10: memref<2x1x128xf32, #tpu.memory_space<vmem>>, %arg11: memref<2x1x128xf32, #tpu.memory_space<vmem>>, %arg12: memref<2x128x128xbf16, #tpu.memory_space<vmem>>, %arg13: memref<2x1x128xf32, #tpu.memory_space<vmem>>, %arg14: memref<2x128x256xbf16, #tpu.memory_space<vmem>>, %arg15: memref<2x1x256xf32, #tpu.memory_space<vmem>>, %arg16: memref<2x128x128xbf16, #tpu.memory_space<vmem>>, %arg17: memref<2x1x128xf32, #tpu.memory_space<vmem>>, %arg18: memref<2x1x128xf32, #tpu.memory_space<vmem>>, %arg19: memref<2x1x128xf32, #tpu.memory_space<vmem>>, %arg20: memref<2x128x256xbf16, #tpu.memory_space<vmem>>, %arg21: memref<2x1x256xf32, #tpu.memory_space<vmem>>, %arg22: memref<2x256x128xbf16, #tpu.memory_space<vmem>>, %arg23: memref<2x1x128xf32, #tpu.memory_space<vmem>>, %arg24: memref<2x1x128xf32, #tpu.memory_space<vmem>>, %arg25: memref<2x1x128xf32, #tpu.memory_space<vmem>>, %arg26: memref<128x128xbf16, #tpu.memory_space<vmem>>, %arg27: memref<64x64xf32, #tpu.memory_space<vmem>>, %arg28: memref<16x128xf32, #tpu.memory_space<vmem>>, %arg29: memref<16x128xf32, #tpu.memory_space<vmem>>, %arg30: memref<16x128xf32, #tpu.memory_space<vmem>>, %arg31: memref<2x1x128xf32, #tpu.memory_space<vmem>>, %arg32: memref<2x128x384xbf16, #tpu.memory_space<vmem>>, %arg33: memref<2x128x128xbf16, #tpu.memory_space<vmem>>, %arg34: memref<2x1x128xf32, #tpu.memory_space<vmem>>, %arg35: memref<2x128x512xbf16, #tpu.memory_space<vmem>>, %arg36: memref<2x256x128xbf16, #tpu.memory_space<vmem>>, %arg37: memref<1x128xf32, #tpu.memory_space<vmem>>, %arg38: memref<128x256xbf16, #tpu.memory_space<vmem>>, %arg39: memref<16x256xf32, #tpu.memory_space<vmem>>) attributes {dimension_semantics = [], scalar_prefetch = 0 : i64, scratch_operands = 0 : i64, tpu.core_type = #tpu.core_type<tc>} {
    %c0 = arith.constant 0 : index
    %c0_0 = arith.constant 0 : index
    %0 = vector.load %arg0[%c0, %c0_0] : memref<16x128xf32, #tpu.memory_space<vmem>>, vector<16x128xf32>
    %c0_1 = arith.constant 0 : index
    %c0_2 = arith.constant 0 : index
    %1 = vector.load %arg1[%c0_1, %c0_2] : memref<1x128xf32, #tpu.memory_space<vmem>>, vector<1x128xf32>
    %c0_3 = arith.constant 0 : index
    %c0_4 = arith.constant 0 : index
    %2 = vector.load %arg2[%c0_3, %c0_4] : memref<1x128xf32, #tpu.memory_space<vmem>>, vector<1x128xf32>
    %cst = arith.constant dense<0.000000e+00> : vector<16xf32>
    %3 = vector.multi_reduction <add>, %0, %cst [1] : vector<16x128xf32> to vector<16xf32>
    %4 = vector.shape_cast %3 : vector<16xf32> to vector<16x1xf32>
    %cst_5 = arith.constant 1.280000e+02 : f32
    %5 = vector.broadcast %cst_5 : f32 to vector<16x1xf32>
    %6 = arith.divf %4, %5 : vector<16x1xf32>
    %7 = vector.broadcast %6 : vector<16x1xf32> to vector<16x128xf32>
    %8 = arith.subf %0, %7 : vector<16x128xf32>
    %9 = arith.mulf %8, %8 : vector<16x128xf32>
    %cst_6 = arith.constant dense<0.000000e+00> : vector<16xf32>
    %10 = vector.multi_reduction <add>, %9, %cst_6 [1] : vector<16x128xf32> to vector<16xf32>
    %11 = vector.shape_cast %10 : vector<16xf32> to vector<16x1xf32>
    %cst_7 = arith.constant 1.280000e+02 : f32
    %12 = vector.broadcast %cst_7 : f32 to vector<16x1xf32>
    %13 = arith.divf %11, %12 : vector<16x1xf32>
    %14 = vector.broadcast %6 : vector<16x1xf32> to vector<16x128xf32>
    %15 = arith.subf %0, %14 : vector<16x128xf32>
    %cst_8 = arith.constant 9.99999974E-6 : f32
    %16 = vector.broadcast %cst_8 : f32 to vector<16x1xf32>
    %17 = arith.addf %13, %16 : vector<16x1xf32>
    %18 = math.rsqrt %17 : vector<16x1xf32>
    %19 = vector.broadcast %18 : vector<16x1xf32> to vector<16x128xf32>
    %20 = arith.mulf %15, %19 : vector<16x128xf32>
    %21 = vector.broadcast %1 : vector<1x128xf32> to vector<16x128xf32>
    %22 = arith.mulf %20, %21 : vector<16x128xf32>
    %23 = vector.broadcast %2 : vector<1x128xf32> to vector<16x128xf32>
    %24 = arith.addf %22, %23 : vector<16x128xf32>
    %c0_9 = arith.constant 0 : index
    %c0_10 = arith.constant 0 : index
    %25 = vector.load %arg3[%c0_9, %c0_10] : memref<16x128xbf16, #tpu.memory_space<vmem>>, vector<16x128xbf16>
    %c0_11 = arith.constant 0 : index
    %c0_12 = arith.constant 0 : index
    %26 = vector.load %arg4[%c0_11, %c0_12] : memref<64x64xf32, #tpu.memory_space<vmem>>, vector<64x64xf32>
    %c0_13 = arith.constant 0 : index
    %c0_14 = arith.constant 0 : index
    %27 = vector.load %arg5[%c0_13, %c0_14] : memref<64x64xf32, #tpu.memory_space<vmem>>, vector<64x64xf32>
    %c0_15 = arith.constant 0 : index
    %c0_16 = arith.constant 0 : index
    %c0_17 = arith.constant 0 : index
    %28 = vector.load %arg6[%c0_15, %c0_16, %c0_17] : memref<2x128x384xbf16, #tpu.memory_space<vmem>>, vector<1x128x384xbf16>
    %29 = vector.shape_cast %28 : vector<1x128x384xbf16> to vector<128x384xbf16>
    %30 = arith.truncf %24 : vector<16x128xf32> to vector<16x128xbf16>
    %cst_18 = arith.constant dense<0.000000e+00> : vector<16x384xf32>
    %31 = tpu.matmul %30, %29, %cst_18 {dimension_numbers = #tpu.dot_dimension_numbers<[1], [0], [0], [1], [0, 0, 1, 1], [], []>} : vector<16x128xbf16>, vector<128x384xbf16>, vector<16x384xf32> -> vector<16x384xf32>
    %c0_19 = arith.constant 0 : index
    %c0_20 = arith.constant 0 : index
    %c0_21 = arith.constant 0 : index
    %32 = vector.load %arg7[%c0_19, %c0_20, %c0_21] : memref<2x1x384xf32, #tpu.memory_space<vmem>>, vector<1x1x384xf32>
    %33 = vector.shape_cast %32 : vector<1x1x384xf32> to vector<1x384xf32>
    %34 = vector.broadcast %33 : vector<1x384xf32> to vector<16x384xf32>
    %35 = arith.addf %31, %34 : vector<16x384xf32>
    %36 = vector.extract_strided_slice %35 {offsets = [0, 0], sizes = [16, 128], strides = [1, 1]} : vector<16x384xf32> to vector<16x128xf32>
    %37 = vector.extract_strided_slice %35 {offsets = [0, 128], sizes = [16, 128], strides = [1, 1]} : vector<16x384xf32> to vector<16x128xf32>
    %38 = vector.extract_strided_slice %35 {offsets = [0, 256], sizes = [16, 128], strides = [1, 1]} : vector<16x384xf32> to vector<16x128xf32>
    %39 = vector.extract_strided_slice %36 {offsets = [0, 0], sizes = [16, 32], strides = [1, 1]} : vector<16x128xf32> to vector<16x32xf32>
    %40 = vector.extract_strided_slice %36 {offsets = [0, 32], sizes = [16, 32], strides = [1, 1]} : vector<16x128xf32> to vector<16x32xf32>
    %41 = vector.extract_strided_slice %36 {offsets = [0, 64], sizes = [16, 32], strides = [1, 1]} : vector<16x128xf32> to vector<16x32xf32>
    %42 = vector.extract_strided_slice %36 {offsets = [0, 96], sizes = [16, 32], strides = [1, 1]} : vector<16x128xf32> to vector<16x32xf32>
    %43 = tpu.concatenate %39, %40, %41, %42 in 0 : vector<16x32xf32>, vector<16x32xf32>, vector<16x32xf32>, vector<16x32xf32> -> vector<64x32xf32>
    %44 = vector.extract_strided_slice %37 {offsets = [0, 0], sizes = [16, 32], strides = [1, 1]} : vector<16x128xf32> to vector<16x32xf32>
    %45 = vector.extract_strided_slice %37 {offsets = [0, 32], sizes = [16, 32], strides = [1, 1]} : vector<16x128xf32> to vector<16x32xf32>
    %46 = vector.extract_strided_slice %37 {offsets = [0, 64], sizes = [16, 32], strides = [1, 1]} : vector<16x128xf32> to vector<16x32xf32>
    %47 = vector.extract_strided_slice %37 {offsets = [0, 96], sizes = [16, 32], strides = [1, 1]} : vector<16x128xf32> to vector<16x32xf32>
    %48 = tpu.concatenate %44, %45, %46, %47 in 0 : vector<16x32xf32>, vector<16x32xf32>, vector<16x32xf32>, vector<16x32xf32> -> vector<64x32xf32>
    %49 = vector.extract_strided_slice %38 {offsets = [0, 0], sizes = [16, 32], strides = [1, 1]} : vector<16x128xf32> to vector<16x32xf32>
    %50 = vector.extract_strided_slice %38 {offsets = [0, 32], sizes = [16, 32], strides = [1, 1]} : vector<16x128xf32> to vector<16x32xf32>
    %51 = vector.extract_strided_slice %38 {offsets = [0, 64], sizes = [16, 32], strides = [1, 1]} : vector<16x128xf32> to vector<16x32xf32>
    %52 = vector.extract_strided_slice %38 {offsets = [0, 96], sizes = [16, 32], strides = [1, 1]} : vector<16x128xf32> to vector<16x32xf32>
    %53 = tpu.concatenate %49, %50, %51, %52 in 0 : vector<16x32xf32>, vector<16x32xf32>, vector<16x32xf32>, vector<16x32xf32> -> vector<64x32xf32>
    %54 = arith.truncf %43 : vector<64x32xf32> to vector<64x32xbf16>
    %55 = arith.truncf %48 : vector<64x32xf32> to vector<64x32xbf16>
    %cst_22 = arith.constant dense<0.000000e+00> : vector<64x64xf32>
    %56 = tpu.matmul %54, %55, %cst_22 {dimension_numbers = #tpu.dot_dimension_numbers<[1], [1], [0], [0], [0, 0, 1, 0], [], []>} : vector<64x32xbf16>, vector<64x32xbf16>, vector<64x64xf32> -> vector<64x64xf32>
    %57 = arith.addf %56, %26 : vector<64x64xf32>
    %cst_23 = arith.constant dense<0xFF800000> : vector<64xf32>
    %58 = vector.multi_reduction <maximumf>, %57, %cst_23 [1] : vector<64x64xf32> to vector<64xf32>
    %59 = vector.shape_cast %58 : vector<64xf32> to vector<64x1xf32>
    %60 = vector.broadcast %59 : vector<64x1xf32> to vector<64x64xf32>
    %61 = arith.subf %57, %60 : vector<64x64xf32>
    %62 = math.exp %61 : vector<64x64xf32>
    %cst_24 = arith.constant dense<0.000000e+00> : vector<64xf32>
    %63 = vector.multi_reduction <add>, %62, %cst_24 [1] : vector<64x64xf32> to vector<64xf32>
    %64 = vector.shape_cast %63 : vector<64xf32> to vector<64x1xf32>
    %65 = tpu.reciprocal %64 {approx = true} : vector<64x1xf32> -> vector<64x1xf32>
    %66 = vector.broadcast %65 : vector<64x1xf32> to vector<64x64xf32>
    %67 = arith.mulf %62, %66 : vector<64x64xf32>
    %68 = arith.truncf %67 : vector<64x64xf32> to vector<64x64xbf16>
    %69 = arith.truncf %53 : vector<64x32xf32> to vector<64x32xbf16>
    %cst_25 = arith.constant dense<0.000000e+00> : vector<64x32xf32>
    %70 = tpu.matmul %68, %69, %cst_25 {dimension_numbers = #tpu.dot_dimension_numbers<[1], [0], [0], [1], [0, 0, 1, 1], [], []>} : vector<64x64xbf16>, vector<64x32xbf16>, vector<64x32xf32> -> vector<64x32xf32>
    %71 = vector.extract_strided_slice %70 {offsets = [0, 0], sizes = [16, 32], strides = [1, 1]} : vector<64x32xf32> to vector<16x32xf32>
    %72 = vector.extract_strided_slice %70 {offsets = [16, 0], sizes = [16, 32], strides = [1, 1]} : vector<64x32xf32> to vector<16x32xf32>
    %73 = vector.extract_strided_slice %70 {offsets = [32, 0], sizes = [16, 32], strides = [1, 1]} : vector<64x32xf32> to vector<16x32xf32>
    %74 = vector.extract_strided_slice %70 {offsets = [48, 0], sizes = [16, 32], strides = [1, 1]} : vector<64x32xf32> to vector<16x32xf32>
    %75 = tpu.concatenate %71, %72, %73, %74 in 1 : vector<16x32xf32>, vector<16x32xf32>, vector<16x32xf32>, vector<16x32xf32> -> vector<16x128xf32>
    %c0_26 = arith.constant 0 : index
    %c0_27 = arith.constant 0 : index
    %c0_28 = arith.constant 0 : index
    %76 = vector.load %arg8[%c0_26, %c0_27, %c0_28] : memref<2x128x128xbf16, #tpu.memory_space<vmem>>, vector<1x128x128xbf16>
    %77 = vector.shape_cast %76 : vector<1x128x128xbf16> to vector<128x128xbf16>
    %78 = arith.truncf %75 : vector<16x128xf32> to vector<16x128xbf16>
    %cst_29 = arith.constant dense<0.000000e+00> : vector<16x128xf32>
    %79 = tpu.matmul %78, %77, %cst_29 {dimension_numbers = #tpu.dot_dimension_numbers<[1], [0], [0], [1], [0, 0, 1, 1], [], []>} : vector<16x128xbf16>, vector<128x128xbf16>, vector<16x128xf32> -> vector<16x128xf32>
    %80 = arith.addf %24, %79 : vector<16x128xf32>
    %c0_30 = arith.constant 0 : index
    %c0_31 = arith.constant 0 : index
    %c0_32 = arith.constant 0 : index
    %81 = vector.load %arg9[%c0_30, %c0_31, %c0_32] : memref<2x1x128xf32, #tpu.memory_space<vmem>>, vector<1x1x128xf32>
    %82 = vector.shape_cast %81 : vector<1x1x128xf32> to vector<1x128xf32>
    %83 = vector.broadcast %82 : vector<1x128xf32> to vector<16x128xf32>
    %84 = arith.addf %80, %83 : vector<16x128xf32>
    %c0_33 = arith.constant 0 : index
    %c0_34 = arith.constant 0 : index
    %c0_35 = arith.constant 0 : index
    %85 = vector.load %arg10[%c0_33, %c0_34, %c0_35] : memref<2x1x128xf32, #tpu.memory_space<vmem>>, vector<1x1x128xf32>
    %86 = vector.shape_cast %85 : vector<1x1x128xf32> to vector<1x128xf32>
    %c0_36 = arith.constant 0 : index
    %c0_37 = arith.constant 0 : index
    %c0_38 = arith.constant 0 : index
    %87 = vector.load %arg11[%c0_36, %c0_37, %c0_38] : memref<2x1x128xf32, #tpu.memory_space<vmem>>, vector<1x1x128xf32>
    %88 = vector.shape_cast %87 : vector<1x1x128xf32> to vector<1x128xf32>
    %cst_39 = arith.constant dense<0.000000e+00> : vector<16xf32>
    %89 = vector.multi_reduction <add>, %84, %cst_39 [1] : vector<16x128xf32> to vector<16xf32>
    %90 = vector.shape_cast %89 : vector<16xf32> to vector<16x1xf32>
    %cst_40 = arith.constant 1.280000e+02 : f32
    %91 = vector.broadcast %cst_40 : f32 to vector<16x1xf32>
    %92 = arith.divf %90, %91 : vector<16x1xf32>
    %93 = vector.broadcast %92 : vector<16x1xf32> to vector<16x128xf32>
    %94 = arith.subf %84, %93 : vector<16x128xf32>
    %95 = arith.mulf %94, %94 : vector<16x128xf32>
    %cst_41 = arith.constant dense<0.000000e+00> : vector<16xf32>
    %96 = vector.multi_reduction <add>, %95, %cst_41 [1] : vector<16x128xf32> to vector<16xf32>
    %97 = vector.shape_cast %96 : vector<16xf32> to vector<16x1xf32>
    %cst_42 = arith.constant 1.280000e+02 : f32
    %98 = vector.broadcast %cst_42 : f32 to vector<16x1xf32>
    %99 = arith.divf %97, %98 : vector<16x1xf32>
    %100 = vector.broadcast %92 : vector<16x1xf32> to vector<16x128xf32>
    %101 = arith.subf %84, %100 : vector<16x128xf32>
    %cst_43 = arith.constant 9.99999974E-6 : f32
    %102 = vector.broadcast %cst_43 : f32 to vector<16x1xf32>
    %103 = arith.addf %99, %102 : vector<16x1xf32>
    %104 = math.rsqrt %103 : vector<16x1xf32>
    %105 = vector.broadcast %104 : vector<16x1xf32> to vector<16x128xf32>
    %106 = arith.mulf %101, %105 : vector<16x128xf32>
    %107 = vector.broadcast %86 : vector<1x128xf32> to vector<16x128xf32>
    %108 = arith.mulf %106, %107 : vector<16x128xf32>
    %109 = vector.broadcast %88 : vector<1x128xf32> to vector<16x128xf32>
    %110 = arith.addf %108, %109 : vector<16x128xf32>
    %c0_44 = arith.constant 0 : index
    %c0_45 = arith.constant 0 : index
    %c0_46 = arith.constant 0 : index
    %111 = vector.load %arg12[%c0_44, %c0_45, %c0_46] : memref<2x128x128xbf16, #tpu.memory_space<vmem>>, vector<1x128x128xbf16>
    %112 = vector.shape_cast %111 : vector<1x128x128xbf16> to vector<128x128xbf16>
    %113 = arith.truncf %110 : vector<16x128xf32> to vector<16x128xbf16>
    %cst_47 = arith.constant dense<0.000000e+00> : vector<16x128xf32>
    %114 = tpu.matmul %113, %112, %cst_47 {dimension_numbers = #tpu.dot_dimension_numbers<[1], [0], [0], [1], [0, 0, 1, 1], [], []>} : vector<16x128xbf16>, vector<128x128xbf16>, vector<16x128xf32> -> vector<16x128xf32>
    %c0_48 = arith.constant 0 : index
    %c0_49 = arith.constant 0 : index
    %c0_50 = arith.constant 0 : index
    %115 = vector.load %arg13[%c0_48, %c0_49, %c0_50] : memref<2x1x128xf32, #tpu.memory_space<vmem>>, vector<1x1x128xf32>
    %116 = vector.shape_cast %115 : vector<1x1x128xf32> to vector<1x128xf32>
    %117 = vector.broadcast %116 : vector<1x128xf32> to vector<16x128xf32>
    %118 = arith.addf %114, %117 : vector<16x128xf32>
    %c0_51 = arith.constant 0 : index
    %c0_52 = arith.constant 0 : index
    %c0_53 = arith.constant 0 : index
    %119 = vector.load %arg14[%c0_51, %c0_52, %c0_53] : memref<2x128x256xbf16, #tpu.memory_space<vmem>>, vector<1x128x256xbf16>
    %120 = vector.shape_cast %119 : vector<1x128x256xbf16> to vector<128x256xbf16>
    %cst_54 = arith.constant dense<0.000000e+00> : vector<16x256xf32>
    %121 = tpu.matmul %25, %120, %cst_54 {dimension_numbers = #tpu.dot_dimension_numbers<[1], [0], [0], [1], [0, 0, 1, 1], [], []>} : vector<16x128xbf16>, vector<128x256xbf16>, vector<16x256xf32> -> vector<16x256xf32>
    %c0_55 = arith.constant 0 : index
    %c0_56 = arith.constant 0 : index
    %c0_57 = arith.constant 0 : index
    %122 = vector.load %arg15[%c0_55, %c0_56, %c0_57] : memref<2x1x256xf32, #tpu.memory_space<vmem>>, vector<1x1x256xf32>
    %123 = vector.shape_cast %122 : vector<1x1x256xf32> to vector<1x256xf32>
    %124 = vector.broadcast %123 : vector<1x256xf32> to vector<16x256xf32>
    %125 = arith.addf %121, %124 : vector<16x256xf32>
    %126 = vector.extract_strided_slice %125 {offsets = [0, 0], sizes = [16, 128], strides = [1, 1]} : vector<16x256xf32> to vector<16x128xf32>
    %127 = vector.extract_strided_slice %125 {offsets = [0, 128], sizes = [16, 128], strides = [1, 1]} : vector<16x256xf32> to vector<16x128xf32>
    %128 = vector.extract_strided_slice %118 {offsets = [0, 0], sizes = [16, 32], strides = [1, 1]} : vector<16x128xf32> to vector<16x32xf32>
    %129 = vector.extract_strided_slice %118 {offsets = [0, 32], sizes = [16, 32], strides = [1, 1]} : vector<16x128xf32> to vector<16x32xf32>
    %130 = vector.extract_strided_slice %118 {offsets = [0, 64], sizes = [16, 32], strides = [1, 1]} : vector<16x128xf32> to vector<16x32xf32>
    %131 = vector.extract_strided_slice %118 {offsets = [0, 96], sizes = [16, 32], strides = [1, 1]} : vector<16x128xf32> to vector<16x32xf32>
    %132 = tpu.concatenate %128, %129, %130, %131 in 0 : vector<16x32xf32>, vector<16x32xf32>, vector<16x32xf32>, vector<16x32xf32> -> vector<64x32xf32>
    %133 = vector.extract_strided_slice %126 {offsets = [0, 0], sizes = [16, 32], strides = [1, 1]} : vector<16x128xf32> to vector<16x32xf32>
    %134 = vector.extract_strided_slice %126 {offsets = [0, 32], sizes = [16, 32], strides = [1, 1]} : vector<16x128xf32> to vector<16x32xf32>
    %135 = vector.extract_strided_slice %126 {offsets = [0, 64], sizes = [16, 32], strides = [1, 1]} : vector<16x128xf32> to vector<16x32xf32>
    %136 = vector.extract_strided_slice %126 {offsets = [0, 96], sizes = [16, 32], strides = [1, 1]} : vector<16x128xf32> to vector<16x32xf32>
    %137 = tpu.concatenate %133, %134, %135, %136 in 0 : vector<16x32xf32>, vector<16x32xf32>, vector<16x32xf32>, vector<16x32xf32> -> vector<64x32xf32>
    %138 = vector.extract_strided_slice %127 {offsets = [0, 0], sizes = [16, 32], strides = [1, 1]} : vector<16x128xf32> to vector<16x32xf32>
    %139 = vector.extract_strided_slice %127 {offsets = [0, 32], sizes = [16, 32], strides = [1, 1]} : vector<16x128xf32> to vector<16x32xf32>
    %140 = vector.extract_strided_slice %127 {offsets = [0, 64], sizes = [16, 32], strides = [1, 1]} : vector<16x128xf32> to vector<16x32xf32>
    %141 = vector.extract_strided_slice %127 {offsets = [0, 96], sizes = [16, 32], strides = [1, 1]} : vector<16x128xf32> to vector<16x32xf32>
    %142 = tpu.concatenate %138, %139, %140, %141 in 0 : vector<16x32xf32>, vector<16x32xf32>, vector<16x32xf32>, vector<16x32xf32> -> vector<64x32xf32>
    %143 = arith.truncf %132 : vector<64x32xf32> to vector<64x32xbf16>
    %144 = arith.truncf %137 : vector<64x32xf32> to vector<64x32xbf16>
    %cst_58 = arith.constant dense<0.000000e+00> : vector<64x64xf32>
    %145 = tpu.matmul %143, %144, %cst_58 {dimension_numbers = #tpu.dot_dimension_numbers<[1], [1], [0], [0], [0, 0, 1, 0], [], []>} : vector<64x32xbf16>, vector<64x32xbf16>, vector<64x64xf32> -> vector<64x64xf32>
    %146 = arith.addf %145, %27 : vector<64x64xf32>
    %cst_59 = arith.constant dense<0xFF800000> : vector<64xf32>
    %147 = vector.multi_reduction <maximumf>, %146, %cst_59 [1] : vector<64x64xf32> to vector<64xf32>
    %148 = vector.shape_cast %147 : vector<64xf32> to vector<64x1xf32>
    %149 = vector.broadcast %148 : vector<64x1xf32> to vector<64x64xf32>
    %150 = arith.subf %146, %149 : vector<64x64xf32>
    %151 = math.exp %150 : vector<64x64xf32>
    %cst_60 = arith.constant dense<0.000000e+00> : vector<64xf32>
    %152 = vector.multi_reduction <add>, %151, %cst_60 [1] : vector<64x64xf32> to vector<64xf32>
    %153 = vector.shape_cast %152 : vector<64xf32> to vector<64x1xf32>
    %154 = tpu.reciprocal %153 {approx = true} : vector<64x1xf32> -> vector<64x1xf32>
    %155 = vector.broadcast %154 : vector<64x1xf32> to vector<64x64xf32>
    %156 = arith.mulf %151, %155 : vector<64x64xf32>
    %157 = arith.truncf %156 : vector<64x64xf32> to vector<64x64xbf16>
    %158 = arith.truncf %142 : vector<64x32xf32> to vector<64x32xbf16>
    %cst_61 = arith.constant dense<0.000000e+00> : vector<64x32xf32>
    %159 = tpu.matmul %157, %158, %cst_61 {dimension_numbers = #tpu.dot_dimension_numbers<[1], [0], [0], [1], [0, 0, 1, 1], [], []>} : vector<64x64xbf16>, vector<64x32xbf16>, vector<64x32xf32> -> vector<64x32xf32>
    %160 = vector.extract_strided_slice %159 {offsets = [0, 0], sizes = [16, 32], strides = [1, 1]} : vector<64x32xf32> to vector<16x32xf32>
    %161 = vector.extract_strided_slice %159 {offsets = [16, 0], sizes = [16, 32], strides = [1, 1]} : vector<64x32xf32> to vector<16x32xf32>
    %162 = vector.extract_strided_slice %159 {offsets = [32, 0], sizes = [16, 32], strides = [1, 1]} : vector<64x32xf32> to vector<16x32xf32>
    %163 = vector.extract_strided_slice %159 {offsets = [48, 0], sizes = [16, 32], strides = [1, 1]} : vector<64x32xf32> to vector<16x32xf32>
    %164 = tpu.concatenate %160, %161, %162, %163 in 1 : vector<16x32xf32>, vector<16x32xf32>, vector<16x32xf32>, vector<16x32xf32> -> vector<16x128xf32>
    %c0_62 = arith.constant 0 : index
    %c0_63 = arith.constant 0 : index
    %c0_64 = arith.constant 0 : index
    %165 = vector.load %arg16[%c0_62, %c0_63, %c0_64] : memref<2x128x128xbf16, #tpu.memory_space<vmem>>, vector<1x128x128xbf16>
    %166 = vector.shape_cast %165 : vector<1x128x128xbf16> to vector<128x128xbf16>
    %167 = arith.truncf %164 : vector<16x128xf32> to vector<16x128xbf16>
    %cst_65 = arith.constant dense<0.000000e+00> : vector<16x128xf32>
    %168 = tpu.matmul %167, %166, %cst_65 {dimension_numbers = #tpu.dot_dimension_numbers<[1], [0], [0], [1], [0, 0, 1, 1], [], []>} : vector<16x128xbf16>, vector<128x128xbf16>, vector<16x128xf32> -> vector<16x128xf32>
    %169 = arith.addf %110, %168 : vector<16x128xf32>
    %c0_66 = arith.constant 0 : index
    %c0_67 = arith.constant 0 : index
    %c0_68 = arith.constant 0 : index
    %170 = vector.load %arg17[%c0_66, %c0_67, %c0_68] : memref<2x1x128xf32, #tpu.memory_space<vmem>>, vector<1x1x128xf32>
    %171 = vector.shape_cast %170 : vector<1x1x128xf32> to vector<1x128xf32>
    %172 = vector.broadcast %171 : vector<1x128xf32> to vector<16x128xf32>
    %173 = arith.addf %169, %172 : vector<16x128xf32>
    %c0_69 = arith.constant 0 : index
    %c0_70 = arith.constant 0 : index
    %c0_71 = arith.constant 0 : index
    %174 = vector.load %arg18[%c0_69, %c0_70, %c0_71] : memref<2x1x128xf32, #tpu.memory_space<vmem>>, vector<1x1x128xf32>
    %175 = vector.shape_cast %174 : vector<1x1x128xf32> to vector<1x128xf32>
    %c0_72 = arith.constant 0 : index
    %c0_73 = arith.constant 0 : index
    %c0_74 = arith.constant 0 : index
    %176 = vector.load %arg19[%c0_72, %c0_73, %c0_74] : memref<2x1x128xf32, #tpu.memory_space<vmem>>, vector<1x1x128xf32>
    %177 = vector.shape_cast %176 : vector<1x1x128xf32> to vector<1x128xf32>
    %cst_75 = arith.constant dense<0.000000e+00> : vector<16xf32>
    %178 = vector.multi_reduction <add>, %173, %cst_75 [1] : vector<16x128xf32> to vector<16xf32>
    %179 = vector.shape_cast %178 : vector<16xf32> to vector<16x1xf32>
    %cst_76 = arith.constant 1.280000e+02 : f32
    %180 = vector.broadcast %cst_76 : f32 to vector<16x1xf32>
    %181 = arith.divf %179, %180 : vector<16x1xf32>
    %182 = vector.broadcast %181 : vector<16x1xf32> to vector<16x128xf32>
    %183 = arith.subf %173, %182 : vector<16x128xf32>
    %184 = arith.mulf %183, %183 : vector<16x128xf32>
    %cst_77 = arith.constant dense<0.000000e+00> : vector<16xf32>
    %185 = vector.multi_reduction <add>, %184, %cst_77 [1] : vector<16x128xf32> to vector<16xf32>
    %186 = vector.shape_cast %185 : vector<16xf32> to vector<16x1xf32>
    %cst_78 = arith.constant 1.280000e+02 : f32
    %187 = vector.broadcast %cst_78 : f32 to vector<16x1xf32>
    %188 = arith.divf %186, %187 : vector<16x1xf32>
    %189 = vector.broadcast %181 : vector<16x1xf32> to vector<16x128xf32>
    %190 = arith.subf %173, %189 : vector<16x128xf32>
    %cst_79 = arith.constant 9.99999974E-6 : f32
    %191 = vector.broadcast %cst_79 : f32 to vector<16x1xf32>
    %192 = arith.addf %188, %191 : vector<16x1xf32>
    %193 = math.rsqrt %192 : vector<16x1xf32>
    %194 = vector.broadcast %193 : vector<16x1xf32> to vector<16x128xf32>
    %195 = arith.mulf %190, %194 : vector<16x128xf32>
    %196 = vector.broadcast %175 : vector<1x128xf32> to vector<16x128xf32>
    %197 = arith.mulf %195, %196 : vector<16x128xf32>
    %198 = vector.broadcast %177 : vector<1x128xf32> to vector<16x128xf32>
    %199 = arith.addf %197, %198 : vector<16x128xf32>
    %c0_80 = arith.constant 0 : index
    %c0_81 = arith.constant 0 : index
    %c0_82 = arith.constant 0 : index
    %200 = vector.load %arg20[%c0_80, %c0_81, %c0_82] : memref<2x128x256xbf16, #tpu.memory_space<vmem>>, vector<1x128x256xbf16>
    %201 = vector.shape_cast %200 : vector<1x128x256xbf16> to vector<128x256xbf16>
    %202 = arith.truncf %199 : vector<16x128xf32> to vector<16x128xbf16>
    %cst_83 = arith.constant dense<0.000000e+00> : vector<16x256xf32>
    %203 = tpu.matmul %202, %201, %cst_83 {dimension_numbers = #tpu.dot_dimension_numbers<[1], [0], [0], [1], [0, 0, 1, 1], [], []>} : vector<16x128xbf16>, vector<128x256xbf16>, vector<16x256xf32> -> vector<16x256xf32>
    %c0_84 = arith.constant 0 : index
    %c0_85 = arith.constant 0 : index
    %c0_86 = arith.constant 0 : index
    %204 = vector.load %arg21[%c0_84, %c0_85, %c0_86] : memref<2x1x256xf32, #tpu.memory_space<vmem>>, vector<1x1x256xf32>
    %205 = vector.shape_cast %204 : vector<1x1x256xf32> to vector<1x256xf32>
    %206 = vector.broadcast %205 : vector<1x256xf32> to vector<16x256xf32>
    %207 = arith.addf %203, %206 : vector<16x256xf32>
    %208 = arith.mulf %207, %207 : vector<16x256xf32>
    %209 = arith.mulf %207, %208 : vector<16x256xf32>
    %cst_87 = arith.constant 4.471500e-02 : f32
    %210 = vector.broadcast %cst_87 : f32 to vector<16x256xf32>
    %211 = arith.mulf %210, %209 : vector<16x256xf32>
    %212 = arith.addf %207, %211 : vector<16x256xf32>
    %cst_88 = arith.constant 0.797884583 : f32
    %213 = vector.broadcast %cst_88 : f32 to vector<16x256xf32>
    %214 = arith.mulf %213, %212 : vector<16x256xf32>
    %215 = math.tanh %214 : vector<16x256xf32>
    %cst_89 = arith.constant 1.000000e+00 : f32
    %216 = vector.broadcast %cst_89 : f32 to vector<16x256xf32>
    %217 = arith.addf %216, %215 : vector<16x256xf32>
    %cst_90 = arith.constant 5.000000e-01 : f32
    %218 = vector.broadcast %cst_90 : f32 to vector<16x256xf32>
    %219 = arith.mulf %218, %217 : vector<16x256xf32>
    %220 = arith.mulf %207, %219 : vector<16x256xf32>
    %c0_91 = arith.constant 0 : index
    %c0_92 = arith.constant 0 : index
    %c0_93 = arith.constant 0 : index
    %221 = vector.load %arg22[%c0_91, %c0_92, %c0_93] : memref<2x256x128xbf16, #tpu.memory_space<vmem>>, vector<1x256x128xbf16>
    %222 = vector.shape_cast %221 : vector<1x256x128xbf16> to vector<256x128xbf16>
    %223 = arith.truncf %220 : vector<16x256xf32> to vector<16x256xbf16>
    %cst_94 = arith.constant dense<0.000000e+00> : vector<16x128xf32>
    %224 = tpu.matmul %223, %222, %cst_94 {dimension_numbers = #tpu.dot_dimension_numbers<[1], [0], [0], [1], [0, 0, 1, 1], [], []>} : vector<16x256xbf16>, vector<256x128xbf16>, vector<16x128xf32> -> vector<16x128xf32>
    %225 = arith.addf %199, %224 : vector<16x128xf32>
    %c0_95 = arith.constant 0 : index
    %c0_96 = arith.constant 0 : index
    %c0_97 = arith.constant 0 : index
    %226 = vector.load %arg23[%c0_95, %c0_96, %c0_97] : memref<2x1x128xf32, #tpu.memory_space<vmem>>, vector<1x1x128xf32>
    %227 = vector.shape_cast %226 : vector<1x1x128xf32> to vector<1x128xf32>
    %228 = vector.broadcast %227 : vector<1x128xf32> to vector<16x128xf32>
    %229 = arith.addf %225, %228 : vector<16x128xf32>
    %c0_98 = arith.constant 0 : index
    %c0_99 = arith.constant 0 : index
    %c0_100 = arith.constant 0 : index
    %230 = vector.load %arg24[%c0_98, %c0_99, %c0_100] : memref<2x1x128xf32, #tpu.memory_space<vmem>>, vector<1x1x128xf32>
    %231 = vector.shape_cast %230 : vector<1x1x128xf32> to vector<1x128xf32>
    %c0_101 = arith.constant 0 : index
    %c0_102 = arith.constant 0 : index
    %c0_103 = arith.constant 0 : index
    %232 = vector.load %arg25[%c0_101, %c0_102, %c0_103] : memref<2x1x128xf32, #tpu.memory_space<vmem>>, vector<1x1x128xf32>
    %233 = vector.shape_cast %232 : vector<1x1x128xf32> to vector<1x128xf32>
    %cst_104 = arith.constant dense<0.000000e+00> : vector<16xf32>
    %234 = vector.multi_reduction <add>, %229, %cst_104 [1] : vector<16x128xf32> to vector<16xf32>
    %235 = vector.shape_cast %234 : vector<16xf32> to vector<16x1xf32>
    %cst_105 = arith.constant 1.280000e+02 : f32
    %236 = vector.broadcast %cst_105 : f32 to vector<16x1xf32>
    %237 = arith.divf %235, %236 : vector<16x1xf32>
    %238 = vector.broadcast %237 : vector<16x1xf32> to vector<16x128xf32>
    %239 = arith.subf %229, %238 : vector<16x128xf32>
    %240 = arith.mulf %239, %239 : vector<16x128xf32>
    %cst_106 = arith.constant dense<0.000000e+00> : vector<16xf32>
    %241 = vector.multi_reduction <add>, %240, %cst_106 [1] : vector<16x128xf32> to vector<16xf32>
    %242 = vector.shape_cast %241 : vector<16xf32> to vector<16x1xf32>
    %cst_107 = arith.constant 1.280000e+02 : f32
    %243 = vector.broadcast %cst_107 : f32 to vector<16x1xf32>
    %244 = arith.divf %242, %243 : vector<16x1xf32>
    %245 = vector.broadcast %237 : vector<16x1xf32> to vector<16x128xf32>
    %246 = arith.subf %229, %245 : vector<16x128xf32>
    %cst_108 = arith.constant 9.99999974E-6 : f32
    %247 = vector.broadcast %cst_108 : f32 to vector<16x1xf32>
    %248 = arith.addf %244, %247 : vector<16x1xf32>
    %249 = math.rsqrt %248 : vector<16x1xf32>
    %250 = vector.broadcast %249 : vector<16x1xf32> to vector<16x128xf32>
    %251 = arith.mulf %246, %250 : vector<16x128xf32>
    %252 = vector.broadcast %231 : vector<1x128xf32> to vector<16x128xf32>
    %253 = arith.mulf %251, %252 : vector<16x128xf32>
    %254 = vector.broadcast %233 : vector<1x128xf32> to vector<16x128xf32>
    %255 = arith.addf %253, %254 : vector<16x128xf32>
    %c1 = arith.constant 1 : index
    %c0_109 = arith.constant 0 : index
    %c0_110 = arith.constant 0 : index
    %256 = vector.load %arg6[%c1, %c0_109, %c0_110] : memref<2x128x384xbf16, #tpu.memory_space<vmem>>, vector<1x128x384xbf16>
    %257 = vector.shape_cast %256 : vector<1x128x384xbf16> to vector<128x384xbf16>
    %258 = arith.truncf %255 : vector<16x128xf32> to vector<16x128xbf16>
    %cst_111 = arith.constant dense<0.000000e+00> : vector<16x384xf32>
    %259 = tpu.matmul %258, %257, %cst_111 {dimension_numbers = #tpu.dot_dimension_numbers<[1], [0], [0], [1], [0, 0, 1, 1], [], []>} : vector<16x128xbf16>, vector<128x384xbf16>, vector<16x384xf32> -> vector<16x384xf32>
    %c1_112 = arith.constant 1 : index
    %c0_113 = arith.constant 0 : index
    %c0_114 = arith.constant 0 : index
    %260 = vector.load %arg7[%c1_112, %c0_113, %c0_114] : memref<2x1x384xf32, #tpu.memory_space<vmem>>, vector<1x1x384xf32>
    %261 = vector.shape_cast %260 : vector<1x1x384xf32> to vector<1x384xf32>
    %262 = vector.broadcast %261 : vector<1x384xf32> to vector<16x384xf32>
    %263 = arith.addf %259, %262 : vector<16x384xf32>
    %264 = vector.extract_strided_slice %263 {offsets = [0, 0], sizes = [16, 128], strides = [1, 1]} : vector<16x384xf32> to vector<16x128xf32>
    %265 = vector.extract_strided_slice %263 {offsets = [0, 128], sizes = [16, 128], strides = [1, 1]} : vector<16x384xf32> to vector<16x128xf32>
    %266 = vector.extract_strided_slice %263 {offsets = [0, 256], sizes = [16, 128], strides = [1, 1]} : vector<16x384xf32> to vector<16x128xf32>
    %267 = vector.extract_strided_slice %264 {offsets = [0, 0], sizes = [16, 32], strides = [1, 1]} : vector<16x128xf32> to vector<16x32xf32>
    %268 = vector.extract_strided_slice %264 {offsets = [0, 32], sizes = [16, 32], strides = [1, 1]} : vector<16x128xf32> to vector<16x32xf32>
    %269 = vector.extract_strided_slice %264 {offsets = [0, 64], sizes = [16, 32], strides = [1, 1]} : vector<16x128xf32> to vector<16x32xf32>
    %270 = vector.extract_strided_slice %264 {offsets = [0, 96], sizes = [16, 32], strides = [1, 1]} : vector<16x128xf32> to vector<16x32xf32>
    %271 = tpu.concatenate %267, %268, %269, %270 in 0 : vector<16x32xf32>, vector<16x32xf32>, vector<16x32xf32>, vector<16x32xf32> -> vector<64x32xf32>
    %272 = vector.extract_strided_slice %265 {offsets = [0, 0], sizes = [16, 32], strides = [1, 1]} : vector<16x128xf32> to vector<16x32xf32>
    %273 = vector.extract_strided_slice %265 {offsets = [0, 32], sizes = [16, 32], strides = [1, 1]} : vector<16x128xf32> to vector<16x32xf32>
    %274 = vector.extract_strided_slice %265 {offsets = [0, 64], sizes = [16, 32], strides = [1, 1]} : vector<16x128xf32> to vector<16x32xf32>
    %275 = vector.extract_strided_slice %265 {offsets = [0, 96], sizes = [16, 32], strides = [1, 1]} : vector<16x128xf32> to vector<16x32xf32>
    %276 = tpu.concatenate %272, %273, %274, %275 in 0 : vector<16x32xf32>, vector<16x32xf32>, vector<16x32xf32>, vector<16x32xf32> -> vector<64x32xf32>
    %277 = vector.extract_strided_slice %266 {offsets = [0, 0], sizes = [16, 32], strides = [1, 1]} : vector<16x128xf32> to vector<16x32xf32>
    %278 = vector.extract_strided_slice %266 {offsets = [0, 32], sizes = [16, 32], strides = [1, 1]} : vector<16x128xf32> to vector<16x32xf32>
    %279 = vector.extract_strided_slice %266 {offsets = [0, 64], sizes = [16, 32], strides = [1, 1]} : vector<16x128xf32> to vector<16x32xf32>
    %280 = vector.extract_strided_slice %266 {offsets = [0, 96], sizes = [16, 32], strides = [1, 1]} : vector<16x128xf32> to vector<16x32xf32>
    %281 = tpu.concatenate %277, %278, %279, %280 in 0 : vector<16x32xf32>, vector<16x32xf32>, vector<16x32xf32>, vector<16x32xf32> -> vector<64x32xf32>
    %282 = arith.truncf %271 : vector<64x32xf32> to vector<64x32xbf16>
    %283 = arith.truncf %276 : vector<64x32xf32> to vector<64x32xbf16>
    %cst_115 = arith.constant dense<0.000000e+00> : vector<64x64xf32>
    %284 = tpu.matmul %282, %283, %cst_115 {dimension_numbers = #tpu.dot_dimension_numbers<[1], [1], [0], [0], [0, 0, 1, 0], [], []>} : vector<64x32xbf16>, vector<64x32xbf16>, vector<64x64xf32> -> vector<64x64xf32>
    %285 = arith.addf %284, %26 : vector<64x64xf32>
    %cst_116 = arith.constant dense<0xFF800000> : vector<64xf32>
    %286 = vector.multi_reduction <maximumf>, %285, %cst_116 [1] : vector<64x64xf32> to vector<64xf32>
    %287 = vector.shape_cast %286 : vector<64xf32> to vector<64x1xf32>
    %288 = vector.broadcast %287 : vector<64x1xf32> to vector<64x64xf32>
    %289 = arith.subf %285, %288 : vector<64x64xf32>
    %290 = math.exp %289 : vector<64x64xf32>
    %cst_117 = arith.constant dense<0.000000e+00> : vector<64xf32>
    %291 = vector.multi_reduction <add>, %290, %cst_117 [1] : vector<64x64xf32> to vector<64xf32>
    %292 = vector.shape_cast %291 : vector<64xf32> to vector<64x1xf32>
    %293 = tpu.reciprocal %292 {approx = true} : vector<64x1xf32> -> vector<64x1xf32>
    %294 = vector.broadcast %293 : vector<64x1xf32> to vector<64x64xf32>
    %295 = arith.mulf %290, %294 : vector<64x64xf32>
    %296 = arith.truncf %295 : vector<64x64xf32> to vector<64x64xbf16>
    %297 = arith.truncf %281 : vector<64x32xf32> to vector<64x32xbf16>
    %cst_118 = arith.constant dense<0.000000e+00> : vector<64x32xf32>
    %298 = tpu.matmul %296, %297, %cst_118 {dimension_numbers = #tpu.dot_dimension_numbers<[1], [0], [0], [1], [0, 0, 1, 1], [], []>} : vector<64x64xbf16>, vector<64x32xbf16>, vector<64x32xf32> -> vector<64x32xf32>
    %299 = vector.extract_strided_slice %298 {offsets = [0, 0], sizes = [16, 32], strides = [1, 1]} : vector<64x32xf32> to vector<16x32xf32>
    %300 = vector.extract_strided_slice %298 {offsets = [16, 0], sizes = [16, 32], strides = [1, 1]} : vector<64x32xf32> to vector<16x32xf32>
    %301 = vector.extract_strided_slice %298 {offsets = [32, 0], sizes = [16, 32], strides = [1, 1]} : vector<64x32xf32> to vector<16x32xf32>
    %302 = vector.extract_strided_slice %298 {offsets = [48, 0], sizes = [16, 32], strides = [1, 1]} : vector<64x32xf32> to vector<16x32xf32>
    %303 = tpu.concatenate %299, %300, %301, %302 in 1 : vector<16x32xf32>, vector<16x32xf32>, vector<16x32xf32>, vector<16x32xf32> -> vector<16x128xf32>
    %c1_119 = arith.constant 1 : index
    %c0_120 = arith.constant 0 : index
    %c0_121 = arith.constant 0 : index
    %304 = vector.load %arg8[%c1_119, %c0_120, %c0_121] : memref<2x128x128xbf16, #tpu.memory_space<vmem>>, vector<1x128x128xbf16>
    %305 = vector.shape_cast %304 : vector<1x128x128xbf16> to vector<128x128xbf16>
    %306 = arith.truncf %303 : vector<16x128xf32> to vector<16x128xbf16>
    %cst_122 = arith.constant dense<0.000000e+00> : vector<16x128xf32>
    %307 = tpu.matmul %306, %305, %cst_122 {dimension_numbers = #tpu.dot_dimension_numbers<[1], [0], [0], [1], [0, 0, 1, 1], [], []>} : vector<16x128xbf16>, vector<128x128xbf16>, vector<16x128xf32> -> vector<16x128xf32>
    %308 = arith.addf %255, %307 : vector<16x128xf32>
    %c1_123 = arith.constant 1 : index
    %c0_124 = arith.constant 0 : index
    %c0_125 = arith.constant 0 : index
    %309 = vector.load %arg9[%c1_123, %c0_124, %c0_125] : memref<2x1x128xf32, #tpu.memory_space<vmem>>, vector<1x1x128xf32>
    %310 = vector.shape_cast %309 : vector<1x1x128xf32> to vector<1x128xf32>
    %311 = vector.broadcast %310 : vector<1x128xf32> to vector<16x128xf32>
    %312 = arith.addf %308, %311 : vector<16x128xf32>
    %c1_126 = arith.constant 1 : index
    %c0_127 = arith.constant 0 : index
    %c0_128 = arith.constant 0 : index
    %313 = vector.load %arg10[%c1_126, %c0_127, %c0_128] : memref<2x1x128xf32, #tpu.memory_space<vmem>>, vector<1x1x128xf32>
    %314 = vector.shape_cast %313 : vector<1x1x128xf32> to vector<1x128xf32>
    %c1_129 = arith.constant 1 : index
    %c0_130 = arith.constant 0 : index
    %c0_131 = arith.constant 0 : index
    %315 = vector.load %arg11[%c1_129, %c0_130, %c0_131] : memref<2x1x128xf32, #tpu.memory_space<vmem>>, vector<1x1x128xf32>
    %316 = vector.shape_cast %315 : vector<1x1x128xf32> to vector<1x128xf32>
    %cst_132 = arith.constant dense<0.000000e+00> : vector<16xf32>
    %317 = vector.multi_reduction <add>, %312, %cst_132 [1] : vector<16x128xf32> to vector<16xf32>
    %318 = vector.shape_cast %317 : vector<16xf32> to vector<16x1xf32>
    %cst_133 = arith.constant 1.280000e+02 : f32
    %319 = vector.broadcast %cst_133 : f32 to vector<16x1xf32>
    %320 = arith.divf %318, %319 : vector<16x1xf32>
    %321 = vector.broadcast %320 : vector<16x1xf32> to vector<16x128xf32>
    %322 = arith.subf %312, %321 : vector<16x128xf32>
    %323 = arith.mulf %322, %322 : vector<16x128xf32>
    %cst_134 = arith.constant dense<0.000000e+00> : vector<16xf32>
    %324 = vector.multi_reduction <add>, %323, %cst_134 [1] : vector<16x128xf32> to vector<16xf32>
    %325 = vector.shape_cast %324 : vector<16xf32> to vector<16x1xf32>
    %cst_135 = arith.constant 1.280000e+02 : f32
    %326 = vector.broadcast %cst_135 : f32 to vector<16x1xf32>
    %327 = arith.divf %325, %326 : vector<16x1xf32>
    %328 = vector.broadcast %320 : vector<16x1xf32> to vector<16x128xf32>
    %329 = arith.subf %312, %328 : vector<16x128xf32>
    %cst_136 = arith.constant 9.99999974E-6 : f32
    %330 = vector.broadcast %cst_136 : f32 to vector<16x1xf32>
    %331 = arith.addf %327, %330 : vector<16x1xf32>
    %332 = math.rsqrt %331 : vector<16x1xf32>
    %333 = vector.broadcast %332 : vector<16x1xf32> to vector<16x128xf32>
    %334 = arith.mulf %329, %333 : vector<16x128xf32>
    %335 = vector.broadcast %314 : vector<1x128xf32> to vector<16x128xf32>
    %336 = arith.mulf %334, %335 : vector<16x128xf32>
    %337 = vector.broadcast %316 : vector<1x128xf32> to vector<16x128xf32>
    %338 = arith.addf %336, %337 : vector<16x128xf32>
    %c1_137 = arith.constant 1 : index
    %c0_138 = arith.constant 0 : index
    %c0_139 = arith.constant 0 : index
    %339 = vector.load %arg12[%c1_137, %c0_138, %c0_139] : memref<2x128x128xbf16, #tpu.memory_space<vmem>>, vector<1x128x128xbf16>
    %340 = vector.shape_cast %339 : vector<1x128x128xbf16> to vector<128x128xbf16>
    %341 = arith.truncf %338 : vector<16x128xf32> to vector<16x128xbf16>
    %cst_140 = arith.constant dense<0.000000e+00> : vector<16x128xf32>
    %342 = tpu.matmul %341, %340, %cst_140 {dimension_numbers = #tpu.dot_dimension_numbers<[1], [0], [0], [1], [0, 0, 1, 1], [], []>} : vector<16x128xbf16>, vector<128x128xbf16>, vector<16x128xf32> -> vector<16x128xf32>
    %c1_141 = arith.constant 1 : index
    %c0_142 = arith.constant 0 : index
    %c0_143 = arith.constant 0 : index
    %343 = vector.load %arg13[%c1_141, %c0_142, %c0_143] : memref<2x1x128xf32, #tpu.memory_space<vmem>>, vector<1x1x128xf32>
    %344 = vector.shape_cast %343 : vector<1x1x128xf32> to vector<1x128xf32>
    %345 = vector.broadcast %344 : vector<1x128xf32> to vector<16x128xf32>
    %346 = arith.addf %342, %345 : vector<16x128xf32>
    %c1_144 = arith.constant 1 : index
    %c0_145 = arith.constant 0 : index
    %c0_146 = arith.constant 0 : index
    %347 = vector.load %arg14[%c1_144, %c0_145, %c0_146] : memref<2x128x256xbf16, #tpu.memory_space<vmem>>, vector<1x128x256xbf16>
    %348 = vector.shape_cast %347 : vector<1x128x256xbf16> to vector<128x256xbf16>
    %cst_147 = arith.constant dense<0.000000e+00> : vector<16x256xf32>
    %349 = tpu.matmul %25, %348, %cst_147 {dimension_numbers = #tpu.dot_dimension_numbers<[1], [0], [0], [1], [0, 0, 1, 1], [], []>} : vector<16x128xbf16>, vector<128x256xbf16>, vector<16x256xf32> -> vector<16x256xf32>
    %c1_148 = arith.constant 1 : index
    %c0_149 = arith.constant 0 : index
    %c0_150 = arith.constant 0 : index
    %350 = vector.load %arg15[%c1_148, %c0_149, %c0_150] : memref<2x1x256xf32, #tpu.memory_space<vmem>>, vector<1x1x256xf32>
    %351 = vector.shape_cast %350 : vector<1x1x256xf32> to vector<1x256xf32>
    %352 = vector.broadcast %351 : vector<1x256xf32> to vector<16x256xf32>
    %353 = arith.addf %349, %352 : vector<16x256xf32>
    %354 = vector.extract_strided_slice %353 {offsets = [0, 0], sizes = [16, 128], strides = [1, 1]} : vector<16x256xf32> to vector<16x128xf32>
    %355 = vector.extract_strided_slice %353 {offsets = [0, 128], sizes = [16, 128], strides = [1, 1]} : vector<16x256xf32> to vector<16x128xf32>
    %356 = vector.extract_strided_slice %346 {offsets = [0, 0], sizes = [16, 32], strides = [1, 1]} : vector<16x128xf32> to vector<16x32xf32>
    %357 = vector.extract_strided_slice %346 {offsets = [0, 32], sizes = [16, 32], strides = [1, 1]} : vector<16x128xf32> to vector<16x32xf32>
    %358 = vector.extract_strided_slice %346 {offsets = [0, 64], sizes = [16, 32], strides = [1, 1]} : vector<16x128xf32> to vector<16x32xf32>
    %359 = vector.extract_strided_slice %346 {offsets = [0, 96], sizes = [16, 32], strides = [1, 1]} : vector<16x128xf32> to vector<16x32xf32>
    %360 = tpu.concatenate %356, %357, %358, %359 in 0 : vector<16x32xf32>, vector<16x32xf32>, vector<16x32xf32>, vector<16x32xf32> -> vector<64x32xf32>
    %361 = vector.extract_strided_slice %354 {offsets = [0, 0], sizes = [16, 32], strides = [1, 1]} : vector<16x128xf32> to vector<16x32xf32>
    %362 = vector.extract_strided_slice %354 {offsets = [0, 32], sizes = [16, 32], strides = [1, 1]} : vector<16x128xf32> to vector<16x32xf32>
    %363 = vector.extract_strided_slice %354 {offsets = [0, 64], sizes = [16, 32], strides = [1, 1]} : vector<16x128xf32> to vector<16x32xf32>
    %364 = vector.extract_strided_slice %354 {offsets = [0, 96], sizes = [16, 32], strides = [1, 1]} : vector<16x128xf32> to vector<16x32xf32>
    %365 = tpu.concatenate %361, %362, %363, %364 in 0 : vector<16x32xf32>, vector<16x32xf32>, vector<16x32xf32>, vector<16x32xf32> -> vector<64x32xf32>
    %366 = vector.extract_strided_slice %355 {offsets = [0, 0], sizes = [16, 32], strides = [1, 1]} : vector<16x128xf32> to vector<16x32xf32>
    %367 = vector.extract_strided_slice %355 {offsets = [0, 32], sizes = [16, 32], strides = [1, 1]} : vector<16x128xf32> to vector<16x32xf32>
    %368 = vector.extract_strided_slice %355 {offsets = [0, 64], sizes = [16, 32], strides = [1, 1]} : vector<16x128xf32> to vector<16x32xf32>
    %369 = vector.extract_strided_slice %355 {offsets = [0, 96], sizes = [16, 32], strides = [1, 1]} : vector<16x128xf32> to vector<16x32xf32>
    %370 = tpu.concatenate %366, %367, %368, %369 in 0 : vector<16x32xf32>, vector<16x32xf32>, vector<16x32xf32>, vector<16x32xf32> -> vector<64x32xf32>
    %371 = arith.truncf %360 : vector<64x32xf32> to vector<64x32xbf16>
    %372 = arith.truncf %365 : vector<64x32xf32> to vector<64x32xbf16>
    %cst_151 = arith.constant dense<0.000000e+00> : vector<64x64xf32>
    %373 = tpu.matmul %371, %372, %cst_151 {dimension_numbers = #tpu.dot_dimension_numbers<[1], [1], [0], [0], [0, 0, 1, 0], [], []>} : vector<64x32xbf16>, vector<64x32xbf16>, vector<64x64xf32> -> vector<64x64xf32>
    %374 = arith.addf %373, %27 : vector<64x64xf32>
    %cst_152 = arith.constant dense<0xFF800000> : vector<64xf32>
    %375 = vector.multi_reduction <maximumf>, %374, %cst_152 [1] : vector<64x64xf32> to vector<64xf32>
    %376 = vector.shape_cast %375 : vector<64xf32> to vector<64x1xf32>
    %377 = vector.broadcast %376 : vector<64x1xf32> to vector<64x64xf32>
    %378 = arith.subf %374, %377 : vector<64x64xf32>
    %379 = math.exp %378 : vector<64x64xf32>
    %cst_153 = arith.constant dense<0.000000e+00> : vector<64xf32>
    %380 = vector.multi_reduction <add>, %379, %cst_153 [1] : vector<64x64xf32> to vector<64xf32>
    %381 = vector.shape_cast %380 : vector<64xf32> to vector<64x1xf32>
    %382 = tpu.reciprocal %381 {approx = true} : vector<64x1xf32> -> vector<64x1xf32>
    %383 = vector.broadcast %382 : vector<64x1xf32> to vector<64x64xf32>
    %384 = arith.mulf %379, %383 : vector<64x64xf32>
    %385 = arith.truncf %384 : vector<64x64xf32> to vector<64x64xbf16>
    %386 = arith.truncf %370 : vector<64x32xf32> to vector<64x32xbf16>
    %cst_154 = arith.constant dense<0.000000e+00> : vector<64x32xf32>
    %387 = tpu.matmul %385, %386, %cst_154 {dimension_numbers = #tpu.dot_dimension_numbers<[1], [0], [0], [1], [0, 0, 1, 1], [], []>} : vector<64x64xbf16>, vector<64x32xbf16>, vector<64x32xf32> -> vector<64x32xf32>
    %388 = vector.extract_strided_slice %387 {offsets = [0, 0], sizes = [16, 32], strides = [1, 1]} : vector<64x32xf32> to vector<16x32xf32>
    %389 = vector.extract_strided_slice %387 {offsets = [16, 0], sizes = [16, 32], strides = [1, 1]} : vector<64x32xf32> to vector<16x32xf32>
    %390 = vector.extract_strided_slice %387 {offsets = [32, 0], sizes = [16, 32], strides = [1, 1]} : vector<64x32xf32> to vector<16x32xf32>
    %391 = vector.extract_strided_slice %387 {offsets = [48, 0], sizes = [16, 32], strides = [1, 1]} : vector<64x32xf32> to vector<16x32xf32>
    %392 = tpu.concatenate %388, %389, %390, %391 in 1 : vector<16x32xf32>, vector<16x32xf32>, vector<16x32xf32>, vector<16x32xf32> -> vector<16x128xf32>
    %c1_155 = arith.constant 1 : index
    %c0_156 = arith.constant 0 : index
    %c0_157 = arith.constant 0 : index
    %393 = vector.load %arg16[%c1_155, %c0_156, %c0_157] : memref<2x128x128xbf16, #tpu.memory_space<vmem>>, vector<1x128x128xbf16>
    %394 = vector.shape_cast %393 : vector<1x128x128xbf16> to vector<128x128xbf16>
    %395 = arith.truncf %392 : vector<16x128xf32> to vector<16x128xbf16>
    %cst_158 = arith.constant dense<0.000000e+00> : vector<16x128xf32>
    %396 = tpu.matmul %395, %394, %cst_158 {dimension_numbers = #tpu.dot_dimension_numbers<[1], [0], [0], [1], [0, 0, 1, 1], [], []>} : vector<16x128xbf16>, vector<128x128xbf16>, vector<16x128xf32> -> vector<16x128xf32>
    %397 = arith.addf %338, %396 : vector<16x128xf32>
    %c1_159 = arith.constant 1 : index
    %c0_160 = arith.constant 0 : index
    %c0_161 = arith.constant 0 : index
    %398 = vector.load %arg17[%c1_159, %c0_160, %c0_161] : memref<2x1x128xf32, #tpu.memory_space<vmem>>, vector<1x1x128xf32>
    %399 = vector.shape_cast %398 : vector<1x1x128xf32> to vector<1x128xf32>
    %400 = vector.broadcast %399 : vector<1x128xf32> to vector<16x128xf32>
    %401 = arith.addf %397, %400 : vector<16x128xf32>
    %c1_162 = arith.constant 1 : index
    %c0_163 = arith.constant 0 : index
    %c0_164 = arith.constant 0 : index
    %402 = vector.load %arg18[%c1_162, %c0_163, %c0_164] : memref<2x1x128xf32, #tpu.memory_space<vmem>>, vector<1x1x128xf32>
    %403 = vector.shape_cast %402 : vector<1x1x128xf32> to vector<1x128xf32>
    %c1_165 = arith.constant 1 : index
    %c0_166 = arith.constant 0 : index
    %c0_167 = arith.constant 0 : index
    %404 = vector.load %arg19[%c1_165, %c0_166, %c0_167] : memref<2x1x128xf32, #tpu.memory_space<vmem>>, vector<1x1x128xf32>
    %405 = vector.shape_cast %404 : vector<1x1x128xf32> to vector<1x128xf32>
    %cst_168 = arith.constant dense<0.000000e+00> : vector<16xf32>
    %406 = vector.multi_reduction <add>, %401, %cst_168 [1] : vector<16x128xf32> to vector<16xf32>
    %407 = vector.shape_cast %406 : vector<16xf32> to vector<16x1xf32>
    %cst_169 = arith.constant 1.280000e+02 : f32
    %408 = vector.broadcast %cst_169 : f32 to vector<16x1xf32>
    %409 = arith.divf %407, %408 : vector<16x1xf32>
    %410 = vector.broadcast %409 : vector<16x1xf32> to vector<16x128xf32>
    %411 = arith.subf %401, %410 : vector<16x128xf32>
    %412 = arith.mulf %411, %411 : vector<16x128xf32>
    %cst_170 = arith.constant dense<0.000000e+00> : vector<16xf32>
    %413 = vector.multi_reduction <add>, %412, %cst_170 [1] : vector<16x128xf32> to vector<16xf32>
    %414 = vector.shape_cast %413 : vector<16xf32> to vector<16x1xf32>
    %cst_171 = arith.constant 1.280000e+02 : f32
    %415 = vector.broadcast %cst_171 : f32 to vector<16x1xf32>
    %416 = arith.divf %414, %415 : vector<16x1xf32>
    %417 = vector.broadcast %409 : vector<16x1xf32> to vector<16x128xf32>
    %418 = arith.subf %401, %417 : vector<16x128xf32>
    %cst_172 = arith.constant 9.99999974E-6 : f32
    %419 = vector.broadcast %cst_172 : f32 to vector<16x1xf32>
    %420 = arith.addf %416, %419 : vector<16x1xf32>
    %421 = math.rsqrt %420 : vector<16x1xf32>
    %422 = vector.broadcast %421 : vector<16x1xf32> to vector<16x128xf32>
    %423 = arith.mulf %418, %422 : vector<16x128xf32>
    %424 = vector.broadcast %403 : vector<1x128xf32> to vector<16x128xf32>
    %425 = arith.mulf %423, %424 : vector<16x128xf32>
    %426 = vector.broadcast %405 : vector<1x128xf32> to vector<16x128xf32>
    %427 = arith.addf %425, %426 : vector<16x128xf32>
    %c1_173 = arith.constant 1 : index
    %c0_174 = arith.constant 0 : index
    %c0_175 = arith.constant 0 : index
    %428 = vector.load %arg20[%c1_173, %c0_174, %c0_175] : memref<2x128x256xbf16, #tpu.memory_space<vmem>>, vector<1x128x256xbf16>
    %429 = vector.shape_cast %428 : vector<1x128x256xbf16> to vector<128x256xbf16>
    %430 = arith.truncf %427 : vector<16x128xf32> to vector<16x128xbf16>
    %cst_176 = arith.constant dense<0.000000e+00> : vector<16x256xf32>
    %431 = tpu.matmul %430, %429, %cst_176 {dimension_numbers = #tpu.dot_dimension_numbers<[1], [0], [0], [1], [0, 0, 1, 1], [], []>} : vector<16x128xbf16>, vector<128x256xbf16>, vector<16x256xf32> -> vector<16x256xf32>
    %c1_177 = arith.constant 1 : index
    %c0_178 = arith.constant 0 : index
    %c0_179 = arith.constant 0 : index
    %432 = vector.load %arg21[%c1_177, %c0_178, %c0_179] : memref<2x1x256xf32, #tpu.memory_space<vmem>>, vector<1x1x256xf32>
    %433 = vector.shape_cast %432 : vector<1x1x256xf32> to vector<1x256xf32>
    %434 = vector.broadcast %433 : vector<1x256xf32> to vector<16x256xf32>
    %435 = arith.addf %431, %434 : vector<16x256xf32>
    %436 = arith.mulf %435, %435 : vector<16x256xf32>
    %437 = arith.mulf %435, %436 : vector<16x256xf32>
    %cst_180 = arith.constant 4.471500e-02 : f32
    %438 = vector.broadcast %cst_180 : f32 to vector<16x256xf32>
    %439 = arith.mulf %438, %437 : vector<16x256xf32>
    %440 = arith.addf %435, %439 : vector<16x256xf32>
    %cst_181 = arith.constant 0.797884583 : f32
    %441 = vector.broadcast %cst_181 : f32 to vector<16x256xf32>
    %442 = arith.mulf %441, %440 : vector<16x256xf32>
    %443 = math.tanh %442 : vector<16x256xf32>
    %cst_182 = arith.constant 1.000000e+00 : f32
    %444 = vector.broadcast %cst_182 : f32 to vector<16x256xf32>
    %445 = arith.addf %444, %443 : vector<16x256xf32>
    %cst_183 = arith.constant 5.000000e-01 : f32
    %446 = vector.broadcast %cst_183 : f32 to vector<16x256xf32>
    %447 = arith.mulf %446, %445 : vector<16x256xf32>
    %448 = arith.mulf %435, %447 : vector<16x256xf32>
    %c1_184 = arith.constant 1 : index
    %c0_185 = arith.constant 0 : index
    %c0_186 = arith.constant 0 : index
    %449 = vector.load %arg22[%c1_184, %c0_185, %c0_186] : memref<2x256x128xbf16, #tpu.memory_space<vmem>>, vector<1x256x128xbf16>
    %450 = vector.shape_cast %449 : vector<1x256x128xbf16> to vector<256x128xbf16>
    %451 = arith.truncf %448 : vector<16x256xf32> to vector<16x256xbf16>
    %cst_187 = arith.constant dense<0.000000e+00> : vector<16x128xf32>
    %452 = tpu.matmul %451, %450, %cst_187 {dimension_numbers = #tpu.dot_dimension_numbers<[1], [0], [0], [1], [0, 0, 1, 1], [], []>} : vector<16x256xbf16>, vector<256x128xbf16>, vector<16x128xf32> -> vector<16x128xf32>
    %453 = arith.addf %427, %452 : vector<16x128xf32>
    %c1_188 = arith.constant 1 : index
    %c0_189 = arith.constant 0 : index
    %c0_190 = arith.constant 0 : index
    %454 = vector.load %arg23[%c1_188, %c0_189, %c0_190] : memref<2x1x128xf32, #tpu.memory_space<vmem>>, vector<1x1x128xf32>
    %455 = vector.shape_cast %454 : vector<1x1x128xf32> to vector<1x128xf32>
    %456 = vector.broadcast %455 : vector<1x128xf32> to vector<16x128xf32>
    %457 = arith.addf %453, %456 : vector<16x128xf32>
    %c1_191 = arith.constant 1 : index
    %c0_192 = arith.constant 0 : index
    %c0_193 = arith.constant 0 : index
    %458 = vector.load %arg24[%c1_191, %c0_192, %c0_193] : memref<2x1x128xf32, #tpu.memory_space<vmem>>, vector<1x1x128xf32>
    %459 = vector.shape_cast %458 : vector<1x1x128xf32> to vector<1x128xf32>
    %c1_194 = arith.constant 1 : index
    %c0_195 = arith.constant 0 : index
    %c0_196 = arith.constant 0 : index
    %460 = vector.load %arg25[%c1_194, %c0_195, %c0_196] : memref<2x1x128xf32, #tpu.memory_space<vmem>>, vector<1x1x128xf32>
    %461 = vector.shape_cast %460 : vector<1x1x128xf32> to vector<1x128xf32>
    %cst_197 = arith.constant dense<0.000000e+00> : vector<16xf32>
    %462 = vector.multi_reduction <add>, %457, %cst_197 [1] : vector<16x128xf32> to vector<16xf32>
    %463 = vector.shape_cast %462 : vector<16xf32> to vector<16x1xf32>
    %cst_198 = arith.constant 1.280000e+02 : f32
    %464 = vector.broadcast %cst_198 : f32 to vector<16x1xf32>
    %465 = arith.divf %463, %464 : vector<16x1xf32>
    %466 = vector.broadcast %465 : vector<16x1xf32> to vector<16x128xf32>
    %467 = arith.subf %457, %466 : vector<16x128xf32>
    %468 = arith.mulf %467, %467 : vector<16x128xf32>
    %cst_199 = arith.constant dense<0.000000e+00> : vector<16xf32>
    %469 = vector.multi_reduction <add>, %468, %cst_199 [1] : vector<16x128xf32> to vector<16xf32>
    %470 = vector.shape_cast %469 : vector<16xf32> to vector<16x1xf32>
    %cst_200 = arith.constant 1.280000e+02 : f32
    %471 = vector.broadcast %cst_200 : f32 to vector<16x1xf32>
    %472 = arith.divf %470, %471 : vector<16x1xf32>
    %473 = vector.broadcast %465 : vector<16x1xf32> to vector<16x128xf32>
    %474 = arith.subf %457, %473 : vector<16x128xf32>
    %cst_201 = arith.constant 9.99999974E-6 : f32
    %475 = vector.broadcast %cst_201 : f32 to vector<16x1xf32>
    %476 = arith.addf %472, %475 : vector<16x1xf32>
    %477 = math.rsqrt %476 : vector<16x1xf32>
    %478 = vector.broadcast %477 : vector<16x1xf32> to vector<16x128xf32>
    %479 = arith.mulf %474, %478 : vector<16x128xf32>
    %480 = vector.broadcast %459 : vector<1x128xf32> to vector<16x128xf32>
    %481 = arith.mulf %479, %480 : vector<16x128xf32>
    %482 = vector.broadcast %461 : vector<1x128xf32> to vector<16x128xf32>
    %483 = arith.addf %481, %482 : vector<16x128xf32>
    %c0_202 = arith.constant 0 : index
    %c0_203 = arith.constant 0 : index
    %484 = vector.load %arg26[%c0_202, %c0_203] : memref<128x128xbf16, #tpu.memory_space<vmem>>, vector<128x128xbf16>
    %485 = arith.truncf %483 : vector<16x128xf32> to vector<16x128xbf16>
    %cst_204 = arith.constant dense<0.000000e+00> : vector<16x128xf32>
    %486 = tpu.matmul %485, %484, %cst_204 {dimension_numbers = #tpu.dot_dimension_numbers<[1], [0], [0], [1], [0, 0, 1, 1], [], []>} : vector<16x128xbf16>, vector<128x128xbf16>, vector<16x128xf32> -> vector<16x128xf32>
    %c0_205 = arith.constant 0 : index
    %c0_206 = arith.constant 0 : index
    %487 = vector.load %arg27[%c0_205, %c0_206] : memref<64x64xf32, #tpu.memory_space<vmem>>, vector<64x64xf32>
    %c0_207 = arith.constant 0 : index
    %c0_208 = arith.constant 0 : index
    %488 = vector.load %arg28[%c0_207, %c0_208] : memref<16x128xf32, #tpu.memory_space<vmem>>, vector<16x128xf32>
    %c0_209 = arith.constant 0 : index
    %c0_210 = arith.constant 0 : index
    %489 = vector.load %arg29[%c0_209, %c0_210] : memref<16x128xf32, #tpu.memory_space<vmem>>, vector<16x128xf32>
    %c0_211 = arith.constant 0 : index
    %c0_212 = arith.constant 0 : index
    %490 = vector.load %arg30[%c0_211, %c0_212] : memref<16x128xf32, #tpu.memory_space<vmem>>, vector<16x128xf32>
    %c0_213 = arith.constant 0 : index
    %c0_214 = arith.constant 0 : index
    %c0_215 = arith.constant 0 : index
    %491 = vector.load %arg31[%c0_213, %c0_214, %c0_215] : memref<2x1x128xf32, #tpu.memory_space<vmem>>, vector<1x1x128xf32>
    %492 = vector.shape_cast %491 : vector<1x1x128xf32> to vector<1x128xf32>
    %493 = arith.mulf %486, %486 : vector<16x128xf32>
    %cst_216 = arith.constant dense<0.000000e+00> : vector<16xf32>
    %494 = vector.multi_reduction <add>, %493, %cst_216 [1] : vector<16x128xf32> to vector<16xf32>
    %495 = vector.shape_cast %494 : vector<16xf32> to vector<16x1xf32>
    %cst_217 = arith.constant 1.280000e+02 : f32
    %496 = vector.broadcast %cst_217 : f32 to vector<16x1xf32>
    %497 = arith.divf %495, %496 : vector<16x1xf32>
    %cst_218 = arith.constant 9.99999997E-7 : f32
    %498 = vector.broadcast %cst_218 : f32 to vector<16x1xf32>
    %499 = arith.addf %497, %498 : vector<16x1xf32>
    %500 = math.rsqrt %499 : vector<16x1xf32>
    %501 = vector.broadcast %500 : vector<16x1xf32> to vector<16x128xf32>
    %502 = arith.mulf %486, %501 : vector<16x128xf32>
    %503 = vector.broadcast %492 : vector<1x128xf32> to vector<16x128xf32>
    %504 = arith.mulf %502, %503 : vector<16x128xf32>
    %c0_219 = arith.constant 0 : index
    %c0_220 = arith.constant 0 : index
    %c0_221 = arith.constant 0 : index
    %505 = vector.load %arg32[%c0_219, %c0_220, %c0_221] : memref<2x128x384xbf16, #tpu.memory_space<vmem>>, vector<1x128x384xbf16>
    %506 = vector.shape_cast %505 : vector<1x128x384xbf16> to vector<128x384xbf16>
    %507 = arith.truncf %504 : vector<16x128xf32> to vector<16x128xbf16>
    %cst_222 = arith.constant dense<0.000000e+00> : vector<16x384xf32>
    %508 = tpu.matmul %507, %506, %cst_222 {dimension_numbers = #tpu.dot_dimension_numbers<[1], [0], [0], [1], [0, 0, 1, 1], [], []>} : vector<16x128xbf16>, vector<128x384xbf16>, vector<16x384xf32> -> vector<16x384xf32>
    %509 = vector.extract_strided_slice %508 {offsets = [0, 0], sizes = [16, 128], strides = [1, 1]} : vector<16x384xf32> to vector<16x128xf32>
    %510 = arith.mulf %509, %488 : vector<16x128xf32>
    %c16_i32 = arith.constant 16 : i32
    %511 = tpu.dynamic_rotate %509 by %c16_i32 dim 1 : vector<16x128xf32>, i32 -> vector<16x128xf32>
    %512 = arith.mulf %511, %489 : vector<16x128xf32>
    %513 = arith.addf %510, %512 : vector<16x128xf32>
    %c112_i32 = arith.constant 112 : i32
    %514 = tpu.dynamic_rotate %509 by %c112_i32 dim 1 : vector<16x128xf32>, i32 -> vector<16x128xf32>
    %515 = arith.mulf %514, %490 : vector<16x128xf32>
    %516 = arith.addf %513, %515 : vector<16x128xf32>
    %517 = vector.extract_strided_slice %508 {offsets = [0, 128], sizes = [16, 128], strides = [1, 1]} : vector<16x384xf32> to vector<16x128xf32>
    %518 = arith.mulf %517, %488 : vector<16x128xf32>
    %c16_i32_223 = arith.constant 16 : i32
    %519 = tpu.dynamic_rotate %517 by %c16_i32_223 dim 1 : vector<16x128xf32>, i32 -> vector<16x128xf32>
    %520 = arith.mulf %519, %489 : vector<16x128xf32>
    %521 = arith.addf %518, %520 : vector<16x128xf32>
    %c112_i32_224 = arith.constant 112 : i32
    %522 = tpu.dynamic_rotate %517 by %c112_i32_224 dim 1 : vector<16x128xf32>, i32 -> vector<16x128xf32>
    %523 = arith.mulf %522, %490 : vector<16x128xf32>
    %524 = arith.addf %521, %523 : vector<16x128xf32>
    %525 = vector.extract_strided_slice %508 {offsets = [0, 256], sizes = [16, 128], strides = [1, 1]} : vector<16x384xf32> to vector<16x128xf32>
    %526 = vector.extract_strided_slice %516 {offsets = [0, 0], sizes = [16, 32], strides = [1, 1]} : vector<16x128xf32> to vector<16x32xf32>
    %527 = vector.extract_strided_slice %516 {offsets = [0, 32], sizes = [16, 32], strides = [1, 1]} : vector<16x128xf32> to vector<16x32xf32>
    %528 = vector.extract_strided_slice %516 {offsets = [0, 64], sizes = [16, 32], strides = [1, 1]} : vector<16x128xf32> to vector<16x32xf32>
    %529 = vector.extract_strided_slice %516 {offsets = [0, 96], sizes = [16, 32], strides = [1, 1]} : vector<16x128xf32> to vector<16x32xf32>
    %530 = tpu.concatenate %526, %527, %528, %529 in 0 : vector<16x32xf32>, vector<16x32xf32>, vector<16x32xf32>, vector<16x32xf32> -> vector<64x32xf32>
    %531 = vector.extract_strided_slice %524 {offsets = [0, 0], sizes = [16, 32], strides = [1, 1]} : vector<16x128xf32> to vector<16x32xf32>
    %532 = vector.extract_strided_slice %524 {offsets = [0, 32], sizes = [16, 32], strides = [1, 1]} : vector<16x128xf32> to vector<16x32xf32>
    %533 = vector.extract_strided_slice %524 {offsets = [0, 64], sizes = [16, 32], strides = [1, 1]} : vector<16x128xf32> to vector<16x32xf32>
    %534 = vector.extract_strided_slice %524 {offsets = [0, 96], sizes = [16, 32], strides = [1, 1]} : vector<16x128xf32> to vector<16x32xf32>
    %535 = tpu.concatenate %531, %532, %533, %534 in 0 : vector<16x32xf32>, vector<16x32xf32>, vector<16x32xf32>, vector<16x32xf32> -> vector<64x32xf32>
    %536 = vector.extract_strided_slice %525 {offsets = [0, 0], sizes = [16, 32], strides = [1, 1]} : vector<16x128xf32> to vector<16x32xf32>
    %537 = vector.extract_strided_slice %525 {offsets = [0, 32], sizes = [16, 32], strides = [1, 1]} : vector<16x128xf32> to vector<16x32xf32>
    %538 = vector.extract_strided_slice %525 {offsets = [0, 64], sizes = [16, 32], strides = [1, 1]} : vector<16x128xf32> to vector<16x32xf32>
    %539 = vector.extract_strided_slice %525 {offsets = [0, 96], sizes = [16, 32], strides = [1, 1]} : vector<16x128xf32> to vector<16x32xf32>
    %540 = tpu.concatenate %536, %537, %538, %539 in 0 : vector<16x32xf32>, vector<16x32xf32>, vector<16x32xf32>, vector<16x32xf32> -> vector<64x32xf32>
    %541 = arith.truncf %530 : vector<64x32xf32> to vector<64x32xbf16>
    %542 = arith.truncf %535 : vector<64x32xf32> to vector<64x32xbf16>
    %cst_225 = arith.constant dense<0.000000e+00> : vector<64x64xf32>
    %543 = tpu.matmul %541, %542, %cst_225 {dimension_numbers = #tpu.dot_dimension_numbers<[1], [1], [0], [0], [0, 0, 1, 0], [], []>} : vector<64x32xbf16>, vector<64x32xbf16>, vector<64x64xf32> -> vector<64x64xf32>
    %544 = arith.addf %543, %487 : vector<64x64xf32>
    %cst_226 = arith.constant dense<0xFF800000> : vector<64xf32>
    %545 = vector.multi_reduction <maximumf>, %544, %cst_226 [1] : vector<64x64xf32> to vector<64xf32>
    %546 = vector.shape_cast %545 : vector<64xf32> to vector<64x1xf32>
    %547 = vector.broadcast %546 : vector<64x1xf32> to vector<64x64xf32>
    %548 = arith.subf %544, %547 : vector<64x64xf32>
    %549 = math.exp %548 : vector<64x64xf32>
    %cst_227 = arith.constant dense<0.000000e+00> : vector<64xf32>
    %550 = vector.multi_reduction <add>, %549, %cst_227 [1] : vector<64x64xf32> to vector<64xf32>
    %551 = vector.shape_cast %550 : vector<64xf32> to vector<64x1xf32>
    %552 = tpu.reciprocal %551 {approx = true} : vector<64x1xf32> -> vector<64x1xf32>
    %553 = vector.broadcast %552 : vector<64x1xf32> to vector<64x64xf32>
    %554 = arith.mulf %549, %553 : vector<64x64xf32>
    %555 = arith.truncf %554 : vector<64x64xf32> to vector<64x64xbf16>
    %556 = arith.truncf %540 : vector<64x32xf32> to vector<64x32xbf16>
    %cst_228 = arith.constant dense<0.000000e+00> : vector<64x32xf32>
    %557 = tpu.matmul %555, %556, %cst_228 {dimension_numbers = #tpu.dot_dimension_numbers<[1], [0], [0], [1], [0, 0, 1, 1], [], []>} : vector<64x64xbf16>, vector<64x32xbf16>, vector<64x32xf32> -> vector<64x32xf32>
    %558 = vector.extract_strided_slice %557 {offsets = [0, 0], sizes = [16, 32], strides = [1, 1]} : vector<64x32xf32> to vector<16x32xf32>
    %559 = vector.extract_strided_slice %557 {offsets = [16, 0], sizes = [16, 32], strides = [1, 1]} : vector<64x32xf32> to vector<16x32xf32>
    %560 = vector.extract_strided_slice %557 {offsets = [32, 0], sizes = [16, 32], strides = [1, 1]} : vector<64x32xf32> to vector<16x32xf32>
    %561 = vector.extract_strided_slice %557 {offsets = [48, 0], sizes = [16, 32], strides = [1, 1]} : vector<64x32xf32> to vector<16x32xf32>
    %562 = tpu.concatenate %558, %559, %560, %561 in 1 : vector<16x32xf32>, vector<16x32xf32>, vector<16x32xf32>, vector<16x32xf32> -> vector<16x128xf32>
    %c0_229 = arith.constant 0 : index
    %c0_230 = arith.constant 0 : index
    %c0_231 = arith.constant 0 : index
    %563 = vector.load %arg33[%c0_229, %c0_230, %c0_231] : memref<2x128x128xbf16, #tpu.memory_space<vmem>>, vector<1x128x128xbf16>
    %564 = vector.shape_cast %563 : vector<1x128x128xbf16> to vector<128x128xbf16>
    %565 = arith.truncf %562 : vector<16x128xf32> to vector<16x128xbf16>
    %cst_232 = arith.constant dense<0.000000e+00> : vector<16x128xf32>
    %566 = tpu.matmul %565, %564, %cst_232 {dimension_numbers = #tpu.dot_dimension_numbers<[1], [0], [0], [1], [0, 0, 1, 1], [], []>} : vector<16x128xbf16>, vector<128x128xbf16>, vector<16x128xf32> -> vector<16x128xf32>
    %567 = arith.addf %486, %566 : vector<16x128xf32>
    %c0_233 = arith.constant 0 : index
    %c0_234 = arith.constant 0 : index
    %c0_235 = arith.constant 0 : index
    %568 = vector.load %arg34[%c0_233, %c0_234, %c0_235] : memref<2x1x128xf32, #tpu.memory_space<vmem>>, vector<1x1x128xf32>
    %569 = vector.shape_cast %568 : vector<1x1x128xf32> to vector<1x128xf32>
    %570 = arith.mulf %567, %567 : vector<16x128xf32>
    %cst_236 = arith.constant dense<0.000000e+00> : vector<16xf32>
    %571 = vector.multi_reduction <add>, %570, %cst_236 [1] : vector<16x128xf32> to vector<16xf32>
    %572 = vector.shape_cast %571 : vector<16xf32> to vector<16x1xf32>
    %cst_237 = arith.constant 1.280000e+02 : f32
    %573 = vector.broadcast %cst_237 : f32 to vector<16x1xf32>
    %574 = arith.divf %572, %573 : vector<16x1xf32>
    %cst_238 = arith.constant 9.99999997E-7 : f32
    %575 = vector.broadcast %cst_238 : f32 to vector<16x1xf32>
    %576 = arith.addf %574, %575 : vector<16x1xf32>
    %577 = math.rsqrt %576 : vector<16x1xf32>
    %578 = vector.broadcast %577 : vector<16x1xf32> to vector<16x128xf32>
    %579 = arith.mulf %567, %578 : vector<16x128xf32>
    %580 = vector.broadcast %569 : vector<1x128xf32> to vector<16x128xf32>
    %581 = arith.mulf %579, %580 : vector<16x128xf32>
    %c0_239 = arith.constant 0 : index
    %c0_240 = arith.constant 0 : index
    %c0_241 = arith.constant 0 : index
    %582 = vector.load %arg35[%c0_239, %c0_240, %c0_241] : memref<2x128x512xbf16, #tpu.memory_space<vmem>>, vector<1x128x512xbf16>
    %583 = vector.shape_cast %582 : vector<1x128x512xbf16> to vector<128x512xbf16>
    %584 = arith.truncf %581 : vector<16x128xf32> to vector<16x128xbf16>
    %cst_242 = arith.constant dense<0.000000e+00> : vector<16x512xf32>
    %585 = tpu.matmul %584, %583, %cst_242 {dimension_numbers = #tpu.dot_dimension_numbers<[1], [0], [0], [1], [0, 0, 1, 1], [], []>} : vector<16x128xbf16>, vector<128x512xbf16>, vector<16x512xf32> -> vector<16x512xf32>
    %586 = vector.extract_strided_slice %585 {offsets = [0, 0], sizes = [16, 256], strides = [1, 1]} : vector<16x512xf32> to vector<16x256xf32>
    %587 = arith.negf %586 : vector<16x256xf32>
    %588 = math.exp %587 : vector<16x256xf32>
    %cst_243 = arith.constant 1.000000e+00 : f32
    %589 = vector.broadcast %cst_243 : f32 to vector<16x256xf32>
    %590 = arith.addf %589, %588 : vector<16x256xf32>
    %591 = arith.divf %589, %590 : vector<16x256xf32>
    %592 = arith.mulf %586, %591 : vector<16x256xf32>
    %593 = vector.extract_strided_slice %585 {offsets = [0, 256], sizes = [16, 256], strides = [1, 1]} : vector<16x512xf32> to vector<16x256xf32>
    %594 = arith.mulf %592, %593 : vector<16x256xf32>
    %c0_244 = arith.constant 0 : index
    %c0_245 = arith.constant 0 : index
    %c0_246 = arith.constant 0 : index
    %595 = vector.load %arg36[%c0_244, %c0_245, %c0_246] : memref<2x256x128xbf16, #tpu.memory_space<vmem>>, vector<1x256x128xbf16>
    %596 = vector.shape_cast %595 : vector<1x256x128xbf16> to vector<256x128xbf16>
    %597 = arith.truncf %594 : vector<16x256xf32> to vector<16x256xbf16>
    %cst_247 = arith.constant dense<0.000000e+00> : vector<16x128xf32>
    %598 = tpu.matmul %597, %596, %cst_247 {dimension_numbers = #tpu.dot_dimension_numbers<[1], [0], [0], [1], [0, 0, 1, 1], [], []>} : vector<16x256xbf16>, vector<256x128xbf16>, vector<16x128xf32> -> vector<16x128xf32>
    %599 = arith.addf %567, %598 : vector<16x128xf32>
    %c1_248 = arith.constant 1 : index
    %c0_249 = arith.constant 0 : index
    %c0_250 = arith.constant 0 : index
    %600 = vector.load %arg31[%c1_248, %c0_249, %c0_250] : memref<2x1x128xf32, #tpu.memory_space<vmem>>, vector<1x1x128xf32>
    %601 = vector.shape_cast %600 : vector<1x1x128xf32> to vector<1x128xf32>
    %602 = arith.mulf %599, %599 : vector<16x128xf32>
    %cst_251 = arith.constant dense<0.000000e+00> : vector<16xf32>
    %603 = vector.multi_reduction <add>, %602, %cst_251 [1] : vector<16x128xf32> to vector<16xf32>
    %604 = vector.shape_cast %603 : vector<16xf32> to vector<16x1xf32>
    %cst_252 = arith.constant 1.280000e+02 : f32
    %605 = vector.broadcast %cst_252 : f32 to vector<16x1xf32>
    %606 = arith.divf %604, %605 : vector<16x1xf32>
    %cst_253 = arith.constant 9.99999997E-7 : f32
    %607 = vector.broadcast %cst_253 : f32 to vector<16x1xf32>
    %608 = arith.addf %606, %607 : vector<16x1xf32>
    %609 = math.rsqrt %608 : vector<16x1xf32>
    %610 = vector.broadcast %609 : vector<16x1xf32> to vector<16x128xf32>
    %611 = arith.mulf %599, %610 : vector<16x128xf32>
    %612 = vector.broadcast %601 : vector<1x128xf32> to vector<16x128xf32>
    %613 = arith.mulf %611, %612 : vector<16x128xf32>
    %c1_254 = arith.constant 1 : index
    %c0_255 = arith.constant 0 : index
    %c0_256 = arith.constant 0 : index
    %614 = vector.load %arg32[%c1_254, %c0_255, %c0_256] : memref<2x128x384xbf16, #tpu.memory_space<vmem>>, vector<1x128x384xbf16>
    %615 = vector.shape_cast %614 : vector<1x128x384xbf16> to vector<128x384xbf16>
    %616 = arith.truncf %613 : vector<16x128xf32> to vector<16x128xbf16>
    %cst_257 = arith.constant dense<0.000000e+00> : vector<16x384xf32>
    %617 = tpu.matmul %616, %615, %cst_257 {dimension_numbers = #tpu.dot_dimension_numbers<[1], [0], [0], [1], [0, 0, 1, 1], [], []>} : vector<16x128xbf16>, vector<128x384xbf16>, vector<16x384xf32> -> vector<16x384xf32>
    %618 = vector.extract_strided_slice %617 {offsets = [0, 0], sizes = [16, 128], strides = [1, 1]} : vector<16x384xf32> to vector<16x128xf32>
    %619 = arith.mulf %618, %488 : vector<16x128xf32>
    %c16_i32_258 = arith.constant 16 : i32
    %620 = tpu.dynamic_rotate %618 by %c16_i32_258 dim 1 : vector<16x128xf32>, i32 -> vector<16x128xf32>
    %621 = arith.mulf %620, %489 : vector<16x128xf32>
    %622 = arith.addf %619, %621 : vector<16x128xf32>
    %c112_i32_259 = arith.constant 112 : i32
    %623 = tpu.dynamic_rotate %618 by %c112_i32_259 dim 1 : vector<16x128xf32>, i32 -> vector<16x128xf32>
    %624 = arith.mulf %623, %490 : vector<16x128xf32>
    %625 = arith.addf %622, %624 : vector<16x128xf32>
    %626 = vector.extract_strided_slice %617 {offsets = [0, 128], sizes = [16, 128], strides = [1, 1]} : vector<16x384xf32> to vector<16x128xf32>
    %627 = arith.mulf %626, %488 : vector<16x128xf32>
    %c16_i32_260 = arith.constant 16 : i32
    %628 = tpu.dynamic_rotate %626 by %c16_i32_260 dim 1 : vector<16x128xf32>, i32 -> vector<16x128xf32>
    %629 = arith.mulf %628, %489 : vector<16x128xf32>
    %630 = arith.addf %627, %629 : vector<16x128xf32>
    %c112_i32_261 = arith.constant 112 : i32
    %631 = tpu.dynamic_rotate %626 by %c112_i32_261 dim 1 : vector<16x128xf32>, i32 -> vector<16x128xf32>
    %632 = arith.mulf %631, %490 : vector<16x128xf32>
    %633 = arith.addf %630, %632 : vector<16x128xf32>
    %634 = vector.extract_strided_slice %617 {offsets = [0, 256], sizes = [16, 128], strides = [1, 1]} : vector<16x384xf32> to vector<16x128xf32>
    %635 = vector.extract_strided_slice %625 {offsets = [0, 0], sizes = [16, 32], strides = [1, 1]} : vector<16x128xf32> to vector<16x32xf32>
    %636 = vector.extract_strided_slice %625 {offsets = [0, 32], sizes = [16, 32], strides = [1, 1]} : vector<16x128xf32> to vector<16x32xf32>
    %637 = vector.extract_strided_slice %625 {offsets = [0, 64], sizes = [16, 32], strides = [1, 1]} : vector<16x128xf32> to vector<16x32xf32>
    %638 = vector.extract_strided_slice %625 {offsets = [0, 96], sizes = [16, 32], strides = [1, 1]} : vector<16x128xf32> to vector<16x32xf32>
    %639 = tpu.concatenate %635, %636, %637, %638 in 0 : vector<16x32xf32>, vector<16x32xf32>, vector<16x32xf32>, vector<16x32xf32> -> vector<64x32xf32>
    %640 = vector.extract_strided_slice %633 {offsets = [0, 0], sizes = [16, 32], strides = [1, 1]} : vector<16x128xf32> to vector<16x32xf32>
    %641 = vector.extract_strided_slice %633 {offsets = [0, 32], sizes = [16, 32], strides = [1, 1]} : vector<16x128xf32> to vector<16x32xf32>
    %642 = vector.extract_strided_slice %633 {offsets = [0, 64], sizes = [16, 32], strides = [1, 1]} : vector<16x128xf32> to vector<16x32xf32>
    %643 = vector.extract_strided_slice %633 {offsets = [0, 96], sizes = [16, 32], strides = [1, 1]} : vector<16x128xf32> to vector<16x32xf32>
    %644 = tpu.concatenate %640, %641, %642, %643 in 0 : vector<16x32xf32>, vector<16x32xf32>, vector<16x32xf32>, vector<16x32xf32> -> vector<64x32xf32>
    %645 = vector.extract_strided_slice %634 {offsets = [0, 0], sizes = [16, 32], strides = [1, 1]} : vector<16x128xf32> to vector<16x32xf32>
    %646 = vector.extract_strided_slice %634 {offsets = [0, 32], sizes = [16, 32], strides = [1, 1]} : vector<16x128xf32> to vector<16x32xf32>
    %647 = vector.extract_strided_slice %634 {offsets = [0, 64], sizes = [16, 32], strides = [1, 1]} : vector<16x128xf32> to vector<16x32xf32>
    %648 = vector.extract_strided_slice %634 {offsets = [0, 96], sizes = [16, 32], strides = [1, 1]} : vector<16x128xf32> to vector<16x32xf32>
    %649 = tpu.concatenate %645, %646, %647, %648 in 0 : vector<16x32xf32>, vector<16x32xf32>, vector<16x32xf32>, vector<16x32xf32> -> vector<64x32xf32>
    %650 = arith.truncf %639 : vector<64x32xf32> to vector<64x32xbf16>
    %651 = arith.truncf %644 : vector<64x32xf32> to vector<64x32xbf16>
    %cst_262 = arith.constant dense<0.000000e+00> : vector<64x64xf32>
    %652 = tpu.matmul %650, %651, %cst_262 {dimension_numbers = #tpu.dot_dimension_numbers<[1], [1], [0], [0], [0, 0, 1, 0], [], []>} : vector<64x32xbf16>, vector<64x32xbf16>, vector<64x64xf32> -> vector<64x64xf32>
    %653 = arith.addf %652, %487 : vector<64x64xf32>
    %cst_263 = arith.constant dense<0xFF800000> : vector<64xf32>
    %654 = vector.multi_reduction <maximumf>, %653, %cst_263 [1] : vector<64x64xf32> to vector<64xf32>
    %655 = vector.shape_cast %654 : vector<64xf32> to vector<64x1xf32>
    %656 = vector.broadcast %655 : vector<64x1xf32> to vector<64x64xf32>
    %657 = arith.subf %653, %656 : vector<64x64xf32>
    %658 = math.exp %657 : vector<64x64xf32>
    %cst_264 = arith.constant dense<0.000000e+00> : vector<64xf32>
    %659 = vector.multi_reduction <add>, %658, %cst_264 [1] : vector<64x64xf32> to vector<64xf32>
    %660 = vector.shape_cast %659 : vector<64xf32> to vector<64x1xf32>
    %661 = tpu.reciprocal %660 {approx = true} : vector<64x1xf32> -> vector<64x1xf32>
    %662 = vector.broadcast %661 : vector<64x1xf32> to vector<64x64xf32>
    %663 = arith.mulf %658, %662 : vector<64x64xf32>
    %664 = arith.truncf %663 : vector<64x64xf32> to vector<64x64xbf16>
    %665 = arith.truncf %649 : vector<64x32xf32> to vector<64x32xbf16>
    %cst_265 = arith.constant dense<0.000000e+00> : vector<64x32xf32>
    %666 = tpu.matmul %664, %665, %cst_265 {dimension_numbers = #tpu.dot_dimension_numbers<[1], [0], [0], [1], [0, 0, 1, 1], [], []>} : vector<64x64xbf16>, vector<64x32xbf16>, vector<64x32xf32> -> vector<64x32xf32>
    %667 = vector.extract_strided_slice %666 {offsets = [0, 0], sizes = [16, 32], strides = [1, 1]} : vector<64x32xf32> to vector<16x32xf32>
    %668 = vector.extract_strided_slice %666 {offsets = [16, 0], sizes = [16, 32], strides = [1, 1]} : vector<64x32xf32> to vector<16x32xf32>
    %669 = vector.extract_strided_slice %666 {offsets = [32, 0], sizes = [16, 32], strides = [1, 1]} : vector<64x32xf32> to vector<16x32xf32>
    %670 = vector.extract_strided_slice %666 {offsets = [48, 0], sizes = [16, 32], strides = [1, 1]} : vector<64x32xf32> to vector<16x32xf32>
    %671 = tpu.concatenate %667, %668, %669, %670 in 1 : vector<16x32xf32>, vector<16x32xf32>, vector<16x32xf32>, vector<16x32xf32> -> vector<16x128xf32>
    %c1_266 = arith.constant 1 : index
    %c0_267 = arith.constant 0 : index
    %c0_268 = arith.constant 0 : index
    %672 = vector.load %arg33[%c1_266, %c0_267, %c0_268] : memref<2x128x128xbf16, #tpu.memory_space<vmem>>, vector<1x128x128xbf16>
    %673 = vector.shape_cast %672 : vector<1x128x128xbf16> to vector<128x128xbf16>
    %674 = arith.truncf %671 : vector<16x128xf32> to vector<16x128xbf16>
    %cst_269 = arith.constant dense<0.000000e+00> : vector<16x128xf32>
    %675 = tpu.matmul %674, %673, %cst_269 {dimension_numbers = #tpu.dot_dimension_numbers<[1], [0], [0], [1], [0, 0, 1, 1], [], []>} : vector<16x128xbf16>, vector<128x128xbf16>, vector<16x128xf32> -> vector<16x128xf32>
    %676 = arith.addf %599, %675 : vector<16x128xf32>
    %c1_270 = arith.constant 1 : index
    %c0_271 = arith.constant 0 : index
    %c0_272 = arith.constant 0 : index
    %677 = vector.load %arg34[%c1_270, %c0_271, %c0_272] : memref<2x1x128xf32, #tpu.memory_space<vmem>>, vector<1x1x128xf32>
    %678 = vector.shape_cast %677 : vector<1x1x128xf32> to vector<1x128xf32>
    %679 = arith.mulf %676, %676 : vector<16x128xf32>
    %cst_273 = arith.constant dense<0.000000e+00> : vector<16xf32>
    %680 = vector.multi_reduction <add>, %679, %cst_273 [1] : vector<16x128xf32> to vector<16xf32>
    %681 = vector.shape_cast %680 : vector<16xf32> to vector<16x1xf32>
    %cst_274 = arith.constant 1.280000e+02 : f32
    %682 = vector.broadcast %cst_274 : f32 to vector<16x1xf32>
    %683 = arith.divf %681, %682 : vector<16x1xf32>
    %cst_275 = arith.constant 9.99999997E-7 : f32
    %684 = vector.broadcast %cst_275 : f32 to vector<16x1xf32>
    %685 = arith.addf %683, %684 : vector<16x1xf32>
    %686 = math.rsqrt %685 : vector<16x1xf32>
    %687 = vector.broadcast %686 : vector<16x1xf32> to vector<16x128xf32>
    %688 = arith.mulf %676, %687 : vector<16x128xf32>
    %689 = vector.broadcast %678 : vector<1x128xf32> to vector<16x128xf32>
    %690 = arith.mulf %688, %689 : vector<16x128xf32>
    %c1_276 = arith.constant 1 : index
    %c0_277 = arith.constant 0 : index
    %c0_278 = arith.constant 0 : index
    %691 = vector.load %arg35[%c1_276, %c0_277, %c0_278] : memref<2x128x512xbf16, #tpu.memory_space<vmem>>, vector<1x128x512xbf16>
    %692 = vector.shape_cast %691 : vector<1x128x512xbf16> to vector<128x512xbf16>
    %693 = arith.truncf %690 : vector<16x128xf32> to vector<16x128xbf16>
    %cst_279 = arith.constant dense<0.000000e+00> : vector<16x512xf32>
    %694 = tpu.matmul %693, %692, %cst_279 {dimension_numbers = #tpu.dot_dimension_numbers<[1], [0], [0], [1], [0, 0, 1, 1], [], []>} : vector<16x128xbf16>, vector<128x512xbf16>, vector<16x512xf32> -> vector<16x512xf32>
    %695 = vector.extract_strided_slice %694 {offsets = [0, 0], sizes = [16, 256], strides = [1, 1]} : vector<16x512xf32> to vector<16x256xf32>
    %696 = arith.negf %695 : vector<16x256xf32>
    %697 = math.exp %696 : vector<16x256xf32>
    %cst_280 = arith.constant 1.000000e+00 : f32
    %698 = vector.broadcast %cst_280 : f32 to vector<16x256xf32>
    %699 = arith.addf %698, %697 : vector<16x256xf32>
    %700 = arith.divf %698, %699 : vector<16x256xf32>
    %701 = arith.mulf %695, %700 : vector<16x256xf32>
    %702 = vector.extract_strided_slice %694 {offsets = [0, 256], sizes = [16, 256], strides = [1, 1]} : vector<16x512xf32> to vector<16x256xf32>
    %703 = arith.mulf %701, %702 : vector<16x256xf32>
    %c1_281 = arith.constant 1 : index
    %c0_282 = arith.constant 0 : index
    %c0_283 = arith.constant 0 : index
    %704 = vector.load %arg36[%c1_281, %c0_282, %c0_283] : memref<2x256x128xbf16, #tpu.memory_space<vmem>>, vector<1x256x128xbf16>
    %705 = vector.shape_cast %704 : vector<1x256x128xbf16> to vector<256x128xbf16>
    %706 = arith.truncf %703 : vector<16x256xf32> to vector<16x256xbf16>
    %cst_284 = arith.constant dense<0.000000e+00> : vector<16x128xf32>
    %707 = tpu.matmul %706, %705, %cst_284 {dimension_numbers = #tpu.dot_dimension_numbers<[1], [0], [0], [1], [0, 0, 1, 1], [], []>} : vector<16x256xbf16>, vector<256x128xbf16>, vector<16x128xf32> -> vector<16x128xf32>
    %708 = arith.addf %676, %707 : vector<16x128xf32>
    %c0_285 = arith.constant 0 : index
    %c0_286 = arith.constant 0 : index
    %709 = vector.load %arg37[%c0_285, %c0_286] : memref<1x128xf32, #tpu.memory_space<vmem>>, vector<1x128xf32>
    %710 = arith.mulf %708, %708 : vector<16x128xf32>
    %cst_287 = arith.constant dense<0.000000e+00> : vector<16xf32>
    %711 = vector.multi_reduction <add>, %710, %cst_287 [1] : vector<16x128xf32> to vector<16xf32>
    %712 = vector.shape_cast %711 : vector<16xf32> to vector<16x1xf32>
    %cst_288 = arith.constant 1.280000e+02 : f32
    %713 = vector.broadcast %cst_288 : f32 to vector<16x1xf32>
    %714 = arith.divf %712, %713 : vector<16x1xf32>
    %cst_289 = arith.constant 9.99999997E-7 : f32
    %715 = vector.broadcast %cst_289 : f32 to vector<16x1xf32>
    %716 = arith.addf %714, %715 : vector<16x1xf32>
    %717 = math.rsqrt %716 : vector<16x1xf32>
    %718 = vector.broadcast %717 : vector<16x1xf32> to vector<16x128xf32>
    %719 = arith.mulf %708, %718 : vector<16x128xf32>
    %720 = vector.broadcast %709 : vector<1x128xf32> to vector<16x128xf32>
    %721 = arith.mulf %719, %720 : vector<16x128xf32>
    %c0_290 = arith.constant 0 : index
    %c0_291 = arith.constant 0 : index
    %722 = vector.load %arg38[%c0_290, %c0_291] : memref<128x256xbf16, #tpu.memory_space<vmem>>, vector<128x256xbf16>
    %723 = arith.truncf %721 : vector<16x128xf32> to vector<16x128xbf16>
    %cst_292 = arith.constant dense<0.000000e+00> : vector<16x256xf32>
    %724 = tpu.matmul %723, %722, %cst_292 {dimension_numbers = #tpu.dot_dimension_numbers<[1], [0], [0], [1], [0, 0, 1, 1], [], []>} : vector<16x128xbf16>, vector<128x256xbf16>, vector<16x256xf32> -> vector<16x256xf32>
    %c0_293 = arith.constant 0 : index
    %c0_294 = arith.constant 0 : index
    %725 = vector.load %arg39[%c0_293, %c0_294] : memref<16x256xf32, #tpu.memory_space<vmem>>, vector<16x256xf32>
    tpu.vector_store %arg39[%c0_293, %c0_294], %724 {strides = array<i32>} : memref<16x256xf32, #tpu.memory_space<vmem>>, vector<16x256xf32>,
    return
  }
}

</mosaic_0001>

<bundles_post_ra>
// kernel: forward.2
= control target key start
LH: loop header
LB: loop body
LE: loop exit
PB: predicated region body
PF: predicated region fallthrough
CT: control target
= control target key end

     0   :  { %s6285_s0 = inlined_call_operand.vmem [shape: f32[32,192], index: 0, kind: input, shape index: {}]   ;;  %s6286_s1 = inlined_call_operand.vmem [shape: bf16[192,128], index: 1, kind: input, shape index: {}]   ;;  %s6287_s2 = inlined_call_operand.vmem [shape: f32[32,128], index: 2, kind: input, shape index: {}]   ;;  %s6288_s3 = inlined_call_operand.vmem [shape: f32[128,128], index: 3, kind: input, shape index: {}]   ;;  %s6289_s4 = inlined_call_operand.hbm [shape: f32[1,128], index: 4, kind: input, shape index: {}]   ;;  %s6290_s5 = inlined_call_operand.hbm [shape: f32[1,128], index: 5, kind: input, shape index: {}]   ;;  %s6291_s6 = inlined_call_operand.vmem [shape: f32[2,1,128], index: 6, kind: input, shape index: {}]   ;;  %s6292_s7 = inlined_call_operand.vmem [shape: f32[2,1,128], index: 7, kind: input, shape index: {}]   ;;  %s6293_s8 = inlined_call_operand.vmem [shape: bf16[2,128,384], index: 8, kind: input, shape index: {}]   ;;  %s6294_s9 = inlined_call_operand.vmem [shape: f32[2,1,384], index: 9, kind: input, shape index: {}]   ;;  %s6295_s10 = inlined_call_operand.vmem [shape: bf16[2,128,128], index: 10, kind: input, shape index: {}]   ;;  %s6296_s11 = inlined_call_operand.vmem [shape: f32[2,1,128], index: 11, kind: input, shape index: {}]   ;;  %s6297_s12 = inlined_call_operand.vmem [shape: f32[2,1,128], index: 12, kind: input, shape index: {}]   ;;  %s6298_s13 = inlined_call_operand.vmem [shape: f32[2,1,128], index: 13, kind: input, shape index: {}]   ;;  %s6299_s14 = inlined_call_operand.vmem [shape: bf16[2,128,256], index: 14, kind: input, shape index: {}]   ;;  %s6300_s15 = inlined_call_operand.vmem [shape: f32[2,1,256], index: 15, kind: input, shape index: {}]   ;;  %s6301_s16 = inlined_call_operand.vmem [shape: bf16[2,256,128], index: 16, kind: input, shape index: {}]   ;;  %s6302_s17 = inlined_call_operand.vmem [shape: f32[2,1,128], index: 17, kind: input, shape index: {}]   ;;  %s6303_s18 = inlined_call_operand.vmem [shape: bf16[16,128], index: 18, kind: output, shape index: {}]  }
   0x1   :  { %6307 = sst [smem:[#allocation8_spill]] %s6285_s0 }
   0x2   :  { %6308 = sst [smem:[#allocation9_spill]] %s6286_s1 }
   0x3   :  { %6309 = sst [smem:[#allocation10_spill]] %s6287_s2 }
   0x4   :  { %23 = vsyncpa [#allocation3], 0 }
   0x5   :  { %24 = vsyncpa [#allocation5], 0  ;;  %s4864_s27 = smov [#allocation2]   ;;  %s4865_s29 = smov [#allocation4]  }
   0x6   :  { %s39_s28 = sshll.u32 %s4864_s27, 4  ;;  %s49_s30 = sshll.u32 %s4865_s29, 4  ;;  %s40_s28 = int_to_ptr.vmem [resolvable:$true] %s39_s28  ;;  %s50_s30 = int_to_ptr.vmem [resolvable:$true] %s49_s30 }
   0x7   :  { %s4816_s1 = scalar_lea.hbm %s6289_s4, 16 }
   0x8   :  { %p4817_p0 = scmp.ne.s32.totalorder %s6289_s4, %s4816_s1  ;;  %p4820_p1 = scmp.lt.u32.totalorder %s4816_s1, %s6289_s4 }
   0xa   :  { %p4822_p2 = pnand %p4820_p1, %p4817_p0 }
   0xc   :  { %4825 = shalt.err (!%p4822_p2)
}
   0xd   :  { %s4826_s23 = scalar_lea.vmem %s40_s28, 16  ;;  %s4830_s24 = scalar_lea.vmem %s40_s28, 32 }
   0xe   :  { %p4827_p3 = scmp.ne.s32.totalorder %s40_s28, %s4826_s23  ;;  %p4831_p4 = scmp.lt.s32.totalorder %s40_s28, %s40_s28 }
   0xf   :  { %p4832_p5 = scmp.lt.s32.totalorder %s4830_s24, %s4826_s23 }
  0x11   :  { %p4833_p6 = por %p4832_p5, %p4831_p4 }
  0x13   :  { %p4834_p7 = pnand %p4833_p6, %p4827_p3 }
  0x15   :  { %4837 = shalt.err (!%p4834_p7)
}
  0x16   :  { %42 = dma.hbm_to_vmem [thread:$0]  %s6289_s4, 16, %s40_s28, [#allocation3]  }
  0x17   :  { %s4838_s0 = scalar_lea.hbm %s6290_s5, 16 }
  0x18   :  { %p4839_p8 = scmp.ne.s32.totalorder %s6290_s5, %s4838_s0  ;;  %p4842_p9 = scmp.lt.u32.totalorder %s4838_s0, %s6290_s5 }
  0x1a   :  { %p4844_p10 = pnand %p4842_p9, %p4839_p8 }
  0x1c   :  { %4847 = shalt.err (!%p4844_p10)
}
  0x1d   :  { %s4848_s22 = scalar_lea.vmem %s50_s30, 16  ;;  %s4852_s2 = scalar_lea.vmem %s50_s30, 32 }
  0x1e   :  { %p4849_p11 = scmp.ne.s32.totalorder %s50_s30, %s4848_s22  ;;  %p4853_p12 = scmp.lt.s32.totalorder %s50_s30, %s50_s30 }
  0x1f   :  { %p4854_p13 = scmp.lt.s32.totalorder %s4852_s2, %s4848_s22 }
  0x21   :  { %p4855_p0 = por %p4854_p13, %p4853_p12 }
  0x23   :  { %p4856_p1 = pnand %p4855_p0, %p4849_p11 }
  0x25   :  { %4859 = shalt.err (!%p4856_p1)
}
  0x26   :  { %52 = dma.hbm_to_vmem [thread:$0]  %s6290_s5, 16, %s50_s30, [#allocation5]  }
  0x27   :  { %4860 = dma.done.wait [#allocation3], 16  }
  0x28   :  { %4861 = vsyncadd [#allocation3], 4294967280 }
  0x29   :  { %4862 = dma.done.wait [#allocation5], 16  }
  0x2a   :  { %4863 = vsyncadd [#allocation5], 4294967280  ;;  %v4866_v0 = vmov 0   ;;  %s6310_s25 = sld [smem:[#allocation9_spill]]  ;;  %s6311_s20 = sld [smem:[#allocation8_spill]]  ;;  %vm196_vm0 = vcmask 523264  }
  0x2b   :  { %203 = vmatprep.subr.bf16.mxu0 %v4866_v0  ;;  %612 = vmatprep.mubr.bf16.mxu1 %v4866_v0  ;;  %s6312_s22 = sld [smem:[#allocation10_spill]]  ;;  %vm818_vm1 = vcmask 261120   ;;  %s4867_s30 = smov 96   ;;  %vm1277_vm2 = vcmask 785408  }
  0x2c   :  { %s4869_s29 = smov 64  }
  0x30   :  { %v4428_v1 = vld [vmem:[%s6310_s25] sm:$0xff]   ;;  %v4429_v2 = vld [vmem:[%s6310_s25 + $0x8] sm:$0xff]   ;;  %v4430_v3 = vld [vmem:[%s6310_s25 + $0x10] sm:$0xff]  }
  0x31   :  { %204 = vmatpush1.bf16.msra.mxu0 %v4428_v1  ;;  %v4431_v4 = vld [vmem:[%s6310_s25 + $0x18] sm:$0xff]   ;;  %v85_v5 = vld [vmem:[%s6311_s20 + $0x8] sm:$0xff]  ;;  %v4432_v8 = vld [vmem:[%s6310_s25 + $0x20] sm:$0xff]  }
  0x32   :  { %205 = vmatprep.subr.bf16.mxu0 %v4866_v0  ;;  %v87_v6 = vld [vmem:[%s6311_s20 + $0x18] sm:$0xff]  ;;  %v4433_v9 = vld [vmem:[%s6310_s25 + $0x28] sm:$0xff]   ;;  %v4434_v10 = vld [vmem:[%s6310_s25 + $0x30] sm:$0xff]  }
  0x33   :  { %v117_v7 = vpack.c.bf16 %v87_v6, %v85_v5  ;;  %v4435_v11 = vld [vmem:[%s6310_s25 + $0x38] sm:$0xff]   ;;  %v4436_v12 = vld [vmem:[%s6310_s25 + $0x40] sm:$0xff]   ;;  %v4437_v13 = vld [vmem:[%s6310_s25 + $0x48] sm:$0xff]  }
  0x34   :  { %v4438_v14 = vld [vmem:[%s6310_s25 + $0x50] sm:$0xff]   ;;  %v4439_v15 = vld [vmem:[%s6310_s25 + $0x58] sm:$0xff]   ;;  %v84_v16 = vld [vmem:[%s6311_s20] sm:$0xff]  ;;  %s4868_s25 = smov 32  }
  0x35   :  { %206 = vmatpush1.bf16.msra.mxu0 %v4429_v2  ;;  %3525 = vmatprep.mubr.msk.bf16.mxu0 %vm196_vm0, %v117_v7  ;;  %v86_v17 = vld [vmem:[%s6311_s20 + $0x10] sm:$0xff]  ;;  %v89_v18 = vld [vmem:[%s6311_s20 + $0x28] sm:$0xff]  ;;  %v91_v19 = vld [vmem:[%s6311_s20 + $0x38] sm:$0xff] }
  0x36   :  { %207 = vmatprep.subr.bf16.mxu0 %v4866_v0  ;;  %v116_v20 = vpack.c.bf16 %v86_v17, %v84_v16  ;;  %v119_v21 = vpack.c.bf16 %v91_v19, %v89_v18  ;;  %v88_v22 = vld [vmem:[%s6311_s20 + $0x20] sm:$0xff]  ;;  %v90_v23 = vld [vmem:[%s6311_s20 + $0x30] sm:$0xff]  ;;  %v121_v29 = vld [vmem:[%s6312_s22 + $0x8] sm:$0xff] }
  0x37   :  { %v118_v24 = vpack.c.bf16 %v90_v23, %v88_v22  ;;  %v120_v25 = vld [vmem:[%s6312_s22] sm:$0xff]  ;;  %v122_v33 = vld [vmem:[%s6312_s22 + $0x10] sm:$0xff]  ;;  %v123_v37 = vld [vmem:[%s6312_s22 + $0x18] sm:$0xff] }
  0x38   :  { %v3527_v7 = vld [vmem:[#allocation2] ss:$0 sm:$0xff] }
  0x39   :  { %208 = vmatpush1.bf16.msra.mxu0 %v4430_v3 }
  0x3a   :  { %209 = vmatprep.subr.bf16.mxu0 %v4866_v0 }
  0x3d   :  { %210 = vmatpush1.bf16.msra.mxu0 %v4431_v4 }
  0x3e   :  { %211 = vmatprep.subr.bf16.mxu0 %v4866_v0 }
  0x41   :  { %212 = vmatpush1.bf16.msra.mxu0 %v4432_v8 }
  0x42   :  { %213 = vmatprep.subr.bf16.mxu0 %v4866_v0 }
  0x45   :  { %214 = vmatpush1.bf16.msra.mxu0 %v4433_v9  ;;  %v3528_v9 = vld [vmem:[#allocation4] ss:$0 sm:$0xff] }
  0x46   :  { %215 = vmatprep.subr.bf16.mxu0 %v4866_v0 }
  0x49   :  { %216 = vmatpush1.bf16.msra.mxu0 %v4434_v10 }
  0x4a   :  { %217 = vmatprep.subr.bf16.mxu0 %v4866_v0 }
  0x4d   :  { %218 = vmatpush1.bf16.msra.mxu0 %v4435_v11 }
  0x4e   :  { %219 = vmatprep.subr.bf16.mxu0 %v4866_v0 }
  0x51   :  { %220 = vmatpush1.bf16.msra.mxu0 %v4436_v12 }
  0x52   :  { %221 = vmatprep.subr.bf16.mxu0 %v4866_v0 }
  0x55   :  { %222 = vmatpush1.bf16.msra.mxu0 %v4437_v13 }
  0x56   :  { %223 = vmatprep.subr.bf16.mxu0 %v4866_v0 }
  0x59   :  { %224 = vmatpush1.bf16.msra.mxu0 %v4438_v14 }
  0x5a   :  { %225 = vmatprep.subr.bf16.mxu0 %v4866_v0 }
  0x5d   :  { %226 = vmatpush1.bf16.msra.mxu0 %v4439_v15 }
  0x60   :  { %236 = vmatmul.mubr.bf16.vlgmr.msra.gmra.mrb[0].mxu0 %v116_v20 }
  0x61   :  { %3526 = vmatprep.mubr.msk.bf16.mxu0 %vm196_vm0, %v119_v21 }
  0x68   :  { %244 = vmatmul.mubr.bf16.gmra.mrb[4].mxu0 %v118_v24  ;;  %v4440_v24 = vld [vmem:[%s6293_s8 + $0x4] ss:$12 sps:$4 sm:$0xff]  }
  0x69   :  { %580 = vmatprep.subr.bf16.mxu1 %v4440_v24 }
 0x133   :  { %v237_v26 = vpop.f32.mrb[0].mxu0 }
 0x134   :  { %v238_v27 = vadd.f32 %v237_v26, %v120_v25  ;;  %v239_v28 = vpop.f32.mrb[1].mxu0  ;;  %v4442_v25 = vld [vmem:[%s6293_s8] ss:$12 sps:$4 sm:$0xff]   ;;  %v4443_v26 = vld [vmem:[%s6293_s8 + $0x1c] ss:$12 sps:$4 sm:$0xff]  }
 0x135   :  { %v240_v30 = vpop.f32.mrb[2].mxu0  ;;  %581 = vmatpush1.bf16.msra.mxu1 %v4442_v25 }
 0x136   :  { %v242_v31 = vpop.f32.mrb[3].mxu0  ;;  %254 = vadd.xlane.f32.xlu0 %v238_v27  ;;  %v241_v32 = vadd.f32 %v240_v30, %v121_v29  ;;  %582 = vmatprep.subr.bf16.mxu1 %v4443_v26 }
 0x13a   :  { %256 = vadd.xlane.f32.xlu0 %v241_v32 }
 0x13b   :  { %v245_v34 = vpop.f32.mrb[4].mxu0 }
 0x13c   :  { %v246_v35 = vadd.f32 %v245_v34, %v122_v33  ;;  %v247_v36 = vpop.f32.mrb[5].mxu0 }
 0x13d   :  { %v248_v38 = vpop.f32.mrb[6].mxu0 }
 0x13e   :  { %v250_v39 = vpop.f32.mrb[7].mxu0  ;;  %258 = vadd.xlane.f32.xlu1 %v246_v35  ;;  %v249_v40 = vadd.f32 %v248_v38, %v123_v37 }
 0x142   :  { %260 = vadd.xlane.f32.xlu1 %v249_v40 }
 0x1c3   :  { %v255_v41 = vpop.xlane.xlu0 %254 }
 0x1c4   :  { %v263_v42 = vmul.f32 0.0078125, %v255_v41 }
 0x1c6   :  { %v267_v43 = vsub.f32 %v238_v27, %v263_v42  ;;  %v4445_v27 = vld [vmem:[%s6293_s8 + $0x18] ss:$12 sps:$4 sm:$0xff]  }
 0x1c7   :  { %v257_v44 = vpop.xlane.xlu0 %256  ;;  %583 = vmatpush1.bf16.msra.mxu1 %v4445_v27  ;;  %v4466_v27 = vld [vmem:[%s6293_s8 + $0x38] ss:$12 sps:$4 sm:$0xff]  }
 0x1c8   :  { %v264_v45 = vmul.f32 0.0078125, %v257_v44  ;;  %v271_v46 = vmul.f32 %v267_v43, %v267_v43  ;;  %v4446_v44 = vld [vmem:[%s6293_s8 + $0x34] ss:$12 sps:$4 sm:$0xff]  }
 0x1c9   :  { %584 = vmatprep.subr.bf16.mxu1 %v4446_v44 }
 0x1ca   :  { %275 = vadd.xlane.f32.xlu0 %v271_v46  ;;  %v268_v47 = vsub.f32 %v241_v32, %v264_v45  ;;  %v4448_v45 = vld [vmem:[%s6293_s8 + $0x30] ss:$12 sps:$4 sm:$0xff]   ;;  %v4449_v46 = vld [vmem:[%s6293_s8 + $0x4c] ss:$12 sps:$4 sm:$0xff]  }
 0x1cb   :  { %v259_v48 = vpop.xlane.xlu1 %258  ;;  %585 = vmatpush1.bf16.msra.mxu1 %v4448_v45 }
 0x1cc   :  { %v265_v49 = vmul.f32 0.0078125, %v259_v48  ;;  %v272_v50 = vmul.f32 %v268_v47, %v268_v47  ;;  %586 = vmatprep.subr.bf16.mxu1 %v4449_v46  ;;  %v4452_v48 = vld [vmem:[%s6293_s8 + $0x64] ss:$12 sps:$4 sm:$0xff]  }
 0x1ce   :  { %277 = vadd.xlane.f32.xlu1 %v272_v50  ;;  %v269_v51 = vsub.f32 %v246_v35, %v265_v49  ;;  %v4454_v49 = vld [vmem:[%s6293_s8 + $0x60] ss:$12 sps:$4 sm:$0xff]   ;;  %v4455_v50 = vld [vmem:[%s6293_s8 + $0x7c] ss:$12 sps:$4 sm:$0xff]  }
 0x1cf   :  { %v261_v52 = vpop.xlane.xlu1 %260 }
 0x1d0   :  { %v266_v53 = vmul.f32 0.0078125, %v261_v52  ;;  %v273_v54 = vmul.f32 %v269_v51, %v269_v51  ;;  %v4458_v52 = vld [vmem:[%s6293_s8 + $0x94] ss:$12 sps:$4 sm:$0xff]  }
 0x1d2   :  { %279 = vadd.xlane.f32.xlu0 %v273_v54  ;;  %v270_v55 = vsub.f32 %v249_v40, %v266_v53  ;;  %v4460_v53 = vld [vmem:[%s6293_s8 + $0x90] ss:$12 sps:$4 sm:$0xff]   ;;  %v4461_v54 = vld [vmem:[%s6293_s8 + $0xac] ss:$12 sps:$4 sm:$0xff]  }
 0x1d4   :  { %v274_v56 = vmul.f32 %v270_v55, %v270_v55 }
 0x1d6   :  { %281 = vadd.xlane.f32.xlu1 %v274_v56  ;;  %v4464_v56 = vld [vmem:[%s6293_s8 + $0x8] ss:$12 sps:$4 sm:$0xff]  }
 0x257   :  { %v276_v57 = vpop.xlane.xlu0 %275 }
 0x258   :  { %v283_v58 = vmul.f32 0.0078125, %v276_v57 }
 0x25a   :  { %v287_v59 = vadd.f32 1e-05, %v283_v58 }
 0x25b   :  { %v278_v60 = vpop.xlane.xlu1 %277 }
 0x25c   :  { %4600 = vrsqrt.f32 %v287_v59  ;;  %v284_v61 = vmul.f32 0.0078125, %v278_v60 }
 0x25e   :  { %v288_v62 = vadd.f32 1e-05, %v284_v61 }
 0x25f   :  { %v280_v63 = vpop.xlane.xlu0 %279 }
 0x260   :  { %4602 = vrsqrt.f32 %v288_v62  ;;  %v285_v1 = vmul.f32 0.0078125, %v280_v63 }
 0x262   :  { %v289_v2 = vadd.f32 1e-05, %v285_v1 }
 0x263   :  { %v282_v3 = vpop.xlane.xlu1 %281 }
 0x264   :  { %4604 = vrsqrt.f32 %v289_v2  ;;  %v286_v4 = vmul.f32 0.0078125, %v282_v3 }
 0x266   :  { %v4601_v5 = vpop.eup %4600  ;;  %v290_v6 = vadd.f32 1e-05, %v286_v4 }
 0x267   :  { %v295_v8 = vmul.f32 %v4601_v5, %v267_v43 }
 0x268   :  { %4606 = vrsqrt.f32 %v290_v6 }
 0x269   :  { %v305_v10 = vmul.f32 %v3527_v7, %v295_v8  ;;  %v3529_v8 = vld [vmem:[%s6291_s6] ss:$0 sm:$0xff] }
 0x26a   :  { %v4603_v11 = vpop.eup %4602 }
 0x26b   :  { %v5076_v12 = vadd.f32 %v3528_v9, %v305_v10  ;;  %v296_v13 = vmul.f32 %v4603_v11, %v268_v47  ;;  %v4451_v47 = vld [vmem:[%s6293_s8 + $0x48] ss:$12 sps:$4 sm:$0xff]  }
 0x26c   :  { %587 = vmatpush1.bf16.msra.mxu1 %v4451_v47 }
 0x26d   :  { %337 = vadd.xlane.f32.xlu0 %v5076_v12  ;;  %v306_v14 = vmul.f32 %v3527_v7, %v296_v13  ;;  %588 = vmatprep.subr.bf16.mxu1 %v4452_v48  ;;  %v3530_v13 = vld [vmem:[%s6292_s7] ss:$0 sm:$0xff] }
 0x26e   :  { %v4605_v15 = vpop.eup %4604 }
 0x26f   :  { %v5079_v16 = vadd.f32 %v3528_v9, %v306_v14  ;;  %v297_v17 = vmul.f32 %v4605_v15, %v269_v51  ;;  %v4457_v51 = vld [vmem:[%s6293_s8 + $0x78] ss:$12 sps:$4 sm:$0xff]  }
 0x270   :  { %589 = vmatpush1.bf16.msra.mxu1 %v4454_v49 }
 0x271   :  { %339 = vadd.xlane.f32.xlu1 %v5079_v16  ;;  %v307_v18 = vmul.f32 %v3527_v7, %v297_v17  ;;  %590 = vmatprep.subr.bf16.mxu1 %v4455_v50 }
 0x272   :  { %v4607_v19 = vpop.eup %4606 }
 0x273   :  { %v5082_v20 = vadd.f32 %v3528_v9, %v307_v18  ;;  %v298_v21 = vmul.f32 %v4607_v19, %v270_v55  ;;  %v4463_v55 = vld [vmem:[%s6293_s8 + $0xa8] ss:$12 sps:$4 sm:$0xff]  }
 0x274   :  { %591 = vmatpush1.bf16.msra.mxu1 %v4457_v51 }
 0x275   :  { %341 = vadd.xlane.f32.xlu0 %v5082_v20  ;;  %v308_v22 = vmul.f32 %v3527_v7, %v298_v21  ;;  %592 = vmatprep.subr.bf16.mxu1 %v4458_v52 }
 0x277   :  { %v5085_v23 = vadd.f32 %v3528_v9, %v308_v22  ;;  %v4465_v22 = vld [vmem:[%s6293_s8 + $0x20] ss:$12 sps:$4 sm:$0xff]  }
 0x278   :  { %593 = vmatpush1.bf16.msra.mxu1 %v4460_v53 }
 0x279   :  { %343 = vadd.xlane.f32.xlu1 %v5085_v23  ;;  %594 = vmatprep.subr.bf16.mxu1 %v4461_v54 }
 0x27c   :  { %595 = vmatpush1.bf16.msra.mxu1 %v4463_v55 }
 0x27d   :  { %3958 = vmatprep.subr.bf16.mxu1 %v4464_v56 }
 0x2fa   :  { %v338_v28 = vpop.xlane.xlu0 %337 }
 0x2fb   :  { %v345_v29 = vmul.f32 0.0078125, %v338_v28 }
 0x2fd   :  { %v349_v30 = vsub.f32 %v5076_v12, %v345_v29 }
 0x2fe   :  { %v340_v31 = vpop.xlane.xlu1 %339 }
 0x2ff   :  { %v346_v32 = vmul.f32 0.0078125, %v340_v31  ;;  %v353_v33 = vmul.f32 %v349_v30, %v349_v30 }
 0x301   :  { %357 = vadd.xlane.f32.xlu0 %v353_v33  ;;  %v350_v34 = vsub.f32 %v5079_v16, %v346_v32  ;;  %v4467_v32 = vld [vmem:[%s6293_s8 + $0x50] ss:$12 sps:$4 sm:$0xff]   ;;  %v4468_v33 = vld [vmem:[%s6293_s8 + $0x68] ss:$12 sps:$4 sm:$0xff]  }
 0x302   :  { %v342_v35 = vpop.xlane.xlu0 %341 }
 0x303   :  { %v347_v36 = vmul.f32 0.0078125, %v342_v35  ;;  %v354_v37 = vmul.f32 %v350_v34, %v350_v34  ;;  %v4470_v35 = vld [vmem:[%s6293_s8 + $0x98] ss:$12 sps:$4 sm:$0xff]  }
 0x305   :  { %359 = vadd.xlane.f32.xlu1 %v354_v37  ;;  %v351_v38 = vsub.f32 %v5082_v20, %v347_v36  ;;  %v4471_v36 = vld [vmem:[%s6293_s8 + $0xb0] ss:$12 sps:$4 sm:$0xff]   ;;  %v437_v37 = vlaneseq }
 0x306   :  { %v344_v39 = vpop.xlane.xlu1 %343 }
 0x307   :  { %v348_v40 = vmul.f32 0.0078125, %v344_v39  ;;  %v355_v41 = vmul.f32 %v351_v38, %v351_v38 }
 0x309   :  { %361 = vadd.xlane.f32.xlu0 %v355_v41  ;;  %v352_v42 = vsub.f32 %v5085_v23, %v348_v40  ;;  %v435_v40 = vld [vmem:[%s6294_s9] sm:$0x7] }
 0x30b   :  { %v356_v43 = vmul.f32 %v352_v42, %v352_v42 }
 0x30d   :  { %363 = vadd.xlane.f32.xlu1 %v356_v43 }
 0x38e   :  { %v358_v57 = vpop.xlane.xlu0 %357 }
 0x38f   :  { %v365_v58 = vmul.f32 0.0078125, %v358_v57 }
 0x391   :  { %v369_v59 = vadd.f32 1e-05, %v365_v58 }
 0x392   :  { %v360_v60 = vpop.xlane.xlu1 %359 }
 0x393   :  { %4608 = vrsqrt.f32 %v369_v59  ;;  %v366_v61 = vmul.f32 0.0078125, %v360_v60 }
 0x395   :  { %v370_v62 = vadd.f32 1e-05, %v366_v61 }
 0x396   :  { %v362_v63 = vpop.xlane.xlu0 %361 }
 0x397   :  { %4610 = vrsqrt.f32 %v370_v62  ;;  %v367_v1 = vmul.f32 0.0078125, %v362_v63 }
 0x399   :  { %v371_v2 = vadd.f32 1e-05, %v367_v1 }
 0x39a   :  { %v364_v3 = vpop.xlane.xlu1 %363 }
 0x39b   :  { %4612 = vrsqrt.f32 %v371_v2  ;;  %v368_v4 = vmul.f32 0.0078125, %v364_v3 }
 0x39d   :  { %v4609_v5 = vpop.eup %4608  ;;  %v372_v6 = vadd.f32 1e-05, %v368_v4 }
 0x39e   :  { %v377_v7 = vmul.f32 %v4609_v5, %v349_v30 }
 0x39f   :  { %4614 = vrsqrt.f32 %v372_v6 }
 0x3a0   :  { %v387_v11 = vmul.f32 %v3529_v8, %v377_v7 }
 0x3a1   :  { %v4611_v9 = vpop.eup %4610 }
 0x3a2   :  { %v378_v10 = vmul.f32 %v4611_v9, %v350_v34  ;;  %v397_v17 = vadd.f32 %v3530_v13, %v387_v11  ;;  %v4469_v34 = vld [vmem:[%s6293_s8 + $0x80] ss:$12 sps:$4 sm:$0xff]  }
 0x3a4   :  { %v388_v14 = vmul.f32 %v3529_v8, %v378_v10 }
 0x3a5   :  { %v4613_v15 = vpop.eup %4612 }
 0x3a6   :  { %v398_v18 = vadd.f32 %v3530_v13, %v388_v14  ;;  %v379_v19 = vmul.f32 %v4613_v15, %v351_v38  ;;  %v5171_v38 = vshrl.u32 %v437_v37, 7 }
 0x3a8   :  { %v433_v21 = vpack.c.bf16 %v398_v18, %v397_v17  ;;  %v389_v26 = vmul.f32 %v3529_v8, %v379_v19  ;;  %v5174_v39 = vsub.s32 0, %v5171_v38  ;;  %v5180_v41 = vsub.s32 1, %v5171_v38 }
 0x3a9   :  { %v4615_v24 = vpop.eup %4614  ;;  %v447_v7 = vsub.s32 2, %v5171_v38 }
 0x3aa   :  { %613 = vmatmul.mubr.bf16.vlgmr.msra.gmra.mrb[0].mxu1 %v433_v21  ;;  %v380_v25 = vmul.f32 %v4615_v24, %v352_v42  ;;  %v399_v29 = vadd.f32 %v3530_v13, %v389_v26  ;;  %v440_v42 = vrot.slane %v435_v40, %v5174_v39  ;;  %v444_v44 = vrot.slane %v435_v40, %v5180_v41 }
 0x3ab   :  { %3959 = vmatpush3.bf16.msra.mxu1 %v4464_v56  ;;  %622 = vmatprep.mubr.bf16.mxu1 %v4866_v0 }
 0x3ac   :  { %3960 = vmatprep.subr.bf16.mxu1 %v4465_v22  ;;  %v390_v28 = vmul.f32 %v3529_v8, %v380_v25  ;;  %v448_v8 = vrot.slane %v435_v40, %v447_v7 }
 0x3ae   :  { %v400_v30 = vadd.f32 %v3530_v13, %v390_v28 }
 0x3af   :  { %3961 = vmatpush3.bf16.msra.mxu1 %v4465_v22 }
 0x3b0   :  { %3962 = vmatprep.subr.bf16.mxu1 %v4466_v27  ;;  %v434_v31 = vpack.c.bf16 %v400_v30, %v399_v29 }
 0x3b2   :  { %623 = vmatmul.mubr.bf16.gmra.mrb[4].mxu1 %v434_v31 }
 0x3b3   :  { %3963 = vmatpush3.bf16.msra.mxu1 %v4466_v27  ;;  %3974 = vmatprep.mubr.bf16.mxu1 %v433_v21 }
 0x3b4   :  { %3964 = vmatprep.subr.bf16.mxu1 %v4467_v32 }
 0x3b7   :  { %3965 = vmatpush3.bf16.msra.mxu1 %v4467_v32 }
 0x3b8   :  { %3966 = vmatprep.subr.bf16.mxu1 %v4468_v33 }
 0x3bb   :  { %3967 = vmatpush3.bf16.msra.mxu1 %v4468_v33 }
 0x3bc   :  { %3968 = vmatprep.subr.bf16.mxu1 %v4469_v34 }
 0x3bf   :  { %3969 = vmatpush3.bf16.msra.mxu1 %v4469_v34 }
 0x3c0   :  { %3970 = vmatprep.subr.bf16.mxu1 %v4470_v35 }
 0x3c3   :  { %3971 = vmatpush3.bf16.msra.mxu1 %v4470_v35 }
 0x3c4   :  { %3972 = vmatprep.subr.bf16.mxu1 %v4471_v36 }
 0x3c7   :  { %3973 = vmatpush3.bf16.msra.mxu1 %v4471_v36 }
 0x3ca   :  { %3975 = vmatmul.mubr.bf16.vlgmr.msra.gmra.mrb[8].mxu1 %v434_v31 }
 0x47d   :  { %v614_v43 = vpop.f32.mrb[0].mxu1 }
 0x47e   :  { %v616_v45 = vpop.f32.mrb[1].mxu1  ;;  %v615_v47 = vadd.f32 %v614_v43, %v440_v42 }
 0x47f   :  { %v618_v46 = vpop.f32.mrb[2].mxu1  ;;  %v617_v50 = vadd.f32 %v616_v45, %v444_v44 }
 0x480   :  { %v619_v48 = vadd.f32 %v618_v46, %v440_v42  ;;  %v620_v49 = vpop.f32.mrb[3].mxu1 }
 0x481   :  { %v621_v51 = vadd.f32 %v620_v49, %v444_v44 }
 0x482   :  { %v802_v52 = vpack.c.bf16 %v619_v48, %v615_v47  ;;  %v4218_v53 = vpack.i.bf16 %v619_v48, %v615_v47 }
 0x483   :  { %v4188_v54 = vpack.i.bf16 %v621_v51, %v617_v50  ;;  %v810_v55 = vpack.c.bf16 %v621_v51, %v617_v50 }
 0x484   :  { %3994 = vmatprep.mubr.msk.bf16.mxu0 %vm818_vm1, %v802_v52 }
 0x485   :  { %4189 = vrot.lane.b32.xlu0 %v4188_v54, %s4867_s30  ;;  %v624_v56 = vpop.f32.mrb[4].mxu1  ;;  %4166 = vmatprep.subr.msk.bf16.mxu0 %vm818_vm1, %v810_v55  ;;  %v844_v57 = vsel %vm818_vm1, %v810_v55, 0 }
 0x486   :  { %v626_v58 = vpop.f32.mrb[5].mxu1  ;;  %3979 = vmatpush3.bf16.xpose.msra.mxu0 %v844_v57  ;;  %v5188_v60 = vadd.f32 %v624_v56, %v440_v42 }
 0x487   :  { %v628_v59 = vpop.f32.mrb[6].mxu1  ;;  %v627_v63 = vadd.f32 %v626_v58, %v444_v44 }
 0x488   :  { %v5190_v61 = vadd.f32 %v628_v59, %v440_v42  ;;  %v630_v62 = vpop.f32.mrb[7].mxu1 }
 0x489   :  { %v631_v1 = vadd.f32 %v630_v62, %v444_v44  ;;  %4209 = vrot.lane.b32.xlu0 %v4188_v54, %s4868_s25 }
 0x48a   :  { %v803_v2 = vpack.c.bf16 %v5190_v61, %v5188_v60  ;;  %v4223_v3 = vpack.i.bf16 %v5190_v61, %v5188_v60 }
 0x48b   :  { %v4193_v4 = vpack.i.bf16 %v631_v1, %v627_v63  ;;  %v811_v5 = vpack.c.bf16 %v631_v1, %v627_v63 }
 0x48d   :  { %4219 = vrot.lane.b32.xlu0 %v4218_v53, %s4867_s30  ;;  %4194 = vrot.lane.b32.xlu1 %v4193_v4, %s4867_s30  ;;  %v847_v6 = vsel %vm818_vm1, %v811_v5, 0 }
 0x48e   :  { %4167 = vmatprep.subr.msk.bf16.mxu0 %vm818_vm1, %v811_v5 }
 0x48f   :  { %3981 = vmatpush3.bf16.xpose.msra.mxu0 %v847_v6 }
 0x491   :  { %4229 = vrot.lane.b32.xlu0 %v4218_v53, %s4869_s29  ;;  %4199 = vrot.lane.b32.xlu1 %v4188_v54, %s4869_s29 }
 0x495   :  { %4239 = vrot.lane.b32.xlu0 %v4218_v53, %s4868_s25  ;;  %4204 = vrot.lane.b32.xlu1 %v4193_v4, %s4869_s29 }
 0x499   :  { %4214 = vrot.lane.b32.xlu1 %v4193_v4, %s4868_s25 }
 0x49d   :  { %v3976_v9 = vpop.f32.mrb[8].mxu1  ;;  %4224 = vrot.lane.b32.xlu1 %v4223_v3, %s4867_s30 }
 0x49e   :  { %v667_v10 = vpop.f32.mrb[9].mxu1  ;;  %v676_v13 = vadd.f32 %v3976_v9, %v448_v8 }
 0x49f   :  { %v3977_v11 = vpop.f32.mrb[10].mxu1  ;;  %v668_v17 = vadd.f32 %v667_v10, %v448_v8 }
 0x4a0   :  { %v679_v14 = vadd.f32 %v3977_v11, %v448_v8  ;;  %v670_v15 = vpop.f32.mrb[11].mxu1 }
 0x4a1   :  { %v671_v18 = vadd.f32 %v670_v15, %v448_v8  ;;  %4234 = vrot.lane.b32.xlu1 %v4223_v3, %s4869_s29 }
 0x4a2   :  { %v1117_v19 = vpack.c.bf16 %v679_v14, %v676_v13  ;;  %v5211_v21 = vpack.i.bf16 %v679_v14, %v676_v13 }
 0x4a3   :  { %v5213_v22 = vpack.i.bf16 %v671_v18, %v668_v17  ;;  %v1116_v24 = vpack.c.bf16 %v671_v18, %v668_v17 }
 0x4a5   :  { %4254 = vrot.lane.b32.xlu0 %v5213_v22, %s4867_s30  ;;  %4010 = vmatprep.subr.bf16.mxu1 %v1116_v24 }
 0x4a6   :  { %4011 = vmatpush3.bf16.msra.mxu1 %v1116_v24  ;;  %4244 = vrot.lane.b32.xlu1 %v4223_v3, %s4868_s25 }
 0x4a7   :  { %4012 = vmatprep.subr.bf16.mxu1 %v1117_v19 }
 0x4aa   :  { %4013 = vmatpush3.bf16.msra.mxu1 %v1117_v19  ;;  %4249 = vrot.lane.b32.xlu1 %v5211_v21, %s4867_s30 }
 0x4f7   :  { %v4190_v25 = vpop.permute.xlu0 %4189 }
 0x4f8   :  { %v4192_v26 = vunpack.i.h.bf16 %v4190_v25  ;;  %v4191_v27 = vunpack.i.l.bf16 %v4190_v25 }
 0x4fa   :  { %v812_v28 = vpack.c.bf16 %v4192_v26, %v4191_v27 }
 0x4fb   :  { %v4210_v33 = vpop.permute.xlu0 %4209 }
 0x4fc   :  { %4168 = vmatprep.subr.msk.bf16.mxu0 %vm818_vm1, %v812_v28  ;;  %v850_v29 = vsel %vm818_vm1, %v812_v28, 0  ;;  %v4212_v52 = vunpack.i.h.bf16 %v4210_v33  ;;  %v4211_v53 = vunpack.i.l.bf16 %v4210_v33 }
 0x4fd   :  { %3983 = vmatpush3.bf16.xpose.msra.mxu0 %v850_v29 }
 0x4fe   :  { %v816_v56 = vpack.c.bf16 %v4212_v52, %v4211_v53  ;;  %v325_v52 = vld [vmem:[%s6288_s3 + $0x30] sm:$0xff] }
 0x4ff   :  { %v4195_v30 = vpop.permute.xlu1 %4194  ;;  %v4220_v43 = vpop.permute.xlu0 %4219 }
 0x500   :  { %v4197_v31 = vunpack.i.h.bf16 %v4195_v30  ;;  %v4196_v32 = vunpack.i.l.bf16 %v4195_v30  ;;  %v862_v10 = vsel %vm818_vm1, %v816_v56, 0  ;;  %v4222_v14 = vunpack.i.h.bf16 %v4220_v43 }
 0x501   :  { %v4221_v15 = vunpack.i.l.bf16 %v4220_v43 }
 0x502   :  { %v813_v34 = vpack.c.bf16 %v4197_v31, %v4196_v32 }
 0x503   :  { %v4200_v35 = vpop.permute.xlu1 %4199  ;;  %v4230_v48 = vpop.permute.xlu0 %4229  ;;  %v804_v17 = vpack.c.bf16 %v4222_v14, %v4221_v15  ;;  %v334_v15 = vld [vmem:[%s6288_s3 + $0x78] sm:$0xff] }
 0x504   :  { %v4202_v36 = vunpack.i.h.bf16 %v4200_v35  ;;  %v4201_v37 = vunpack.i.l.bf16 %v4200_v35  ;;  %4169 = vmatprep.subr.msk.bf16.mxu0 %vm818_vm1, %v813_v34  ;;  %v853_v40 = vsel %vm818_vm1, %v813_v34, 0  ;;  %v4232_v24 = vunpack.i.h.bf16 %v4230_v48  ;;  %v321_v34 = vld [vmem:[%s6288_s3 + $0x10] sm:$0xff] }
 0x505   :  { %3985 = vmatpush3.bf16.xpose.msra.mxu0 %v853_v40  ;;  %v4231_v25 = vunpack.i.l.bf16 %v4230_v48  ;;  %v320_v40 = vld [vmem:[%s6288_s3 + $0x8] sm:$0xff] }
 0x506   :  { %v814_v42 = vpack.c.bf16 %v4202_v36, %v4201_v37 }
 0x507   :  { %v4205_v44 = vpop.permute.xlu1 %4204  ;;  %v4240_v54 = vpop.permute.xlu0 %4239  ;;  %v806_v27 = vpack.c.bf16 %v4232_v24, %v4231_v25 }
 0x508   :  { %4170 = vmatprep.subr.msk.bf16.mxu0 %vm818_vm1, %v814_v42  ;;  %v4207_v45 = vunpack.i.h.bf16 %v4205_v44  ;;  %v4206_v46 = vunpack.i.l.bf16 %v4205_v44  ;;  %v856_v50 = vsel %vm818_vm1, %v814_v42, 0  ;;  %v4242_v30 = vunpack.i.h.bf16 %v4240_v54  ;;  %v319_v42 = vld [vmem:[%s6288_s3] sm:$0xff] }
 0x509   :  { %v4241_v31 = vunpack.i.l.bf16 %v4240_v54 }
 0x50a   :  { %v815_v49 = vpack.c.bf16 %v4207_v45, %v4206_v46 }
 0x50b   :  { %v4215_v47 = vpop.permute.xlu1 %4214  ;;  %v808_v60 = vpack.c.bf16 %v4242_v30, %v4241_v31 }
 0x50c   :  { %v859_v57 = vsel %vm818_vm1, %v815_v49, 0  ;;  %v4217_v1 = vunpack.i.h.bf16 %v4215_v47  ;;  %v4216_v3 = vunpack.i.l.bf16 %v4215_v47  ;;  %v322_v47 = vld [vmem:[%s6288_s3 + $0x18] sm:$0xff] }
 0x50d   :  { %3987 = vmatpush3.bf16.xpose.msra.mxu0 %v856_v50 }
 0x50e   :  { %4171 = vmatprep.subr.msk.bf16.mxu0 %vm818_vm1, %v815_v49  ;;  %v817_v6 = vpack.c.bf16 %v4217_v1, %v4216_v3  ;;  %v326_v49 = vld [vmem:[%s6288_s3 + $0x38] sm:$0xff] }
 0x50f   :  { %v4225_v51 = vpop.permute.xlu1 %4224 }
 0x510   :  { %v865_v13 = vsel %vm818_vm1, %v817_v6, 0  ;;  %v4227_v18 = vunpack.i.h.bf16 %v4225_v51  ;;  %v4226_v19 = vunpack.i.l.bf16 %v4225_v51 }
 0x512   :  { %v805_v26 = vpack.c.bf16 %v4227_v18, %v4226_v19  ;;  %v333_v19 = vld [vmem:[%s6288_s3 + $0x70] sm:$0xff] }
 0x513   :  { %v4235_v55 = vpop.permute.xlu1 %4234 }
 0x514   :  { %v4237_v28 = vunpack.i.h.bf16 %v4235_v55  ;;  %v4236_v29 = vunpack.i.l.bf16 %v4235_v55 }
 0x515   :  { %3989 = vmatpush3.bf16.xpose.msra.mxu0 %v859_v57 }
 0x516   :  { %4172 = vmatprep.subr.msk.bf16.mxu0 %vm818_vm1, %v816_v56  ;;  %v807_v32 = vpack.c.bf16 %v4237_v28, %v4236_v29  ;;  %v324_v56 = vld [vmem:[%s6288_s3 + $0x28] sm:$0xff]  ;;  %v331_v29 = vld [vmem:[%s6288_s3 + $0x60] sm:$0xff] }
 0x517   :  { %v4255_v58 = vpop.permute.xlu0 %4254 }
 0x518   :  { %v4257_v59 = vunpack.i.h.bf16 %v4255_v58  ;;  %v4256_v62 = vunpack.i.l.bf16 %v4255_v58  ;;  %v4245_v63 = vpop.permute.xlu1 %4244  ;;  %v323_v58 = vld [vmem:[%s6288_s3 + $0x20] sm:$0xff] }
 0x519   :  { %v4247_v61 = vunpack.i.h.bf16 %v4245_v63 }
 0x51a   :  { %v1118_v4 = vpack.c.bf16 %v4257_v59, %v4256_v62 }
 0x51c   :  { %v4250_v5 = vpop.permute.xlu1 %4249  ;;  %4014 = vmatprep.subr.bf16.mxu1 %v1118_v4 }
 0x51d   :  { %v4252_v8 = vunpack.i.h.bf16 %v4250_v5  ;;  %v4251_v9 = vunpack.i.l.bf16 %v4250_v5  ;;  %4015 = vmatpush3.bf16.msra.mxu1 %v1118_v4  ;;  %3991 = vmatpush3.bf16.xpose.msra.mxu0 %v862_v10  ;;  %v329_v4 = vld [vmem:[%s6288_s3 + $0x50] sm:$0xff] }
 0x51e   :  { %4173 = vmatprep.subr.msk.bf16.mxu0 %vm818_vm1, %v817_v6 }
 0x51f   :  { %v1119_v11 = vpack.c.bf16 %v4252_v8, %v4251_v9  ;;  %v328_v9 = vld [vmem:[%s6288_s3 + $0x48] sm:$0xff] }
 0x521   :  { %4016 = vmatprep.subr.bf16.mxu1 %v1119_v11 }
 0x522   :  { %4017 = vmatpush3.bf16.msra.mxu1 %v1119_v11  ;;  %v327_v11 = vld [vmem:[%s6288_s3 + $0x40] sm:$0xff] }
 0x525   :  { %3993 = vmatpush3.bf16.xpose.msra.mxu0 %v865_v13 }
 0x52c   :  { %3995 = vmatmul.mubr.msk.bf16.vlgmr.msra.gmra.mrb[8].mxu0 %vm818_vm1, %v803_v2  ;;  %v4246_v2 = vunpack.i.l.bf16 %v4245_v63  ;;  %v330_v63 = vld [vmem:[%s6288_s3 + $0x58] sm:$0xff] }
 0x52d   :  { %3998 = vmatprep.mubr.msk.bf16.mxu0 %vm818_vm1, %v804_v17 }
 0x52e   :  { %v809_v33 = vpack.c.bf16 %v4247_v61, %v4246_v2 }
 0x534   :  { %3999 = vmatmul.mubr.msk.bf16.gmra.mrb[12].mxu0 %vm818_vm1, %v805_v26 }
 0x535   :  { %4002 = vmatprep.mubr.msk.bf16.mxu0 %vm818_vm1, %v806_v27  ;;  %v332_v27 = vld [vmem:[%s6288_s3 + $0x68] sm:$0xff] }
 0x53c   :  { %4003 = vmatmul.mubr.msk.bf16.gmra.mrb[16].mxu0 %vm818_vm1, %v807_v32 }
 0x53d   :  { %4006 = vmatprep.mubr.msk.bf16.mxu0 %vm818_vm1, %v808_v60 }
 0x544   :  { %4007 = vmatmul.mubr.msk.bf16.gmra.mrb[20].mxu0 %vm818_vm1, %v809_v33 }
 0x545   :  { %1620 = vmatprep.mubr.bf16.mxu0 %v4866_v0 }
 0x5ff   :  { %v3996_v35 = vpop.f32.mrb[8].mxu0 }
 0x600   :  { %v5246_v36 = vadd.f32 %v3996_v35, %v321_v34  ;;  %v901_v37 = vpop.f32.mrb[9].mxu0 }
 0x601   :  { %v3997_v43 = vpop.f32.mrb[10].mxu0  ;;  %v5257_v46 = vadd.f32 %v901_v37, %v319_v42 }
 0x602   :  { %968 = vmax.xlane.f32.xlu0 %v5246_v36  ;;  %v904_v44 = vpop.f32.mrb[11].mxu0  ;;  %v5267_v50 = vadd.f32 %v3997_v43, %v322_v47 }
 0x603   :  { %v5255_v45 = vadd.f32 %v904_v44, %v320_v40 }
 0x605   :  { %966 = vmax.xlane.f32.xlu1 %v5255_v45 }
 0x606   :  { %964 = vmax.xlane.f32.xlu0 %v5257_v46 }
 0x607   :  { %v4000_v48 = vpop.f32.mrb[12].mxu0 }
 0x608   :  { %v917_v51 = vpop.f32.mrb[13].mxu0  ;;  %v926_v57 = vadd.f32 %v4000_v48, %v325_v52 }
 0x609   :  { %v4001_v53 = vpop.f32.mrb[14].mxu0  ;;  %v5287_v1 = vadd.f32 %v917_v51, %v323_v58 }
 0x60a   :  { %v5272_v54 = vadd.f32 %v4001_v53, %v326_v49  ;;  %v920_v55 = vpop.f32.mrb[15].mxu0  ;;  %970 = vmax.xlane.f32.xlu0 %v5267_v50 }
 0x60b   :  { %v5282_v59 = vadd.f32 %v920_v55, %v324_v56 }
 0x60c   :  { %978 = vmax.xlane.f32.xlu1 %v5272_v54 }
 0x60e   :  { %976 = vmax.xlane.f32.xlu0 %v926_v57 }
 0x60f   :  { %v4004_v62 = vpop.f32.mrb[16].mxu0 }
 0x610   :  { %v933_v3 = vpop.f32.mrb[17].mxu0  ;;  %974 = vmax.xlane.f32.xlu1 %v5282_v59  ;;  %v5299_v10 = vadd.f32 %v4004_v62, %v329_v4 }
 0x611   :  { %v4005_v5 = vpop.f32.mrb[18].mxu0  ;;  %v5311_v17 = vadd.f32 %v933_v3, %v327_v11 }
 0x612   :  { %v5293_v6 = vadd.f32 %v4005_v5, %v330_v63  ;;  %v936_v8 = vpop.f32.mrb[19].mxu0  ;;  %972 = vmax.xlane.f32.xlu0 %v5287_v1 }
 0x613   :  { %v5305_v13 = vadd.f32 %v936_v8, %v328_v9 }
 0x614   :  { %986 = vmax.xlane.f32.xlu1 %v5293_v6 }
 0x616   :  { %984 = vmax.xlane.f32.xlu0 %v5299_v10 }
 0x617   :  { %v4008_v14 = vpop.f32.mrb[20].mxu0 }
 0x618   :  { %v949_v18 = vpop.f32.mrb[21].mxu0  ;;  %982 = vmax.xlane.f32.xlu1 %v5305_v13  ;;  %v5323_v28 = vadd.f32 %v4008_v14, %v333_v19 }
 0x619   :  { %v4009_v24 = vpop.f32.mrb[22].mxu0  ;;  %v5332_v31 = vadd.f32 %v949_v18, %v331_v29 }
 0x61a   :  { %v5317_v25 = vadd.f32 %v4009_v24, %v334_v15  ;;  %v952_v26 = vpop.f32.mrb[23].mxu0  ;;  %980 = vmax.xlane.f32.xlu0 %v5311_v17 }
 0x61b   :  { %v5329_v30 = vadd.f32 %v952_v26, %v332_v27 }
 0x61c   :  { %994 = vmax.xlane.f32.xlu1 %v5317_v25 }
 0x61e   :  { %992 = vmax.xlane.f32.xlu0 %v5323_v28 }
 0x620   :  { %990 = vmax.xlane.f32.xlu1 %v5329_v30 }
 0x622   :  { %988 = vmax.xlane.f32.xlu0 %v5332_v31 }
 0x631   :  { %4264 = vrot.lane.b32.xlu1 %v5211_v21, %s4869_s29 }
 0x638   :  { %4259 = vrot.lane.b32.xlu0 %v5213_v22, %s4869_s29 }
 0x68f   :  { %v969_v32 = vpop.xlane.xlu0 %968 }
 0x690   :  { %v998_v60 = vsub.f32 %v5246_v36, %v969_v32 }
 0x692   :  { %v1016_v61 = vmul.f32 1.442695, %v998_v60  ;;  %v967_v33 = vpop.xlane.xlu1 %966 }
 0x693   :  { %v965_v2 = vpop.xlane.xlu0 %964  ;;  %v997_v37 = vsub.f32 %v5255_v45, %v967_v33 }
 0x694   :  { %4616 = vpow2.f32 %v1016_v61  ;;  %v996_v34 = vsub.f32 %v5257_v46, %v965_v2 }
 0x695   :  { %v1014_v47 = vmul.f32 1.442695, %v997_v37 }
 0x696   :  { %v1012_v35 = vmul.f32 1.442695, %v996_v34 }
 0x697   :  { %v971_v40 = vpop.xlane.xlu0 %970 }
 0x698   :  { %4618 = vpow2.f32 %v1012_v35  ;;  %v999_v42 = vsub.f32 %v5267_v50, %v971_v40 }
 0x699   :  { %v979_v43 = vpop.xlane.xlu1 %978 }
 0x69a   :  { %v1018_v44 = vmul.f32 1.442695, %v999_v42  ;;  %v1003_v46 = vsub.f32 %v5272_v54, %v979_v43 }
 0x69b   :  { %v977_v48 = vpop.xlane.xlu0 %976 }
 0x69c   :  { %4620 = vpow2.f32 %v1018_v44  ;;  %v1002_v49 = vsub.f32 %v926_v57, %v977_v48  ;;  %v1026_v62 = vmul.f32 1.442695, %v1003_v46 }
 0x69d   :  { %v975_v36 = vpop.xlane.xlu1 %974  ;;  %4622 = vpow2.f32 %v1014_v47 }
 0x69e   :  { %v5344_v51 = vpop.eup %4616  ;;  %v1024_v52 = vmul.f32 1.442695, %v1002_v49  ;;  %v1001_v53 = vsub.f32 %v5282_v59, %v975_v36 }
 0x69f   :  { %1048 = vadd.xlane.f32.xlu0 %v5344_v51  ;;  %v973_v45 = vpop.xlane.xlu0 %972 }
 0x6a0   :  { %4624 = vpow2.f32 %v1024_v52  ;;  %v1022_v50 = vmul.f32 1.442695, %v1001_v53  ;;  %v1000_v55 = vsub.f32 %v5287_v1, %v973_v45 }
 0x6a1   :  { %v987_v56 = vpop.xlane.xlu1 %986 }
 0x6a2   :  { %v5350_v58 = vpop.eup %4618  ;;  %v1020_v57 = vmul.f32 1.442695, %v1000_v55  ;;  %4626 = vpow2.f32 %v1022_v50  ;;  %v1007_v8 = vsub.f32 %v5293_v6, %v987_v56 }
 0x6a3   :  { %1044 = vadd.xlane.f32.xlu0 %v5350_v58  ;;  %v985_v63 = vpop.xlane.xlu0 %984 }
 0x6a4   :  { %4628 = vpow2.f32 %v1020_v57  ;;  %v1006_v59 = vsub.f32 %v5299_v10, %v985_v63  ;;  %v1034_v19 = vmul.f32 1.442695, %v1007_v8 }
 0x6a5   :  { %v983_v54 = vpop.xlane.xlu1 %982  ;;  %4630 = vpow2.f32 %v1026_v62 }
 0x6a6   :  { %v5354_v3 = vpop.eup %4620  ;;  %v1032_v4 = vmul.f32 1.442695, %v1006_v59  ;;  %v1005_v5 = vsub.f32 %v5305_v13, %v983_v54 }
 0x6a7   :  { %1050 = vadd.xlane.f32.xlu1 %v5354_v3  ;;  %v981_v1 = vpop.xlane.xlu0 %980  ;;  %v5360_v14 = vpop.eup %4622 }
 0x6a8   :  { %4632 = vpow2.f32 %v1032_v4  ;;  %v1030_v9 = vmul.f32 1.442695, %v1005_v5  ;;  %v1004_v11 = vsub.f32 %v5311_v17, %v981_v1 }
 0x6a9   :  { %v995_v15 = vpop.xlane.xlu1 %994 }
 0x6aa   :  { %v5362_v10 = vpop.eup %4624  ;;  %v1028_v18 = vmul.f32 1.442695, %v1004_v11  ;;  %4634 = vpow2.f32 %v1030_v9  ;;  %v1011_v52 = vsub.f32 %v5317_v25, %v995_v15 }
 0x6ab   :  { %1046 = vadd.xlane.f32.xlu1 %v5360_v14  ;;  %1056 = vadd.xlane.f32.xlu0 %v5362_v10  ;;  %v993_v13 = vpop.xlane.xlu0 %992 }
 0x6ac   :  { %4636 = vpow2.f32 %v1028_v18  ;;  %v5366_v24 = vpop.eup %4626  ;;  %v1010_v47 = vsub.f32 %v5323_v28, %v993_v13  ;;  %v1042_v46 = vmul.f32 1.442695, %v1011_v52 }
 0x6ad   :  { %v991_v6 = vpop.xlane.xlu1 %990  ;;  %4638 = vpow2.f32 %v1034_v19 }
 0x6ae   :  { %v5368_v26 = vpop.eup %4628  ;;  %v1009_v44 = vsub.f32 %v5329_v30, %v991_v6  ;;  %v1040_v36 = vmul.f32 1.442695, %v1010_v47 }
 0x6af   :  { %1054 = vadd.xlane.f32.xlu0 %v5366_v24  ;;  %1052 = vadd.xlane.f32.xlu1 %v5368_v26  ;;  %v989_v17 = vpop.xlane.xlu0 %988  ;;  %v5372_v27 = vpop.eup %4630 }
 0x6b0   :  { %v1038_v48 = vmul.f32 1.442695, %v1009_v44  ;;  %v1008_v49 = vsub.f32 %v5332_v31, %v989_v17 }
 0x6b1   :  { %v4265_v29 = vpop.permute.xlu1 %4264 }
 0x6b2   :  { %v5374_v32 = vpop.eup %4632  ;;  %v4267_v61 = vunpack.i.h.bf16 %v4265_v29  ;;  %v4266_v2 = vunpack.i.l.bf16 %v4265_v29  ;;  %4640 = vpow2.f32 %v1038_v48  ;;  %v1036_v53 = vmul.f32 1.442695, %v1008_v49 }
 0x6b3   :  { %1058 = vadd.xlane.f32.xlu1 %v5372_v27  ;;  %1064 = vadd.xlane.f32.xlu0 %v5374_v32  ;;  %v4260_v60 = vpop.permute.xlu0 %4259  ;;  %4642 = vpow2.f32 %v1040_v36 }
 0x6b4   :  { %v4262_v33 = vunpack.i.h.bf16 %v4260_v60  ;;  %v4261_v34 = vunpack.i.l.bf16 %v4260_v60  ;;  %v5378_v35 = vpop.eup %4634  ;;  %v1121_v42 = vpack.c.bf16 %v4267_v61, %v4266_v2  ;;  %4644 = vpow2.f32 %v1036_v53 }
 0x6b5   :  { %4646 = vpow2.f32 %v1042_v46 }
 0x6b6   :  { %v5380_v37 = vpop.eup %4636  ;;  %v1120_v40 = vpack.c.bf16 %v4262_v33, %v4261_v34 }
 0x6b7   :  { %1062 = vadd.xlane.f32.xlu0 %v5378_v35  ;;  %1060 = vadd.xlane.f32.xlu1 %v5380_v37  ;;  %v5384_v43 = vpop.eup %4638 }
 0x6b8   :  { %4018 = vmatprep.subr.bf16.mxu1 %v1120_v40 }
 0x6b9   :  { %4019 = vmatpush3.bf16.msra.mxu1 %v1120_v40 }
 0x6ba   :  { %4020 = vmatprep.subr.bf16.mxu1 %v1121_v42 }
 0x6bb   :  { %1066 = vadd.xlane.f32.xlu1 %v5384_v43 }
 0x6bd   :  { %4021 = vmatpush3.bf16.msra.mxu1 %v1121_v42 }
 0x6cc   :  { %4274 = vrot.lane.b32.xlu1 %v5211_v21, %s4868_s25  ;;  %v5395_v21 = vpop.eup %4640 }
 0x6cd   :  { %4269 = vrot.lane.b32.xlu0 %v5213_v22, %s4868_s25  ;;  %v5398_v22 = vpop.eup %4642 }
 0x6ce   :  { %v5400_v30 = vpop.eup %4644 }
 0x6cf   :  { %v5404_v28 = vpop.eup %4646 }
 0x6ec   :  { %1070 = vadd.xlane.f32.xlu0 %v5395_v21 }
 0x6f0   :  { %1072 = vadd.xlane.f32.xlu0 %v5398_v22  ;;  %1068 = vadd.xlane.f32.xlu1 %v5400_v30 }
 0x6f4   :  { %1074 = vadd.xlane.f32.xlu1 %v5404_v28 }
 0x72c   :  { %v1049_v25 = vpop.xlane.xlu0 %1048 }
 0x730   :  { %v1045_v31 = vpop.xlane.xlu0 %1044 }
 0x731   :  { %4648 = vrcp.f32 %v1045_v31 }
 0x734   :  { %v1051_v45 = vpop.xlane.xlu1 %1050 }
 0x738   :  { %v1047_v50 = vpop.xlane.xlu1 %1046  ;;  %v1057_v55 = vpop.xlane.xlu0 %1056 }
 0x739   :  { %4650 = vrcp.f32 %v1047_v50 }
 0x73a   :  { %4652 = vrcp.f32 %v1051_v45 }
 0x73b   :  { %v4649_v59 = vpop.eup %4648 }
 0x73c   :  { %v1053_v56 = vpop.xlane.xlu1 %1052  ;;  %v1055_v57 = vpop.xlane.xlu0 %1054  ;;  %v1092_v1 = vmul.f32 %v4649_v59, %v5350_v58 }
 0x73d   :  { %4654 = vrcp.f32 %v1053_v56 }
 0x73e   :  { %4656 = vrcp.f32 %v1055_v57 }
 0x73f   :  { %4658 = vrcp.f32 %v1049_v25 }
 0x740   :  { %v1059_v62 = vpop.xlane.xlu1 %1058  ;;  %v1065_v63 = vpop.xlane.xlu0 %1064 }
 0x741   :  { %4660 = vrcp.f32 %v1059_v62 }
 0x743   :  { %v4651_v54 = vpop.eup %4650 }
 0x744   :  { %v1061_v4 = vpop.xlane.xlu1 %1060  ;;  %v1063_v5 = vpop.xlane.xlu0 %1062  ;;  %v1093_v8 = vmul.f32 %v4651_v54, %v5360_v14 }
 0x745   :  { %4662 = vrcp.f32 %v1061_v4  ;;  %v4653_v19 = vpop.eup %4652 }
 0x746   :  { %v1108_v9 = vpack.c.bf16 %v1093_v8, %v1092_v1  ;;  %4664 = vrcp.f32 %v1063_v5  ;;  %v1095_v33 = vmul.f32 %v4653_v19, %v5354_v3 }
 0x747   :  { %v4655_v17 = vpop.eup %4654  ;;  %4666 = vrcp.f32 %v1057_v55 }
 0x748   :  { %v1067_v11 = vpop.xlane.xlu1 %1066  ;;  %4026 = vmatprep.mubr.bf16.mxu1 %v1108_v9  ;;  %v4270_v15 = vpop.permute.xlu0 %4269  ;;  %v1096_v34 = vmul.f32 %v4655_v17, %v5368_v26 }
 0x749   :  { %v4272_v18 = vunpack.i.h.bf16 %v4270_v15  ;;  %v4271_v13 = vunpack.i.l.bf16 %v4270_v15  ;;  %v4657_v60 = vpop.eup %4656  ;;  %4668 = vrcp.f32 %v1067_v11 }
 0x74a   :  { %v4659_v58 = vpop.eup %4658  ;;  %v1097_v40 = vmul.f32 %v4657_v60, %v5366_v24  ;;  %4670 = vrcp.f32 %v1065_v63  ;;  %v4474_v60 = vld [vmem:[%s6295_s10 + $0x10] sm:$0xff]  }
 0x74b   :  { %v1122_v6 = vpack.c.bf16 %v4272_v18, %v4271_v13  ;;  %v1094_v42 = vmul.f32 %v4659_v58, %v5344_v51  ;;  %v4661_v44 = vpop.eup %4660 }
 0x74c   :  { %v4275_v29 = vpop.permute.xlu1 %4274  ;;  %v1110_v49 = vpack.c.bf16 %v1097_v40, %v1096_v34  ;;  %v1099_v3 = vmul.f32 %v4661_v44, %v5372_v27  ;;  %v4477_v34 = vld [vmem:[%s6295_s10 + $0x28] sm:$0xff]   ;;  %v4478_v40 = vld [vmem:[%s6295_s10 + $0x30] sm:$0xff]  }
 0x74d   :  { %v4277_v61 = vunpack.i.h.bf16 %v4275_v29  ;;  %v4276_v2 = vunpack.i.l.bf16 %v4275_v29  ;;  %4022 = vmatprep.subr.bf16.mxu1 %v1122_v6  ;;  %v1109_v47 = vpack.c.bf16 %v1095_v33, %v1094_v42  ;;  %v4476_v33 = vld [vmem:[%s6295_s10 + $0x20] sm:$0xff]   ;;  %v4479_v42 = vld [vmem:[%s6295_s10 + $0x38] sm:$0xff]  }
 0x74e   :  { %4023 = vmatpush3.bf16.msra.mxu1 %v1122_v6 }
 0x74f   :  { %v1123_v14 = vpack.c.bf16 %v4277_v61, %v4276_v2  ;;  %v4663_v48 = vpop.eup %4662 }
 0x750   :  { %v4665_v36 = vpop.eup %4664  ;;  %v1100_v26 = vmul.f32 %v4663_v48, %v5380_v37 }
 0x751   :  { %4024 = vmatprep.subr.bf16.mxu1 %v1123_v14  ;;  %v4667_v52 = vpop.eup %4666  ;;  %v1101_v24 = vmul.f32 %v4665_v36, %v5378_v35 }
 0x752   :  { %4025 = vmatpush3.bf16.msra.mxu1 %v1123_v14  ;;  %v1098_v53 = vmul.f32 %v4667_v52, %v5362_v10  ;;  %v4475_v14 = vld [vmem:[%s6295_s10 + $0x18] sm:$0xff]  }
 0x753   :  { %v4669_v46 = vpop.eup %4668  ;;  %v1112_v25 = vpack.c.bf16 %v1101_v24, %v1100_v26 }
 0x754   :  { %v1111_v51 = vpack.c.bf16 %v1099_v3, %v1098_v53  ;;  %v4671_v31 = vpop.eup %4670  ;;  %v1103_v45 = vmul.f32 %v4669_v46, %v5384_v43 }
 0x755   :  { %4027 = vmatmul.mubr.bf16.vlgmr.msra.gmra.mrb[12].mxu1 %v1109_v47  ;;  %v1102_v50 = vmul.f32 %v4671_v31, %v5374_v32 }
 0x756   :  { %4030 = vmatprep.mubr.bf16.mxu1 %v1110_v49 }
 0x757   :  { %v1113_v55 = vpack.c.bf16 %v1103_v45, %v1102_v50 }
 0x75d   :  { %4031 = vmatmul.mubr.bf16.gmra.mrb[16].mxu1 %v1111_v51 }
 0x75e   :  { %4034 = vmatprep.mubr.bf16.mxu1 %v1112_v25 }
 0x765   :  { %4035 = vmatmul.mubr.bf16.gmra.mrb[20].mxu1 %v1113_v55 }
 0x779   :  { %v1071_v56 = vpop.xlane.xlu0 %1070 }
 0x77a   :  { %4672 = vrcp.f32 %v1071_v56 }
 0x77d   :  { %v1069_v27 = vpop.xlane.xlu1 %1068  ;;  %v1073_v37 = vpop.xlane.xlu0 %1072 }
 0x77e   :  { %4674 = vrcp.f32 %v1069_v27 }
 0x77f   :  { %4676 = vrcp.f32 %v1073_v37 }
 0x781   :  { %v1075_v35 = vpop.xlane.xlu1 %1074 }
 0x782   :  { %4678 = vrcp.f32 %v1075_v35 }
 0x784   :  { %v4673_v10 = vpop.eup %4672 }
 0x785   :  { %v1105_v63 = vmul.f32 %v4673_v10, %v5395_v21 }
 0x788   :  { %v4675_v57 = vpop.eup %4674 }
 0x789   :  { %v1104_v62 = vmul.f32 %v4675_v57, %v5400_v30  ;;  %v4677_v59 = vpop.eup %4676 }
 0x78a   :  { %v1106_v32 = vmul.f32 %v4677_v59, %v5398_v22  ;;  %v4472_v22 = vld [vmem:[%s6295_s10] sm:$0xff]  }
 0x78b   :  { %v1114_v43 = vpack.c.bf16 %v1105_v63, %v1104_v62  ;;  %4042 = vmatprep.subr.bf16.mxu1 %v4472_v22 }
 0x78c   :  { %v4679_v54 = vpop.eup %4678  ;;  %4043 = vmatpush3.bf16.msra.mxu1 %v4472_v22 }
 0x78d   :  { %4038 = vmatprep.mubr.bf16.mxu1 %v1114_v43  ;;  %v1107_v4 = vmul.f32 %v4679_v54, %v5404_v28  ;;  %v4473_v28 = vld [vmem:[%s6295_s10 + $0x8] sm:$0xff]  }
 0x78e   :  { %4044 = vmatprep.subr.bf16.mxu1 %v4473_v28 }
 0x78f   :  { %v1115_v5 = vpack.c.bf16 %v1107_v4, %v1106_v32 }
 0x790   :  { %4045 = vmatpush3.bf16.msra.mxu1 %v4473_v28 }
 0x791   :  { %4039 = vmatmul.mubr.bf16.gmra.mrb[24].mxu1 %v1115_v5  ;;  %4046 = vmatprep.subr.bf16.mxu1 %v4474_v60 }
 0x794   :  { %4047 = vmatpush3.bf16.msra.mxu1 %v4474_v60 }
 0x795   :  { %4048 = vmatprep.subr.bf16.mxu1 %v4475_v14 }
 0x798   :  { %4049 = vmatpush3.bf16.msra.mxu1 %v4475_v14  ;;  %v4483_v14 = vld [vmem:[%s6299_s14 + $0x10] ss:$8 sps:$4 sm:$0xff]  }
 0x799   :  { %4050 = vmatprep.subr.bf16.mxu1 %v4476_v33 }
 0x79c   :  { %4051 = vmatpush3.bf16.msra.mxu1 %v4476_v33 }
 0x79d   :  { %4052 = vmatprep.subr.bf16.mxu1 %v4477_v34 }
 0x7a0   :  { %4053 = vmatpush3.bf16.msra.mxu1 %v4477_v34 }
 0x7a1   :  { %4054 = vmatprep.subr.bf16.mxu1 %v4478_v40 }
 0x7a4   :  { %4055 = vmatpush3.bf16.msra.mxu1 %v4478_v40 }
 0x7a5   :  { %4056 = vmatprep.subr.bf16.mxu1 %v4479_v42 }
 0x7a8   :  { %4057 = vmatpush3.bf16.msra.mxu1 %v4479_v42 }
 0x828   :  { %v5423_v1 = vpop.f32.mrb[12].mxu1 }
 0x829   :  { %v5425_v8 = vpop.f32.mrb[13].mxu1 }
 0x82a   :  { %v5427_v9 = vpop.f32.mrb[14].mxu1 }
 0x82b   :  { %v5429_v11 = vpop.f32.mrb[15].mxu1 }
 0x830   :  { %v4032_v30 = vpop.f32.mrb[16].mxu1 }
 0x831   :  { %v1174_v21 = vpop.f32.mrb[17].mxu1 }
 0x832   :  { %v4033_v15 = vpop.f32.mrb[18].mxu1 }
 0x833   :  { %v4278_v18 = vpack.i.bf16 %v4033_v15, %v4032_v30  ;;  %v1177_v13 = vpop.f32.mrb[19].mxu1 }
 0x834   :  { %v4283_v19 = vpack.i.bf16 %v1177_v13, %v1174_v21  ;;  %v3571_v13 = vld [vmem:[%s6296_s11] ss:$0 sm:$0xff] }
 0x835   :  { %4279 = vrot.lane.b32.xlu1 %v4278_v18, %s4868_s25 }
 0x836   :  { %4284 = vrot.lane.b32.xlu0 %v4283_v19, %s4868_s25 }
 0x838   :  { %v4036_v6 = vpop.f32.mrb[20].mxu1 }
 0x839   :  { %v1190_v17 = vpop.f32.mrb[21].mxu1 }
 0x83a   :  { %v4037_v29 = vpop.f32.mrb[22].mxu1 }
 0x83b   :  { %v4288_v61 = vpack.i.bf16 %v4037_v29, %v4036_v6  ;;  %v1193_v2 = vpop.f32.mrb[23].mxu1 }
 0x83c   :  { %v4293_v58 = vpack.i.bf16 %v1193_v2, %v1190_v17 }
 0x83d   :  { %4289 = vrot.lane.b32.xlu1 %v4288_v61, %s4869_s29 }
 0x841   :  { %4294 = vrot.lane.b32.xlu1 %v4293_v58, %s4869_s29 }
 0x864   :  { %v4040_v44 = vpop.f32.mrb[24].mxu1 }
 0x865   :  { %v1206_v47 = vpop.f32.mrb[25].mxu1 }
 0x866   :  { %v4041_v48 = vpop.f32.mrb[26].mxu1 }
 0x867   :  { %v4303_v49 = vpack.i.bf16 %v4041_v48, %v4040_v44  ;;  %v1209_v36 = vpop.f32.mrb[27].mxu1 }
 0x868   :  { %v4298_v52 = vpack.i.bf16 %v1209_v36, %v1206_v47 }
 0x869   :  { %4304 = vrot.lane.b32.xlu1 %v4303_v49, %s4867_s30 }
 0x86a   :  { %4299 = vrot.lane.b32.xlu0 %v4298_v52, %s4867_s30 }
 0x8a7   :  { %v4280_v3 = vpop.permute.xlu1 %4279 }
 0x8a8   :  { %v4285_v24 = vpop.permute.xlu0 %4284  ;;  %v4282_v53 = vunpack.i.h.bf16 %v4280_v3  ;;  %v4281_v51 = vunpack.i.l.bf16 %v4280_v3 }
 0x8a9   :  { %v4287_v25 = vunpack.i.h.bf16 %v4285_v24  ;;  %v4286_v31 = vunpack.i.l.bf16 %v4285_v24 }
 0x8aa   :  { %v1272_v27 = vsel %vm818_vm1, %v5427_v9, %v4282_v53  ;;  %v1271_v37 = vsel %vm818_vm1, %v5423_v1, %v4281_v51 }
 0x8ab   :  { %v1270_v10 = vsel %vm818_vm1, %v5429_v11, %v4287_v25  ;;  %v1269_v57 = vsel %vm818_vm1, %v5425_v8, %v4286_v31  ;;  %v4488_v25 = vld [vmem:[%s6299_s14 + $0x24] ss:$8 sps:$4 sm:$0xff]   ;;  %v4486_v31 = vld [vmem:[%s6299_s14 + $0x20] ss:$8 sps:$4 sm:$0xff]  }
 0x8af   :  { %v4290_v26 = vpop.permute.xlu1 %4289 }
 0x8b0   :  { %v4292_v45 = vunpack.i.h.bf16 %v4290_v26  ;;  %v4291_v50 = vunpack.i.l.bf16 %v4290_v26 }
 0x8b2   :  { %v1276_v43 = vsel %vm196_vm0, %v1272_v27, %v4292_v45  ;;  %v1275_v54 = vsel %vm196_vm0, %v1271_v37, %v4291_v50  ;;  %v4491_v45 = vld [vmem:[%s6299_s14 + $0x34] ss:$8 sps:$4 sm:$0xff]   ;;  %v4489_v50 = vld [vmem:[%s6299_s14 + $0x30] ss:$8 sps:$4 sm:$0xff]  }
 0x8b3   :  { %v4295_v46 = vpop.permute.xlu1 %4294  ;;  %v4497_v27 = vld [vmem:[%s6299_s14 + $0x54] ss:$8 sps:$4 sm:$0xff]   ;;  %v4495_v37 = vld [vmem:[%s6299_s14 + $0x50] ss:$8 sps:$4 sm:$0xff]  }
 0x8b4   :  { %v4297_v55 = vunpack.i.h.bf16 %v4295_v46  ;;  %v4296_v56 = vunpack.i.l.bf16 %v4295_v46 }
 0x8b6   :  { %v1274_v5 = vsel %vm196_vm0, %v1270_v10, %v4297_v55  ;;  %v1273_v1 = vsel %vm196_vm0, %v1269_v57, %v4296_v56  ;;  %v4494_v55 = vld [vmem:[%s6299_s14 + $0x44] ss:$8 sps:$4 sm:$0xff]   ;;  %v4492_v56 = vld [vmem:[%s6299_s14 + $0x40] ss:$8 sps:$4 sm:$0xff]   ;;  %v4501_v57 = vld [vmem:[%s6299_s14 + $0x70] ss:$8 sps:$4 sm:$0xff]  }
 0x8b7   :  { %v4498_v10 = vld [vmem:[%s6299_s14 + $0x60] ss:$8 sps:$4 sm:$0xff]  }
 0x8db   :  { %v4305_v35 = vpop.permute.xlu1 %4304 }
 0x8dc   :  { %v4307_v62 = vunpack.i.h.bf16 %v4305_v35  ;;  %v4306_v63 = vunpack.i.l.bf16 %v4305_v35  ;;  %v4300_v59 = vpop.permute.xlu0 %4299  ;;  %v4500_v35 = vld [vmem:[%s6299_s14 + $0x64] ss:$8 sps:$4 sm:$0xff]  }
 0x8dd   :  { %v4302_v32 = vunpack.i.h.bf16 %v4300_v59  ;;  %v4301_v4 = vunpack.i.l.bf16 %v4300_v59 }
 0x8de   :  { %v1281_v9 = vsel %vm1277_vm2, %v1276_v43, %v4307_v62  ;;  %v1280_v11 = vsel %vm1277_vm2, %v1275_v54, %v4306_v63  ;;  %v4503_v62 = vld [vmem:[%s6299_s14 + $0x74] ss:$8 sps:$4 sm:$0xff]  }
 0x8df   :  { %v1299_v30 = vpack.c.bf16 %v1281_v9, %v1280_v11  ;;  %v1278_v8 = vsel %vm1277_vm2, %v1273_v1, %v4301_v4  ;;  %v1279_v21 = vsel %vm1277_vm2, %v1274_v5, %v4302_v32 }
 0x8e0   :  { %v1298_v15 = vpack.c.bf16 %v1279_v21, %v1278_v8 }
 0x8e2   :  { %4058 = vmatprep.mubr.bf16.mxu1 %v1298_v15  ;;  %v3572_v15 = vld [vmem:[%s6297_s12] ss:$0 sm:$0xff] }
 0x8e3   :  { %4059 = vmatmul.mubr.bf16.vlgmr.msra.gmra.mrb[28].mxu1 %v1299_v30 }
 0x9b6   :  { %v4060_v18 = vpop.f32.mrb[28].mxu1 }
 0x9b7   :  { %v1382_v19 = vpop.f32.mrb[29].mxu1  ;;  %v1399_v17 = vadd.f32 %v4060_v18, %v5082_v20  ;;  %v4482_v20 = vld [vmem:[%s6299_s14 + $0x4] ss:$8 sps:$4 sm:$0xff]  }
 0x9b8   :  { %v1397_v22 = vadd.f32 %v1382_v19, %v5076_v12  ;;  %v4061_v28 = vpop.f32.mrb[30].mxu1  ;;  %1588 = vmatprep.subr.bf16.mxu0 %v4482_v20 }
 0x9b9   :  { %v1385_v6 = vpop.f32.mrb[31].mxu1  ;;  %v5488_v2 = vadd.f32 %v3571_v13, %v1399_v17  ;;  %v1400_v58 = vadd.f32 %v4061_v28, %v5085_v23  ;;  %v4485_v23 = vld [vmem:[%s6299_s14 + $0x14] ss:$8 sps:$4 sm:$0xff]  }
 0x9ba   :  { %v5482_v29 = vadd.f32 %v3571_v13, %v1397_v22  ;;  %v1398_v60 = vadd.f32 %v1385_v6, %v5079_v16  ;;  %v4480_v16 = vld [vmem:[%s6299_s14] ss:$8 sps:$4 sm:$0xff]  }
 0x9bb   :  { %v5493_v12 = vadd.f32 %v3571_v13, %v1400_v58  ;;  %1589 = vmatpush1.bf16.msra.mxu0 %v4480_v16  ;;  %v3573_v6 = vld [vmem:[%s6298_s13] ss:$0 sm:$0xff] }
 0x9bc   :  { %v5485_v61 = vadd.f32 %v3571_v13, %v1398_v60  ;;  %1414 = vadd.xlane.f32.xlu0 %v5482_v29  ;;  %1590 = vmatprep.subr.bf16.mxu0 %v4485_v23 }
 0x9be   :  { %1416 = vadd.xlane.f32.xlu1 %v5485_v61 }
 0x9bf   :  { %1591 = vmatpush1.bf16.msra.mxu0 %v4483_v14 }
 0x9c0   :  { %1418 = vadd.xlane.f32.xlu0 %v5488_v2  ;;  %1592 = vmatprep.subr.bf16.mxu0 %v4488_v25  ;;  %v4515_v25 = vld [vmem:[%s6301_s16 + $0x28] sm:$0xff]  }
 0x9c3   :  { %1593 = vmatpush1.bf16.msra.mxu0 %v4486_v31  ;;  %v4516_v31 = vld [vmem:[%s6301_s16 + $0x70] sm:$0xff]  }
 0x9c4   :  { %1420 = vadd.xlane.f32.xlu0 %v5493_v12  ;;  %1594 = vmatprep.subr.bf16.mxu0 %v4491_v45  ;;  %v4517_v45 = vld [vmem:[%s6301_s16 + $0x30] sm:$0xff]  }
 0x9c7   :  { %1595 = vmatpush1.bf16.msra.mxu0 %v4489_v50  ;;  %v4518_v50 = vld [vmem:[%s6301_s16 + $0x78] sm:$0xff]  }
 0x9c8   :  { %1596 = vmatprep.subr.bf16.mxu0 %v4494_v55  ;;  %v4519_v55 = vld [vmem:[%s6301_s16 + $0x38] sm:$0xff]  }
 0x9cb   :  { %1597 = vmatpush1.bf16.msra.mxu0 %v4492_v56  ;;  %v1496_v56 = vld [vmem:[%s6300_s15] sm:$0x3] }
 0x9cc   :  { %1598 = vmatprep.subr.bf16.mxu0 %v4497_v27  ;;  %v1501_v27 = vrot.slane %v1496_v56, %v5174_v39 }
 0x9cf   :  { %1599 = vmatpush1.bf16.msra.mxu0 %v4495_v37  ;;  %v1505_v37 = vrot.slane %v1496_v56, %v5180_v41 }
 0x9d0   :  { %1600 = vmatprep.subr.bf16.mxu0 %v4500_v35 }
 0x9d3   :  { %1601 = vmatpush1.bf16.msra.mxu0 %v4498_v10 }
 0x9d4   :  { %1602 = vmatprep.subr.bf16.mxu0 %v4503_v62 }
 0x9d7   :  { %1603 = vmatpush1.bf16.msra.mxu0 %v4501_v57 }
 0xa49   :  { %v1415_v33 = vpop.xlane.xlu0 %1414 }
 0xa4a   :  { %v1422_v34 = vmul.f32 0.0078125, %v1415_v33 }
 0xa4b   :  { %v1417_v40 = vpop.xlane.xlu1 %1416 }
 0xa4c   :  { %v1426_v42 = vsub.f32 %v5482_v29, %v1422_v34  ;;  %v1423_v44 = vmul.f32 0.0078125, %v1417_v40 }
 0xa4d   :  { %v1419_v47 = vpop.xlane.xlu0 %1418 }
 0xa4e   :  { %v1427_v48 = vsub.f32 %v5485_v61, %v1423_v44  ;;  %v1424_v49 = vmul.f32 0.0078125, %v1419_v47  ;;  %v1430_v36 = vmul.f32 %v1426_v42, %v1426_v42  ;;  %v4504_v47 = vld [vmem:[%s6301_s16 + $0x40] sm:$0xff]  }
 0xa4f   :  { %3850 = vmatprep.subr.bf16.mxu1 %v4504_v47 }
 0xa50   :  { %v1428_v52 = vsub.f32 %v5488_v2, %v1424_v49  ;;  %1434 = vadd.xlane.f32.xlu0 %v1430_v36  ;;  %v1431_v3 = vmul.f32 %v1427_v48, %v1427_v48  ;;  %v4506_v49 = vld [vmem:[%s6301_s16 + $0x48] sm:$0xff]  }
 0xa51   :  { %v1421_v26 = vpop.xlane.xlu0 %1420  ;;  %v4507_v36 = vld [vmem:[%s6301_s16 + $0x8] sm:$0xff]  }
 0xa52   :  { %v1425_v24 = vmul.f32 0.0078125, %v1421_v26  ;;  %1436 = vadd.xlane.f32.xlu1 %v1431_v3  ;;  %v1432_v53 = vmul.f32 %v1428_v52, %v1428_v52  ;;  %v4509_v3 = vld [vmem:[%s6301_s16 + $0x10] sm:$0xff]   ;;  %v4510_v26 = vld [vmem:[%s6301_s16 + $0x58] sm:$0xff]  }
 0xa54   :  { %v1429_v51 = vsub.f32 %v5493_v12, %v1425_v24  ;;  %1438 = vadd.xlane.f32.xlu0 %v1432_v53  ;;  %v4511_v24 = vld [vmem:[%s6301_s16 + $0x18] sm:$0xff]   ;;  %v4512_v53 = vld [vmem:[%s6301_s16 + $0x60] sm:$0xff]  }
 0xa56   :  { %v1433_v46 = vmul.f32 %v1429_v51, %v1429_v51 }
 0xa58   :  { %1440 = vadd.xlane.f32.xlu1 %v1433_v46  ;;  %v4514_v46 = vld [vmem:[%s6301_s16 + $0x68] sm:$0xff]  }
 0xadd   :  { %v1435_v63 = vpop.xlane.xlu0 %1434 }
 0xade   :  { %v1442_v59 = vmul.f32 0.0078125, %v1435_v63 }
 0xadf   :  { %v1437_v43 = vpop.xlane.xlu1 %1436 }
 0xae0   :  { %v1446_v54 = vadd.f32 1e-05, %v1442_v59  ;;  %v1443_v32 = vmul.f32 0.0078125, %v1437_v43 }
 0xae1   :  { %v1439_v4 = vpop.xlane.xlu0 %1438 }
 0xae2   :  { %4680 = vrsqrt.f32 %v1446_v54  ;;  %v1447_v5 = vadd.f32 1e-05, %v1443_v32  ;;  %v1444_v1 = vmul.f32 0.0078125, %v1439_v4 }
 0xae4   :  { %4682 = vrsqrt.f32 %v1447_v5  ;;  %v1448_v9 = vadd.f32 1e-05, %v1444_v1 }
 0xae5   :  { %v1441_v11 = vpop.xlane.xlu1 %1440 }
 0xae6   :  { %4684 = vrsqrt.f32 %v1448_v9  ;;  %v1445_v30 = vmul.f32 0.0078125, %v1441_v11 }
 0xae8   :  { %v1449_v8 = vadd.f32 1e-05, %v1445_v30 }
 0xaea   :  { %4686 = vrsqrt.f32 %v1449_v8 }
 0xaec   :  { %v4681_v21 = vpop.eup %4680 }
 0xaed   :  { %v1454_v18 = vmul.f32 %v4681_v21, %v1426_v42 }
 0xaee   :  { %v4683_v13 = vpop.eup %4682 }
 0xaef   :  { %v1464_v19 = vmul.f32 %v3572_v15, %v1454_v18  ;;  %v1455_v22 = vmul.f32 %v4683_v13, %v1427_v48  ;;  %v4505_v48 = vld [vmem:[%s6301_s16] sm:$0xff]  }
 0xaf0   :  { %v4685_v28 = vpop.eup %4684  ;;  %3851 = vmatpush3.bf16.msra.mxu1 %v4505_v48 }
 0xaf1   :  { %v1465_v17 = vmul.f32 %v3572_v15, %v1455_v22  ;;  %v1474_v60 = vadd.f32 %v3573_v6, %v1464_v19  ;;  %v1456_v16 = vmul.f32 %v4685_v28, %v1428_v52  ;;  %3852 = vmatprep.subr.bf16.mxu1 %v4506_v49  ;;  %v4508_v52 = vld [vmem:[%s6301_s16 + $0x50] sm:$0xff]  }
 0xaf3   :  { %v1475_v58 = vadd.f32 %v3573_v6, %v1465_v17  ;;  %v1466_v33 = vmul.f32 %v3572_v15, %v1456_v16 }
 0xaf4   :  { %v4687_v20 = vpop.eup %4686  ;;  %3853 = vmatpush3.bf16.msra.mxu1 %v4507_v36 }
 0xaf5   :  { %v1494_v23 = vpack.c.bf16 %v1475_v58, %v1474_v60  ;;  %v1457_v14 = vmul.f32 %v4687_v20, %v1429_v51  ;;  %v1476_v42 = vadd.f32 %v3573_v6, %v1466_v33  ;;  %3854 = vmatprep.subr.bf16.mxu1 %v4508_v52  ;;  %v4513_v51 = vld [vmem:[%s6301_s16 + $0x20] sm:$0xff]  }
 0xaf7   :  { %1621 = vmatmul.mubr.bf16.vlgmr.msra.gmra.mrb[24].mxu0 %v1494_v23  ;;  %v1467_v34 = vmul.f32 %v3572_v15, %v1457_v14 }
 0xaf8   :  { %1630 = vmatprep.mubr.bf16.mxu0 %v4866_v0  ;;  %3855 = vmatpush3.bf16.msra.mxu1 %v4509_v3 }
 0xaf9   :  { %v1477_v40 = vadd.f32 %v3573_v6, %v1467_v34  ;;  %3856 = vmatprep.subr.bf16.mxu1 %v4510_v26 }
 0xafb   :  { %v1495_v44 = vpack.c.bf16 %v1477_v40, %v1476_v42 }
 0xafc   :  { %3857 = vmatpush3.bf16.msra.mxu1 %v4511_v24 }
 0xafd   :  { %3858 = vmatprep.subr.bf16.mxu1 %v4512_v53 }
 0xaff   :  { %1631 = vmatmul.mubr.bf16.gmra.mrb[28].mxu0 %v1495_v44 }
 0xb00   :  { %2190 = vmatprep.mubr.bf16.mxu0 %v4866_v0  ;;  %3859 = vmatpush3.bf16.msra.mxu1 %v4513_v51 }
 0xb01   :  { %3860 = vmatprep.subr.bf16.mxu1 %v4514_v46 }
 0xb04   :  { %3861 = vmatpush3.bf16.msra.mxu1 %v4515_v25 }
 0xb05   :  { %3862 = vmatprep.subr.bf16.mxu1 %v4516_v31 }
 0xb08   :  { %3863 = vmatpush3.bf16.msra.mxu1 %v4517_v45 }
 0xb09   :  { %3864 = vmatprep.subr.bf16.mxu1 %v4518_v50 }
 0xb0c   :  { %3865 = vmatpush3.bf16.msra.mxu1 %v4519_v55 }
 0xbca   :  { %v1622_v35 = vpop.f32.mrb[24].mxu0 }
 0xbcb   :  { %v5609_v10 = vadd.f32 %v1622_v35, %v1501_v27  ;;  %v1624_v57 = vpop.f32.mrb[25].mxu0 }
 0xbcc   :  { %v5611_v62 = vadd.f32 %v1624_v57, %v1505_v37  ;;  %v1626_v63 = vpop.f32.mrb[26].mxu0 }
 0xbcd   :  { %v1641_v59 = vmul.f32 %v5609_v10, %v5609_v10  ;;  %v5615_v43 = vadd.f32 %v1626_v63, %v1501_v27  ;;  %v1628_v54 = vpop.f32.mrb[27].mxu0 }
 0xbce   :  { %v1642_v32 = vmul.f32 %v5611_v62, %v5611_v62  ;;  %v5619_v4 = vadd.f32 %v1628_v54, %v1505_v37 }
 0xbcf   :  { %v1649_v5 = vmul.f32 %v1641_v59, %v5609_v10  ;;  %v1643_v1 = vmul.f32 %v5615_v43, %v5615_v43 }
 0xbd0   :  { %v1650_v9 = vmul.f32 %v1642_v32, %v5611_v62  ;;  %v1644_v11 = vmul.f32 %v5619_v4, %v5619_v4 }
 0xbd1   :  { %v1657_v30 = vmul.f32 0.044715, %v1649_v5  ;;  %v1651_v8 = vmul.f32 %v1643_v1, %v5615_v43 }
 0xbd2   :  { %v1658_v21 = vmul.f32 0.044715, %v1650_v9  ;;  %v1652_v15 = vmul.f32 %v1644_v11, %v5619_v4  ;;  %v1632_v18 = vpop.f32.mrb[28].mxu0 }
 0xbd3   :  { %v1665_v13 = vadd.f32 %v1657_v30, %v5609_v10  ;;  %v1659_v19 = vmul.f32 0.044715, %v1651_v8  ;;  %v5630_v22 = vadd.f32 %v1632_v18, %v1501_v27  ;;  %v1634_v28 = vpop.f32.mrb[29].mxu0 }
 0xbd4   :  { %v1666_v6 = vadd.f32 %v1658_v21, %v5611_v62  ;;  %v1660_v17 = vmul.f32 0.044715, %v1652_v15  ;;  %v5633_v60 = vadd.f32 %v1634_v28, %v1505_v37  ;;  %v1636_v58 = vpop.f32.mrb[30].mxu0 }
 0xbd5   :  { %v1673_v16 = vmul.f32 0.7978846, %v1665_v13  ;;  %v1667_v20 = vadd.f32 %v1659_v19, %v5615_v43  ;;  %v1645_v23 = vmul.f32 %v5630_v22, %v5630_v22  ;;  %v5638_v14 = vadd.f32 %v1636_v58, %v1501_v27  ;;  %v1638_v33 = vpop.f32.mrb[31].mxu0 }
 0xbd6   :  { %v1674_v34 = vmul.f32 0.7978846, %v1666_v6  ;;  %v1668_v40 = vadd.f32 %v1660_v17, %v5619_v4  ;;  %v1646_v42 = vmul.f32 %v5633_v60, %v5633_v60  ;;  %v5643_v44 = vadd.f32 %v1638_v33, %v1505_v37 }
 0xbd7   :  { %4688 = vtanh.f32 %v1673_v16  ;;  %v1675_v47 = vmul.f32 0.7978846, %v1667_v20  ;;  %v1653_v48 = vmul.f32 %v1645_v23, %v5630_v22  ;;  %v1647_v49 = vmul.f32 %v5638_v14, %v5638_v14 }
 0xbd8   :  { %4690 = vtanh.f32 %v1674_v34  ;;  %v1676_v36 = vmul.f32 0.7978846, %v1668_v40  ;;  %v1654_v52 = vmul.f32 %v1646_v42, %v5633_v60  ;;  %v1648_v3 = vmul.f32 %v5643_v44, %v5643_v44 }
 0xbd9   :  { %4692 = vtanh.f32 %v1675_v47  ;;  %v1661_v26 = vmul.f32 0.044715, %v1653_v48  ;;  %v1655_v24 = vmul.f32 %v1647_v49, %v5638_v14 }
 0xbda   :  { %4694 = vtanh.f32 %v1676_v36  ;;  %v1662_v53 = vmul.f32 0.044715, %v1654_v52  ;;  %v1656_v51 = vmul.f32 %v1648_v3, %v5643_v44 }
 0xbdb   :  { %v1669_v46 = vadd.f32 %v1661_v26, %v5630_v22  ;;  %v1663_v25 = vmul.f32 0.044715, %v1655_v24 }
 0xbdc   :  { %v1670_v31 = vadd.f32 %v1662_v53, %v5633_v60  ;;  %v1664_v45 = vmul.f32 0.044715, %v1656_v51 }
 0xbdd   :  { %v1677_v50 = vmul.f32 0.7978846, %v1669_v46  ;;  %v1671_v55 = vadd.f32 %v1663_v25, %v5638_v14  ;;  %v3606_v46 = vld [vmem:[%s6302_s17] ss:$0 sm:$0xff] }
 0xbde   :  { %v1678_v56 = vmul.f32 0.7978846, %v1670_v31  ;;  %v1672_v27 = vadd.f32 %v1664_v45, %v5643_v44 }
 0xbdf   :  { %4696 = vtanh.f32 %v1677_v50  ;;  %v1679_v37 = vmul.f32 0.7978846, %v1671_v55 }
 0xbe0   :  { %4698 = vtanh.f32 %v1678_v56  ;;  %v1680_v35 = vmul.f32 0.7978846, %v1672_v27 }
 0xbe1   :  { %v4689_v57 = vpop.eup %4688  ;;  %4700 = vtanh.f32 %v1679_v37 }
 0xbe2   :  { %v4691_v63 = vpop.eup %4690  ;;  %v1689_v59 = vadd.f32 1.0, %v4689_v57  ;;  %4702 = vtanh.f32 %v1680_v35  ;;  %v4520_v57 = vld [vmem:[%s6293_s8 + $0xc0] ss:$12 sps:$4 sm:$0xff]  }
 0xbe3   :  { %v4693_v54 = vpop.eup %4692  ;;  %v1690_v32 = vadd.f32 1.0, %v4691_v63  ;;  %v4522_v63 = vld [vmem:[%s6293_s8 + $0xc4] ss:$12 sps:$4 sm:$0xff]  }
 0xbe4   :  { %v4695_v5 = vpop.eup %4694  ;;  %v1697_v1 = vmul.f32 0.5, %v1689_v59  ;;  %v1691_v9 = vadd.f32 1.0, %v4693_v54  ;;  %2158 = vmatprep.subr.bf16.mxu0 %v4522_v63 }
 0xbe5   :  { %v1692_v11 = vadd.f32 1.0, %v4695_v5  ;;  %v1698_v30 = vmul.f32 0.5, %v1690_v32  ;;  %2159 = vmatpush1.bf16.msra.mxu0 %v4520_v57 }
 0xbe6   :  { %v1699_v8 = vmul.f32 0.5, %v1691_v9  ;;  %v1705_v15 = vmul.f32 %v1697_v1, %v5609_v10 }
 0xbe7   :  { %v1700_v21 = vmul.f32 0.5, %v1692_v11  ;;  %v1706_v19 = vmul.f32 %v1698_v30, %v5611_v62 }
 0xbe8   :  { %v1707_v18 = vmul.f32 %v1699_v8, %v5615_v43 }
 0xbe9   :  { %v4697_v13 = vpop.eup %4696  ;;  %v1708_v28 = vmul.f32 %v1700_v21, %v5619_v4 }
 0xbea   :  { %v4699_v6 = vpop.eup %4698  ;;  %v1745_v17 = vpack.c.bf16 %v1707_v18, %v1705_v15  ;;  %v1693_v58 = vadd.f32 1.0, %v4697_v13 }
 0xbeb   :  { %v4701_v16 = vpop.eup %4700  ;;  %v1746_v20 = vpack.c.bf16 %v1708_v28, %v1706_v19  ;;  %v1694_v23 = vadd.f32 1.0, %v4699_v6 }
 0xbec   :  { %v4703_v33 = vpop.eup %4702  ;;  %v1695_v34 = vadd.f32 1.0, %v4701_v16  ;;  %v1701_v40 = vmul.f32 0.5, %v1693_v58  ;;  %v4529_v58 = vld [vmem:[%s6293_s8 + $0xc8] ss:$12 sps:$4 sm:$0xff]   ;;  %v4526_v16 = vld [vmem:[%s6293_s8 + $0xf0] ss:$12 sps:$4 sm:$0xff]  }
 0xbed   :  { %1877 = vmatprep.mubr.bf16.mxu1 %v1746_v20  ;;  %v1696_v42 = vadd.f32 1.0, %v4703_v33  ;;  %v1702_v47 = vmul.f32 0.5, %v1694_v23  ;;  %4062 = vmatprep.subr.bf16.mxu1 %v4529_v58  ;;  %v4532_v20 = vld [vmem:[%s6293_s8 + $0x10c] ss:$12 sps:$4 sm:$0xff]   ;;  %v4530_v33 = vld [vmem:[%s6293_s8 + $0x108] ss:$12 sps:$4 sm:$0xff]  }
 0xbee   :  { %1878 = vmatmul.mubr.bf16.vlgmr.msra.gmra.mrb[32].mxu1 %v1745_v17  ;;  %v1703_v10 = vmul.f32 0.5, %v1695_v34  ;;  %v1709_v48 = vmul.f32 %v1701_v40, %v5630_v22  ;;  %v4528_v17 = vld [vmem:[%s6293_s8 + $0xf4] ss:$12 sps:$4 sm:$0xff]   ;;  %v4536_v34 = vld [vmem:[%s6293_s8 + $0x124] ss:$12 sps:$4 sm:$0xff]  }
 0xbef   :  { %v1704_v43 = vmul.f32 0.5, %v1696_v42  ;;  %v1710_v4 = vmul.f32 %v1702_v47, %v5633_v60  ;;  %4063 = vmatpush3.bf16.msra.mxu1 %v4529_v58  ;;  %v4533_v23 = vld [vmem:[%s6293_s8 + $0xe0] ss:$12 sps:$4 sm:$0xff]   ;;  %v4537_v40 = vld [vmem:[%s6293_s8 + $0xf8] ss:$12 sps:$4 sm:$0xff]  }
 0xbf0   :  { %v1711_v62 = vmul.f32 %v1703_v10, %v5638_v14  ;;  %4064 = vmatprep.subr.bf16.mxu1 %v4533_v23  ;;  %v4534_v42 = vld [vmem:[%s6293_s8 + $0x120] ss:$12 sps:$4 sm:$0xff]   ;;  %v4540_v47 = vld [vmem:[%s6293_s8 + $0x13c] ss:$12 sps:$4 sm:$0xff]  }
 0xbf1   :  { %v1712_v49 = vmul.f32 %v1704_v43, %v5643_v44  ;;  %v4541_v10 = vld [vmem:[%s6293_s8 + $0x110] ss:$12 sps:$4 sm:$0xff]   ;;  %v4538_v43 = vld [vmem:[%s6293_s8 + $0x138] ss:$12 sps:$4 sm:$0xff]  }
 0xbf2   :  { %v1747_v36 = vpack.c.bf16 %v1711_v62, %v1709_v48  ;;  %v4544_v48 = vld [vmem:[%s6293_s8 + $0x154] ss:$12 sps:$4 sm:$0xff]  }
 0xbf3   :  { %v1748_v52 = vpack.c.bf16 %v1712_v49, %v1710_v4  ;;  %4065 = vmatpush3.bf16.msra.mxu1 %v4533_v23  ;;  %v4545_v62 = vld [vmem:[%s6293_s8 + $0x128] ss:$12 sps:$4 sm:$0xff]   ;;  %v4542_v4 = vld [vmem:[%s6293_s8 + $0x150] ss:$12 sps:$4 sm:$0xff]  }
 0xbf4   :  { %4066 = vmatprep.subr.bf16.mxu1 %v4537_v40  ;;  %v4546_v49 = vld [vmem:[%s6293_s8 + $0x168] ss:$12 sps:$4 sm:$0xff]  }
 0xbf5   :  { %1885 = vmatprep.mubr.bf16.mxu1 %v1748_v52  ;;  %v4549_v52 = vld [vmem:[%s6293_s8 + $0x140] ss:$12 sps:$4 sm:$0xff]  }
 0xbf6   :  { %1886 = vmatmul.mubr.bf16.gmra.mrb[36].mxu1 %v1747_v36  ;;  %v4548_v36 = vld [vmem:[%s6293_s8 + $0x16c] ss:$12 sps:$4 sm:$0xff]  }
 0xbf7   :  { %4067 = vmatpush3.bf16.msra.mxu1 %v4537_v40 }
 0xbf8   :  { %4068 = vmatprep.subr.bf16.mxu1 %v4541_v10 }
 0xbfb   :  { %4069 = vmatpush3.bf16.msra.mxu1 %v4541_v10 }
 0xbfc   :  { %4070 = vmatprep.subr.bf16.mxu1 %v4545_v62 }
 0xbff   :  { %4071 = vmatpush3.bf16.msra.mxu1 %v4545_v62 }
 0xc00   :  { %4072 = vmatprep.subr.bf16.mxu1 %v4549_v52 }
 0xc03   :  { %4073 = vmatpush3.bf16.msra.mxu1 %v4549_v52 }
 0xcc1   :  { %v3866_v3 = vpop.f32.mrb[32].mxu1 }
 0xcc2   :  { %v3867_v26 = vpop.f32.mrb[33].mxu1 }
 0xcc3   :  { %v3868_v24 = vadd.f32 %v3867_v26, %v3866_v3  ;;  %v3869_v53 = vpop.f32.mrb[34].mxu1  ;;  %v4550_v3 = vld [vmem:[%s6293_s8 + $0x158] ss:$12 sps:$4 sm:$0xff]   ;;  %v4551_v26 = vld [vmem:[%s6293_s8 + $0x170] ss:$12 sps:$4 sm:$0xff]  }
 0xcc4   :  { %v3870_v51 = vpop.f32.mrb[35].mxu1  ;;  %4074 = vmatprep.subr.bf16.mxu1 %v4550_v3 }
 0xcc5   :  { %v1894_v22 = vadd.f32 %v3868_v24, %v5482_v29  ;;  %v3871_v14 = vadd.f32 %v3870_v51, %v3869_v53  ;;  %4075 = vmatpush3.bf16.msra.mxu1 %v4550_v3 }
 0xcc6   :  { %4076 = vmatprep.subr.bf16.mxu1 %v4551_v26 }
 0xcc7   :  { %v1895_v60 = vadd.f32 %v3871_v14, %v5485_v61  ;;  %v5670_v25 = vadd.f32 %v3606_v46, %v1894_v22 }
 0xcc9   :  { %1913 = vadd.xlane.f32.xlu0 %v5670_v25  ;;  %v3872_v44 = vpop.f32.mrb[36].mxu1  ;;  %v5673_v31 = vadd.f32 %v3606_v46, %v1895_v60  ;;  %4077 = vmatpush3.bf16.msra.mxu1 %v4551_v26 }
 0xcca   :  { %v3873_v45 = vpop.f32.mrb[37].mxu1 }
 0xccb   :  { %v3874_v50 = vadd.f32 %v3873_v45, %v3872_v44  ;;  %1915 = vadd.xlane.f32.xlu1 %v5673_v31  ;;  %v3875_v55 = vpop.f32.mrb[38].mxu1 }
 0xccc   :  { %v3876_v56 = vpop.f32.mrb[39].mxu1 }
 0xccd   :  { %v1896_v27 = vadd.f32 %v3874_v50, %v5488_v2  ;;  %v3877_v37 = vadd.f32 %v3876_v56, %v3875_v55  ;;  %v4525_v2 = vld [vmem:[%s6293_s8 + $0xdc] ss:$12 sps:$4 sm:$0xff]  }
 0xcce   :  { %2160 = vmatprep.subr.bf16.mxu0 %v4525_v2 }
 0xccf   :  { %v1897_v29 = vadd.f32 %v3877_v37, %v5493_v12  ;;  %v5678_v35 = vadd.f32 %v3606_v46, %v1896_v27  ;;  %v4523_v12 = vld [vmem:[%s6293_s8 + $0xd8] ss:$12 sps:$4 sm:$0xff]   ;;  %v3609_v37 = vld [vmem:[%s6291_s6 + $0x1] ss:$0 sm:$0xff] }
 0xcd0   :  { %2161 = vmatpush1.bf16.msra.mxu0 %v4523_v12  ;;  %v3610_v12 = vld [vmem:[%s6292_s7 + $0x1] ss:$0 sm:$0xff] }
 0xcd1   :  { %1917 = vadd.xlane.f32.xlu0 %v5678_v35  ;;  %v5681_v61 = vadd.f32 %v3606_v46, %v1897_v29  ;;  %2162 = vmatprep.subr.bf16.mxu0 %v4528_v17 }
 0xcd3   :  { %1919 = vadd.xlane.f32.xlu1 %v5681_v61 }
 0xcd4   :  { %2163 = vmatpush1.bf16.msra.mxu0 %v4526_v16 }
 0xcd5   :  { %2164 = vmatprep.subr.bf16.mxu0 %v4532_v20 }
 0xcd8   :  { %2165 = vmatpush1.bf16.msra.mxu0 %v4530_v33 }
 0xcd9   :  { %2166 = vmatprep.subr.bf16.mxu0 %v4536_v34 }
 0xcdc   :  { %2167 = vmatpush1.bf16.msra.mxu0 %v4534_v42 }
 0xcdd   :  { %2168 = vmatprep.subr.bf16.mxu0 %v4540_v47 }
 0xce0   :  { %2169 = vmatpush1.bf16.msra.mxu0 %v4538_v43 }
 0xce1   :  { %2170 = vmatprep.subr.bf16.mxu0 %v4544_v48 }
 0xce4   :  { %2171 = vmatpush1.bf16.msra.mxu0 %v4542_v4 }
 0xce5   :  { %2172 = vmatprep.subr.bf16.mxu0 %v4548_v36 }
 0xce8   :  { %2173 = vmatpush1.bf16.msra.mxu0 %v4546_v49 }
 0xd56   :  { %v1914_v59 = vpop.xlane.xlu0 %1913 }
 0xd57   :  { %v1921_v54 = vmul.f32 0.0078125, %v1914_v59 }
 0xd58   :  { %v1916_v32 = vpop.xlane.xlu1 %1915 }
 0xd59   :  { %v5697_v5 = vsub.f32 %v5670_v25, %v1921_v54  ;;  %v1922_v1 = vmul.f32 0.0078125, %v1916_v32 }
 0xd5b   :  { %v5700_v9 = vsub.f32 %v5673_v31, %v1922_v1  ;;  %v1929_v11 = vmul.f32 %v5697_v5, %v5697_v5 }
 0xd5d   :  { %1933 = vadd.xlane.f32.xlu0 %v1929_v11  ;;  %v1930_v30 = vmul.f32 %v5700_v9, %v5700_v9 }
 0xd5e   :  { %v1918_v8 = vpop.xlane.xlu0 %1917 }
 0xd5f   :  { %v1923_v21 = vmul.f32 0.0078125, %v1918_v8  ;;  %1935 = vadd.xlane.f32.xlu1 %v1930_v30 }
 0xd60   :  { %v1920_v15 = vpop.xlane.xlu1 %1919 }
 0xd61   :  { %v5707_v18 = vsub.f32 %v5678_v35, %v1923_v21  ;;  %v1924_v13 = vmul.f32 0.0078125, %v1920_v15 }
 0xd63   :  { %v5710_v19 = vsub.f32 %v5681_v61, %v1924_v13  ;;  %v1931_v28 = vmul.f32 %v5707_v18, %v5707_v18 }
 0xd65   :  { %1937 = vadd.xlane.f32.xlu0 %v1931_v28  ;;  %v1932_v6 = vmul.f32 %v5710_v19, %v5710_v19 }
 0xd67   :  { %1939 = vadd.xlane.f32.xlu1 %v1932_v6  ;;  %v3643_v6 = vld [vmem:[%s6294_s9 + $0x3] sm:$0x7] }
 0xd68   :  { %v2022_v58 = vrot.slane %v3643_v6, %v5180_v41  ;;  %v2026_v48 = vrot.slane %v3643_v6, %v447_v7 }
 0xdea   :  { %v1934_v24 = vpop.xlane.xlu0 %1933 }
 0xdeb   :  { %v1941_v53 = vmul.f32 0.0078125, %v1934_v24 }
 0xdec   :  { %v1936_v51 = vpop.xlane.xlu1 %1935 }
 0xded   :  { %v1945_v46 = vadd.f32 1e-05, %v1941_v53  ;;  %v1942_v22 = vmul.f32 0.0078125, %v1936_v51 }
 0xdef   :  { %4704 = vrsqrt.f32 %v1945_v46  ;;  %v1946_v14 = vadd.f32 1e-05, %v1942_v22 }
 0xdf1   :  { %4706 = vrsqrt.f32 %v1946_v14 }
 0xdf2   :  { %v1938_v60 = vpop.xlane.xlu0 %1937 }
 0xdf3   :  { %v1943_v44 = vmul.f32 0.0078125, %v1938_v60 }
 0xdf4   :  { %v1940_v45 = vpop.xlane.xlu1 %1939 }
 0xdf5   :  { %v1947_v50 = vadd.f32 1e-05, %v1943_v44  ;;  %v1944_v55 = vmul.f32 0.0078125, %v1940_v45 }
 0xdf7   :  { %4708 = vrsqrt.f32 %v1947_v50  ;;  %v1948_v56 = vadd.f32 1e-05, %v1944_v55 }
 0xdf9   :  { %v4705_v27 = vpop.eup %4704  ;;  %4710 = vrsqrt.f32 %v1948_v56 }
 0xdfa   :  { %v1953_v29 = vmul.f32 %v4705_v27, %v5697_v5 }
 0xdfb   :  { %v4707_v57 = vpop.eup %4706 }
 0xdfc   :  { %v1963_v63 = vmul.f32 %v3609_v37, %v1953_v29  ;;  %v1954_v2 = vmul.f32 %v4707_v57, %v5700_v9 }
 0xdfe   :  { %v1964_v59 = vmul.f32 %v3609_v37, %v1954_v2  ;;  %v1973_v54 = vadd.f32 %v3610_v12, %v1963_v63 }
 0xe00   :  { %v1974_v32 = vadd.f32 %v3610_v12, %v1964_v59 }
 0xe01   :  { %v4709_v1 = vpop.eup %4708 }
 0xe02   :  { %v2010_v11 = vpack.c.bf16 %v1974_v32, %v1973_v54  ;;  %v1955_v30 = vmul.f32 %v4709_v1, %v5707_v18  ;;  %v2018_v18 = vrot.slane %v3643_v6, %v5174_v39 }
 0xe03   :  { %v4711_v8 = vpop.eup %4710 }
 0xe04   :  { %2191 = vmatmul.mubr.bf16.vlgmr.msra.gmra.mrb[32].mxu0 %v2010_v11  ;;  %4078 = vmatprep.mubr.bf16.mxu1 %v2010_v11  ;;  %v1956_v5 = vmul.f32 %v4711_v8, %v5710_v19  ;;  %v1965_v21 = vmul.f32 %v3609_v37, %v1955_v30 }
 0xe05   :  { %2200 = vmatprep.mubr.bf16.mxu0 %v4866_v0 }
 0xe06   :  { %v1966_v9 = vmul.f32 %v3609_v37, %v1956_v5  ;;  %v1975_v15 = vadd.f32 %v3610_v12, %v1965_v21 }
 0xe08   :  { %v1976_v13 = vadd.f32 %v3610_v12, %v1966_v9 }
 0xe0a   :  { %v2011_v28 = vpack.c.bf16 %v1976_v13, %v1975_v15 }
 0xe0c   :  { %2201 = vmatmul.mubr.bf16.gmra.mrb[36].mxu0 %v2011_v28  ;;  %4079 = vmatmul.mubr.bf16.vlgmr.msra.gmra.mrb[40].mxu1 %v2011_v28 }
 0xed7   :  { %v2192_v17 = vpop.f32.mrb[32].mxu0 }
 0xed8   :  { %v2194_v16 = vpop.f32.mrb[33].mxu0  ;;  %v2193_v20 = vadd.f32 %v2192_v17, %v2018_v18 }
 0xed9   :  { %v2196_v19 = vpop.f32.mrb[34].mxu0  ;;  %v2195_v34 = vadd.f32 %v2194_v16, %v2022_v58 }
 0xeda   :  { %v2197_v23 = vadd.f32 %v2196_v19, %v2018_v18  ;;  %v2198_v33 = vpop.f32.mrb[35].mxu0 }
 0xedb   :  { %v2199_v40 = vadd.f32 %v2198_v33, %v2022_v58 }
 0xedc   :  { %v2380_v42 = vpack.c.bf16 %v2197_v23, %v2193_v20  ;;  %v4338_v47 = vpack.i.bf16 %v2197_v23, %v2193_v20 }
 0xedd   :  { %v4308_v10 = vpack.i.bf16 %v2199_v40, %v2195_v34  ;;  %v2388_v43 = vpack.c.bf16 %v2199_v40, %v2195_v34 }
 0xede   :  { %4098 = vmatprep.mubr.msk.bf16.mxu0 %vm818_vm1, %v2380_v42 }
 0xedf   :  { %4309 = vrot.lane.b32.xlu0 %v4308_v10, %s4867_s30  ;;  %v2202_v62 = vpop.f32.mrb[36].mxu0  ;;  %v4080_v4 = vpop.f32.mrb[40].mxu1  ;;  %4174 = vmatprep.subr.msk.bf16.mxu0 %vm818_vm1, %v2388_v43  ;;  %v2421_v49 = vsel %vm818_vm1, %v2388_v43, 0 }
 0xee0   :  { %v2204_v36 = vpop.f32.mrb[37].mxu0  ;;  %v2245_v52 = vpop.f32.mrb[41].mxu1  ;;  %4083 = vmatpush3.bf16.xpose.msra.mxu0 %v2421_v49  ;;  %v5798_v24 = vadd.f32 %v2202_v62, %v2018_v18  ;;  %v2254_v53 = vadd.f32 %v4080_v4, %v2026_v48 }
 0xee1   :  { %v2206_v3 = vpop.f32.mrb[38].mxu0  ;;  %v4081_v26 = vpop.f32.mrb[42].mxu1  ;;  %v2205_v22 = vadd.f32 %v2204_v36, %v2022_v58  ;;  %v2246_v14 = vadd.f32 %v2245_v52, %v2026_v48 }
 0xee2   :  { %v5800_v51 = vadd.f32 %v2206_v3, %v2018_v18  ;;  %v2257_v38 = vadd.f32 %v4081_v26, %v2026_v48  ;;  %v2208_v7 = vpop.f32.mrb[39].mxu0  ;;  %v2248_v46 = vpop.f32.mrb[43].mxu1 }
 0xee3   :  { %v2209_v60 = vadd.f32 %v2208_v7, %v2022_v58  ;;  %v2249_v44 = vadd.f32 %v2248_v46, %v2026_v48  ;;  %4329 = vrot.lane.b32.xlu0 %v4308_v10, %s4868_s25 }
 0xee4   :  { %v2381_v45 = vpack.c.bf16 %v5800_v51, %v5798_v24  ;;  %v2694_v50 = vpack.c.bf16 %v2257_v38, %v2254_v53  ;;  %v4343_v55 = vpack.i.bf16 %v5800_v51, %v5798_v24  ;;  %v5809_v57 = vpack.i.bf16 %v2257_v38, %v2254_v53 }
 0xee5   :  { %v2693_v56 = vpack.c.bf16 %v2249_v44, %v2246_v14  ;;  %v4313_v27 = vpack.i.bf16 %v2209_v60, %v2205_v22  ;;  %v2389_v37 = vpack.c.bf16 %v2209_v60, %v2205_v22  ;;  %v5807_v29 = vpack.i.bf16 %v2249_v44, %v2246_v14 }
 0xee7   :  { %4339 = vrot.lane.b32.xlu0 %v4338_v47, %s4867_s30  ;;  %4114 = vmatprep.subr.bf16.mxu1 %v2693_v56  ;;  %v2424_v63 = vsel %vm818_vm1, %v2389_v37, 0 }
 0xee8   :  { %4314 = vrot.lane.b32.xlu1 %v4313_v27, %s4867_s30  ;;  %4175 = vmatprep.subr.msk.bf16.mxu0 %vm818_vm1, %v2389_v37 }
 0xee9   :  { %4085 = vmatpush3.bf16.xpose.msra.mxu0 %v2424_v63  ;;  %4115 = vmatpush3.bf16.msra.mxu1 %v2693_v56 }
 0xeea   :  { %4116 = vmatprep.subr.bf16.mxu1 %v2694_v50 }
 0xeeb   :  { %4349 = vrot.lane.b32.xlu0 %v4338_v47, %s4869_s29 }
 0xeec   :  { %4319 = vrot.lane.b32.xlu1 %v4308_v10, %s4869_s29 }
 0xeed   :  { %4117 = vmatpush3.bf16.msra.mxu1 %v2694_v50 }
 0xeef   :  { %4359 = vrot.lane.b32.xlu0 %v4338_v47, %s4868_s25 }
 0xef0   :  { %4324 = vrot.lane.b32.xlu1 %v4313_v27, %s4869_s29 }
 0xef3   :  { %4374 = vrot.lane.b32.xlu0 %v5807_v29, %s4867_s30 }
 0xef4   :  { %4334 = vrot.lane.b32.xlu1 %v4313_v27, %s4868_s25 }
 0xef8   :  { %4344 = vrot.lane.b32.xlu1 %v4343_v55, %s4867_s30 }
 0xefc   :  { %4354 = vrot.lane.b32.xlu1 %v4343_v55, %s4869_s29 }
 0xf00   :  { %4364 = vrot.lane.b32.xlu1 %v4343_v55, %s4868_s25 }
 0xf04   :  { %4369 = vrot.lane.b32.xlu1 %v5809_v57, %s4867_s30 }
 0xf51   :  { %v4310_v2 = vpop.permute.xlu0 %4309 }
 0xf52   :  { %v4312_v12 = vunpack.i.h.bf16 %v4310_v2  ;;  %v4311_v59 = vunpack.i.l.bf16 %v4310_v2 }
 0xf54   :  { %v2390_v54 = vpack.c.bf16 %v4312_v12, %v4311_v59 }
 0xf55   :  { %v4330_v32 = vpop.permute.xlu0 %4329 }
 0xf56   :  { %4176 = vmatprep.subr.msk.bf16.mxu0 %vm818_vm1, %v2390_v54  ;;  %v2427_v1 = vsel %vm818_vm1, %v2390_v54, 0  ;;  %v4332_v43 = vunpack.i.h.bf16 %v4330_v32  ;;  %v4331_v48 = vunpack.i.l.bf16 %v4330_v32 }
 0xf57   :  { %4087 = vmatpush3.bf16.xpose.msra.mxu0 %v2427_v1 }
 0xf58   :  { %v2394_v4 = vpack.c.bf16 %v4332_v43, %v4331_v48  ;;  %v4807_v48 = vld [vmem:[%s6288_s3 + $0x20] sm:$0xff] }
 0xf59   :  { %v4340_v11 = vpop.permute.xlu0 %4339 }
 0xf5a   :  { %v4315_v30 = vpop.permute.xlu1 %4314  ;;  %v2439_v46 = vsel %vm818_vm1, %v2394_v4, 0  ;;  %v4342_v60 = vunpack.i.h.bf16 %v4340_v11  ;;  %v4341_v44 = vunpack.i.l.bf16 %v4340_v11 }
 0xf5b   :  { %v4317_v8 = vunpack.i.h.bf16 %v4315_v30  ;;  %v4316_v5 = vunpack.i.l.bf16 %v4315_v30 }
 0xf5c   :  { %v2382_v50 = vpack.c.bf16 %v4342_v60, %v4341_v44 }
 0xf5d   :  { %v2391_v21 = vpack.c.bf16 %v4317_v8, %v4316_v5  ;;  %v4350_v9 = vpop.permute.xlu0 %4349  ;;  %v4800_v8 = vld [vmem:[%s6288_s3 + $0x10] sm:$0xff] }
 0xf5e   :  { %v4320_v15 = vpop.permute.xlu1 %4319  ;;  %v4352_v27 = vunpack.i.h.bf16 %v4350_v9  ;;  %v4351_v37 = vunpack.i.l.bf16 %v4350_v9 }
 0xf5f   :  { %v4322_v13 = vunpack.i.h.bf16 %v4320_v15  ;;  %v4321_v28 = vunpack.i.l.bf16 %v4320_v15  ;;  %4177 = vmatprep.subr.msk.bf16.mxu0 %vm818_vm1, %v2391_v21  ;;  %v2430_v6 = vsel %vm818_vm1, %v2391_v21, 0 }
 0xf60   :  { %4089 = vmatpush3.bf16.xpose.msra.mxu0 %v2430_v6  ;;  %v2384_v2 = vpack.c.bf16 %v4352_v27, %v4351_v37  ;;  %v4802_v6 = vld [vmem:[%s6288_s3] sm:$0xff]  ;;  %v4813_v27 = vld [vmem:[%s6288_s3 + $0x70] sm:$0xff] }
 0xf61   :  { %v2392_v18 = vpack.c.bf16 %v4322_v13, %v4321_v28  ;;  %v4360_v17 = vpop.permute.xlu0 %4359  ;;  %v4801_v13 = vld [vmem:[%s6288_s3 + $0x8] sm:$0xff] }
 0xf62   :  { %v4325_v58 = vpop.permute.xlu1 %4324  ;;  %v4362_v54 = vunpack.i.h.bf16 %v4360_v17  ;;  %v4361_v32 = vunpack.i.l.bf16 %v4360_v17 }
 0xf63   :  { %v4327_v16 = vunpack.i.h.bf16 %v4325_v58  ;;  %v4326_v19 = vunpack.i.l.bf16 %v4325_v58  ;;  %4178 = vmatprep.subr.msk.bf16.mxu0 %vm818_vm1, %v2392_v18  ;;  %v2433_v42 = vsel %vm818_vm1, %v2392_v18, 0  ;;  %v4803_v58 = vld [vmem:[%s6288_s3 + $0x18] sm:$0xff] }
 0xf64   :  { %v2386_v24 = vpack.c.bf16 %v4362_v54, %v4361_v32 }
 0xf65   :  { %v4375_v20 = vpop.permute.xlu0 %4374  ;;  %v2393_v40 = vpack.c.bf16 %v4327_v16, %v4326_v19 }
 0xf66   :  { %v4377_v23 = vunpack.i.h.bf16 %v4375_v20  ;;  %v4376_v33 = vunpack.i.l.bf16 %v4375_v20  ;;  %v4335_v34 = vpop.permute.xlu1 %4334 }
 0xf67   :  { %v2436_v49 = vsel %vm818_vm1, %v2393_v40, 0  ;;  %v4337_v52 = vunpack.i.h.bf16 %v4335_v34  ;;  %v4336_v3 = vunpack.i.l.bf16 %v4335_v34 }
 0xf68   :  { %v2695_v47 = vpack.c.bf16 %v4377_v23, %v4376_v33  ;;  %4091 = vmatpush3.bf16.xpose.msra.mxu0 %v2433_v42  ;;  %v4804_v23 = vld [vmem:[%s6288_s3 + $0x38] sm:$0xff] }
 0xf69   :  { %4179 = vmatprep.subr.msk.bf16.mxu0 %vm818_vm1, %v2393_v40  ;;  %v2395_v53 = vpack.c.bf16 %v4337_v52, %v4336_v3  ;;  %v4805_v40 = vld [vmem:[%s6288_s3 + $0x30] sm:$0xff] }
 0xf6a   :  { %v4345_v10 = vpop.permute.xlu1 %4344  ;;  %4118 = vmatprep.subr.bf16.mxu1 %v2695_v47 }
 0xf6b   :  { %4119 = vmatpush3.bf16.msra.mxu1 %v2695_v47  ;;  %v2442_v14 = vsel %vm818_vm1, %v2395_v53, 0  ;;  %v4347_v55 = vunpack.i.h.bf16 %v4345_v10  ;;  %v4346_v56 = vunpack.i.l.bf16 %v4345_v10  ;;  %v4806_v47 = vld [vmem:[%s6288_s3 + $0x28] sm:$0xff] }
 0xf6d   :  { %v2383_v63 = vpack.c.bf16 %v4347_v55, %v4346_v56 }
 0xf6e   :  { %v4355_v62 = vpop.permute.xlu1 %4354 }
 0xf6f   :  { %v4357_v12 = vunpack.i.h.bf16 %v4355_v62  ;;  %v4356_v59 = vunpack.i.l.bf16 %v4355_v62 }
 0xf70   :  { %4093 = vmatpush3.bf16.xpose.msra.mxu0 %v2436_v49 }
 0xf71   :  { %4180 = vmatprep.subr.msk.bf16.mxu0 %vm818_vm1, %v2394_v4  ;;  %v2385_v1 = vpack.c.bf16 %v4357_v12, %v4356_v59  ;;  %v4815_v12 = vld [vmem:[%s6288_s3 + $0x60] sm:$0xff] }
 0xf72   :  { %v4365_v36 = vpop.permute.xlu1 %4364 }
 0xf73   :  { %v4367_v51 = vunpack.i.h.bf16 %v4365_v36 }
 0xf76   :  { %v4370_v26 = vpop.permute.xlu1 %4369 }
 0xf77   :  { %v4372_v38 = vunpack.i.h.bf16 %v4370_v26  ;;  %v4371_v7 = vunpack.i.l.bf16 %v4370_v26  ;;  %v4809_v26 = vld [vmem:[%s6288_s3 + $0x50] sm:$0xff] }
 0xf78   :  { %4095 = vmatpush3.bf16.xpose.msra.mxu0 %v2439_v46 }
 0xf79   :  { %v2696_v22 = vpack.c.bf16 %v4372_v38, %v4371_v7  ;;  %4181 = vmatprep.subr.msk.bf16.mxu0 %vm818_vm1, %v2395_v53  ;;  %v4810_v38 = vld [vmem:[%s6288_s3 + $0x48] sm:$0xff] }
 0xf7b   :  { %4120 = vmatprep.subr.bf16.mxu1 %v2696_v22 }
 0xf7c   :  { %4121 = vmatpush3.bf16.msra.mxu1 %v2696_v22  ;;  %v4811_v22 = vld [vmem:[%s6288_s3 + $0x40] sm:$0xff] }
 0xf80   :  { %4097 = vmatpush3.bf16.xpose.msra.mxu0 %v2442_v14 }
 0xf87   :  { %4099 = vmatmul.mubr.msk.bf16.vlgmr.msra.gmra.mrb[40].mxu0 %vm818_vm1, %v2381_v45  ;;  %v4366_v45 = vunpack.i.l.bf16 %v4365_v36  ;;  %v4808_v36 = vld [vmem:[%s6288_s3 + $0x58] sm:$0xff] }
 0xf88   :  { %4102 = vmatprep.mubr.msk.bf16.mxu0 %vm818_vm1, %v2382_v50  ;;  %v4812_v50 = vld [vmem:[%s6288_s3 + $0x78] sm:$0xff] }
 0xf89   :  { %v2387_v11 = vpack.c.bf16 %v4367_v51, %v4366_v45 }
 0xf8f   :  { %4103 = vmatmul.mubr.msk.bf16.gmra.mrb[44].mxu0 %vm818_vm1, %v2383_v63  ;;  %v4814_v63 = vld [vmem:[%s6288_s3 + $0x68] sm:$0xff] }
 0xf90   :  { %4106 = vmatprep.mubr.msk.bf16.mxu0 %vm818_vm1, %v2384_v2 }
 0xf97   :  { %4107 = vmatmul.mubr.msk.bf16.gmra.mrb[48].mxu0 %vm818_vm1, %v2385_v1 }
 0xf98   :  { %4110 = vmatprep.mubr.msk.bf16.mxu0 %vm818_vm1, %v2386_v24 }
 0xf9f   :  { %4111 = vmatmul.mubr.msk.bf16.gmra.mrb[52].mxu0 %vm818_vm1, %v2387_v11 }
 0xfa0   :  { %3202 = vmatprep.mubr.bf16.mxu0 %v4866_v0 }
0x105a   :  { %v4100_v30 = vpop.f32.mrb[40].mxu0 }
0x105b   :  { %v5853_v5 = vadd.f32 %v4800_v8, %v4100_v30  ;;  %v2478_v21 = vpop.f32.mrb[41].mxu0 }
0x105c   :  { %v4101_v9 = vpop.f32.mrb[42].mxu0  ;;  %v5864_v18 = vadd.f32 %v4802_v6, %v2478_v21 }
0x105d   :  { %2545 = vmax.xlane.f32.xlu0 %v5853_v5  ;;  %v2481_v15 = vpop.f32.mrb[43].mxu0  ;;  %v5871_v16 = vadd.f32 %v4803_v58, %v4101_v9 }
0x105e   :  { %v5859_v28 = vadd.f32 %v4801_v13, %v2481_v15 }
0x1060   :  { %2543 = vmax.xlane.f32.xlu1 %v5859_v28 }
0x1061   :  { %2541 = vmax.xlane.f32.xlu0 %v5864_v18 }
0x1062   :  { %v4104_v17 = vpop.f32.mrb[44].mxu0 }
0x1063   :  { %v2494_v19 = vpop.f32.mrb[45].mxu0  ;;  %v5882_v42 = vadd.f32 %v4805_v40, %v4104_v17 }
0x1064   :  { %v4105_v20 = vpop.f32.mrb[46].mxu0  ;;  %v5894_v62 = vadd.f32 %v4807_v48, %v2494_v19 }
0x1065   :  { %v5876_v33 = vadd.f32 %v4804_v23, %v4105_v20  ;;  %v2497_v34 = vpop.f32.mrb[47].mxu0  ;;  %2547 = vmax.xlane.f32.xlu0 %v5871_v16 }
0x1066   :  { %v5888_v10 = vadd.f32 %v4806_v47, %v2497_v34 }
0x1067   :  { %2555 = vmax.xlane.f32.xlu1 %v5876_v33 }
0x1069   :  { %2553 = vmax.xlane.f32.xlu0 %v5882_v42 }
0x106a   :  { %v4108_v43 = vpop.f32.mrb[48].mxu0 }
0x106b   :  { %v2510_v4 = vpop.f32.mrb[49].mxu0  ;;  %2551 = vmax.xlane.f32.xlu1 %v5888_v10  ;;  %v5906_v53 = vadd.f32 %v4809_v26, %v4108_v43 }
0x106c   :  { %v4109_v49 = vpop.f32.mrb[50].mxu0  ;;  %v5918_v14 = vadd.f32 %v4811_v22, %v2510_v4 }
0x106d   :  { %v5900_v52 = vadd.f32 %v4808_v36, %v4109_v49  ;;  %v2513_v3 = vpop.f32.mrb[51].mxu0  ;;  %2549 = vmax.xlane.f32.xlu0 %v5894_v62 }
0x106e   :  { %v5912_v7 = vadd.f32 %v4810_v38, %v2513_v3 }
0x106f   :  { %2563 = vmax.xlane.f32.xlu1 %v5900_v52 }
0x1071   :  { %2561 = vmax.xlane.f32.xlu0 %v5906_v53 }
0x1072   :  { %v4112_v46 = vpop.f32.mrb[52].mxu0 }
0x1073   :  { %v2526_v60 = vpop.f32.mrb[53].mxu0  ;;  %2559 = vmax.xlane.f32.xlu1 %v5912_v7  ;;  %v5930_v37 = vadd.f32 %v4813_v27, %v4112_v46 }
0x1074   :  { %v4113_v44 = vpop.f32.mrb[54].mxu0  ;;  %v5942_v59 = vadd.f32 %v4815_v12, %v2526_v60 }
0x1075   :  { %v5924_v55 = vadd.f32 %v4812_v50, %v4113_v44  ;;  %v2529_v56 = vpop.f32.mrb[55].mxu0  ;;  %2557 = vmax.xlane.f32.xlu0 %v5918_v14 }
0x1076   :  { %v5936_v2 = vadd.f32 %v4814_v63, %v2529_v56 }
0x1077   :  { %2571 = vmax.xlane.f32.xlu1 %v5924_v55 }
0x1079   :  { %2569 = vmax.xlane.f32.xlu0 %v5930_v37 }
0x107b   :  { %2567 = vmax.xlane.f32.xlu1 %v5936_v2 }
0x107d   :  { %2565 = vmax.xlane.f32.xlu0 %v5942_v59 }
0x108c   :  { %4384 = vrot.lane.b32.xlu1 %v5809_v57, %s4869_s29 }
0x1093   :  { %4379 = vrot.lane.b32.xlu0 %v5807_v29, %s4869_s29 }
0x10ea   :  { %v2546_v54 = vpop.xlane.xlu0 %2545 }
0x10eb   :  { %v2575_v32 = vsub.f32 %v5853_v5, %v2546_v54 }
0x10ed   :  { %v2593_v1 = vmul.f32 1.442695, %v2575_v32  ;;  %v2544_v51 = vpop.xlane.xlu1 %2543 }
0x10ee   :  { %v2542_v24 = vpop.xlane.xlu0 %2541  ;;  %v2574_v30 = vsub.f32 %v5859_v28, %v2544_v51 }
0x10ef   :  { %4712 = vpow2.f32 %v2593_v1  ;;  %v2573_v45 = vsub.f32 %v5864_v18, %v2542_v24 }
0x10f0   :  { %v2591_v13 = vmul.f32 1.442695, %v2574_v30 }
0x10f1   :  { %v2589_v11 = vmul.f32 1.442695, %v2573_v45 }
0x10f2   :  { %v2548_v8 = vpop.xlane.xlu0 %2547 }
0x10f3   :  { %4714 = vpow2.f32 %v2589_v11  ;;  %v2576_v21 = vsub.f32 %v5871_v16, %v2548_v8 }
0x10f4   :  { %v2556_v9 = vpop.xlane.xlu1 %2555 }
0x10f5   :  { %v2595_v15 = vmul.f32 1.442695, %v2576_v21  ;;  %v2580_v28 = vsub.f32 %v5876_v33, %v2556_v9 }
0x10f6   :  { %v2554_v6 = vpop.xlane.xlu0 %2553 }
0x10f7   :  { %4716 = vpow2.f32 %v2595_v15  ;;  %v2579_v5 = vsub.f32 %v5882_v42, %v2554_v6  ;;  %v2603_v47 = vmul.f32 1.442695, %v2580_v28 }
0x10f8   :  { %v2552_v17 = vpop.xlane.xlu1 %2551  ;;  %4718 = vpow2.f32 %v2591_v13 }
0x10f9   :  { %v5955_v58 = vpop.eup %4712  ;;  %v2601_v19 = vmul.f32 1.442695, %v2579_v5  ;;  %v2578_v18 = vsub.f32 %v5888_v10, %v2552_v17 }
0x10fa   :  { %2625 = vadd.xlane.f32.xlu0 %v5955_v58  ;;  %v2550_v20 = vpop.xlane.xlu0 %2549 }
0x10fb   :  { %4720 = vpow2.f32 %v2601_v19  ;;  %v2599_v16 = vmul.f32 1.442695, %v2578_v18  ;;  %v2577_v23 = vsub.f32 %v5894_v62, %v2550_v20 }
0x10fc   :  { %v2564_v34 = vpop.xlane.xlu1 %2563 }
0x10fd   :  { %v5961_v40 = vpop.eup %4714  ;;  %v2597_v42 = vmul.f32 1.442695, %v2577_v23  ;;  %4722 = vpow2.f32 %v2599_v16  ;;  %v2584_v36 = vsub.f32 %v5900_v52, %v2564_v34 }
0x10fe   :  { %2621 = vadd.xlane.f32.xlu0 %v5961_v40  ;;  %v2562_v43 = vpop.xlane.xlu0 %2561 }
0x10ff   :  { %4724 = vpow2.f32 %v2597_v42  ;;  %v2583_v10 = vsub.f32 %v5906_v53, %v2562_v43  ;;  %v2611_v60 = vmul.f32 1.442695, %v2584_v36 }
0x1100   :  { %v2560_v33 = vpop.xlane.xlu1 %2559  ;;  %4726 = vpow2.f32 %v2603_v47 }
0x1101   :  { %v5965_v48 = vpop.eup %4716  ;;  %v2609_v4 = vmul.f32 1.442695, %v2583_v10  ;;  %v2582_v49 = vsub.f32 %v5912_v7, %v2560_v33 }
0x1102   :  { %2627 = vadd.xlane.f32.xlu1 %v5965_v48  ;;  %v2558_v62 = vpop.xlane.xlu0 %2557  ;;  %v5971_v38 = vpop.eup %4718 }
0x1103   :  { %4728 = vpow2.f32 %v2609_v4  ;;  %v2607_v3 = vmul.f32 1.442695, %v2582_v49  ;;  %v2581_v26 = vsub.f32 %v5918_v14, %v2558_v62 }
0x1104   :  { %v2572_v46 = vpop.xlane.xlu1 %2571 }
0x1105   :  { %v5973_v53 = vpop.eup %4720  ;;  %v2605_v22 = vmul.f32 1.442695, %v2581_v26  ;;  %4730 = vpow2.f32 %v2607_v3  ;;  %v2588_v5 = vsub.f32 %v5924_v55, %v2572_v46 }
0x1106   :  { %2623 = vadd.xlane.f32.xlu1 %v5971_v38  ;;  %2633 = vadd.xlane.f32.xlu0 %v5973_v53  ;;  %v2570_v7 = vpop.xlane.xlu0 %2569 }
0x1107   :  { %4732 = vpow2.f32 %v2605_v22  ;;  %v5977_v44 = vpop.eup %4722  ;;  %v2587_v9 = vsub.f32 %v5930_v37, %v2570_v7  ;;  %v2619_v19 = vmul.f32 1.442695, %v2588_v5 }
0x1108   :  { %v2568_v52 = vpop.xlane.xlu1 %2567  ;;  %4734 = vpow2.f32 %v2611_v60 }
0x1109   :  { %v5979_v50 = vpop.eup %4724  ;;  %v2586_v21 = vsub.f32 %v5936_v2, %v2568_v52  ;;  %v2617_v6 = vmul.f32 1.442695, %v2587_v9 }
0x110a   :  { %2631 = vadd.xlane.f32.xlu0 %v5977_v44  ;;  %2629 = vadd.xlane.f32.xlu1 %v5979_v50  ;;  %v2566_v14 = vpop.xlane.xlu0 %2565  ;;  %v5983_v56 = vpop.eup %4726 }
0x110b   :  { %v2615_v15 = vmul.f32 1.442695, %v2586_v21  ;;  %v2585_v13 = vsub.f32 %v5942_v59, %v2566_v14 }
0x110c   :  { %v4385_v27 = vpop.permute.xlu1 %4384 }
0x110d   :  { %v5985_v63 = vpop.eup %4728  ;;  %v4387_v54 = vunpack.i.h.bf16 %v4385_v27  ;;  %v4386_v32 = vunpack.i.l.bf16 %v4385_v27  ;;  %4736 = vpow2.f32 %v2615_v15  ;;  %v2613_v17 = vmul.f32 1.442695, %v2585_v13 }
0x110e   :  { %2635 = vadd.xlane.f32.xlu1 %v5983_v56  ;;  %2641 = vadd.xlane.f32.xlu0 %v5985_v63  ;;  %v4380_v12 = vpop.permute.xlu0 %4379  ;;  %4738 = vpow2.f32 %v2617_v6 }
0x110f   :  { %v4382_v1 = vunpack.i.h.bf16 %v4380_v12  ;;  %v4381_v24 = vunpack.i.l.bf16 %v4380_v12  ;;  %v5989_v51 = vpop.eup %4730  ;;  %v2698_v30 = vpack.c.bf16 %v4387_v54, %v4386_v32  ;;  %4740 = vpow2.f32 %v2613_v17 }
0x1110   :  { %4742 = vpow2.f32 %v2619_v19 }
0x1111   :  { %v5991_v45 = vpop.eup %4732  ;;  %v2697_v11 = vpack.c.bf16 %v4382_v1, %v4381_v24 }
0x1112   :  { %2639 = vadd.xlane.f32.xlu0 %v5989_v51  ;;  %2637 = vadd.xlane.f32.xlu1 %v5991_v45  ;;  %v5995_v8 = vpop.eup %4734 }
0x1113   :  { %4122 = vmatprep.subr.bf16.mxu1 %v2697_v11 }
0x1114   :  { %4123 = vmatpush3.bf16.msra.mxu1 %v2697_v11 }
0x1115   :  { %4124 = vmatprep.subr.bf16.mxu1 %v2698_v30 }
0x1116   :  { %2643 = vadd.xlane.f32.xlu1 %v5995_v8 }
0x1118   :  { %4125 = vmatpush3.bf16.msra.mxu1 %v2698_v30 }
0x1127   :  { %4394 = vrot.lane.b32.xlu1 %v5809_v57, %s4868_s25  ;;  %v6006_v57 = vpop.eup %4736 }
0x1128   :  { %4389 = vrot.lane.b32.xlu0 %v5807_v29, %s4868_s25  ;;  %v6009_v29 = vpop.eup %4738 }
0x1129   :  { %v6011_v2 = vpop.eup %4740 }
0x112a   :  { %v6015_v37 = vpop.eup %4742 }
0x1147   :  { %2647 = vadd.xlane.f32.xlu0 %v6006_v57 }
0x114b   :  { %2649 = vadd.xlane.f32.xlu0 %v6009_v29  ;;  %2645 = vadd.xlane.f32.xlu1 %v6011_v2 }
0x114f   :  { %2651 = vadd.xlane.f32.xlu1 %v6015_v37 }
0x1187   :  { %v2626_v55 = vpop.xlane.xlu0 %2625 }
0x118b   :  { %v2622_v59 = vpop.xlane.xlu0 %2621 }
0x118c   :  { %4744 = vrcp.f32 %v2622_v59 }
0x118f   :  { %v2628_v18 = vpop.xlane.xlu1 %2627 }
0x1193   :  { %v2624_v28 = vpop.xlane.xlu1 %2623  ;;  %v2634_v20 = vpop.xlane.xlu0 %2633 }
0x1194   :  { %4746 = vrcp.f32 %v2624_v28 }
0x1195   :  { %4748 = vrcp.f32 %v2628_v18 }
0x1196   :  { %v4745_v47 = vpop.eup %4744 }
0x1197   :  { %v2630_v16 = vpop.xlane.xlu1 %2629  ;;  %v2632_v23 = vpop.xlane.xlu0 %2631  ;;  %v2669_v4 = vmul.f32 %v4745_v47, %v5961_v40 }
0x1198   :  { %4750 = vrcp.f32 %v2630_v16 }
0x1199   :  { %4752 = vrcp.f32 %v2632_v23 }
0x119a   :  { %4754 = vrcp.f32 %v2626_v55 }
0x119b   :  { %v2636_v34 = vpop.xlane.xlu1 %2635  ;;  %v2642_v42 = vpop.xlane.xlu0 %2641 }
0x119c   :  { %4756 = vrcp.f32 %v2636_v34 }
0x119e   :  { %v4747_v43 = vpop.eup %4746 }
0x119f   :  { %v2638_v10 = vpop.xlane.xlu1 %2637  ;;  %v2640_v33 = vpop.xlane.xlu0 %2639  ;;  %v2670_v49 = vmul.f32 %v4747_v43, %v5971_v38 }
0x11a0   :  { %4758 = vrcp.f32 %v2638_v10  ;;  %v4749_v22 = vpop.eup %4748 }
0x11a1   :  { %v2685_v62 = vpack.c.bf16 %v2670_v49, %v2669_v4  ;;  %4760 = vrcp.f32 %v2640_v33  ;;  %v2672_v54 = vmul.f32 %v4749_v22, %v5965_v48 }
0x11a2   :  { %v4751_v60 = vpop.eup %4750  ;;  %4762 = vrcp.f32 %v2634_v20 }
0x11a3   :  { %v2644_v36 = vpop.xlane.xlu1 %2643  ;;  %4130 = vmatprep.mubr.bf16.mxu1 %v2685_v62  ;;  %v4390_v3 = vpop.permute.xlu0 %4389  ;;  %v2673_v32 = vmul.f32 %v4751_v60, %v5979_v50  ;;  %v4554_v60 = vld [vmem:[%s6295_s10 + $0x50] sm:$0xff]  }
0x11a4   :  { %v4392_v26 = vunpack.i.h.bf16 %v4390_v3  ;;  %v4391_v46 = vunpack.i.l.bf16 %v4390_v3  ;;  %v4753_v14 = vpop.eup %4752  ;;  %4764 = vrcp.f32 %v2644_v36 }
0x11a5   :  { %v4755_v40 = vpop.eup %4754  ;;  %v2674_v1 = vmul.f32 %v4753_v14, %v5977_v44  ;;  %4766 = vrcp.f32 %v2642_v42 }
0x11a6   :  { %v2699_v7 = vpack.c.bf16 %v4392_v26, %v4391_v46  ;;  %v2671_v24 = vmul.f32 %v4755_v40, %v5955_v58  ;;  %v4757_v11 = vpop.eup %4756  ;;  %v4556_v40 = vld [vmem:[%s6295_s10 + $0x60] sm:$0xff]  }
0x11a7   :  { %v4395_v52 = vpop.permute.xlu1 %4394  ;;  %v2687_v9 = vpack.c.bf16 %v2674_v1, %v2673_v32  ;;  %v2676_v48 = vmul.f32 %v4757_v11, %v5983_v56  ;;  %v4559_v32 = vld [vmem:[%s6295_s10 + $0x78] sm:$0xff]  }
0x11a8   :  { %v4397_v27 = vunpack.i.h.bf16 %v4395_v52  ;;  %v4396_v12 = vunpack.i.l.bf16 %v4395_v52  ;;  %4126 = vmatprep.subr.bf16.mxu1 %v2699_v7  ;;  %v2686_v30 = vpack.c.bf16 %v2672_v54, %v2671_v24  ;;  %v4558_v54 = vld [vmem:[%s6295_s10 + $0x70] sm:$0xff]  }
0x11a9   :  { %4127 = vmatpush3.bf16.msra.mxu1 %v2699_v7 }
0x11aa   :  { %v2700_v38 = vpack.c.bf16 %v4397_v27, %v4396_v12  ;;  %v4759_v21 = vpop.eup %4758  ;;  %v4555_v12 = vld [vmem:[%s6295_s10 + $0x58] sm:$0xff]  }
0x11ab   :  { %v4761_v15 = vpop.eup %4760  ;;  %v2677_v50 = vmul.f32 %v4759_v21, %v5991_v45 }
0x11ac   :  { %4128 = vmatprep.subr.bf16.mxu1 %v2700_v38  ;;  %v4763_v13 = vpop.eup %4762  ;;  %v2678_v44 = vmul.f32 %v4761_v15, %v5989_v51 }
0x11ad   :  { %4129 = vmatpush3.bf16.msra.mxu1 %v2700_v38  ;;  %v2675_v6 = vmul.f32 %v4763_v13, %v5973_v53  ;;  %v4557_v38 = vld [vmem:[%s6295_s10 + $0x68] sm:$0xff]  }
0x11ae   :  { %v4765_v5 = vpop.eup %4764  ;;  %v2689_v17 = vpack.c.bf16 %v2678_v44, %v2677_v50 }
0x11af   :  { %v2688_v58 = vpack.c.bf16 %v2676_v48, %v2675_v6  ;;  %v4767_v19 = vpop.eup %4766  ;;  %v2680_v55 = vmul.f32 %v4765_v5, %v5995_v8 }
0x11b0   :  { %4131 = vmatmul.mubr.bf16.vlgmr.msra.gmra.mrb[44].mxu1 %v2686_v30  ;;  %v2679_v59 = vmul.f32 %v4767_v19, %v5985_v63 }
0x11b1   :  { %4134 = vmatprep.mubr.bf16.mxu1 %v2687_v9 }
0x11b2   :  { %v2690_v18 = vpack.c.bf16 %v2680_v55, %v2679_v59 }
0x11b8   :  { %4135 = vmatmul.mubr.bf16.gmra.mrb[48].mxu1 %v2688_v58 }
0x11b9   :  { %4138 = vmatprep.mubr.bf16.mxu1 %v2689_v17 }
0x11c0   :  { %4139 = vmatmul.mubr.bf16.gmra.mrb[52].mxu1 %v2690_v18 }
0x11d4   :  { %v2648_v28 = vpop.xlane.xlu0 %2647 }
0x11d5   :  { %4768 = vrcp.f32 %v2648_v28 }
0x11d8   :  { %v2646_v56 = vpop.xlane.xlu1 %2645  ;;  %v2650_v45 = vpop.xlane.xlu0 %2649 }
0x11d9   :  { %4770 = vrcp.f32 %v2646_v56 }
0x11da   :  { %4772 = vrcp.f32 %v2650_v45 }
0x11dc   :  { %v2652_v51 = vpop.xlane.xlu1 %2651 }
0x11dd   :  { %4774 = vrcp.f32 %v2652_v51 }
0x11df   :  { %v4769_v53 = vpop.eup %4768 }
0x11e0   :  { %v2682_v23 = vmul.f32 %v4769_v53, %v6006_v57 }
0x11e3   :  { %v4771_v20 = vpop.eup %4770 }
0x11e4   :  { %v2681_v16 = vmul.f32 %v4771_v20, %v6011_v2  ;;  %v4773_v34 = vpop.eup %4772 }
0x11e5   :  { %v2683_v63 = vmul.f32 %v4773_v34, %v6009_v29  ;;  %v4552_v29 = vld [vmem:[%s6295_s10 + $0x40] sm:$0xff]  }
0x11e6   :  { %v2691_v8 = vpack.c.bf16 %v2682_v23, %v2681_v16  ;;  %4146 = vmatprep.subr.bf16.mxu1 %v4552_v29 }
0x11e7   :  { %v4775_v42 = vpop.eup %4774  ;;  %4147 = vmatpush3.bf16.msra.mxu1 %v4552_v29 }
0x11e8   :  { %4142 = vmatprep.mubr.bf16.mxu1 %v2691_v8  ;;  %v2684_v47 = vmul.f32 %v4775_v42, %v6015_v37  ;;  %v4553_v37 = vld [vmem:[%s6295_s10 + $0x48] sm:$0xff]  }
0x11e9   :  { %4148 = vmatprep.subr.bf16.mxu1 %v4553_v37 }
0x11ea   :  { %v2692_v43 = vpack.c.bf16 %v2684_v47, %v2683_v63 }
0x11eb   :  { %4149 = vmatpush3.bf16.msra.mxu1 %v4553_v37 }
0x11ec   :  { %4143 = vmatmul.mubr.bf16.gmra.mrb[56].mxu1 %v2692_v43  ;;  %4150 = vmatprep.subr.bf16.mxu1 %v4554_v60 }
0x11ef   :  { %4151 = vmatpush3.bf16.msra.mxu1 %v4554_v60 }
0x11f0   :  { %4152 = vmatprep.subr.bf16.mxu1 %v4555_v12 }
0x11f3   :  { %4153 = vmatpush3.bf16.msra.mxu1 %v4555_v12 }
0x11f4   :  { %4154 = vmatprep.subr.bf16.mxu1 %v4556_v40 }
0x11f7   :  { %4155 = vmatpush3.bf16.msra.mxu1 %v4556_v40 }
0x11f8   :  { %4156 = vmatprep.subr.bf16.mxu1 %v4557_v38 }
0x11fb   :  { %4157 = vmatpush3.bf16.msra.mxu1 %v4557_v38 }
0x11fc   :  { %4158 = vmatprep.subr.bf16.mxu1 %v4558_v54 }
0x11ff   :  { %4159 = vmatpush3.bf16.msra.mxu1 %v4558_v54 }
0x1200   :  { %4160 = vmatprep.subr.bf16.mxu1 %v4559_v32 }
0x1203   :  { %4161 = vmatpush3.bf16.msra.mxu1 %v4559_v32 }
0x1283   :  { %v6034_v10 = vpop.f32.mrb[44].mxu1 }
0x1284   :  { %v6036_v33 = vpop.f32.mrb[45].mxu1 }
0x1285   :  { %v6038_v4 = vpop.f32.mrb[46].mxu1 }
0x1286   :  { %v6040_v49 = vpop.f32.mrb[47].mxu1 }
0x128b   :  { %v4136_v2 = vpop.f32.mrb[48].mxu1 }
0x128c   :  { %v2751_v57 = vpop.f32.mrb[49].mxu1 }
0x128d   :  { %v4137_v62 = vpop.f32.mrb[50].mxu1 }
0x128e   :  { %v4398_v36 = vpack.i.bf16 %v4137_v62, %v4136_v2  ;;  %v2754_v3 = vpop.f32.mrb[51].mxu1  ;;  %v3701_v62 = vld [vmem:[%s6296_s11 + $0x1] ss:$0 sm:$0xff] }
0x128f   :  { %v4403_v26 = vpack.i.bf16 %v2754_v3, %v2751_v57 }
0x1290   :  { %4399 = vrot.lane.b32.xlu1 %v4398_v36, %s4868_s25 }
0x1291   :  { %4404 = vrot.lane.b32.xlu0 %v4403_v26, %s4868_s25 }
0x1293   :  { %v4140_v46 = vpop.f32.mrb[52].mxu1 }
0x1294   :  { %v2767_v22 = vpop.f32.mrb[53].mxu1 }
0x1295   :  { %v4141_v7 = vpop.f32.mrb[54].mxu1 }
0x1296   :  { %v4408_v52 = vpack.i.bf16 %v4141_v7, %v4140_v46  ;;  %v2770_v14 = vpop.f32.mrb[55].mxu1 }
0x1297   :  { %v4413_v27 = vpack.i.bf16 %v2770_v14, %v2767_v22  ;;  %v4563_v14 = vld [vmem:[%s6299_s14 + $0x90] ss:$8 sps:$4 sm:$0xff]  }
0x1298   :  { %4409 = vrot.lane.b32.xlu1 %v4408_v52, %s4869_s29 }
0x129c   :  { %4414 = vrot.lane.b32.xlu1 %v4413_v27, %s4869_s29 }
0x12bf   :  { %v4144_v1 = vpop.f32.mrb[56].mxu1 }
0x12c0   :  { %v2783_v24 = vpop.f32.mrb[57].mxu1 }
0x12c1   :  { %v4145_v11 = vpop.f32.mrb[58].mxu1 }
0x12c2   :  { %v4423_v30 = vpack.i.bf16 %v4145_v11, %v4144_v1  ;;  %v2786_v21 = vpop.f32.mrb[59].mxu1 }
0x12c3   :  { %v4418_v9 = vpack.i.bf16 %v2786_v21, %v2783_v24 }
0x12c4   :  { %4424 = vrot.lane.b32.xlu1 %v4423_v30, %s4867_s30 }
0x12c5   :  { %4419 = vrot.lane.b32.xlu0 %v4418_v9, %s4867_s30 }
0x1302   :  { %v4400_v15 = vpop.permute.xlu1 %4399 }
0x1303   :  { %v4405_v48 = vpop.permute.xlu0 %4404  ;;  %v4402_v50 = vunpack.i.h.bf16 %v4400_v15  ;;  %v4401_v44 = vunpack.i.l.bf16 %v4400_v15 }
0x1304   :  { %v4407_v58 = vunpack.i.h.bf16 %v4405_v48  ;;  %v4406_v5 = vunpack.i.l.bf16 %v4405_v48 }
0x1305   :  { %v2849_v18 = vsel %vm818_vm1, %v6038_v4, %v4402_v50  ;;  %v2848_v28 = vsel %vm818_vm1, %v6034_v10, %v4401_v44  ;;  %v4568_v44 = vld [vmem:[%s6299_s14 + $0xa4] ss:$8 sps:$4 sm:$0xff]  }
0x1306   :  { %v2847_v45 = vsel %vm818_vm1, %v6040_v49, %v4407_v58  ;;  %v2846_v51 = vsel %vm818_vm1, %v6036_v33, %v4406_v5  ;;  %v4571_v58 = vld [vmem:[%s6299_s14 + $0xb4] ss:$8 sps:$4 sm:$0xff]   ;;  %v4569_v5 = vld [vmem:[%s6299_s14 + $0xb0] ss:$8 sps:$4 sm:$0xff]  }
0x130a   :  { %v4410_v13 = vpop.permute.xlu1 %4409 }
0x130b   :  { %v4412_v17 = vunpack.i.h.bf16 %v4410_v13  ;;  %v4411_v19 = vunpack.i.l.bf16 %v4410_v13 }
0x130d   :  { %v2853_v23 = vsel %vm196_vm0, %v2849_v18, %v4412_v17  ;;  %v2852_v34 = vsel %vm196_vm0, %v2848_v28, %v4411_v19  ;;  %v4574_v17 = vld [vmem:[%s6299_s14 + $0xc4] ss:$8 sps:$4 sm:$0xff]   ;;  %v4572_v19 = vld [vmem:[%s6299_s14 + $0xc0] ss:$8 sps:$4 sm:$0xff]  }
0x130e   :  { %v4415_v6 = vpop.permute.xlu1 %4414  ;;  %v4580_v18 = vld [vmem:[%s6299_s14 + $0xe4] ss:$8 sps:$4 sm:$0xff]   ;;  %v4578_v28 = vld [vmem:[%s6299_s14 + $0xe0] ss:$8 sps:$4 sm:$0xff]  }
0x130f   :  { %v4417_v55 = vunpack.i.h.bf16 %v4415_v6  ;;  %v4416_v59 = vunpack.i.l.bf16 %v4415_v6  ;;  %v4566_v6 = vld [vmem:[%s6299_s14 + $0xa0] ss:$8 sps:$4 sm:$0xff]  }
0x1311   :  { %v2851_v63 = vsel %vm196_vm0, %v2847_v45, %v4417_v55  ;;  %v2850_v47 = vsel %vm196_vm0, %v2846_v51, %v4416_v59  ;;  %v4577_v55 = vld [vmem:[%s6299_s14 + $0xd4] ss:$8 sps:$4 sm:$0xff]   ;;  %v4575_v59 = vld [vmem:[%s6299_s14 + $0xd0] ss:$8 sps:$4 sm:$0xff]  }
0x1312   :  { %v4581_v45 = vld [vmem:[%s6299_s14 + $0xf0] ss:$8 sps:$4 sm:$0xff]  }
0x1336   :  { %v4425_v56 = vpop.permute.xlu1 %4424 }
0x1337   :  { %v4427_v53 = vunpack.i.h.bf16 %v4425_v56  ;;  %v4426_v20 = vunpack.i.l.bf16 %v4425_v56  ;;  %v4420_v16 = vpop.permute.xlu0 %4419  ;;  %v4583_v56 = vld [vmem:[%s6299_s14 + $0xf4] ss:$8 sps:$4 sm:$0xff]  }
0x1338   :  { %v4422_v8 = vunpack.i.h.bf16 %v4420_v16  ;;  %v4421_v42 = vunpack.i.l.bf16 %v4420_v16 }
0x1339   :  { %v2857_v43 = vsel %vm1277_vm2, %v2853_v23, %v4427_v53  ;;  %v2856_v10 = vsel %vm1277_vm2, %v2852_v34, %v4426_v20 }
0x133a   :  { %v2876_v4 = vpack.c.bf16 %v2857_v43, %v2856_v10  ;;  %v2854_v33 = vsel %vm1277_vm2, %v2850_v47, %v4421_v42  ;;  %v2855_v49 = vsel %vm1277_vm2, %v2851_v63, %v4422_v8 }
0x133b   :  { %v2875_v2 = vpack.c.bf16 %v2855_v49, %v2854_v33  ;;  %v3704_v33 = vld [vmem:[%s6297_s12 + $0x1] ss:$0 sm:$0xff] }
0x133d   :  { %4162 = vmatprep.mubr.bf16.mxu1 %v2875_v2 }
0x133e   :  { %4163 = vmatmul.mubr.bf16.vlgmr.msra.gmra.mrb[60].mxu1 %v2876_v4 }
0x1411   :  { %v4164_v57 = vpop.f32.mrb[60].mxu1 }
0x1412   :  { %v2959_v36 = vpop.f32.mrb[61].mxu1  ;;  %v2976_v37 = vadd.f32 %v4164_v57, %v5678_v35  ;;  %v4562_v35 = vld [vmem:[%s6299_s14 + $0x84] ss:$8 sps:$4 sm:$0xff]  }
0x1413   :  { %v2974_v3 = vadd.f32 %v2959_v36, %v5670_v25  ;;  %v4165_v26 = vpop.f32.mrb[62].mxu1  ;;  %3170 = vmatprep.subr.bf16.mxu0 %v4562_v35 }
0x1414   :  { %v2962_v29 = vpop.f32.mrb[63].mxu1  ;;  %v6099_v60 = vadd.f32 %v3701_v62, %v2976_v37  ;;  %v2977_v52 = vadd.f32 %v4165_v26, %v5681_v61  ;;  %v4565_v61 = vld [vmem:[%s6299_s14 + $0x94] ss:$8 sps:$4 sm:$0xff]  }
0x1415   :  { %v6093_v46 = vadd.f32 %v3701_v62, %v2974_v3  ;;  %v2975_v22 = vadd.f32 %v2962_v29, %v5673_v31  ;;  %v4560_v31 = vld [vmem:[%s6299_s14 + $0x80] ss:$8 sps:$4 sm:$0xff]  }
0x1416   :  { %v6104_v25 = vadd.f32 %v3701_v62, %v2977_v52  ;;  %3171 = vmatpush1.bf16.msra.mxu0 %v4560_v31  ;;  %v3705_v3 = vld [vmem:[%s6298_s13 + $0x1] ss:$0 sm:$0xff] }
0x1417   :  { %v6096_v7 = vadd.f32 %v3701_v62, %v2975_v22  ;;  %2994 = vadd.xlane.f32.xlu0 %v6093_v46  ;;  %3172 = vmatprep.subr.bf16.mxu0 %v4565_v61 }
0x1419   :  { %2996 = vadd.xlane.f32.xlu1 %v6096_v7 }
0x141a   :  { %3173 = vmatpush1.bf16.msra.mxu0 %v4563_v14 }
0x141b   :  { %2998 = vadd.xlane.f32.xlu0 %v6099_v60  ;;  %3174 = vmatprep.subr.bf16.mxu0 %v4568_v44  ;;  %v4598_v44 = vld [vmem:[%s6301_s16 + $0xf8] sm:$0xff]  }
0x141e   :  { %3175 = vmatpush1.bf16.msra.mxu0 %v4566_v6  ;;  %v4599_v6 = vld [vmem:[%s6301_s16 + $0xb8] sm:$0xff]  }
0x141f   :  { %3000 = vadd.xlane.f32.xlu0 %v6104_v25  ;;  %3176 = vmatprep.subr.bf16.mxu0 %v4571_v58  ;;  %v3722_v58 = vld [vmem:[%s6300_s15 + $0x2] sm:$0x3] }
0x1422   :  { %3177 = vmatpush1.bf16.msra.mxu0 %v4569_v5  ;;  %v3083_v5 = vrot.slane %v3722_v58, %v5174_v39 }
0x1423   :  { %3178 = vmatprep.subr.bf16.mxu0 %v4574_v17  ;;  %v3087_v17 = vrot.slane %v3722_v58, %v5180_v41 }
0x1426   :  { %3179 = vmatpush1.bf16.msra.mxu0 %v4572_v19 }
0x1427   :  { %3180 = vmatprep.subr.bf16.mxu0 %v4577_v55 }
0x142a   :  { %3181 = vmatpush1.bf16.msra.mxu0 %v4575_v59 }
0x142b   :  { %3182 = vmatprep.subr.bf16.mxu0 %v4580_v18 }
0x142e   :  { %3183 = vmatpush1.bf16.msra.mxu0 %v4578_v28 }
0x142f   :  { %3184 = vmatprep.subr.bf16.mxu0 %v4583_v56 }
0x1432   :  { %3185 = vmatpush1.bf16.msra.mxu0 %v4581_v45 }
0x14a4   :  { %v2995_v27 = vpop.xlane.xlu0 %2994 }
0x14a5   :  { %v3002_v12 = vmul.f32 0.0078125, %v2995_v27 }
0x14a6   :  { %v2997_v40 = vpop.xlane.xlu1 %2996 }
0x14a7   :  { %v3006_v38 = vsub.f32 %v6093_v46, %v3002_v12  ;;  %v3003_v54 = vmul.f32 0.0078125, %v2997_v40 }
0x14a8   :  { %v2999_v32 = vpop.xlane.xlu0 %2998 }
0x14a9   :  { %v3007_v1 = vsub.f32 %v6096_v7, %v3003_v54  ;;  %v3004_v24 = vmul.f32 0.0078125, %v2999_v32  ;;  %v3010_v11 = vmul.f32 %v3006_v38, %v3006_v38  ;;  %v4585_v54 = vld [vmem:[%s6301_s16 + $0x80] sm:$0xff]   ;;  %v4586_v32 = vld [vmem:[%s6301_s16 + $0xc8] sm:$0xff]  }
0x14ab   :  { %v3008_v30 = vsub.f32 %v6099_v60, %v3004_v24  ;;  %3014 = vadd.xlane.f32.xlu0 %v3010_v11  ;;  %v3011_v21 = vmul.f32 %v3007_v1, %v3007_v1  ;;  %v4589_v24 = vld [vmem:[%s6301_s16 + $0x90] sm:$0xff]   ;;  %v4590_v11 = vld [vmem:[%s6301_s16 + $0xd8] sm:$0xff]  }
0x14ac   :  { %v3001_v9 = vpop.xlane.xlu0 %3000 }
0x14ad   :  { %v3005_v15 = vmul.f32 0.0078125, %v3001_v9  ;;  %3016 = vadd.xlane.f32.xlu1 %v3011_v21  ;;  %v3012_v13 = vmul.f32 %v3008_v30, %v3008_v30  ;;  %v4592_v21 = vld [vmem:[%s6301_s16 + $0xe0] sm:$0xff]  }
0x14ae   :  { %v4593_v9 = vld [vmem:[%s6301_s16 + $0xa0] sm:$0xff]  }
0x14af   :  { %v3009_v48 = vsub.f32 %v6104_v25, %v3005_v15  ;;  %3018 = vadd.xlane.f32.xlu0 %v3012_v13  ;;  %v4594_v15 = vld [vmem:[%s6301_s16 + $0xe8] sm:$0xff]  }
0x14b0   :  { %v4595_v13 = vld [vmem:[%s6301_s16 + $0xa8] sm:$0xff]  }
0x14b1   :  { %v3013_v50 = vmul.f32 %v3009_v48, %v3009_v48 }
0x14b3   :  { %3020 = vadd.xlane.f32.xlu1 %v3013_v50  ;;  %v4597_v50 = vld [vmem:[%s6301_s16 + $0xb0] sm:$0xff]  }
0x1538   :  { %v3015_v51 = vpop.xlane.xlu0 %3014 }
0x1539   :  { %v3022_v53 = vmul.f32 0.0078125, %v3015_v51 }
0x153a   :  { %v3017_v20 = vpop.xlane.xlu1 %3016 }
0x153b   :  { %v3026_v16 = vadd.f32 1e-05, %v3022_v53  ;;  %v3023_v23 = vmul.f32 0.0078125, %v3017_v20 }
0x153c   :  { %v3019_v34 = vpop.xlane.xlu0 %3018 }
0x153d   :  { %4776 = vrsqrt.f32 %v3026_v16  ;;  %v3027_v8 = vadd.f32 1e-05, %v3023_v23  ;;  %v3024_v42 = vmul.f32 0.0078125, %v3019_v34 }
0x153f   :  { %4778 = vrsqrt.f32 %v3027_v8  ;;  %v3028_v63 = vadd.f32 1e-05, %v3024_v42 }
0x1540   :  { %v3021_v47 = vpop.xlane.xlu1 %3020 }
0x1541   :  { %4780 = vrsqrt.f32 %v3028_v63  ;;  %v3025_v43 = vmul.f32 0.0078125, %v3021_v47 }
0x1543   :  { %v3029_v10 = vadd.f32 1e-05, %v3025_v43 }
0x1545   :  { %4782 = vrsqrt.f32 %v3029_v10 }
0x1547   :  { %v4777_v4 = vpop.eup %4776 }
0x1548   :  { %v3034_v49 = vmul.f32 %v4777_v4, %v3006_v38  ;;  %v4584_v38 = vld [vmem:[%s6301_s16 + $0xc0] sm:$0xff]  }
0x1549   :  { %v4779_v2 = vpop.eup %4778  ;;  %3930 = vmatprep.subr.bf16.mxu1 %v4584_v38 }
0x154a   :  { %v3044_v57 = vmul.f32 %v3704_v33, %v3034_v49  ;;  %v3035_v62 = vmul.f32 %v4779_v2, %v3007_v1  ;;  %3931 = vmatpush3.bf16.msra.mxu1 %v4585_v54  ;;  %v4588_v1 = vld [vmem:[%s6301_s16 + $0xd0] sm:$0xff]  }
0x154b   :  { %v4781_v36 = vpop.eup %4780  ;;  %3932 = vmatprep.subr.bf16.mxu1 %v4586_v32 }
0x154c   :  { %v3045_v26 = vmul.f32 %v3704_v33, %v3035_v62  ;;  %v3054_v29 = vadd.f32 %v3705_v3, %v3044_v57  ;;  %v3036_v22 = vmul.f32 %v4781_v36, %v3008_v30  ;;  %v4591_v30 = vld [vmem:[%s6301_s16 + $0x98] sm:$0xff]  }
0x154e   :  { %v3055_v37 = vadd.f32 %v3705_v3, %v3045_v26  ;;  %v3046_v61 = vmul.f32 %v3704_v33, %v3036_v22 }
0x154f   :  { %v4783_v52 = vpop.eup %4782 }
0x1550   :  { %v3075_v31 = vpack.c.bf16 %v3055_v37, %v3054_v29  ;;  %v3037_v35 = vmul.f32 %v4783_v52, %v3009_v48  ;;  %v3056_v12 = vadd.f32 %v3705_v3, %v3046_v61  ;;  %v4596_v48 = vld [vmem:[%s6301_s16 + $0xf0] sm:$0xff]  }
0x1552   :  { %3203 = vmatmul.mubr.bf16.vlgmr.msra.gmra.mrb[56].mxu0 %v3075_v31  ;;  %v3047_v14 = vmul.f32 %v3704_v33, %v3037_v35 }
0x1553   :  { %3212 = vmatprep.mubr.bf16.mxu0 %v4866_v0  ;;  %v4587_v0 = vld [vmem:[%s6301_s16 + $0x88] sm:$0xff]  }
0x1554   :  { %v3057_v27 = vadd.f32 %v3705_v3, %v3047_v14  ;;  %3933 = vmatpush3.bf16.msra.mxu1 %v4587_v0 }
0x1555   :  { %3934 = vmatprep.subr.bf16.mxu1 %v4588_v1 }
0x1556   :  { %v3076_v40 = vpack.c.bf16 %v3057_v27, %v3056_v12 }
0x1558   :  { %3935 = vmatpush3.bf16.msra.mxu1 %v4589_v24 }
0x1559   :  { %3936 = vmatprep.subr.bf16.mxu1 %v4590_v11 }
0x155a   :  { %3213 = vmatmul.mubr.bf16.gmra.mrb[60].mxu0 %v3076_v40 }
0x155c   :  { %3937 = vmatpush3.bf16.msra.mxu1 %v4591_v30 }
0x155d   :  { %3938 = vmatprep.subr.bf16.mxu1 %v4592_v21 }
0x1560   :  { %3939 = vmatpush3.bf16.msra.mxu1 %v4593_v9 }
0x1561   :  { %3940 = vmatprep.subr.bf16.mxu1 %v4594_v15 }
0x1564   :  { %3941 = vmatpush3.bf16.msra.mxu1 %v4595_v13 }
0x1565   :  { %3942 = vmatprep.subr.bf16.mxu1 %v4596_v48 }
0x1568   :  { %3943 = vmatpush3.bf16.msra.mxu1 %v4597_v50 }
0x1569   :  { %3944 = vmatprep.subr.bf16.mxu1 %v4598_v44 }
0x156c   :  { %3945 = vmatpush3.bf16.msra.mxu1 %v4599_v6 }
0x1625   :  { %v3204_v19 = vpop.f32.mrb[56].mxu0 }
0x1626   :  { %v6219_v55 = vadd.f32 %v3204_v19, %v3083_v5  ;;  %v3206_v59 = vpop.f32.mrb[57].mxu0 }
0x1627   :  { %v6221_v18 = vadd.f32 %v3206_v59, %v3087_v17  ;;  %v3208_v28 = vpop.f32.mrb[58].mxu0 }
0x1628   :  { %v3223_v56 = vmul.f32 %v6219_v55, %v6219_v55  ;;  %v6225_v45 = vadd.f32 %v3208_v28, %v3083_v5  ;;  %v3210_v51 = vpop.f32.mrb[59].mxu0 }
0x1629   :  { %v3224_v53 = vmul.f32 %v6221_v18, %v6221_v18  ;;  %v6229_v20 = vadd.f32 %v3210_v51, %v3087_v17 }
0x162a   :  { %v3231_v39 = vmul.f32 %v3223_v56, %v6219_v55  ;;  %v3225_v41 = vmul.f32 %v6225_v45, %v6225_v45 }
0x162b   :  { %v3232_v16 = vmul.f32 %v3224_v53, %v6221_v18  ;;  %v3226_v23 = vmul.f32 %v6229_v20, %v6229_v20 }
0x162c   :  { %v3239_v34 = vmul.f32 0.044715, %v3231_v39  ;;  %v3233_v8 = vmul.f32 %v3225_v41, %v6225_v45 }
0x162d   :  { %v3240_v42 = vmul.f32 0.044715, %v3232_v16  ;;  %v3234_v63 = vmul.f32 %v3226_v23, %v6229_v20  ;;  %v3214_v47 = vpop.f32.mrb[60].mxu0 }
0x162e   :  { %v3247_v43 = vadd.f32 %v3239_v34, %v6219_v55  ;;  %v3241_v10 = vmul.f32 0.044715, %v3233_v8  ;;  %v6240_v4 = vadd.f32 %v3214_v47, %v3083_v5  ;;  %v3216_v33 = vpop.f32.mrb[61].mxu0 }
0x162f   :  { %v3248_v49 = vadd.f32 %v3240_v42, %v6221_v18  ;;  %v3242_v2 = vmul.f32 0.044715, %v3234_v63  ;;  %v6243_v57 = vadd.f32 %v3216_v33, %v3087_v17  ;;  %v3218_v62 = vpop.f32.mrb[62].mxu0 }
0x1630   :  { %v3255_v36 = vmul.f32 0.7978846, %v3247_v43  ;;  %v3249_v3 = vadd.f32 %v3241_v10, %v6225_v45  ;;  %v3227_v26 = vmul.f32 %v6240_v4, %v6240_v4  ;;  %v6248_v29 = vadd.f32 %v3218_v62, %v3083_v5  ;;  %v3220_v37 = vpop.f32.mrb[63].mxu0 }
0x1631   :  { %v3256_v22 = vmul.f32 0.7978846, %v3248_v49  ;;  %v3250_v52 = vadd.f32 %v3242_v2, %v6229_v20  ;;  %v3228_v31 = vmul.f32 %v6243_v57, %v6243_v57  ;;  %v6253_v35 = vadd.f32 %v3220_v37, %v3087_v17 }
0x1632   :  { %4784 = vtanh.f32 %v3255_v36  ;;  %v3257_v61 = vmul.f32 0.7978846, %v3249_v3  ;;  %v3235_v14 = vmul.f32 %v3227_v26, %v6240_v4  ;;  %v3229_v27 = vmul.f32 %v6248_v29, %v6248_v29 }
0x1633   :  { %4786 = vtanh.f32 %v3256_v22  ;;  %v3258_v12 = vmul.f32 0.7978846, %v3250_v52  ;;  %v3236_v40 = vmul.f32 %v3228_v31, %v6243_v57  ;;  %v3230_v38 = vmul.f32 %v6253_v35, %v6253_v35 }
0x1634   :  { %4788 = vtanh.f32 %v3257_v61  ;;  %v3243_v54 = vmul.f32 0.044715, %v3235_v14  ;;  %v3237_v32 = vmul.f32 %v3229_v27, %v6248_v29 }
0x1635   :  { %4790 = vtanh.f32 %v3258_v12  ;;  %v3244_v0 = vmul.f32 0.044715, %v3236_v40  ;;  %v3238_v1 = vmul.f32 %v3230_v38, %v6253_v35 }
0x1636   :  { %v3251_v24 = vadd.f32 %v3243_v54, %v6240_v4  ;;  %v3245_v11 = vmul.f32 0.044715, %v3237_v32 }
0x1637   :  { %v3252_v30 = vadd.f32 %v3244_v0, %v6243_v57  ;;  %v3246_v21 = vmul.f32 0.044715, %v3238_v1 }
0x1638   :  { %v3259_v9 = vmul.f32 0.7978846, %v3251_v24  ;;  %v3253_v15 = vadd.f32 %v3245_v11, %v6248_v29 }
0x1639   :  { %v3260_v13 = vmul.f32 0.7978846, %v3252_v30  ;;  %v3254_v48 = vadd.f32 %v3246_v21, %v6253_v35 }
0x163a   :  { %4792 = vtanh.f32 %v3259_v9  ;;  %v3261_v50 = vmul.f32 0.7978846, %v3253_v15 }
0x163b   :  { %4794 = vtanh.f32 %v3260_v13  ;;  %v3262_v44 = vmul.f32 0.7978846, %v3254_v48 }
0x163c   :  { %v4785_v6 = vpop.eup %4784  ;;  %4796 = vtanh.f32 %v3261_v50 }
0x163d   :  { %v4787_v58 = vpop.eup %4786  ;;  %v3271_v5 = vadd.f32 1.0, %v4785_v6  ;;  %4798 = vtanh.f32 %v3262_v44 }
0x163e   :  { %v4789_v17 = vpop.eup %4788  ;;  %v3272_v19 = vadd.f32 1.0, %v4787_v58 }
0x163f   :  { %v4791_v59 = vpop.eup %4790  ;;  %v3279_v28 = vmul.f32 0.5, %v3271_v5  ;;  %v3273_v56 = vadd.f32 1.0, %v4789_v17 }
0x1640   :  { %v3274_v51 = vadd.f32 1.0, %v4791_v59  ;;  %v3280_v53 = vmul.f32 0.5, %v3272_v19 }
0x1641   :  { %v3281_v39 = vmul.f32 0.5, %v3273_v56  ;;  %v3287_v16 = vmul.f32 %v3279_v28, %v6219_v55 }
0x1642   :  { %v3282_v41 = vmul.f32 0.5, %v3274_v51  ;;  %v3288_v8 = vmul.f32 %v3280_v53, %v6221_v18 }
0x1643   :  { %v3289_v23 = vmul.f32 %v3281_v39, %v6225_v45 }
0x1644   :  { %v4793_v34 = vpop.eup %4792  ;;  %v3290_v42 = vmul.f32 %v3282_v41, %v6229_v20 }
0x1645   :  { %v4795_v63 = vpop.eup %4794  ;;  %v3328_v47 = vpack.c.bf16 %v3289_v23, %v3287_v16  ;;  %v3275_v43 = vadd.f32 1.0, %v4793_v34 }
0x1646   :  { %v4797_v10 = vpop.eup %4796  ;;  %v3329_v33 = vpack.c.bf16 %v3290_v42, %v3288_v8  ;;  %v3276_v49 = vadd.f32 1.0, %v4795_v63 }
0x1647   :  { %v4799_v2 = vpop.eup %4798  ;;  %v3277_v62 = vadd.f32 1.0, %v4797_v10  ;;  %v3283_v36 = vmul.f32 0.5, %v3275_v43 }
0x1648   :  { %3460 = vmatprep.mubr.bf16.mxu1 %v3329_v33  ;;  %v3278_v3 = vadd.f32 1.0, %v4799_v2  ;;  %v3284_v26 = vmul.f32 0.5, %v3276_v49 }
0x1649   :  { %3461 = vmatmul.mubr.bf16.vlgmr.msra.gmra.mrb[64].mxu1 %v3328_v47  ;;  %v3285_v55 = vmul.f32 0.5, %v3277_v62  ;;  %v3291_v37 = vmul.f32 %v3283_v36, %v6240_v4  ;;  %v3788_v4 = vld [vmem:[%s6302_s17 + $0x1] ss:$0 sm:$0xff] }
0x164a   :  { %v3286_v45 = vmul.f32 0.5, %v3278_v3  ;;  %v3292_v20 = vmul.f32 %v3284_v26, %v6243_v57 }
0x164b   :  { %v3293_v18 = vmul.f32 %v3285_v55, %v6248_v29 }
0x164c   :  { %v3294_v22 = vmul.f32 %v3286_v45, %v6253_v35 }
0x164d   :  { %v3330_v52 = vpack.c.bf16 %v3293_v18, %v3291_v37 }
0x164e   :  { %v3331_v31 = vpack.c.bf16 %v3294_v22, %v3292_v20 }
0x1650   :  { %3468 = vmatprep.mubr.bf16.mxu1 %v3331_v31 }
0x1651   :  { %3469 = vmatmul.mubr.bf16.gmra.mrb[68].mxu1 %v3330_v52 }
0x171c   :  { %v3946_v61 = vpop.f32.mrb[64].mxu1 }
0x171d   :  { %v3947_v14 = vpop.f32.mrb[65].mxu1 }
0x171e   :  { %v3948_v27 = vadd.f32 %v3947_v14, %v3946_v61  ;;  %v3949_v12 = vpop.f32.mrb[66].mxu1 }
0x171f   :  { %v3950_v40 = vpop.f32.mrb[67].mxu1 }
0x1720   :  { %v3477_v38 = vadd.f32 %v3948_v27, %v6093_v46  ;;  %v3951_v54 = vadd.f32 %v3950_v40, %v3949_v12 }
0x1722   :  { %v3478_v57 = vadd.f32 %v3951_v54, %v6096_v7  ;;  %v3489_v29 = vadd.f32 %v3788_v4, %v3477_v38 }
0x1724   :  { %v3490_v35 = vadd.f32 %v3788_v4, %v3478_v57  ;;  %v3952_v32 = vpop.f32.mrb[68].mxu1 }
0x1725   :  { %v3953_v0 = vpop.f32.mrb[69].mxu1 }
0x1726   :  { %v3493_v1 = vadd.f32 %v3490_v35, %v3489_v29  ;;  %v3954_v24 = vadd.f32 %v3953_v0, %v3952_v32  ;;  %v3955_v11 = vpop.f32.mrb[70].mxu1 }
0x1727   :  { %v3956_v30 = vpop.f32.mrb[71].mxu1 }
0x1728   :  { %v3479_v21 = vadd.f32 %v3954_v24, %v6099_v60  ;;  %v3957_v9 = vadd.f32 %v3956_v30, %v3955_v11  ;;  %v3494_v50 = vmul.f32 0.5, %v3493_v1 }
0x172a   :  { %v3480_v46 = vadd.f32 %v3957_v9, %v6104_v25  ;;  %v3491_v15 = vadd.f32 %v3788_v4, %v3479_v21 }
0x172c   :  { %v3492_v13 = vadd.f32 %v3788_v4, %v3480_v46 }
0x172e   :  { %v3495_v48 = vadd.f32 %v3492_v13, %v3491_v15 }
0x1730   :  { %v3496_v44 = vmul.f32 0.5, %v3495_v48 }
0x1732   :  { %v3796_v6 = vpack.c.bf16 %v3496_v44, %v3494_v50 }
0x1734   :  { %3797 = vst [vmem:[%s6303_s18] sm:$0xff] %v3796_v6  }
0x1735   :  { %3511 = vsyncpa [#allocation3], 1 }
0x1736   :  { %3512 = vsyncpa [#allocation5], 1 }

// kernel: forward.3
= control target key start
LH: loop header
LB: loop body
LE: loop exit
PB: predicated region body
PF: predicated region fallthrough
CT: control target
= control target key end

     0   :  { %s10100_s6 = smov 1   ;;  %s10101_s10 = smov 2   ;;  %s11615_s0 = inlined_call_operand.smem [shape: u32[40], index: -1, kind: input, shape index: {}] }
   0x1   :  { %s10165_s5 = sld [smem:[%s11615_s0]]   ;;  %s10102_s14 = smov 3  }
   0x2   :  { %s10170_s9 = sld [smem:[%s11615_s0 + %s10100_s6]]   ;;  %s10103_s18 = smov 4  }
   0x3   :  { %s10175_s13 = sld [smem:[%s11615_s0 + %s10101_s10]]   ;;  %s10104_s22 = smov 5  }
   0x4   :  { %s10180_s17 = sld [smem:[%s11615_s0 + %s10102_s14]]   ;;  %s10105_s26 = smov 6  }
   0x5   :  { %s10185_s21 = sld [smem:[%s11615_s0 + %s10103_s18]]   ;;  %s10106_s30 = smov 7  }
   0x6   :  { %s10190_s25 = sld [smem:[%s11615_s0 + %s10104_s22]]   ;;  %s10107_s4 = smov 8  }
   0x7   :  { %s10195_s29 = sld [smem:[%s11615_s0 + %s10105_s26]]   ;;  %s10108_s10 = smov 9  }
   0x8   :  { %s10200_s3 = sld [smem:[%s11615_s0 + %s10106_s30]]   ;;  %s10109_s15 = smov 10  }
   0x9   :  { %s10205_s8 = sld [smem:[%s11615_s0 + %s10107_s4]]   ;;  %s10110_s20 = smov 11  }
   0xa   :  { %11638 = sst [smem:[#allocation20_spill]] %s10180_s17  ;;  %s10111_s26 = smov 12  }
   0xb   :  { %s10210_s14 = sld [smem:[%s11615_s0 + %s10108_s10]]   ;;  %s10112_s1 = smov 13  }
   0xc   :  { %11639 = sst [smem:[#allocation21_spill]] %s10190_s25  ;;  %s10113_s7 = smov 14  }
   0xd   :  { %s10215_s19 = sld [smem:[%s11615_s0 + %s10109_s15]]   ;;  %s10114_s15 = smov 15  }
   0xe   :  { %s10220_s24 = sld [smem:[%s11615_s0 + %s10110_s20]]   ;;  %s10115_s22 = smov 16  }
   0xf   :  { %s10225_s30 = sld [smem:[%s11615_s0 + %s10111_s26]]   ;;  %s10116_s28 = smov 17  }
  0x10   :  { %s10230_s6 = sld [smem:[%s11615_s0 + %s10112_s1]]  }
  0x11   :  { %s10235_s12 = sld [smem:[%s11615_s0 + %s10113_s7]]   ;;  %s10117_s7 = smov 18  }
  0x12   :  { %s10240_s20 = sld [smem:[%s11615_s0 + %s10114_s15]]   ;;  %s10118_s15 = smov 19  }
  0x13   :  { %11640 = sst [smem:[#allocation22_spill]] %s10215_s19 }
  0x14   :  { %11641 = sst [smem:[#allocation23_spill]] %s10220_s24 }
  0x15   :  { %s10245_s27 = sld [smem:[%s11615_s0 + %s10115_s22]]   ;;  %s10119_s22 = smov 20  }
  0x16   :  { %11642 = sst [smem:[#allocation24_spill]] %s10230_s6 }
  0x17   :  { %s10250_s4 = sld [smem:[%s11615_s0 + %s10116_s28]]   ;;  %s10120_s28 = smov 21  }
  0x18   :  { %11643 = sst [smem:[#allocation25_spill]] %s10240_s20 }
  0x19   :  { %s10255_s25 = sld [smem:[%s11615_s0 + %s10117_s7]]   ;;  %s10121_s7 = smov 22  }
  0x1a   :  { %s10260_s6 = sld [smem:[%s11615_s0 + %s10118_s15]]   ;;  %s10122_s15 = smov 23  }
  0x1b   :  { %11644 = sst [smem:[#allocation26_spill]] %s10245_s27 }
  0x1c   :  { %s10265_s27 = sld [smem:[%s11615_s0 + %s10119_s22]]   ;;  %s10123_s22 = smov 24  }
  0x1d   :  { %11645 = sst [smem:[#allocation27_spill]] %s10250_s4 }
  0x1e   :  { %s10270_s4 = sld [smem:[%s11615_s0 + %s10120_s28]]   ;;  %s10124_s28 = smov 25  }
  0x1f   :  { %11646 = sst [smem:[#allocation28_spill]] %s10255_s25 }
  0x20   :  { %11647 = sst [smem:[#allocation29_spill]] %s10260_s6 }
  0x21   :  { %s10275_s25 = sld [smem:[%s11615_s0 + %s10121_s7]]   ;;  %s10125_s7 = smov 26  }
  0x22   :  { %11648 = sst [smem:[#allocation30_spill]] %s10265_s27 }
  0x23   :  { %s10280_s6 = sld [smem:[%s11615_s0 + %s10122_s15]]   ;;  %s10126_s15 = smov 27  }
  0x24   :  { %11649 = sst [smem:[#allocation31_spill]] %s10270_s4 }
  0x25   :  { %s10285_s27 = sld [smem:[%s11615_s0 + %s10123_s22]]   ;;  %s10127_s22 = smov 28  }
  0x26   :  { %s10290_s4 = sld [smem:[%s11615_s0 + %s10124_s28]]   ;;  %s10128_s28 = smov 29  }
  0x27   :  { %11650 = sst [smem:[#allocation32_spill]] %s10275_s25 }
  0x28   :  { %s10295_s25 = sld [smem:[%s11615_s0 + %s10125_s7]]   ;;  %s10129_s7 = smov 30  }
  0x29   :  { %11651 = sst [smem:[#allocation33_spill]] %s10280_s6 }
  0x2a   :  { %s10300_s6 = sld [smem:[%s11615_s0 + %s10126_s15]]   ;;  %s10130_s15 = smov 31  }
  0x2b   :  { %s10305_s24 = sld [smem:[%s11615_s0 + %s10127_s22]]   ;;  %s10131_s22 = smov 32  }
  0x2c   :  { %s10310_s19 = sld [smem:[%s11615_s0 + %s10128_s28]]   ;;  %s10132_s28 = smov 33  }
  0x2e   :  { %11652 = sst [smem:[#allocation34_spill]] %s10295_s25 }
  0x2f   :  { %s10315_s25 = sld [smem:[%s11615_s0 + %s10129_s7]]   ;;  %s10133_s7 = smov 34  }
  0x30   :  { %11653 = sst [smem:[#allocation35_spill]] %s10300_s6 }
  0x31   :  { %11654 = sst [smem:[#allocation36_spill]] %s10305_s24 }
  0x32   :  { %11655 = sst [smem:[#allocation37_spill]] %s10310_s19 }
  0x33   :  { %s10320_s6 = sld [smem:[%s11615_s0 + %s10130_s15]]   ;;  %s10134_s15 = smov 35  }
  0x34   :  { %s10325_s24 = sld [smem:[%s11615_s0 + %s10131_s22]]   ;;  %s10135_s22 = smov 36  }
  0x35   :  { %11656 = sst [smem:[#allocation38_spill]] %s10315_s25 }
  0x36   :  { %s10330_s19 = sld [smem:[%s11615_s0 + %s10132_s28]]   ;;  %s10136_s28 = smov 37  }
  0x37   :  { %s10335_s25 = sld [smem:[%s11615_s0 + %s10133_s7]]   ;;  %s10137_s7 = smov 38  }
  0x38   :  { %s10340_s20 = sld [smem:[%s11615_s0 + %s10134_s15]]   ;;  %s10138_s15 = smov 39  }
  0x39   :  { %s10355_s17 = sld [smem:[%s11615_s0 + %s10137_s7]]  }
  0x3a   :  { %11657 = sst [smem:[#allocation39_spill]] %s10325_s24 }
  0x3b   :  { %s10345_s24 = sld [smem:[%s11615_s0 + %s10135_s22]]  }
  0x3c   :  { %11658 = sst [smem:[#allocation40_spill]] %s10330_s19 }
  0x3d   :  { %s10350_s19 = sld [smem:[%s11615_s0 + %s10136_s28]]  }
  0x3e   :  { %11659 = sst [smem:[#allocation41_spill]] %s10340_s20 }
  0x3f   :  { %s10360_s20 = sld [smem:[%s11615_s0 + %s10138_s15]]  }
  0x40   :  { %84 = vsyncpa [#allocation3], 0 }
  0x41   :  { %85 = vsyncpa [#allocation6], 0 }
  0x42   :  { %86 = vsyncpa [#allocation9], 0 }
  0x43   :  { %87 = vsyncpa [#allocation12], 0 }
  0x44   :  { %88 = vsyncpa [#allocation4], 0  ;;  %s10139_s22 = smov [#allocation5]   ;;  %s9914_s26 = scalar_lea.hbm %s10175_s13, 16 }
  0x45   :  { %s107_s23 = sshll.u32 %s10139_s22, 4  ;;  %p9915_p0 = scmp.ne.s32.totalorder %s10175_s13, %s9914_s26  ;;  %s108_s23 = int_to_ptr.vmem [resolvable:$true] %s107_s23 }
  0x46   :  { %p9918_p1 = scmp.lt.u32.totalorder %s9914_s26, %s10175_s13 }
  0x48   :  { %p9920_p2 = pnand %p9918_p1, %p9915_p0 }
  0x4a   :  { %9923 = shalt.err (!%p9920_p2)
}
  0x4b   :  { %s9924_s28 = scalar_lea.vmem %s108_s23, 16  ;;  %s9928_s0 = scalar_lea.vmem %s108_s23, 32 }
  0x4c   :  { %p9925_p3 = scmp.ne.s32.totalorder %s108_s23, %s9924_s28  ;;  %p9929_p4 = scmp.lt.s32.totalorder %s108_s23, %s108_s23 }
  0x4d   :  { %p9930_p5 = scmp.lt.s32.totalorder %s9928_s0, %s9924_s28 }
  0x4f   :  { %p9931_p6 = por %p9930_p5, %p9929_p4 }
  0x51   :  { %p9932_p7 = pnand %p9931_p6, %p9925_p3 }
  0x53   :  { %9935 = shalt.err (!%p9932_p7)
}
  0x54   :  { %110 = dma.hbm_to_vmem [thread:$0]  %s10175_s13, 16, %s108_s23, [#allocation6]  }
  0x55   :  { %s10140_s1 = smov [#allocation8]   ;;  %s10141_s7 = smov [#allocation11]  }
  0x56   :  { %s170_s2 = sshll.u32 %s10140_s1, 4  ;;  %s208_s10 = sshll.u32 %s10141_s7, 4  ;;  %s171_s2 = int_to_ptr.vmem [resolvable:$true] %s170_s2  ;;  %s209_s10 = int_to_ptr.vmem [resolvable:$true] %s208_s10 }
  0x57   :  { %s9936_s11 = scalar_lea.hbm %s10290_s4, 32 }
  0x58   :  { %p9937_p8 = scmp.ne.s32.totalorder %s10290_s4, %s9936_s11  ;;  %p9940_p9 = scmp.lt.u32.totalorder %s9936_s11, %s10290_s4 }
  0x5a   :  { %p9942_p10 = pnand %p9940_p9, %p9937_p8 }
  0x5c   :  { %9945 = shalt.err (!%p9942_p10)
}
  0x5d   :  { %s9946_s15 = scalar_lea.vmem %s171_s2, 32  ;;  %p9951_p12 = scmp.lt.s32.totalorder %s171_s2, %s171_s2 }
  0x5e   :  { %p9947_p11 = scmp.ne.s32.totalorder %s171_s2, %s9946_s15  ;;  %p9952_p13 = scmp.lt.s32.totalorder %s9946_s15, %s9946_s15 }
  0x60   :  { %p9953_p0 = por %p9952_p13, %p9951_p12 }
  0x62   :  { %p9954_p1 = pnand %p9953_p0, %p9947_p11 }
  0x64   :  { %9957 = shalt.err (!%p9954_p1)
}
  0x65   :  { %s10142_s16 = smov 16   ;;  %s10143_s13 = smov 1  }
  0x66   :  { %176 = dma.hbm_to_vmem [thread:$0]  %s10290_s4, 32, %s171_s2, [#allocation9], %s10142_s16, %s10142_s16, %s10143_s13  }
  0x67   :  { %s9958_s18 = scalar_lea.hbm %s10335_s25, 32 }
  0x68   :  { %p9959_p2 = scmp.ne.s32.totalorder %s10335_s25, %s9958_s18  ;;  %p9962_p3 = scmp.lt.u32.totalorder %s9958_s18, %s10335_s25 }
  0x6a   :  { %p9964_p4 = pnand %p9962_p3, %p9959_p2 }
  0x6c   :  { %9967 = shalt.err (!%p9964_p4)
}
  0x6d   :  { %s9968_s22 = scalar_lea.vmem %s209_s10, 32  ;;  %p9973_p6 = scmp.lt.s32.totalorder %s209_s10, %s209_s10 }
  0x6e   :  { %p9969_p5 = scmp.ne.s32.totalorder %s209_s10, %s9968_s22  ;;  %p9974_p7 = scmp.lt.s32.totalorder %s9968_s22, %s9968_s22 }
  0x70   :  { %p9975_p8 = por %p9974_p7, %p9973_p6 }
  0x72   :  { %p9976_p9 = pnand %p9975_p8, %p9969_p5 }
  0x74   :  { %9979 = shalt.err (!%p9976_p9)
}
  0x75   :  { %214 = dma.hbm_to_vmem [thread:$0]  %s10335_s25, 32, %s209_s10, [#allocation12], %s10142_s16, %s10142_s16, %s10143_s13  }
  0x76   :  { %s10144_s4 = smov [#allocation2]   ;;  %s10145_s26 = smov [#allocation7]  }
  0x77   :  { %s97_s23 = sshll.u32 %s10144_s4, 4  ;;  %s158_s28 = sshll.u32 %s10145_s26, 4  ;;  %s98_s23 = int_to_ptr.vmem [resolvable:$true] %s97_s23  ;;  %s159_s28 = int_to_ptr.vmem [resolvable:$true] %s158_s28 }
  0x78   :  { %s9980_s0 = scalar_lea.hbm %s10170_s9, 16 }
  0x79   :  { %p9981_p10 = scmp.ne.s32.totalorder %s10170_s9, %s9980_s0  ;;  %p9984_p11 = scmp.lt.u32.totalorder %s9980_s0, %s10170_s9 }
  0x7b   :  { %p9986_p12 = pnand %p9984_p11, %p9981_p10 }
  0x7d   :  { %9989 = shalt.err (!%p9986_p12)
}
  0x7e   :  { %s9990_s1 = scalar_lea.vmem %s98_s23, 16  ;;  %s9994_s2 = scalar_lea.vmem %s98_s23, 32 }
  0x7f   :  { %p9991_p13 = scmp.ne.s32.totalorder %s98_s23, %s9990_s1  ;;  %p9995_p0 = scmp.lt.s32.totalorder %s98_s23, %s98_s23 }
  0x80   :  { %p9996_p1 = scmp.lt.s32.totalorder %s9994_s2, %s9990_s1 }
  0x82   :  { %p9997_p2 = por %p9996_p1, %p9995_p0 }
  0x84   :  { %p9998_p3 = pnand %p9997_p2, %p9991_p13 }
  0x86   :  { %10001 = shalt.err (!%p9998_p3)
}
  0x87   :  { %100 = dma.hbm_to_vmem [thread:$0]  %s10170_s9, 16, %s98_s23, [#allocation3]  }
  0x88   :  { %s10002_s25 = scalar_lea.hbm %s10285_s27, 32 }
  0x89   :  { %p10003_p4 = scmp.ne.s32.totalorder %s10285_s27, %s10002_s25  ;;  %p10006_p5 = scmp.lt.u32.totalorder %s10002_s25, %s10285_s27 }
  0x8b   :  { %p10008_p6 = pnand %p10006_p5, %p10003_p4 }
  0x8d   :  { %10011 = shalt.err (!%p10008_p6)
}
  0x8e   :  { %s10012_s7 = scalar_lea.vmem %s159_s28, 32  ;;  %p10017_p8 = scmp.lt.s32.totalorder %s159_s28, %s159_s28 }
  0x8f   :  { %p10013_p7 = scmp.ne.s32.totalorder %s159_s28, %s10012_s7  ;;  %p10018_p9 = scmp.lt.s32.totalorder %s10012_s7, %s10012_s7 }
  0x91   :  { %p10019_p10 = por %p10018_p9, %p10017_p8 }
  0x93   :  { %p10020_p11 = pnand %p10019_p10, %p10013_p7 }
  0x95   :  { %10023 = shalt.err (!%p10020_p11)
}
  0x96   :  { %164 = dma.hbm_to_vmem [thread:$0]  %s10285_s27, 32, %s159_s28, [#allocation6], %s10142_s16, %s10142_s16, %s10143_s13  }
  0x97   :  { %s10146_s9 = smov [#allocation10]   ;;  %s10147_s11 = smov [#allocation13]  }
  0x98   :  { %s192_s10 = sshll.u32 %s10146_s9, 4  ;;  %s225_s15 = sshll.u32 %s10147_s11, 4  ;;  %s193_s10 = int_to_ptr.vmem [resolvable:$true] %s192_s10  ;;  %s226_s15 = int_to_ptr.vmem [resolvable:$true] %s225_s15 }
  0x99   :  { %s10024_s18 = scalar_lea.hbm %s10320_s6, 32 }
  0x9a   :  { %p10025_p12 = scmp.ne.s32.totalorder %s10320_s6, %s10024_s18  ;;  %p10028_p13 = scmp.lt.u32.totalorder %s10024_s18, %s10320_s6 }
  0x9c   :  { %p10030_p0 = pnand %p10028_p13, %p10025_p12 }
  0x9e   :  { %10033 = shalt.err (!%p10030_p0)
}
  0x9f   :  { %s10034_s22 = scalar_lea.vmem %s193_s10, 32  ;;  %p10039_p2 = scmp.lt.s32.totalorder %s193_s10, %s193_s10 }
  0xa0   :  { %p10035_p1 = scmp.ne.s32.totalorder %s193_s10, %s10034_s22  ;;  %p10040_p3 = scmp.lt.s32.totalorder %s10034_s22, %s10034_s22 }
  0xa2   :  { %p10041_p4 = por %p10040_p3, %p10039_p2 }
  0xa4   :  { %p10042_p5 = pnand %p10041_p4, %p10035_p1 }
  0xa6   :  { %10045 = shalt.err (!%p10042_p5)
}
  0xa7   :  { %198 = dma.hbm_to_vmem [thread:$0]  %s10320_s6, 32, %s193_s10, [#allocation9], %s10142_s16, %s10142_s16, %s10143_s13  }
  0xa8   :  { %s10046_s27 = scalar_lea.hbm %s10350_s19, 16 }
  0xa9   :  { %p10047_p6 = scmp.ne.s32.totalorder %s10350_s19, %s10046_s27  ;;  %p10050_p7 = scmp.lt.u32.totalorder %s10046_s27, %s10350_s19 }
  0xab   :  { %p10052_p8 = pnand %p10050_p7, %p10047_p6 }
  0xad   :  { %10055 = shalt.err (!%p10052_p8)
}
  0xae   :  { %s10056_s4 = scalar_lea.vmem %s226_s15, 16  ;;  %s10060_s23 = scalar_lea.vmem %s226_s15, 32 }
  0xaf   :  { %p10057_p9 = scmp.ne.s32.totalorder %s226_s15, %s10056_s4  ;;  %p10061_p10 = scmp.lt.s32.totalorder %s226_s15, %s226_s15 }
  0xb0   :  { %p10062_p11 = scmp.lt.s32.totalorder %s10060_s23, %s10056_s4 }
  0xb2   :  { %p10063_p12 = por %p10062_p11, %p10061_p10 }
  0xb4   :  { %p10064_p13 = pnand %p10063_p12, %p10057_p9 }
  0xb6   :  { %10067 = shalt.err (!%p10064_p13)
}
  0xb7   :  { %228 = dma.hbm_to_vmem [thread:$0]  %s10350_s19, 16, %s226_s15, [#allocation12]  }
  0xb8   :  { %10090 = dma.done.wait [#allocation3], 16  }
  0xb9   :  { %10091 = vsyncadd [#allocation3], 4294967280 }
  0xba   :  { %10092 = dma.done.wait [#allocation6], 48  }
  0xbb   :  { %10093 = vsyncadd [#allocation6], 4294967248 }
  0xbc   :  { %10094 = dma.done.wait [#allocation9], 64  }
  0xbd   :  { %10095 = vsyncadd [#allocation9], 4294967232 }
  0xbe   :  { %10096 = dma.done.wait [#allocation12], 48  }
  0xbf   :  { %10097 = vsyncadd [#allocation12], 4294967248  ;;  %v253_v0 = vld [vmem:[%s10165_s5] sm:$0xff]  ;;  %v254_v1 = vld [vmem:[%s10165_s5 + $0x8] sm:$0xff]  ;;  %v10148_v4 = vmov 0.0   ;;  %v10149_v32 = vmov 0   ;;  %v349_v53 = vlaneseq }
  0xc0   :  { %257 = vadd.xlane.f32.xlu0 %v253_v0  ;;  %v9114_v2 = vld [vmem:[%s10195_s29 + $0x4] ss:$12 sps:$4 sm:$0xff]   ;;  %v9116_v3 = vld [vmem:[%s10195_s29] ss:$12 sps:$4 sm:$0xff]   ;;  %8221 = vmatprep.subr.bf16.mxu1 %v10148_v4  ;;  %v9117_v5 = vld [vmem:[%s10195_s29 + $0x8] ss:$12 sps:$4 sm:$0xff]  }
  0xc1   :  { %v9118_v6 = vld [vmem:[%s10195_s29 + $0x1c] ss:$12 sps:$4 sm:$0xff]   ;;  %492 = vmatprep.subr.bf16.mxu0 %v9114_v2  ;;  %8222 = vmatpush3.bf16.msra.mxu1 %v9117_v5  ;;  %v9120_v15 = vld [vmem:[%s10195_s29 + $0x18] ss:$12 sps:$4 sm:$0xff]   ;;  %v9121_v16 = vld [vmem:[%s10195_s29 + $0x20] ss:$12 sps:$4 sm:$0xff]  }
  0xc2   :  { %493 = vmatpush1.bf16.msra.mxu0 %v9116_v3  ;;  %8223 = vmatprep.subr.bf16.mxu1 %v10148_v4  ;;  %v9122_v17 = vld [vmem:[%s10195_s29 + $0x34] ss:$12 sps:$4 sm:$0xff]   ;;  %v9124_v18 = vld [vmem:[%s10195_s29 + $0x30] ss:$12 sps:$4 sm:$0xff]   ;;  %v9125_v19 = vld [vmem:[%s10195_s29 + $0x38] ss:$12 sps:$4 sm:$0xff]  }
  0xc3   :  { %494 = vmatprep.subr.bf16.mxu0 %v9118_v6  ;;  %v9126_v20 = vld [vmem:[%s10195_s29 + $0x4c] ss:$12 sps:$4 sm:$0xff]   ;;  %v9128_v21 = vld [vmem:[%s10195_s29 + $0x48] ss:$12 sps:$4 sm:$0xff]   ;;  %v9129_v22 = vld [vmem:[%s10195_s29 + $0x50] ss:$12 sps:$4 sm:$0xff]   ;;  %524 = vmatprep.mubr.bf16.mxu0 %v10149_v32 }
  0xc4   :  { %259 = vadd.xlane.f32.xlu0 %v254_v1  ;;  %v9130_v23 = vld [vmem:[%s10195_s29 + $0x64] ss:$12 sps:$4 sm:$0xff]   ;;  %v9132_v24 = vld [vmem:[%s10195_s29 + $0x60] ss:$12 sps:$4 sm:$0xff]   ;;  %v9133_v25 = vld [vmem:[%s10195_s29 + $0x68] ss:$12 sps:$4 sm:$0xff]  }
  0xc5   :  { %8224 = vmatpush3.bf16.msra.mxu1 %v9121_v16  ;;  %v9134_v26 = vld [vmem:[%s10195_s29 + $0x7c] ss:$12 sps:$4 sm:$0xff]   ;;  %v9136_v27 = vld [vmem:[%s10195_s29 + $0x78] ss:$12 sps:$4 sm:$0xff]   ;;  %v9137_v28 = vld [vmem:[%s10195_s29 + $0x80] ss:$12 sps:$4 sm:$0xff]  }
  0xc6   :  { %495 = vmatpush1.bf16.msra.mxu0 %v9120_v15  ;;  %8225 = vmatprep.subr.bf16.mxu1 %v10148_v4  ;;  %v9138_v29 = vld [vmem:[%s10195_s29 + $0x94] ss:$12 sps:$4 sm:$0xff]   ;;  %v9140_v30 = vld [vmem:[%s10195_s29 + $0x90] ss:$12 sps:$4 sm:$0xff]   ;;  %v9141_v31 = vld [vmem:[%s10195_s29 + $0x98] ss:$12 sps:$4 sm:$0xff]  }
  0xc7   :  { %496 = vmatprep.subr.bf16.mxu0 %v9122_v17  ;;  %vm10150_vm0 = vmmov 0   ;;  %v9142_v33 = vld [vmem:[%s10195_s29 + $0xac] ss:$12 sps:$4 sm:$0xff]   ;;  %v9144_v34 = vld [vmem:[%s10195_s29 + $0xa8] ss:$12 sps:$4 sm:$0xff]   ;;  %v10455_v54 = vshrl.u32 %v349_v53, 7 }
  0xc8   :  { %8237 = vmatprep.mubr.msk.bf16.mxu1 %vm10150_vm0, %v10148_v4  ;;  %v9145_v35 = vld [vmem:[%s10195_s29 + $0xb0] ss:$12 sps:$4 sm:$0xff]   ;;  %v7193_v44 = vld [vmem:[#allocation2] ss:$0 sm:$0xff]  ;;  %v7194_v48 = vld [vmem:[#allocation5] ss:$0 sm:$0xff] }
  0xc9   :  { %8226 = vmatpush3.bf16.msra.mxu1 %v9125_v19  ;;  %v10458_v55 = vsub.s32 0, %v10455_v54  ;;  %v359_v56 = vsub.s32 2, %v10455_v54  ;;  %v347_v57 = vld [vmem:[%s10200_s3] sm:$0x7]  ;;  %v10463_v58 = vsub.s32 1, %v10455_v54  ;;  %vm644_vm1 = vcmask 261120  }
  0xca   :  { %497 = vmatpush1.bf16.msra.mxu0 %v9124_v18  ;;  %8227 = vmatprep.subr.bf16.mxu1 %v10148_v4  ;;  %s10151_s5 = smov 64   ;;  %s10152_s19 = smov 96   ;;  %vm734_vm2 = vcmask 523264   ;;  %vm936_vm3 = vcmask 785408  }
  0xcb   :  { %498 = vmatprep.subr.bf16.mxu0 %v9126_v20  ;;  %v352_v59 = vrot.slane %v347_v57, %v10458_v55  ;;  %v360_v60 = vrot.slane %v347_v57, %v359_v56  ;;  %v356_v63 = vrot.slane %v347_v57, %v10463_v58  ;;  %s10153_s6 = smov 32   ;;  %v299_v57 = vld [vmem:[%s10185_s21 + $0x8] sm:$0xff]  ;;  %s11660_s13 = sld [smem:[#allocation20_spill]] }
  0xcc   :  { %s11661_s26 = sld [smem:[#allocation25_spill]]  ;;  %s11662_s28 = sld [smem:[#allocation22_spill]] }
  0xcd   :  { %8228 = vmatpush3.bf16.msra.mxu1 %v9129_v22  ;;  %s11663_s0 = sld [smem:[#allocation23_spill]]  ;;  %s11664_s1 = sld [smem:[#allocation24_spill]] }
  0xce   :  { %499 = vmatpush1.bf16.msra.mxu0 %v9128_v21  ;;  %8229 = vmatprep.subr.bf16.mxu1 %v10148_v4  ;;  %s11665_s2 = sld [smem:[#allocation21_spill]]  ;;  %s11666_s25 = sld [smem:[#allocation26_spill]] }
  0xcf   :  { %500 = vmatprep.subr.bf16.mxu0 %v9130_v23  ;;  %s11667_s7 = sld [smem:[#allocation27_spill]]  ;;  %s11668_s9 = sld [smem:[#allocation30_spill]] }
  0xd0   :  { %s11669_s10 = sld [smem:[#allocation28_spill]]  ;;  %s11670_s11 = sld [smem:[#allocation29_spill]] }
  0xd1   :  { %8230 = vmatpush3.bf16.msra.mxu1 %v9133_v25  ;;  %s11671_s15 = sld [smem:[#allocation32_spill]]  ;;  %s11672_s18 = sld [smem:[#allocation31_spill]] }
  0xd2   :  { %501 = vmatpush1.bf16.msra.mxu0 %v9132_v24  ;;  %8231 = vmatprep.subr.bf16.mxu1 %v10148_v4  ;;  %s11673_s22 = sld [smem:[#allocation33_spill]]  ;;  %s11680_s27 = sld [smem:[#allocation40_spill]] }
  0xd3   :  { %502 = vmatprep.subr.bf16.mxu0 %v9134_v26  ;;  %s11681_s4 = sld [smem:[#allocation41_spill]] }
  0xd5   :  { %8232 = vmatpush3.bf16.msra.mxu1 %v9137_v28 }
  0xd6   :  { %503 = vmatpush1.bf16.msra.mxu0 %v9136_v27  ;;  %8233 = vmatprep.subr.bf16.mxu1 %v10148_v4 }
  0xd7   :  { %504 = vmatprep.subr.bf16.mxu0 %v9138_v29 }
  0xd9   :  { %8234 = vmatpush3.bf16.msra.mxu1 %v9141_v31 }
  0xda   :  { %505 = vmatpush1.bf16.msra.mxu0 %v9140_v30  ;;  %8235 = vmatprep.subr.bf16.mxu1 %v10148_v4 }
  0xdb   :  { %506 = vmatprep.subr.bf16.mxu0 %v9142_v33 }
  0xdd   :  { %8236 = vmatpush3.bf16.msra.mxu1 %v9145_v35 }
  0xde   :  { %507 = vmatpush1.bf16.msra.mxu0 %v9144_v34 }
 0x14d   :  { %v258_v7 = vpop.xlane.xlu0 %257 }
 0x14e   :  { %v262_v8 = vmul.f32 0.0078125, %v258_v7 }
 0x150   :  { %v10410_v9 = vsub.f32 %v253_v0, %v262_v8 }
 0x151   :  { %v260_v10 = vpop.xlane.xlu0 %259 }
 0x152   :  { %v263_v11 = vmul.f32 0.0078125, %v260_v10  ;;  %v266_v12 = vmul.f32 %v10410_v9, %v10410_v9 }
 0x154   :  { %268 = vadd.xlane.f32.xlu1 %v266_v12  ;;  %v10414_v13 = vsub.f32 %v254_v1, %v263_v11 }
 0x156   :  { %v267_v14 = vmul.f32 %v10414_v13, %v10414_v13 }
 0x158   :  { %270 = vadd.xlane.f32.xlu1 %v267_v14 }
 0x1e1   :  { %v269_v36 = vpop.xlane.xlu1 %268 }
 0x1e2   :  { %v272_v37 = vmul.f32 0.0078125, %v269_v36 }
 0x1e4   :  { %v274_v38 = vadd.f32 1e-05, %v272_v37 }
 0x1e5   :  { %v271_v39 = vpop.xlane.xlu1 %270 }
 0x1e6   :  { %9595 = vrsqrt.f32 %v274_v38  ;;  %v273_v40 = vmul.f32 0.0078125, %v271_v39 }
 0x1e8   :  { %v275_v41 = vadd.f32 1e-05, %v273_v40 }
 0x1ea   :  { %9597 = vrsqrt.f32 %v275_v41 }
 0x1f0   :  { %v9596_v42 = vpop.eup %9595 }
 0x1f1   :  { %v278_v43 = vmul.f32 %v9596_v42, %v10410_v9 }
 0x1f3   :  { %v286_v47 = vmul.f32 %v7193_v44, %v278_v43 }
 0x1f4   :  { %v9598_v45 = vpop.eup %9597 }
 0x1f5   :  { %v279_v46 = vmul.f32 %v9598_v45, %v10414_v13  ;;  %v10449_v50 = vadd.f32 %v7194_v48, %v286_v47 }
 0x1f7   :  { %v287_v49 = vmul.f32 %v7193_v44, %v279_v46 }
 0x1f9   :  { %v10451_v51 = vadd.f32 %v7194_v48, %v287_v49  ;;  %v298_v48 = vld [vmem:[%s10185_s21] sm:$0xff] }
 0x1fb   :  { %v346_v52 = vpack.c.bf16 %v10451_v51, %v10449_v50 }
 0x1fd   :  { %525 = vmatmul.mubr.bf16.vlgmr.msra.gmra.mrb[0].mxu0 %v346_v52  ;;  %8238 = vmatmul.mubr.bf16.vlgmr.msra.gmra.mrb[0].mxu1 %v346_v52  ;;  %v300_v52 = vld [vmem:[%s10185_s21 + $0x10] sm:$0xff] }
 0x2d0   :  { %v526_v61 = vpop.f32.mrb[0].mxu0  ;;  %v569_v62 = vpop.f32.mrb[0].mxu1 }
 0x2d1   :  { %v528_v0 = vpop.f32.mrb[1].mxu0  ;;  %v8239_v1 = vpop.f32.mrb[1].mxu1  ;;  %v527_v5 = vadd.f32 %v526_v61, %v352_v59  ;;  %v570_v6 = vadd.f32 %v569_v62, %v360_v60 }
 0x2d2   :  { %v530_v2 = vpop.f32.mrb[2].mxu0  ;;  %v572_v3 = vpop.f32.mrb[2].mxu1  ;;  %v529_v11 = vadd.f32 %v528_v0, %v356_v63  ;;  %v301_v1 = vld [vmem:[%s10185_s21 + $0x18] sm:$0xff] }
 0x2d3   :  { %v531_v7 = vadd.f32 %v530_v2, %v352_v59  ;;  %v573_v8 = vadd.f32 %v572_v3, %v360_v60  ;;  %v532_v9 = vpop.f32.mrb[3].mxu0  ;;  %v8240_v10 = vpop.f32.mrb[3].mxu1 }
 0x2d4   :  { %v533_v12 = vadd.f32 %v532_v9, %v356_v63  ;;  %v303_v9 = vld [vmem:[%s10185_s21 + $0x28] sm:$0xff] }
 0x2d5   :  { %v636_v13 = vpack.c.bf16 %v531_v7, %v527_v5  ;;  %v827_v14 = vpack.c.bf16 %v573_v8, %v570_v6  ;;  %v8774_v15 = vpack.i.bf16 %v531_v7, %v527_v5  ;;  %v10470_v18 = vpack.i.bf16 %v573_v8, %v570_v6  ;;  %v302_v8 = vld [vmem:[%s10185_s21 + $0x20] sm:$0xff] }
 0x2d6   :  { %v8759_v16 = vpack.i.bf16 %v533_v12, %v529_v11  ;;  %v640_v17 = vpack.c.bf16 %v533_v12, %v529_v11  ;;  %v305_v11 = vld [vmem:[%s10185_s21 + $0x38] sm:$0xff] }
 0x2d7   :  { %8249 = vmatprep.mubr.msk.bf16.mxu0 %vm644_vm1, %v636_v13  ;;  %8257 = vmatprep.subr.bf16.mxu1 %v827_v14 }
 0x2d8   :  { %8258 = vmatpush3.bf16.msra.mxu1 %v827_v14  ;;  %8760 = vrot.lane.b32.xlu1 %v8759_v16, %s10151_s5  ;;  %v658_v19 = vsel %vm644_vm1, %v640_v17, 0 }
 0x2d9   :  { %8755 = vrot.lane.b32.xlu0 %v8759_v16, %s10152_s19  ;;  %8673 = vmatprep.subr.msk.bf16.mxu0 %vm644_vm1, %v640_v17 }
 0x2da   :  { %8242 = vmatpush3.bf16.xpose.msra.mxu0 %v658_v19 }
 0x2dc   :  { %8765 = vrot.lane.b32.xlu1 %v8759_v16, %s10153_s6  ;;  %v304_v16 = vld [vmem:[%s10185_s21 + $0x30] sm:$0xff] }
 0x2dd   :  { %8775 = vrot.lane.b32.xlu0 %v8774_v15, %s10151_s5 }
 0x2e0   :  { %8770 = vrot.lane.b32.xlu1 %v8774_v15, %s10152_s19 }
 0x2e4   :  { %8780 = vrot.lane.b32.xlu1 %v8774_v15, %s10153_s6 }
 0x34a   :  { %v8761_v20 = vpop.permute.xlu1 %8760 }
 0x34b   :  { %v8756_v21 = vpop.permute.xlu0 %8755  ;;  %v8763_v22 = vunpack.i.h.bf16 %v8761_v20  ;;  %v8762_v23 = vunpack.i.l.bf16 %v8761_v20 }
 0x34c   :  { %v8758_v24 = vunpack.i.h.bf16 %v8756_v21  ;;  %v8757_v25 = vunpack.i.l.bf16 %v8756_v21 }
 0x34d   :  { %v642_v27 = vpack.c.bf16 %v8763_v22, %v8762_v23 }
 0x34e   :  { %v641_v26 = vpack.c.bf16 %v8758_v24, %v8757_v25  ;;  %v8766_v29 = vpop.permute.xlu1 %8765 }
 0x34f   :  { %v8768_v30 = vunpack.i.h.bf16 %v8766_v29  ;;  %v8767_v31 = vunpack.i.l.bf16 %v8766_v29  ;;  %v664_v34 = vsel %vm644_vm1, %v642_v27, 0  ;;  %v8776_v36 = vpop.permute.xlu0 %8775 }
 0x350   :  { %8674 = vmatprep.subr.msk.bf16.mxu0 %vm644_vm1, %v641_v26  ;;  %v661_v28 = vsel %vm644_vm1, %v641_v26, 0  ;;  %v8778_v40 = vunpack.i.h.bf16 %v8776_v36  ;;  %v8777_v41 = vunpack.i.l.bf16 %v8776_v36 }
 0x351   :  { %8244 = vmatpush3.bf16.xpose.msra.mxu0 %v661_v28  ;;  %v643_v33 = vpack.c.bf16 %v8768_v30, %v8767_v31 }
 0x352   :  { %8675 = vmatprep.subr.msk.bf16.mxu0 %vm644_vm1, %v642_v27  ;;  %v8771_v35 = vpop.permute.xlu1 %8770  ;;  %v638_v43 = vpack.c.bf16 %v8778_v40, %v8777_v41 }
 0x353   :  { %v667_v37 = vsel %vm644_vm1, %v643_v33, 0  ;;  %v8773_v38 = vunpack.i.h.bf16 %v8771_v35  ;;  %v8772_v39 = vunpack.i.l.bf16 %v8771_v35 }
 0x355   :  { %v637_v42 = vpack.c.bf16 %v8773_v38, %v8772_v39 }
 0x356   :  { %v8781_v44 = vpop.permute.xlu1 %8780 }
 0x357   :  { %v8783_v45 = vunpack.i.h.bf16 %v8781_v44  ;;  %v8782_v46 = vunpack.i.l.bf16 %v8781_v44 }
 0x359   :  { %8246 = vmatpush3.bf16.xpose.msra.mxu0 %v664_v34  ;;  %v639_v47 = vpack.c.bf16 %v8783_v45, %v8782_v46 }
 0x35a   :  { %8676 = vmatprep.subr.msk.bf16.mxu0 %vm644_vm1, %v643_v33 }
 0x361   :  { %8248 = vmatpush3.bf16.xpose.msra.mxu0 %v667_v37 }
 0x362   :  { %8293 = vmatprep.subr.bf16.mxu0 %v10148_v4 }
 0x368   :  { %8250 = vmatmul.mubr.msk.bf16.vlgmr.msra.gmra.mrb[4].mxu0 %vm644_vm1, %v637_v42 }
 0x369   :  { %8253 = vmatprep.mubr.msk.bf16.mxu0 %vm644_vm1, %v638_v43 }
 0x370   :  { %8254 = vmatmul.mubr.msk.bf16.gmra.mrb[8].mxu0 %vm644_vm1, %v639_v47 }
 0x371   :  { %8309 = vmatprep.mubr.msk.bf16.mxu0 %vm10150_vm0, %v10148_v4 }
 0x43b   :  { %v8251_v49 = vpop.f32.mrb[4].mxu0 }
 0x43c   :  { %v703_v53 = vpop.f32.mrb[5].mxu0  ;;  %v712_v62 = vadd.f32 %v8251_v49, %v300_v52 }
 0x43d   :  { %v704_v59 = vadd.f32 %v703_v53, %v298_v48  ;;  %v8252_v60 = vpop.f32.mrb[6].mxu0 }
 0x43e   :  { %v706_v61 = vpop.f32.mrb[7].mxu0  ;;  %v715_v3 = vadd.f32 %v8252_v60, %v301_v1  ;;  %v741_v6 = vsel %vm734_vm2, %v712_v62, -inf }
 0x43f   :  { %v707_v63 = vadd.f32 %v706_v61, %v299_v57  ;;  %v735_v0 = vsel %vm734_vm2, %v704_v59, -inf }
 0x440   :  { %736 = vmax.xlane.f32.xlu0 %v735_v0  ;;  %v744_v15 = vsel %vm734_vm2, %v715_v3, -inf }
 0x441   :  { %v738_v2 = vsel %vm734_vm2, %v707_v63, -inf }
 0x442   :  { %739 = vmax.xlane.f32.xlu1 %v738_v2 }
 0x443   :  { %v8255_v5 = vpop.f32.mrb[8].mxu0 }
 0x444   :  { %v719_v7 = vpop.f32.mrb[9].mxu0  ;;  %742 = vmax.xlane.f32.xlu0 %v741_v6  ;;  %v728_v20 = vadd.f32 %v8255_v5, %v304_v16 }
 0x445   :  { %v8256_v10 = vpop.f32.mrb[10].mxu0  ;;  %v720_v13 = vadd.f32 %v719_v7, %v302_v8 }
 0x446   :  { %v722_v12 = vpop.f32.mrb[11].mxu0  ;;  %v731_v17 = vadd.f32 %v8256_v10, %v305_v11  ;;  %v753_v23 = vsel %vm734_vm2, %v728_v20, -inf }
 0x447   :  { %v10502_v14 = vadd.f32 %v722_v12, %v303_v9  ;;  %v747_v21 = vsel %vm734_vm2, %v720_v13, -inf }
 0x448   :  { %745 = vmax.xlane.f32.xlu0 %v744_v15  ;;  %v756_v22 = vsel %vm734_vm2, %v731_v17, -inf }
 0x449   :  { %v750_v19 = vsel %vm734_vm2, %v10502_v14, -inf }
 0x44a   :  { %751 = vmax.xlane.f32.xlu1 %v750_v19 }
 0x44c   :  { %748 = vmax.xlane.f32.xlu0 %v747_v21 }
 0x44e   :  { %757 = vmax.xlane.f32.xlu1 %v756_v22 }
 0x450   :  { %754 = vmax.xlane.f32.xlu0 %v753_v23 }
 0x4cd   :  { %v737_v24 = vpop.xlane.xlu0 %736 }
 0x4ce   :  { %v759_v25 = vsub.f32 %v704_v59, %v737_v24 }
 0x4cf   :  { %v740_v26 = vpop.xlane.xlu1 %739 }
 0x4d0   :  { %v767_v29 = vmul.f32 1.442695, %v759_v25  ;;  %v760_v30 = vsub.f32 %v707_v63, %v740_v26 }
 0x4d1   :  { %v743_v27 = vpop.xlane.xlu0 %742 }
 0x4d2   :  { %v761_v28 = vsub.f32 %v712_v62, %v743_v27  ;;  %v769_v35 = vmul.f32 1.442695, %v760_v30 }
 0x4d4   :  { %v771_v31 = vmul.f32 1.442695, %v761_v28 }
 0x4d5   :  { %v746_v33 = vpop.xlane.xlu0 %745 }
 0x4d6   :  { %9599 = vpow2.f32 %v771_v31  ;;  %v762_v34 = vsub.f32 %v715_v3, %v746_v33 }
 0x4d7   :  { %9601 = vpow2.f32 %v767_v29  ;;  %v752_v61 = vpop.xlane.xlu1 %751 }
 0x4d8   :  { %v773_v36 = vmul.f32 1.442695, %v762_v34  ;;  %v764_v0 = vsub.f32 %v10502_v14, %v752_v61 }
 0x4d9   :  { %v749_v37 = vpop.xlane.xlu0 %748 }
 0x4da   :  { %9603 = vpow2.f32 %v773_v36  ;;  %v763_v38 = vsub.f32 %v720_v13, %v749_v37  ;;  %v777_v2 = vmul.f32 1.442695, %v764_v0 }
 0x4db   :  { %9605 = vpow2.f32 %v769_v35  ;;  %v758_v62 = vpop.xlane.xlu1 %757 }
 0x4dc   :  { %v775_v42 = vmul.f32 1.442695, %v763_v38  ;;  %v766_v63 = vsub.f32 %v731_v17, %v758_v62  ;;  %v9152_v62 = vld [vmem:[%s10205_s8 + $0x30] sm:$0xff]  }
 0x4dd   :  { %v755_v39 = vpop.xlane.xlu0 %754 }
 0x4de   :  { %v765_v40 = vsub.f32 %v728_v20, %v755_v39  ;;  %v781_v1 = vmul.f32 1.442695, %v766_v63 }
 0x4e0   :  { %v10511_v41 = vpop.eup %9599  ;;  %v779_v43 = vmul.f32 1.442695, %v765_v40 }
 0x4e1   :  { %v789_v44 = vsel %vm734_vm2, %v10511_v41, 0.0  ;;  %v9602_v45 = vpop.eup %9601 }
 0x4e2   :  { %9607 = vpow2.f32 %v779_v43  ;;  %790 = vadd.xlane.f32.xlu0 %v789_v44  ;;  %v783_v47 = vsel %vm734_vm2, %v9602_v45, 0.0 }
 0x4e3   :  { %9609 = vpow2.f32 %v775_v42 }
 0x4e4   :  { %v10515_v46 = vpop.eup %9603  ;;  %9611 = vpow2.f32 %v781_v1 }
 0x4e5   :  { %v792_v48 = vsel %vm734_vm2, %v10515_v46, 0.0  ;;  %v9606_v49 = vpop.eup %9605  ;;  %9613 = vpow2.f32 %v777_v2 }
 0x4e6   :  { %784 = vadd.xlane.f32.xlu0 %v783_v47  ;;  %793 = vadd.xlane.f32.xlu1 %v792_v48  ;;  %v786_v52 = vsel %vm734_vm2, %v9606_v49, 0.0 }
 0x4ea   :  { %787 = vadd.xlane.f32.xlu1 %v786_v52  ;;  %v9147_v52 = vld [vmem:[%s10205_s8 + $0x8] sm:$0xff]  }
 0x4ec   :  { %v10521_v53 = vpop.eup %9607 }
 0x4ed   :  { %v801_v57 = vsel %vm734_vm2, %v10521_v53, 0.0  ;;  %v10525_v59 = vpop.eup %9609 }
 0x4ee   :  { %802 = vadd.xlane.f32.xlu0 %v801_v57  ;;  %v795_v60 = vsel %vm734_vm2, %v10525_v59, 0.0  ;;  %v9612_v3 = vpop.eup %9611  ;;  %v9148_v57 = vld [vmem:[%s10205_s8 + $0x10] sm:$0xff]  }
 0x4ef   :  { %v804_v5 = vsel %vm734_vm2, %v9612_v3, 0.0  ;;  %v9614_v6 = vpop.eup %9613 }
 0x4f0   :  { %v798_v7 = vsel %vm734_vm2, %v9614_v6, 0.0 }
 0x4f2   :  { %796 = vadd.xlane.f32.xlu0 %v795_v60  ;;  %v9151_v60 = vld [vmem:[%s10205_s8 + $0x28] sm:$0xff]  }
 0x4fb   :  { %8790 = vrot.lane.b32.xlu1 %v10470_v18, %s10151_s5 }
 0x508   :  { %8785 = vrot.lane.b32.xlu0 %v10470_v18, %s10152_s19 }
 0x51f   :  { %805 = vadd.xlane.f32.xlu1 %v804_v5 }
 0x523   :  { %799 = vadd.xlane.f32.xlu1 %v798_v7 }
 0x534   :  { %8795 = vrot.lane.b32.xlu1 %v10470_v18, %s10153_s6 }
 0x56f   :  { %v791_v8 = vpop.xlane.xlu0 %790 }
 0x573   :  { %v794_v9 = vpop.xlane.xlu1 %793  ;;  %v785_v10 = vpop.xlane.xlu0 %784 }
 0x574   :  { %9615 = vrcp.f32 %v785_v10 }
 0x577   :  { %v788_v11 = vpop.xlane.xlu1 %787 }
 0x578   :  { %9617 = vrcp.f32 %v788_v11 }
 0x579   :  { %9619 = vrcp.f32 %v794_v9 }
 0x57a   :  { %9621 = vrcp.f32 %v791_v8 }
 0x57b   :  { %v803_v12 = vpop.xlane.xlu0 %802  ;;  %v8791_v15 = vpop.permute.xlu1 %8790 }
 0x57c   :  { %v8793_v21 = vunpack.i.h.bf16 %v8791_v15  ;;  %v8792_v22 = vunpack.i.l.bf16 %v8791_v15 }
 0x57e   :  { %v9616_v14 = vpop.eup %9615  ;;  %v829_v26 = vpack.c.bf16 %v8793_v21, %v8792_v22 }
 0x57f   :  { %v797_v13 = vpop.xlane.xlu0 %796  ;;  %v815_v19 = vmul.f32 %v9616_v14, %v9602_v45 }
 0x580   :  { %9623 = vrcp.f32 %v797_v13 }
 0x582   :  { %v9618_v16 = vpop.eup %9617 }
 0x583   :  { %v8786_v17 = vpop.permute.xlu0 %8785  ;;  %v816_v20 = vmul.f32 %v9618_v16, %v9606_v49  ;;  %v9620_v29 = vpop.eup %9619  ;;  %v9146_v49 = vld [vmem:[%s10205_s8] sm:$0xff]  }
 0x584   :  { %v8788_v23 = vunpack.i.h.bf16 %v8786_v17  ;;  %v8787_v24 = vunpack.i.l.bf16 %v8786_v17  ;;  %v9622_v34 = vpop.eup %9621  ;;  %v818_v35 = vmul.f32 %v9620_v29, %v10515_v46 }
 0x585   :  { %v823_v25 = vpack.c.bf16 %v816_v20, %v815_v19  ;;  %v817_v38 = vmul.f32 %v9622_v34, %v10511_v41 }
 0x586   :  { %v828_v18 = vpack.c.bf16 %v8788_v23, %v8787_v24 }
 0x587   :  { %8265 = vmatprep.mubr.msk.bf16.mxu1 %vm734_vm2, %v823_v25  ;;  %v824_v40 = vpack.c.bf16 %v818_v35, %v817_v38  ;;  %v9156_v38 = vld [vmem:[%s10235_s12 + $0x4] ss:$8 sps:$4 sm:$0xff]  }
 0x588   :  { %8259 = vmatprep.subr.bf16.mxu1 %v828_v18 }
 0x589   :  { %8260 = vmatpush3.bf16.msra.mxu1 %v828_v18 }
 0x58a   :  { %8261 = vmatprep.subr.bf16.mxu1 %v829_v26  ;;  %v9624_v37 = vpop.eup %9623 }
 0x58b   :  { %v819_v43 = vmul.f32 %v9624_v37, %v10525_v59  ;;  %v9150_v59 = vld [vmem:[%s10205_s8 + $0x20] sm:$0xff]  }
 0x58c   :  { %v9154_v37 = vld [vmem:[%s10235_s12] ss:$8 sps:$4 sm:$0xff]  }
 0x58d   :  { %8262 = vmatpush3.bf16.msra.mxu1 %v829_v26 }
 0x5ac   :  { %v806_v27 = vpop.xlane.xlu1 %805 }
 0x5b0   :  { %v800_v28 = vpop.xlane.xlu1 %799 }
 0x5b1   :  { %9625 = vrcp.f32 %v800_v28  ;;  %v7235_v28 = vld [vmem:[%s10210_s14] ss:$0 sm:$0xff] }
 0x5b2   :  { %9627 = vrcp.f32 %v806_v27 }
 0x5b3   :  { %9629 = vrcp.f32 %v803_v12 }
 0x5b4   :  { %v8796_v30 = vpop.permute.xlu1 %8795 }
 0x5b5   :  { %v8798_v31 = vunpack.i.h.bf16 %v8796_v30  ;;  %v8797_v33 = vunpack.i.l.bf16 %v8796_v30 }
 0x5b7   :  { %v830_v36 = vpack.c.bf16 %v8798_v31, %v8797_v33 }
 0x5b9   :  { %8263 = vmatprep.subr.bf16.mxu1 %v830_v36 }
 0x5ba   :  { %8264 = vmatpush3.bf16.msra.mxu1 %v830_v36 }
 0x5bb   :  { %v9626_v39 = vpop.eup %9625  ;;  %8273 = vmatprep.subr.bf16.mxu1 %v10148_v4 }
 0x5bc   :  { %v9628_v42 = vpop.eup %9627  ;;  %v820_v44 = vmul.f32 %v9626_v39, %v9614_v6  ;;  %v9159_v39 = vld [vmem:[%s10235_s12 + $0x14] ss:$8 sps:$4 sm:$0xff]  }
 0x5bd   :  { %8266 = vmatmul.mubr.msk.bf16.vlgmr.msra.gmra.mrb[4].mxu1 %vm734_vm2, %v824_v40  ;;  %v9630_v45 = vpop.eup %9629  ;;  %v822_v47 = vmul.f32 %v9628_v42, %v9612_v3  ;;  %v9153_v3 = vld [vmem:[%s10205_s8 + $0x38] sm:$0xff]   ;;  %v9162_v40 = vld [vmem:[%s10235_s12 + $0x24] ss:$8 sps:$4 sm:$0xff]   ;;  %v9160_v42 = vld [vmem:[%s10235_s12 + $0x20] ss:$8 sps:$4 sm:$0xff]  }
 0x5be   :  { %v825_v46 = vpack.c.bf16 %v820_v44, %v819_v43  ;;  %v821_v41 = vmul.f32 %v9630_v45, %v10521_v53  ;;  %8274 = vmatpush3.bf16.msra.mxu1 %v9146_v49  ;;  %v9149_v53 = vld [vmem:[%s10205_s8 + $0x18] sm:$0xff]   ;;  %v9168_v45 = vld [vmem:[%s10235_s12 + $0x44] ss:$8 sps:$4 sm:$0xff]   ;;  %v9172_v49 = vld [vmem:[%s10235_s12 + $0x60] ss:$8 sps:$4 sm:$0xff]  }
 0x5bf   :  { %8275 = vmatprep.subr.bf16.mxu1 %v10148_v4  ;;  %v9165_v43 = vld [vmem:[%s10235_s12 + $0x34] ss:$8 sps:$4 sm:$0xff]   ;;  %v9163_v44 = vld [vmem:[%s10235_s12 + $0x30] ss:$8 sps:$4 sm:$0xff]  }
 0x5c0   :  { %8269 = vmatprep.mubr.msk.bf16.mxu1 %vm734_vm2, %v825_v46  ;;  %v826_v48 = vpack.c.bf16 %v822_v47, %v821_v41  ;;  %v9166_v46 = vld [vmem:[%s10235_s12 + $0x40] ss:$8 sps:$4 sm:$0xff]   ;;  %v9171_v47 = vld [vmem:[%s10235_s12 + $0x54] ss:$8 sps:$4 sm:$0xff]   ;;  %v9169_v41 = vld [vmem:[%s10235_s12 + $0x50] ss:$8 sps:$4 sm:$0xff]  }
 0x5c2   :  { %8276 = vmatpush3.bf16.msra.mxu1 %v9147_v52  ;;  %v9177_v52 = vld [vmem:[%s10235_s12 + $0x74] ss:$8 sps:$4 sm:$0xff]  }
 0x5c3   :  { %8277 = vmatprep.subr.bf16.mxu1 %v10148_v4 }
 0x5c5   :  { %8270 = vmatmul.mubr.msk.bf16.gmra.mrb[8].mxu1 %vm734_vm2, %v826_v48  ;;  %v9174_v48 = vld [vmem:[%s10235_s12 + $0x64] ss:$8 sps:$4 sm:$0xff]  }
 0x5c6   :  { %8289 = vmatprep.mubr.msk.bf16.mxu1 %vm10150_vm0, %v10148_v4  ;;  %8278 = vmatpush3.bf16.msra.mxu1 %v9148_v57  ;;  %v9175_v57 = vld [vmem:[%s10235_s12 + $0x70] ss:$8 sps:$4 sm:$0xff]  }
 0x5c7   :  { %8279 = vmatprep.subr.bf16.mxu1 %v10148_v4 }
 0x5ca   :  { %8280 = vmatpush3.bf16.msra.mxu1 %v9149_v53  ;;  %v9178_v53 = vld [vmem:[%s11660_s13] sm:$0xff]  }
 0x5cb   :  { %8281 = vmatprep.subr.bf16.mxu1 %v10148_v4 }
 0x5ce   :  { %8282 = vmatpush3.bf16.msra.mxu1 %v9150_v59 }
 0x5cf   :  { %8283 = vmatprep.subr.bf16.mxu1 %v10148_v4 }
 0x5d2   :  { %8284 = vmatpush3.bf16.msra.mxu1 %v9151_v60 }
 0x5d3   :  { %8285 = vmatprep.subr.bf16.mxu1 %v10148_v4 }
 0x5d6   :  { %8286 = vmatpush3.bf16.msra.mxu1 %v9152_v62 }
 0x5d7   :  { %8287 = vmatprep.subr.bf16.mxu1 %v10148_v4 }
 0x5da   :  { %8288 = vmatpush3.bf16.msra.mxu1 %v9153_v3  ;;  %v9180_v3 = vld [vmem:[%s10225_s30 + $0x8] sm:$0xff]  }
 0x5db   :  { %1323 = vmatprep.subr.bf16.mxu1 %v9156_v38  ;;  %v7237_v38 = vld [vmem:[%s11663_s0] ss:$0 sm:$0xff] }
 0x690   :  { %v8267_v61 = vpop.f32.mrb[4].mxu1 }
 0x691   :  { %v877_v63 = vpop.f32.mrb[5].mxu1 }
 0x692   :  { %v8268_v0 = vpop.f32.mrb[6].mxu1 }
 0x693   :  { %v8799_v1 = vpack.i.bf16 %v8268_v0, %v8267_v61  ;;  %v880_v2 = vpop.f32.mrb[7].mxu1 }
 0x695   :  { %8800 = vrot.lane.b32.xlu1 %v8799_v1, %s10153_s6 }
 0x698   :  { %v8271_v5 = vpop.f32.mrb[8].mxu1 }
 0x699   :  { %v893_v6 = vpop.f32.mrb[9].mxu1 }
 0x69a   :  { %v8272_v7 = vpop.f32.mrb[10].mxu1 }
 0x69b   :  { %v8809_v8 = vpack.i.bf16 %v8272_v7, %v8271_v5  ;;  %v896_v9 = vpop.f32.mrb[11].mxu1  ;;  %v9181_v5 = vld [vmem:[%s10225_s30 + $0x10] sm:$0xff]   ;;  %v9183_v7 = vld [vmem:[%s10225_s30 + $0x20] sm:$0xff]  }
 0x69c   :  { %v8804_v10 = vpack.i.bf16 %v896_v9, %v893_v6  ;;  %v9182_v6 = vld [vmem:[%s10225_s30 + $0x18] sm:$0xff]   ;;  %v9185_v9 = vld [vmem:[%s10225_s30 + $0x30] sm:$0xff]  }
 0x69d   :  { %8810 = vrot.lane.b32.xlu1 %v8809_v8, %s10152_s19  ;;  %v9184_v8 = vld [vmem:[%s10225_s30 + $0x28] sm:$0xff]  }
 0x69e   :  { %8805 = vrot.lane.b32.xlu0 %v8804_v10, %s10151_s5  ;;  %v9186_v10 = vld [vmem:[%s10225_s30 + $0x38] sm:$0xff]  }
 0x707   :  { %v8801_v11 = vpop.permute.xlu1 %8800 }
 0x708   :  { %v8803_v12 = vunpack.i.h.bf16 %v8801_v11  ;;  %v8802_v13 = vunpack.i.l.bf16 %v8801_v11  ;;  %v1225_v11 = vld [vmem:[%s11661_s26] sm:$0x3] }
 0x70a   :  { %v932_v19 = vsel %vm644_vm1, %v877_v63, %v8802_v13  ;;  %v933_v20 = vsel %vm644_vm1, %v880_v2, %v8803_v12  ;;  %v1230_v12 = vrot.slane %v1225_v11, %v10458_v55  ;;  %v1234_v13 = vrot.slane %v1225_v11, %v10463_v58 }
 0x70f   :  { %v8811_v14 = vpop.permute.xlu1 %8810 }
 0x710   :  { %v8806_v15 = vpop.permute.xlu0 %8805  ;;  %v8813_v21 = vunpack.i.h.bf16 %v8811_v14  ;;  %v8812_v22 = vunpack.i.l.bf16 %v8811_v14 }
 0x711   :  { %v8808_v16 = vunpack.i.h.bf16 %v8806_v15  ;;  %v8807_v17 = vunpack.i.l.bf16 %v8806_v15 }
 0x713   :  { %v935_v23 = vsel %vm734_vm2, %v933_v20, %v8808_v16  ;;  %v934_v24 = vsel %vm734_vm2, %v932_v19, %v8807_v17 }
 0x714   :  { %v938_v25 = vsel %vm936_vm3, %v935_v23, %v8813_v21  ;;  %v937_v18 = vsel %vm936_vm3, %v934_v24, %v8812_v22 }
 0x715   :  { %v955_v26 = vpack.c.bf16 %v938_v25, %v937_v18 }
 0x717   :  { %8290 = vmatmul.mubr.bf16.vlgmr.msra.gmra.mrb[12].mxu1 %v955_v26 }
 0x718   :  { %1355 = vmatprep.mubr.bf16.mxu1 %v10149_v32  ;;  %1324 = vmatpush1.bf16.msra.mxu1 %v9154_v37 }
 0x719   :  { %1325 = vmatprep.subr.bf16.mxu1 %v9159_v39 }
 0x7ea   :  { %v1038_v27 = vpop.f32.mrb[12].mxu1 }
 0x7eb   :  { %v1045_v29 = vadd.f32 %v1038_v27, %v10449_v50  ;;  %v8291_v30 = vpop.f32.mrb[13].mxu1  ;;  %v9157_v50 = vld [vmem:[%s10235_s12 + $0x10] ss:$8 sps:$4 sm:$0xff]  }
 0x7ec   :  { %v1041_v31 = vpop.f32.mrb[14].mxu1  ;;  %1326 = vmatpush1.bf16.msra.mxu1 %v9157_v50 }
 0x7ed   :  { %v1046_v33 = vadd.f32 %v1041_v31, %v10451_v51  ;;  %v8292_v34 = vpop.f32.mrb[15].mxu1  ;;  %v1054_v35 = vadd.f32 %v7235_v28, %v1045_v29  ;;  %v9179_v51 = vld [vmem:[%s10225_s30] sm:$0xff]   ;;  %1327 = vmatprep.subr.bf16.mxu1 %v9162_v40 }
 0x7ee   :  { %8294 = vmatpush3.bf16.msra.mxu0 %v9179_v51  ;;  %v7236_v34 = vld [vmem:[%s11662_s28] ss:$0 sm:$0xff] }
 0x7ef   :  { %1058 = vadd.xlane.f32.xlu0 %v1054_v35  ;;  %v1055_v36 = vadd.f32 %v7235_v28, %v1046_v33  ;;  %8295 = vmatprep.subr.bf16.mxu0 %v10148_v4 }
 0x7f0   :  { %1328 = vmatpush1.bf16.msra.mxu1 %v9160_v42 }
 0x7f1   :  { %1060 = vadd.xlane.f32.xlu1 %v1055_v36  ;;  %1329 = vmatprep.subr.bf16.mxu1 %v9165_v43 }
 0x7f2   :  { %8296 = vmatpush3.bf16.msra.mxu0 %v9180_v3 }
 0x7f3   :  { %8297 = vmatprep.subr.bf16.mxu0 %v10148_v4 }
 0x7f4   :  { %1330 = vmatpush1.bf16.msra.mxu1 %v9163_v44 }
 0x7f5   :  { %1331 = vmatprep.subr.bf16.mxu1 %v9168_v45 }
 0x7f6   :  { %8298 = vmatpush3.bf16.msra.mxu0 %v9181_v5 }
 0x7f7   :  { %8299 = vmatprep.subr.bf16.mxu0 %v10148_v4 }
 0x7f8   :  { %1332 = vmatpush1.bf16.msra.mxu1 %v9166_v46 }
 0x7f9   :  { %1333 = vmatprep.subr.bf16.mxu1 %v9171_v47 }
 0x7fa   :  { %8300 = vmatpush3.bf16.msra.mxu0 %v9182_v6 }
 0x7fb   :  { %8301 = vmatprep.subr.bf16.mxu0 %v10148_v4 }
 0x7fc   :  { %1334 = vmatpush1.bf16.msra.mxu1 %v9169_v41 }
 0x7fd   :  { %1335 = vmatprep.subr.bf16.mxu1 %v9174_v48 }
 0x7fe   :  { %8302 = vmatpush3.bf16.msra.mxu0 %v9183_v7 }
 0x7ff   :  { %8303 = vmatprep.subr.bf16.mxu0 %v10148_v4 }
 0x800   :  { %1336 = vmatpush1.bf16.msra.mxu1 %v9172_v49 }
 0x801   :  { %1337 = vmatprep.subr.bf16.mxu1 %v9177_v52 }
 0x802   :  { %8304 = vmatpush3.bf16.msra.mxu0 %v9184_v8 }
 0x803   :  { %8305 = vmatprep.subr.bf16.mxu0 %v10148_v4 }
 0x804   :  { %1338 = vmatpush1.bf16.msra.mxu1 %v9175_v57 }
 0x806   :  { %8306 = vmatpush3.bf16.msra.mxu0 %v9185_v9 }
 0x807   :  { %1356 = vmatmul.mubr.bf16.vlgmr.msra.gmra.mrb[16].mxu1 %v9178_v53  ;;  %8307 = vmatprep.subr.bf16.mxu0 %v10148_v4 }
 0x80a   :  { %8308 = vmatpush3.bf16.msra.mxu0 %v9186_v10 }
 0x87c   :  { %v1059_v59 = vpop.xlane.xlu0 %1058 }
 0x87d   :  { %v1062_v60 = vmul.f32 0.0078125, %v1059_v59 }
 0x87e   :  { %v1061_v61 = vpop.xlane.xlu1 %1060 }
 0x87f   :  { %v1063_v62 = vmul.f32 0.0078125, %v1061_v61  ;;  %v1064_v63 = vsub.f32 %v1054_v35, %v1062_v60 }
 0x881   :  { %v1066_v0 = vmul.f32 %v1064_v63, %v1064_v63  ;;  %v1065_v1 = vsub.f32 %v1055_v36, %v1063_v62 }
 0x883   :  { %1068 = vadd.xlane.f32.xlu0 %v1066_v0  ;;  %v1067_v2 = vmul.f32 %v1065_v1, %v1065_v1 }
 0x887   :  { %1070 = vadd.xlane.f32.xlu0 %v1067_v2 }
 0x8da   :  { %v1357_v14 = vpop.f32.mrb[16].mxu1 }
 0x8db   :  { %v1358_v15 = vadd.f32 %v1357_v14, %v1230_v12  ;;  %v1359_v16 = vpop.f32.mrb[17].mxu1 }
 0x8dc   :  { %v10612_v17 = vadd.f32 %v1359_v16, %v1234_v13  ;;  %v1361_v19 = vpop.f32.mrb[18].mxu1 }
 0x8dd   :  { %v1362_v20 = vadd.f32 %v1361_v19, %v1230_v12  ;;  %v1363_v21 = vpop.f32.mrb[19].mxu1 }
 0x8de   :  { %v10614_v22 = vadd.f32 %v1363_v21, %v1234_v13 }
 0x8df   :  { %v8814_v23 = vpack.i.bf16 %v1362_v20, %v1358_v15  ;;  %v1430_v24 = vpack.c.bf16 %v1362_v20, %v1358_v15 }
 0x8e0   :  { %v1615_v25 = vpack.c.bf16 %v10614_v22, %v10612_v17 }
 0x8e1   :  { %8815 = vrot.lane.b32.xlu0 %v8814_v23, %s10152_s19  ;;  %8820 = vrot.lane.b32.xlu1 %v8814_v23, %s10151_s5  ;;  %v1447_v42 = vsel %vm644_vm1, %v1430_v24, 0 }
 0x8e2   :  { %8329 = vmatprep.subr.bf16.mxu1 %v1615_v25  ;;  %8677 = vmatprep.subr.msk.bf16.mxu0 %vm644_vm1, %v1430_v24  ;;  %v306_v24 = vld [vmem:[%s11665_s2] sm:$0xff] }
 0x8e3   :  { %8330 = vmatpush3.bf16.msra.mxu1 %v1615_v25 }
 0x8e5   :  { %8825 = vrot.lane.b32.xlu1 %v8814_v23, %s10153_s6 }
 0x910   :  { %v1069_v18 = vpop.xlane.xlu0 %1068 }
 0x911   :  { %v1072_v26 = vmul.f32 0.0078125, %v1069_v18  ;;  %v308_v18 = vld [vmem:[%s11665_s2 + $0x10] sm:$0xff] }
 0x913   :  { %v1074_v27 = vadd.f32 1e-05, %v1072_v26 }
 0x914   :  { %v1071_v28 = vpop.xlane.xlu0 %1070 }
 0x915   :  { %9631 = vrsqrt.f32 %v1074_v27  ;;  %v1073_v29 = vmul.f32 0.0078125, %v1071_v28  ;;  %v307_v27 = vld [vmem:[%s11665_s2 + $0x8] sm:$0xff] }
 0x917   :  { %v1075_v30 = vadd.f32 1e-05, %v1073_v29 }
 0x919   :  { %9633 = vrsqrt.f32 %v1075_v30 }
 0x91f   :  { %v9632_v31 = vpop.eup %9631 }
 0x920   :  { %v1078_v33 = vmul.f32 %v9632_v31, %v1064_v63  ;;  %v7238_v63 = vld [vmem:[%s11664_s1] ss:$0 sm:$0xff] }
 0x922   :  { %v1086_v36 = vmul.f32 %v7236_v34, %v1078_v33 }
 0x923   :  { %v9634_v35 = vpop.eup %9633 }
 0x924   :  { %v1079_v37 = vmul.f32 %v9634_v35, %v1065_v1  ;;  %v10624_v50 = vadd.f32 %v7237_v38, %v1086_v36  ;;  %v309_v35 = vld [vmem:[%s11665_s2 + $0x18] sm:$0xff] }
 0x926   :  { %v1087_v39 = vmul.f32 %v7236_v34, %v1079_v37 }
 0x928   :  { %v10626_v40 = vadd.f32 %v7237_v38, %v1087_v39 }
 0x92a   :  { %v1112_v51 = vpack.c.bf16 %v10626_v40, %v10624_v50 }
 0x92c   :  { %8310 = vmatmul.mubr.bf16.vlgmr.msra.gmra.mrb[12].mxu0 %v1112_v51 }
 0x92d   :  { %8314 = vmatpush3.bf16.xpose.msra.mxu0 %v1447_v42  ;;  %v310_v42 = vld [vmem:[%s11665_s2 + $0x20] sm:$0xff] }
 0x953   :  { %v8816_v43 = vpop.permute.xlu0 %8815  ;;  %v8821_v44 = vpop.permute.xlu1 %8820 }
 0x954   :  { %v8818_v45 = vunpack.i.h.bf16 %v8816_v43  ;;  %v8817_v46 = vunpack.i.l.bf16 %v8816_v43  ;;  %v8823_v47 = vunpack.i.h.bf16 %v8821_v44  ;;  %v8822_v41 = vunpack.i.l.bf16 %v8821_v44  ;;  %v311_v43 = vld [vmem:[%s11665_s2 + $0x28] sm:$0xff] }
 0x956   :  { %v1431_v48 = vpack.c.bf16 %v8818_v45, %v8817_v46  ;;  %v1432_v49 = vpack.c.bf16 %v8823_v47, %v8822_v41  ;;  %v313_v45 = vld [vmem:[%s11665_s2 + $0x38] sm:$0xff] }
 0x957   :  { %v8826_v52 = vpop.permute.xlu1 %8825 }
 0x958   :  { %8678 = vmatprep.subr.msk.bf16.mxu0 %vm644_vm1, %v1431_v48  ;;  %v1450_v57 = vsel %vm644_vm1, %v1431_v48, 0  ;;  %v8828_v53 = vunpack.i.h.bf16 %v8826_v52  ;;  %v8827_v59 = vunpack.i.l.bf16 %v8826_v52  ;;  %v1453_v60 = vsel %vm644_vm1, %v1432_v49, 0 }
 0x959   :  { %8316 = vmatpush3.bf16.xpose.msra.mxu0 %v1450_v57 }
 0x95a   :  { %8679 = vmatprep.subr.msk.bf16.mxu0 %vm644_vm1, %v1432_v49  ;;  %v1433_v61 = vpack.c.bf16 %v8828_v53, %v8827_v59  ;;  %v312_v49 = vld [vmem:[%s11665_s2 + $0x30] sm:$0xff] }
 0x95c   :  { %v1456_v62 = vsel %vm644_vm1, %v1433_v61, 0 }
 0x961   :  { %8318 = vmatpush3.bf16.xpose.msra.mxu0 %v1453_v60 }
 0x962   :  { %8680 = vmatprep.subr.msk.bf16.mxu0 %vm644_vm1, %v1433_v61 }
 0x969   :  { %8320 = vmatpush3.bf16.xpose.msra.mxu0 %v1456_v62 }
 0x96a   :  { %8345 = vmatprep.subr.bf16.mxu0 %v10148_v4 }
 0x9ff   :  { %v1202_v0 = vpop.f32.mrb[12].mxu0 }
 0xa00   :  { %v8311_v1 = vpop.f32.mrb[13].mxu0  ;;  %v1203_v3 = vadd.f32 %v7238_v63, %v1202_v0 }
 0xa01   :  { %v1205_v2 = vpop.f32.mrb[14].mxu0 }
 0xa02   :  { %v1206_v5 = vadd.f32 %v7238_v63, %v1205_v2  ;;  %v8312_v6 = vpop.f32.mrb[15].mxu0 }
 0xa04   :  { %v1426_v7 = vpack.c.bf16 %v1206_v5, %v1203_v3  ;;  %v8829_v8 = vpack.i.bf16 %v1206_v5, %v1203_v3 }
 0xa06   :  { %8321 = vmatprep.mubr.msk.bf16.mxu0 %vm644_vm1, %v1426_v7  ;;  %8830 = vrot.lane.b32.xlu1 %v8829_v8, %s10152_s19 }
 0xa07   :  { %8835 = vrot.lane.b32.xlu0 %v8829_v8, %s10151_s5 }
 0xa0a   :  { %8840 = vrot.lane.b32.xlu1 %v8829_v8, %s10153_s6 }
 0xa78   :  { %v8831_v9 = vpop.permute.xlu1 %8830 }
 0xa79   :  { %v8833_v10 = vunpack.i.h.bf16 %v8831_v9  ;;  %v8832_v11 = vunpack.i.l.bf16 %v8831_v9  ;;  %v8836_v12 = vpop.permute.xlu0 %8835 }
 0xa7a   :  { %v8838_v13 = vunpack.i.h.bf16 %v8836_v12  ;;  %v8837_v14 = vunpack.i.l.bf16 %v8836_v12 }
 0xa7b   :  { %v1427_v15 = vpack.c.bf16 %v8833_v10, %v8832_v11 }
 0xa7c   :  { %v1428_v16 = vpack.c.bf16 %v8838_v13, %v8837_v14  ;;  %v8841_v19 = vpop.permute.xlu1 %8840 }
 0xa7d   :  { %8322 = vmatmul.mubr.msk.bf16.vlgmr.msra.gmra.mrb[16].mxu0 %vm644_vm1, %v1427_v15  ;;  %v8843_v20 = vunpack.i.h.bf16 %v8841_v19  ;;  %v8842_v21 = vunpack.i.l.bf16 %v8841_v19 }
 0xa7e   :  { %8325 = vmatprep.mubr.msk.bf16.mxu0 %vm644_vm1, %v1428_v16 }
 0xa7f   :  { %v1429_v23 = vpack.c.bf16 %v8843_v20, %v8842_v21 }
 0xa85   :  { %8326 = vmatmul.mubr.msk.bf16.gmra.mrb[20].mxu0 %vm644_vm1, %v1429_v23 }
 0xa86   :  { %8361 = vmatprep.mubr.msk.bf16.mxu0 %vm10150_vm0, %v10148_v4 }
 0xb50   :  { %v8323_v25 = vpop.f32.mrb[16].mxu0 }
 0xb51   :  { %v1492_v26 = vpop.f32.mrb[17].mxu0  ;;  %v1501_v31 = vadd.f32 %v8323_v25, %v308_v18 }
 0xb52   :  { %v1493_v28 = vadd.f32 %v1492_v26, %v306_v24  ;;  %v8324_v29 = vpop.f32.mrb[18].mxu0 }
 0xb53   :  { %v1495_v30 = vpop.f32.mrb[19].mxu0  ;;  %v1504_v37 = vadd.f32 %v8324_v29, %v309_v35  ;;  %v1529_v39 = vsel %vm734_vm2, %v1501_v31, -inf }
 0xb54   :  { %v1496_v33 = vadd.f32 %v1495_v30, %v307_v27  ;;  %v1523_v34 = vsel %vm734_vm2, %v1493_v28, -inf }
 0xb55   :  { %1524 = vmax.xlane.f32.xlu0 %v1523_v34  ;;  %v1532_v48 = vsel %vm734_vm2, %v1504_v37, -inf }
 0xb56   :  { %v1526_v36 = vsel %vm734_vm2, %v1496_v33, -inf }
 0xb57   :  { %1527 = vmax.xlane.f32.xlu1 %v1526_v36 }
 0xb58   :  { %v8327_v38 = vpop.f32.mrb[20].mxu0 }
 0xb59   :  { %v1508_v51 = vpop.f32.mrb[21].mxu0  ;;  %1530 = vmax.xlane.f32.xlu0 %v1529_v39  ;;  %v1517_v53 = vadd.f32 %v8327_v38, %v312_v49 }
 0xb5a   :  { %v8328_v44 = vpop.f32.mrb[22].mxu0  ;;  %v1509_v47 = vadd.f32 %v1508_v51, %v310_v42 }
 0xb5b   :  { %v1511_v46 = vpop.f32.mrb[23].mxu0  ;;  %v1520_v52 = vadd.f32 %v8328_v44, %v313_v45  ;;  %v1541_v61 = vsel %vm734_vm2, %v1517_v53, -inf }
 0xb5c   :  { %v10658_v41 = vadd.f32 %v1511_v46, %v311_v43  ;;  %v1535_v59 = vsel %vm734_vm2, %v1509_v47, -inf }
 0xb5d   :  { %1533 = vmax.xlane.f32.xlu0 %v1532_v48  ;;  %v1544_v60 = vsel %vm734_vm2, %v1520_v52, -inf }
 0xb5e   :  { %v1538_v57 = vsel %vm734_vm2, %v10658_v41, -inf }
 0xb5f   :  { %1539 = vmax.xlane.f32.xlu1 %v1538_v57 }
 0xb61   :  { %1536 = vmax.xlane.f32.xlu0 %v1535_v59 }
 0xb63   :  { %1545 = vmax.xlane.f32.xlu1 %v1544_v60 }
 0xb65   :  { %1542 = vmax.xlane.f32.xlu0 %v1541_v61 }
 0xbe2   :  { %v1525_v62 = vpop.xlane.xlu0 %1524 }
 0xbe3   :  { %v1547_v63 = vsub.f32 %v1493_v28, %v1525_v62 }
 0xbe4   :  { %v1528_v0 = vpop.xlane.xlu1 %1527 }
 0xbe5   :  { %v1555_v3 = vmul.f32 1.442695, %v1547_v63  ;;  %v1548_v5 = vsub.f32 %v1496_v33, %v1528_v0 }
 0xbe6   :  { %v1531_v1 = vpop.xlane.xlu0 %1530 }
 0xbe7   :  { %v1549_v2 = vsub.f32 %v1501_v31, %v1531_v1  ;;  %v1557_v9 = vmul.f32 1.442695, %v1548_v5  ;;  %v8849_v31 = vpack.i.bf16 %v10614_v22, %v10612_v17 }
 0xbe9   :  { %v1559_v6 = vmul.f32 1.442695, %v1549_v2 }
 0xbea   :  { %v1534_v7 = vpop.xlane.xlu0 %1533 }
 0xbeb   :  { %9635 = vpow2.f32 %v1559_v6  ;;  %v1550_v8 = vsub.f32 %v1504_v37, %v1534_v7 }
 0xbec   :  { %9637 = vpow2.f32 %v1555_v3  ;;  %v1540_v33 = vpop.xlane.xlu1 %1539 }
 0xbed   :  { %v1561_v10 = vmul.f32 1.442695, %v1550_v8  ;;  %v1552_v36 = vsub.f32 %v10658_v41, %v1540_v33 }
 0xbee   :  { %v1537_v11 = vpop.xlane.xlu0 %1536 }
 0xbef   :  { %9639 = vpow2.f32 %v1561_v10  ;;  %v1551_v12 = vsub.f32 %v1509_v47, %v1537_v11  ;;  %v1565_v38 = vmul.f32 1.442695, %v1552_v36 }
 0xbf0   :  { %9641 = vpow2.f32 %v1557_v9  ;;  %v1546_v34 = vpop.xlane.xlu1 %1545 }
 0xbf1   :  { %v1563_v16 = vmul.f32 1.442695, %v1551_v12  ;;  %v1554_v35 = vsub.f32 %v1520_v52, %v1546_v34  ;;  %v9193_v34 = vld [vmem:[%s11666_s25 + $0x30] sm:$0xff]  }
 0xbf2   :  { %v1543_v13 = vpop.xlane.xlu0 %1542 }
 0xbf3   :  { %v1553_v14 = vsub.f32 %v1517_v53, %v1543_v13  ;;  %v1569_v37 = vmul.f32 1.442695, %v1554_v35 }
 0xbf5   :  { %v10667_v15 = vpop.eup %9635  ;;  %v1567_v19 = vmul.f32 1.442695, %v1553_v14 }
 0xbf6   :  { %v1577_v20 = vsel %vm734_vm2, %v10667_v15, 0.0  ;;  %v9638_v21 = vpop.eup %9637 }
 0xbf7   :  { %9643 = vpow2.f32 %v1567_v19  ;;  %1578 = vadd.xlane.f32.xlu0 %v1577_v20  ;;  %v1571_v24 = vsel %vm734_vm2, %v9638_v21, 0.0 }
 0xbf8   :  { %9645 = vpow2.f32 %v1563_v16 }
 0xbf9   :  { %v10671_v23 = vpop.eup %9639  ;;  %9647 = vpow2.f32 %v1569_v37 }
 0xbfa   :  { %v1580_v25 = vsel %vm734_vm2, %v10671_v23, 0.0  ;;  %v9642_v18 = vpop.eup %9641  ;;  %9649 = vpow2.f32 %v1565_v38 }
 0xbfb   :  { %1572 = vadd.xlane.f32.xlu0 %v1571_v24  ;;  %1581 = vadd.xlane.f32.xlu1 %v1580_v25  ;;  %v1574_v26 = vsel %vm734_vm2, %v9642_v18, 0.0 }
 0xbff   :  { %1575 = vadd.xlane.f32.xlu1 %v1574_v26  ;;  %v9187_v26 = vld [vmem:[%s11666_s25] sm:$0xff]  }
 0xc00   :  { %8346 = vmatpush3.bf16.msra.mxu0 %v9187_v26  ;;  %v9206_v26 = vld [vmem:[%s11668_s9 + $0x34] ss:$8 sps:$4 sm:$0xff]  }
 0xc01   :  { %v10677_v27 = vpop.eup %9643  ;;  %8347 = vmatprep.subr.bf16.mxu0 %v10148_v4 }
 0xc02   :  { %v1589_v28 = vsel %vm734_vm2, %v10677_v27, 0.0  ;;  %v10681_v29 = vpop.eup %9645 }
 0xc03   :  { %1590 = vadd.xlane.f32.xlu0 %v1589_v28  ;;  %v1583_v30 = vsel %vm734_vm2, %v10681_v29, 0.0  ;;  %v9648_v39 = vpop.eup %9647  ;;  %v9188_v28 = vld [vmem:[%s11666_s25 + $0x8] sm:$0xff]  }
 0xc04   :  { %v1592_v51 = vsel %vm734_vm2, %v9648_v39, 0.0  ;;  %v9650_v42 = vpop.eup %9649  ;;  %8348 = vmatpush3.bf16.msra.mxu0 %v9188_v28  ;;  %v9204_v28 = vld [vmem:[%s11668_s9 + $0x30] ss:$8 sps:$4 sm:$0xff]  }
 0xc05   :  { %v1586_v17 = vsel %vm734_vm2, %v9650_v42, 0.0  ;;  %8349 = vmatprep.subr.bf16.mxu0 %v10148_v4 }
 0xc07   :  { %1584 = vadd.xlane.f32.xlu0 %v1583_v30  ;;  %v9190_v30 = vld [vmem:[%s11666_s25 + $0x18] sm:$0xff]  }
 0xc10   :  { %8850 = vrot.lane.b32.xlu1 %v8849_v31, %s10151_s5 }
 0xc1d   :  { %8845 = vrot.lane.b32.xlu0 %v8849_v31, %s10152_s19 }
 0xc34   :  { %1593 = vadd.xlane.f32.xlu1 %v1592_v51 }
 0xc38   :  { %1587 = vadd.xlane.f32.xlu1 %v1586_v17 }
 0xc49   :  { %8855 = vrot.lane.b32.xlu1 %v8849_v31, %s10153_s6  ;;  %v9192_v31 = vld [vmem:[%s11666_s25 + $0x28] sm:$0xff]  }
 0xc84   :  { %v1579_v22 = vpop.xlane.xlu0 %1578 }
 0xc88   :  { %v1582_v43 = vpop.xlane.xlu1 %1581  ;;  %v1573_v44 = vpop.xlane.xlu0 %1572 }
 0xc89   :  { %9651 = vrcp.f32 %v1573_v44 }
 0xc8c   :  { %v1576_v45 = vpop.xlane.xlu1 %1575 }
 0xc8d   :  { %9653 = vrcp.f32 %v1576_v45 }
 0xc8e   :  { %9655 = vrcp.f32 %v1582_v43 }
 0xc8f   :  { %9657 = vrcp.f32 %v1579_v22 }
 0xc90   :  { %v1591_v46 = vpop.xlane.xlu0 %1590  ;;  %v8851_v48 = vpop.permute.xlu1 %8850 }
 0xc91   :  { %v8853_v59 = vunpack.i.h.bf16 %v8851_v48  ;;  %v8852_v60 = vunpack.i.l.bf16 %v8851_v48 }
 0xc93   :  { %v9652_v41 = vpop.eup %9651  ;;  %v1617_v1 = vpack.c.bf16 %v8853_v59, %v8852_v60 }
 0xc94   :  { %v1585_v47 = vpop.xlane.xlu0 %1584  ;;  %v1603_v57 = vmul.f32 %v9652_v41, %v9638_v21 }
 0xc95   :  { %9659 = vrcp.f32 %v1585_v47 }
 0xc97   :  { %v9654_v49 = vpop.eup %9653 }
 0xc98   :  { %v8846_v52 = vpop.permute.xlu0 %8845  ;;  %v1604_v53 = vmul.f32 %v9654_v49, %v9642_v18  ;;  %v9656_v5 = vpop.eup %9655 }
 0xc99   :  { %v8848_v61 = vunpack.i.h.bf16 %v8846_v52  ;;  %v8847_v62 = vunpack.i.l.bf16 %v8846_v52  ;;  %v9658_v9 = vpop.eup %9657  ;;  %v1606_v10 = vmul.f32 %v9656_v5, %v10671_v23 }
 0xc9a   :  { %v1611_v63 = vpack.c.bf16 %v1604_v53, %v1603_v57  ;;  %v1605_v13 = vmul.f32 %v9658_v9, %v10667_v15 }
 0xc9b   :  { %v1616_v0 = vpack.c.bf16 %v8848_v61, %v8847_v62 }
 0xc9c   :  { %8337 = vmatprep.mubr.msk.bf16.mxu1 %vm734_vm2, %v1611_v63  ;;  %v1612_v16 = vpack.c.bf16 %v1606_v10, %v1605_v13  ;;  %v9197_v13 = vld [vmem:[%s11668_s9 + $0x4] ss:$8 sps:$4 sm:$0xff]  }
 0xc9d   :  { %8331 = vmatprep.subr.bf16.mxu1 %v1616_v0 }
 0xc9e   :  { %8332 = vmatpush3.bf16.msra.mxu1 %v1616_v0 }
 0xc9f   :  { %8333 = vmatprep.subr.bf16.mxu1 %v1617_v1  ;;  %v9660_v12 = vpop.eup %9659 }
 0xca0   :  { %v1607_v20 = vmul.f32 %v9660_v12, %v10681_v29  ;;  %v9189_v29 = vld [vmem:[%s11666_s25 + $0x10] sm:$0xff]   ;;  %v9195_v12 = vld [vmem:[%s11668_s9] ss:$8 sps:$4 sm:$0xff]  }
 0xca1   :  { %8350 = vmatpush3.bf16.msra.mxu0 %v9189_v29  ;;  %v9209_v29 = vld [vmem:[%s11668_s9 + $0x44] ss:$8 sps:$4 sm:$0xff]  }
 0xca2   :  { %8334 = vmatpush3.bf16.msra.mxu1 %v1617_v1  ;;  %8351 = vmatprep.subr.bf16.mxu0 %v10148_v4 }
 0xca5   :  { %8352 = vmatpush3.bf16.msra.mxu0 %v9190_v30  ;;  %v9207_v30 = vld [vmem:[%s11668_s9 + $0x40] ss:$8 sps:$4 sm:$0xff]  }
 0xca6   :  { %8353 = vmatprep.subr.bf16.mxu0 %v10148_v4 }
 0xcc1   :  { %v1594_v2 = vpop.xlane.xlu1 %1593 }
 0xcc5   :  { %v1588_v3 = vpop.xlane.xlu1 %1587 }
 0xcc6   :  { %9661 = vrcp.f32 %v1588_v3  ;;  %v7280_v3 = vld [vmem:[%s11667_s7] ss:$0 sm:$0xff] }
 0xcc7   :  { %9663 = vrcp.f32 %v1594_v2 }
 0xcc8   :  { %9665 = vrcp.f32 %v1591_v46 }
 0xcc9   :  { %v8856_v6 = vpop.permute.xlu1 %8855 }
 0xcca   :  { %v8858_v7 = vunpack.i.h.bf16 %v8856_v6  ;;  %v8857_v8 = vunpack.i.l.bf16 %v8856_v6 }
 0xccc   :  { %v1618_v11 = vpack.c.bf16 %v8858_v7, %v8857_v8 }
 0xcce   :  { %8335 = vmatprep.subr.bf16.mxu1 %v1618_v11 }
 0xccf   :  { %8336 = vmatpush3.bf16.msra.mxu1 %v1618_v11 }
 0xcd0   :  { %v9662_v14 = vpop.eup %9661  ;;  %1992 = vmatprep.subr.bf16.mxu1 %v9197_v13 }
 0xcd1   :  { %v9664_v19 = vpop.eup %9663  ;;  %v1608_v21 = vmul.f32 %v9662_v14, %v9650_v42  ;;  %v9200_v14 = vld [vmem:[%s11668_s9 + $0x14] ss:$8 sps:$4 sm:$0xff]  }
 0xcd2   :  { %8338 = vmatmul.mubr.msk.bf16.vlgmr.msra.gmra.mrb[20].mxu1 %vm734_vm2, %v1612_v16  ;;  %v9666_v24 = vpop.eup %9665  ;;  %v1610_v25 = vmul.f32 %v9664_v19, %v9648_v39  ;;  %v9194_v39 = vld [vmem:[%s11666_s25 + $0x38] sm:$0xff]  }
 0xcd3   :  { %v1613_v23 = vpack.c.bf16 %v1608_v21, %v1607_v20  ;;  %v1609_v15 = vmul.f32 %v9666_v24, %v10677_v27  ;;  %v9191_v27 = vld [vmem:[%s11666_s25 + $0x20] sm:$0xff]   ;;  %1993 = vmatpush1.bf16.msra.mxu1 %v9195_v12  ;;  %v9198_v16 = vld [vmem:[%s11668_s9 + $0x10] ss:$8 sps:$4 sm:$0xff]  }
 0xcd4   :  { %8354 = vmatpush3.bf16.msra.mxu0 %v9191_v27  ;;  %1994 = vmatprep.subr.bf16.mxu1 %v9200_v14  ;;  %v9212_v27 = vld [vmem:[%s11668_s9 + $0x54] ss:$8 sps:$4 sm:$0xff]  }
 0xcd5   :  { %8341 = vmatprep.mubr.msk.bf16.mxu1 %vm734_vm2, %v1613_v23  ;;  %v1614_v18 = vpack.c.bf16 %v1610_v25, %v1609_v15  ;;  %8355 = vmatprep.subr.bf16.mxu0 %v10148_v4  ;;  %v9203_v15 = vld [vmem:[%s11668_s9 + $0x24] ss:$8 sps:$4 sm:$0xff]  }
 0xcd7   :  { %1995 = vmatpush1.bf16.msra.mxu1 %v9198_v16 }
 0xcd8   :  { %8356 = vmatpush3.bf16.msra.mxu0 %v9192_v31  ;;  %1996 = vmatprep.subr.bf16.mxu1 %v9203_v15  ;;  %v9210_v31 = vld [vmem:[%s11668_s9 + $0x50] ss:$8 sps:$4 sm:$0xff]  }
 0xcd9   :  { %8357 = vmatprep.subr.bf16.mxu0 %v10148_v4 }
 0xcda   :  { %8342 = vmatmul.mubr.msk.bf16.gmra.mrb[24].mxu1 %vm734_vm2, %v1614_v18  ;;  %v9201_v18 = vld [vmem:[%s11668_s9 + $0x20] ss:$8 sps:$4 sm:$0xff]  }
 0xcdb   :  { %2024 = vmatprep.mubr.bf16.mxu1 %v10149_v32  ;;  %1997 = vmatpush1.bf16.msra.mxu1 %v9201_v18 }
 0xcdc   :  { %8358 = vmatpush3.bf16.msra.mxu0 %v9193_v34  ;;  %1998 = vmatprep.subr.bf16.mxu1 %v9206_v26  ;;  %v9213_v34 = vld [vmem:[%s11668_s9 + $0x60] ss:$8 sps:$4 sm:$0xff]  }
 0xcdd   :  { %8359 = vmatprep.subr.bf16.mxu0 %v10148_v4 }
 0xcdf   :  { %1999 = vmatpush1.bf16.msra.mxu1 %v9204_v28 }
 0xce0   :  { %8360 = vmatpush3.bf16.msra.mxu0 %v9194_v39  ;;  %2000 = vmatprep.subr.bf16.mxu1 %v9209_v29 }
 0xce3   :  { %2001 = vmatpush1.bf16.msra.mxu1 %v9207_v30 }
 0xce4   :  { %2002 = vmatprep.subr.bf16.mxu1 %v9212_v27 }
 0xce7   :  { %2003 = vmatpush1.bf16.msra.mxu1 %v9210_v31 }
 0xda5   :  { %v8339_v33 = vpop.f32.mrb[20].mxu1 }
 0xda6   :  { %v1665_v35 = vpop.f32.mrb[21].mxu1 }
 0xda7   :  { %v8340_v36 = vpop.f32.mrb[22].mxu1 }
 0xda8   :  { %v8859_v37 = vpack.i.bf16 %v8340_v36, %v8339_v33  ;;  %v1668_v38 = vpop.f32.mrb[23].mxu1  ;;  %v9215_v33 = vld [vmem:[%s11668_s9 + $0x64] ss:$8 sps:$4 sm:$0xff]   ;;  %v9216_v36 = vld [vmem:[%s11668_s9 + $0x70] ss:$8 sps:$4 sm:$0xff]  }
 0xda9   :  { %2004 = vmatprep.subr.bf16.mxu1 %v9215_v33 }
 0xdaa   :  { %8860 = vrot.lane.b32.xlu1 %v8859_v37, %s10153_s6  ;;  %2005 = vmatpush1.bf16.msra.mxu1 %v9213_v34 }
 0xdad   :  { %v8343_v51 = vpop.f32.mrb[24].mxu1 }
 0xdae   :  { %v1681_v42 = vpop.f32.mrb[25].mxu1 }
 0xdaf   :  { %v8344_v17 = vpop.f32.mrb[26].mxu1 }
 0xdb0   :  { %v8869_v22 = vpack.i.bf16 %v8344_v17, %v8343_v51  ;;  %v1684_v43 = vpop.f32.mrb[27].mxu1 }
 0xdb1   :  { %v8864_v44 = vpack.i.bf16 %v1684_v43, %v1681_v42 }
 0xdb2   :  { %8870 = vrot.lane.b32.xlu1 %v8869_v22, %s10152_s19 }
 0xdb3   :  { %8865 = vrot.lane.b32.xlu0 %v8864_v44, %s10151_s5  ;;  %v7281_v44 = vld [vmem:[%s11669_s10] ss:$0 sm:$0xff] }
 0xe1c   :  { %v8861_v45 = vpop.permute.xlu1 %8860 }
 0xe1d   :  { %v8863_v46 = vunpack.i.h.bf16 %v8861_v45  ;;  %v8862_v47 = vunpack.i.l.bf16 %v8861_v45 }
 0xe1f   :  { %v1720_v57 = vsel %vm644_vm1, %v1665_v35, %v8862_v47  ;;  %v1721_v53 = vsel %vm644_vm1, %v1668_v38, %v8863_v46  ;;  %v9218_v35 = vld [vmem:[%s11668_s9 + $0x74] ss:$8 sps:$4 sm:$0xff]  }
 0xe20   :  { %2006 = vmatprep.subr.bf16.mxu1 %v9218_v35 }
 0xe21   :  { %2007 = vmatpush1.bf16.msra.mxu1 %v9216_v36 }
 0xe24   :  { %v8871_v41 = vpop.permute.xlu1 %8870 }
 0xe25   :  { %v8866_v48 = vpop.permute.xlu0 %8865  ;;  %v8873_v59 = vunpack.i.h.bf16 %v8871_v41  ;;  %v8872_v60 = vunpack.i.l.bf16 %v8871_v41  ;;  %v7282_v41 = vld [vmem:[%s11670_s11] ss:$0 sm:$0xff] }
 0xe26   :  { %v8868_v49 = vunpack.i.h.bf16 %v8866_v48  ;;  %v8867_v52 = vunpack.i.l.bf16 %v8866_v48 }
 0xe28   :  { %v1723_v61 = vsel %vm734_vm2, %v1721_v53, %v8868_v49  ;;  %v1722_v62 = vsel %vm734_vm2, %v1720_v57, %v8867_v52  ;;  %v9219_v53 = vld [vmem:[%s11671_s15 + $0x40] sm:$0xff]  }
 0xe29   :  { %v1725_v63 = vsel %vm936_vm3, %v1723_v61, %v8873_v59  ;;  %v1724_v0 = vsel %vm936_vm3, %v1722_v62, %v8872_v60  ;;  %v9220_v59 = vld [vmem:[%s11671_s15] sm:$0xff]   ;;  %7988 = vmatprep.subr.bf16.mxu0 %v9219_v53  ;;  %v9221_v60 = vld [vmem:[%s11671_s15 + $0x48] sm:$0xff]   ;;  %v9223_v62 = vld [vmem:[%s11671_s15 + $0x50] sm:$0xff]  }
 0xe2a   :  { %v1742_v1 = vpack.c.bf16 %v1725_v63, %v1724_v0  ;;  %v9222_v61 = vld [vmem:[%s11671_s15 + $0x8] sm:$0xff]   ;;  %v9224_v63 = vld [vmem:[%s11671_s15 + $0x10] sm:$0xff]   ;;  %v9225_v0 = vld [vmem:[%s11671_s15 + $0x58] sm:$0xff]  }
 0xe2c   :  { %8362 = vmatmul.mubr.bf16.vlgmr.msra.gmra.mrb[24].mxu0 %v1742_v1  ;;  %v9226_v1 = vld [vmem:[%s11671_s15 + $0x18] sm:$0xff]  }
 0xe2d   :  { %7989 = vmatpush3.bf16.msra.mxu0 %v9220_v59 }
 0xe2e   :  { %7990 = vmatprep.subr.bf16.mxu0 %v9221_v60 }
 0xe31   :  { %7991 = vmatpush3.bf16.msra.mxu0 %v9222_v61 }
 0xe32   :  { %7992 = vmatprep.subr.bf16.mxu0 %v9223_v62 }
 0xe35   :  { %7993 = vmatpush3.bf16.msra.mxu0 %v9224_v63 }
 0xe36   :  { %7994 = vmatprep.subr.bf16.mxu0 %v9225_v0 }
 0xe39   :  { %7995 = vmatpush3.bf16.msra.mxu0 %v9226_v1 }
 0xeff   :  { %v1825_v2 = vpop.f32.mrb[24].mxu0 }
 0xf00   :  { %v1832_v5 = vadd.f32 %v1825_v2, %v10624_v50  ;;  %v8363_v6 = vpop.f32.mrb[25].mxu0  ;;  %v9227_v2 = vld [vmem:[%s11671_s15 + $0x60] sm:$0xff]  }
 0xf01   :  { %v1828_v7 = vpop.f32.mrb[26].mxu0  ;;  %7996 = vmatprep.subr.bf16.mxu0 %v9227_v2  ;;  %v9230_v6 = vld [vmem:[%s11671_s15 + $0x28] sm:$0xff]  }
 0xf02   :  { %v1833_v8 = vadd.f32 %v1828_v7, %v10626_v40  ;;  %v8364_v9 = vpop.f32.mrb[27].mxu0  ;;  %v1841_v10 = vadd.f32 %v7280_v3, %v1832_v5  ;;  %v9229_v5 = vld [vmem:[%s11671_s15 + $0x68] sm:$0xff]   ;;  %v9231_v7 = vld [vmem:[%s11671_s15 + $0x70] sm:$0xff]  }
 0xf03   :  { %v9233_v9 = vld [vmem:[%s11671_s15 + $0x78] sm:$0xff]  }
 0xf04   :  { %1845 = vadd.xlane.f32.xlu0 %v1841_v10  ;;  %v1842_v11 = vadd.f32 %v7280_v3, %v1833_v8  ;;  %v9228_v3 = vld [vmem:[%s11671_s15 + $0x20] sm:$0xff]   ;;  %v9232_v8 = vld [vmem:[%s11671_s15 + $0x30] sm:$0xff]  }
 0xf05   :  { %7997 = vmatpush3.bf16.msra.mxu0 %v9228_v3 }
 0xf06   :  { %1847 = vadd.xlane.f32.xlu1 %v1842_v11  ;;  %7998 = vmatprep.subr.bf16.mxu0 %v9229_v5 }
 0xf09   :  { %7999 = vmatpush3.bf16.msra.mxu0 %v9230_v6 }
 0xf0a   :  { %8000 = vmatprep.subr.bf16.mxu0 %v9231_v7 }
 0xf0d   :  { %8001 = vmatpush3.bf16.msra.mxu0 %v9232_v8 }
 0xf0e   :  { %8002 = vmatprep.subr.bf16.mxu0 %v9233_v9  ;;  %v7315_v9 = vld [vmem:[%s11673_s22] ss:$0 sm:$0xff] }
 0xf91   :  { %v1846_v50 = vpop.xlane.xlu0 %1845 }
 0xf92   :  { %v1849_v19 = vmul.f32 0.0078125, %v1846_v50 }
 0xf93   :  { %v1848_v40 = vpop.xlane.xlu1 %1847 }
 0xf94   :  { %v1850_v20 = vmul.f32 0.0078125, %v1848_v40  ;;  %v1851_v21 = vsub.f32 %v1841_v10, %v1849_v19  ;;  %v9234_v10 = vld [vmem:[%s11671_s15 + $0x38] sm:$0xff]  }
 0xf95   :  { %8003 = vmatpush3.bf16.msra.mxu0 %v9234_v10 }
 0xf96   :  { %v1853_v24 = vmul.f32 %v1851_v21, %v1851_v21  ;;  %v1852_v23 = vsub.f32 %v1842_v11, %v1850_v20  ;;  %8365 = vmatprep.subr.bf16.mxu0 %v10148_v4  ;;  %v1900_v11 = vld [vmem:[%s11672_s18] sm:$0x3] }
 0xf97   :  { %v1905_v12 = vrot.slane %v1900_v11, %v10458_v55  ;;  %v1909_v13 = vrot.slane %v1900_v11, %v10463_v58 }
 0xf98   :  { %1855 = vadd.xlane.f32.xlu0 %v1853_v24  ;;  %v1854_v25 = vmul.f32 %v1852_v23, %v1852_v23 }
 0xf9c   :  { %1857 = vadd.xlane.f32.xlu0 %v1854_v25 }
0x1025   :  { %v1856_v37 = vpop.xlane.xlu0 %1855 }
0x1026   :  { %v1859_v38 = vmul.f32 0.0078125, %v1856_v37 }
0x1028   :  { %v1861_v39 = vadd.f32 1e-05, %v1859_v38 }
0x1029   :  { %v1858_v51 = vpop.xlane.xlu0 %1857 }
0x102a   :  { %9667 = vrsqrt.f32 %v1861_v39  ;;  %v1860_v42 = vmul.f32 0.0078125, %v1858_v51 }
0x102c   :  { %v1862_v17 = vadd.f32 1e-05, %v1860_v42 }
0x102e   :  { %9669 = vrsqrt.f32 %v1862_v17 }
0x1034   :  { %v9668_v22 = vpop.eup %9667 }
0x1035   :  { %v1865_v43 = vmul.f32 %v9668_v22, %v1851_v21 }
0x1037   :  { %v1873_v46 = vmul.f32 %v7281_v44, %v1865_v43 }
0x1038   :  { %v9670_v45 = vpop.eup %9669 }
0x1039   :  { %v1866_v47 = vmul.f32 %v9670_v45, %v1852_v23  ;;  %v10747_v49 = vadd.f32 %v7282_v41, %v1873_v46 }
0x103b   :  { %v1874_v48 = vmul.f32 %v7281_v44, %v1866_v47 }
0x103d   :  { %v10749_v52 = vadd.f32 %v7282_v41, %v1874_v48 }
0x103f   :  { %v1899_v57 = vpack.c.bf16 %v10749_v52, %v10747_v49 }
0x1041   :  { %2025 = vmatmul.mubr.bf16.vlgmr.msra.gmra.mrb[28].mxu1 %v1899_v57 }
0x1042   :  { %2505 = vmatprep.mubr.bf16.mxu1 %v10149_v32 }
0x1114   :  { %v2026_v14 = vpop.f32.mrb[28].mxu1 }
0x1115   :  { %v2027_v16 = vadd.f32 %v2026_v14, %v1905_v12  ;;  %v2028_v50 = vpop.f32.mrb[29].mxu1 }
0x1116   :  { %v2029_v19 = vadd.f32 %v2028_v50, %v1909_v13  ;;  %v2030_v40 = vpop.f32.mrb[30].mxu1  ;;  %v9237_v50 = vld [vmem:[%s10195_s29 + $0xc4] ss:$12 sps:$4 sm:$0xff]  }
0x1117   :  { %v2035_v20 = vmul.f32 %v2027_v16, %v2027_v16  ;;  %v2031_v21 = vadd.f32 %v2030_v40, %v1905_v12  ;;  %v2032_v24 = vpop.f32.mrb[31].mxu1  ;;  %v9241_v40 = vld [vmem:[%s10195_s29 + $0xdc] ss:$12 sps:$4 sm:$0xff]   ;;  %2473 = vmatprep.subr.bf16.mxu1 %v9237_v50 }
0x1118   :  { %v2036_v23 = vmul.f32 %v2029_v19, %v2029_v19  ;;  %v2033_v25 = vadd.f32 %v2032_v24, %v1909_v13 }
0x1119   :  { %v2039_v15 = vmul.f32 %v2035_v20, %v2027_v16  ;;  %v2037_v18 = vmul.f32 %v2031_v21, %v2031_v21  ;;  %v9242_v20 = vld [vmem:[%s10195_s29 + $0xe0] ss:$12 sps:$4 sm:$0xff]  }
0x111a   :  { %v2040_v26 = vmul.f32 %v2036_v23, %v2029_v19  ;;  %v2038_v28 = vmul.f32 %v2033_v25, %v2033_v25 }
0x111b   :  { %v2043_v29 = vmul.f32 0.044715, %v2039_v15  ;;  %v2041_v30 = vmul.f32 %v2037_v18, %v2031_v21 }
0x111c   :  { %v2044_v27 = vmul.f32 0.044715, %v2040_v26  ;;  %v2042_v31 = vmul.f32 %v2038_v28, %v2033_v25  ;;  %v9245_v28 = vld [vmem:[%s10195_s29 + $0xf4] ss:$12 sps:$4 sm:$0xff]  }
0x111d   :  { %v2047_v33 = vadd.f32 %v2043_v29, %v2027_v16  ;;  %v2045_v34 = vmul.f32 0.044715, %v2041_v30  ;;  %v9243_v29 = vld [vmem:[%s10195_s29 + $0xf0] ss:$12 sps:$4 sm:$0xff]   ;;  %v9246_v30 = vld [vmem:[%s10195_s29 + $0xf8] ss:$12 sps:$4 sm:$0xff]  }
0x111e   :  { %v2048_v35 = vadd.f32 %v2044_v27, %v2029_v19  ;;  %v2046_v36 = vmul.f32 0.044715, %v2042_v31  ;;  %v9249_v27 = vld [vmem:[%s10195_s29 + $0x10c] ss:$12 sps:$4 sm:$0xff]   ;;  %v9247_v31 = vld [vmem:[%s10195_s29 + $0x108] ss:$12 sps:$4 sm:$0xff]  }
0x111f   :  { %v2051_v37 = vmul.f32 0.7978846, %v2047_v33  ;;  %v2049_v38 = vadd.f32 %v2045_v34, %v2031_v21  ;;  %v9250_v33 = vld [vmem:[%s10195_s29 + $0x110] ss:$12 sps:$4 sm:$0xff]  }
0x1120   :  { %v2052_v39 = vmul.f32 0.7978846, %v2048_v35  ;;  %v2050_v51 = vadd.f32 %v2046_v36, %v2033_v25  ;;  %v9253_v34 = vld [vmem:[%s10195_s29 + $0x124] ss:$12 sps:$4 sm:$0xff]   ;;  %v9251_v35 = vld [vmem:[%s10195_s29 + $0x120] ss:$12 sps:$4 sm:$0xff]  }
0x1121   :  { %9671 = vtanh.f32 %v2051_v37  ;;  %v2053_v42 = vmul.f32 0.7978846, %v2049_v38  ;;  %v9254_v36 = vld [vmem:[%s10195_s29 + $0x128] ss:$12 sps:$4 sm:$0xff]   ;;  %v9255_v38 = vld [vmem:[%s10195_s29 + $0x138] ss:$12 sps:$4 sm:$0xff]  }
0x1122   :  { %9673 = vtanh.f32 %v2052_v39  ;;  %v2054_v17 = vmul.f32 0.7978846, %v2050_v51  ;;  %v9257_v37 = vld [vmem:[%s10195_s29 + $0x13c] ss:$12 sps:$4 sm:$0xff]   ;;  %v9258_v39 = vld [vmem:[%s10195_s29 + $0x140] ss:$12 sps:$4 sm:$0xff]  }
0x1123   :  { %9675 = vtanh.f32 %v2053_v42  ;;  %v9261_v51 = vld [vmem:[%s10195_s29 + $0x154] ss:$12 sps:$4 sm:$0xff]   ;;  %v9259_v42 = vld [vmem:[%s10195_s29 + $0x150] ss:$12 sps:$4 sm:$0xff]  }
0x1124   :  { %9677 = vtanh.f32 %v2054_v17  ;;  %v9262_v17 = vld [vmem:[%s10195_s29 + $0x158] ss:$12 sps:$4 sm:$0xff]  }
0x112b   :  { %v9672_v22 = vpop.eup %9671 }
0x112c   :  { %v9674_v43 = vpop.eup %9673  ;;  %v2059_v44 = vadd.f32 1.0, %v9672_v22  ;;  %v9265_v22 = vld [vmem:[%s10195_s29 + $0x16c] ss:$12 sps:$4 sm:$0xff]  }
0x112d   :  { %v9676_v45 = vpop.eup %9675  ;;  %v2060_v46 = vadd.f32 1.0, %v9674_v43  ;;  %v9263_v43 = vld [vmem:[%s10195_s29 + $0x168] ss:$12 sps:$4 sm:$0xff]  }
0x112e   :  { %v9678_v47 = vpop.eup %9677  ;;  %v2063_v41 = vmul.f32 0.5, %v2059_v44  ;;  %v2061_v48 = vadd.f32 1.0, %v9676_v45  ;;  %v9266_v44 = vld [vmem:[%s10195_s29 + $0x170] ss:$12 sps:$4 sm:$0xff]  }
0x112f   :  { %v2062_v57 = vadd.f32 1.0, %v9678_v47  ;;  %v2064_v53 = vmul.f32 0.5, %v2060_v46 }
0x1130   :  { %v2065_v59 = vmul.f32 0.5, %v2061_v48  ;;  %v2067_v61 = vmul.f32 %v2063_v41, %v2027_v16  ;;  %v9235_v16 = vld [vmem:[%s10195_s29 + $0xc0] ss:$12 sps:$4 sm:$0xff]  }
0x1131   :  { %v2066_v60 = vmul.f32 0.5, %v2062_v57  ;;  %v2068_v63 = vmul.f32 %v2064_v53, %v2029_v19  ;;  %v9238_v19 = vld [vmem:[%s10195_s29 + $0xc8] ss:$12 sps:$4 sm:$0xff]   ;;  %2474 = vmatpush1.bf16.msra.mxu1 %v9235_v16 }
0x1132   :  { %v2069_v62 = vmul.f32 %v2065_v59, %v2031_v21  ;;  %v9239_v21 = vld [vmem:[%s10195_s29 + $0xd8] ss:$12 sps:$4 sm:$0xff]   ;;  %2475 = vmatprep.subr.bf16.mxu1 %v9241_v40  ;;  %s11675_s29 = sld [smem:[#allocation39_spill]] }
0x1133   :  { %v2070_v0 = vmul.f32 %v2066_v60, %v2033_v25  ;;  %v7316_v59 = vld [vmem:[#allocation7] ss:$0 sm:$0xff] }
0x1134   :  { %v2103_v1 = vpack.c.bf16 %v2069_v62, %v2067_v61 }
0x1135   :  { %v2104_v2 = vpack.c.bf16 %v2070_v0, %v2068_v63  ;;  %2476 = vmatpush1.bf16.msra.mxu1 %v9239_v21  ;;  %v7317_v0 = vld [vmem:[#allocation8] ss:$0 sm:$0xff] }
0x1136   :  { %2477 = vmatprep.subr.bf16.mxu1 %v9245_v28 }
0x1137   :  { %2233 = vmatprep.mubr.bf16.mxu0 %v2104_v2 }
0x1138   :  { %2234 = vmatmul.mubr.bf16.vlgmr.msra.gmra.mrb[28].mxu0 %v2103_v1 }
0x1139   :  { %8381 = vmatprep.mubr.msk.bf16.mxu0 %vm10150_vm0, %v10148_v4  ;;  %8366 = vmatpush3.bf16.msra.mxu0 %v9238_v19 }
0x113a   :  { %8367 = vmatprep.subr.bf16.mxu0 %v10148_v4  ;;  %2478 = vmatpush1.bf16.msra.mxu1 %v9243_v29 }
0x113b   :  { %2479 = vmatprep.subr.bf16.mxu1 %v9249_v27 }
0x113d   :  { %8368 = vmatpush3.bf16.msra.mxu0 %v9242_v20 }
0x113e   :  { %8369 = vmatprep.subr.bf16.mxu0 %v10148_v4  ;;  %2480 = vmatpush1.bf16.msra.mxu1 %v9247_v31 }
0x113f   :  { %2481 = vmatprep.subr.bf16.mxu1 %v9253_v34 }
0x1141   :  { %8370 = vmatpush3.bf16.msra.mxu0 %v9246_v30 }
0x1142   :  { %8371 = vmatprep.subr.bf16.mxu0 %v10148_v4  ;;  %2482 = vmatpush1.bf16.msra.mxu1 %v9251_v35 }
0x1143   :  { %2483 = vmatprep.subr.bf16.mxu1 %v9257_v37 }
0x1145   :  { %8372 = vmatpush3.bf16.msra.mxu0 %v9250_v33 }
0x1146   :  { %8373 = vmatprep.subr.bf16.mxu0 %v10148_v4  ;;  %2484 = vmatpush1.bf16.msra.mxu1 %v9255_v38 }
0x1147   :  { %2485 = vmatprep.subr.bf16.mxu1 %v9261_v51 }
0x1149   :  { %8374 = vmatpush3.bf16.msra.mxu0 %v9254_v36 }
0x114a   :  { %8375 = vmatprep.subr.bf16.mxu0 %v10148_v4  ;;  %2486 = vmatpush1.bf16.msra.mxu1 %v9259_v42 }
0x114b   :  { %2487 = vmatprep.subr.bf16.mxu1 %v9265_v22 }
0x114d   :  { %8376 = vmatpush3.bf16.msra.mxu0 %v9258_v39 }
0x114e   :  { %8377 = vmatprep.subr.bf16.mxu0 %v10148_v4  ;;  %2488 = vmatpush1.bf16.msra.mxu1 %v9263_v43 }
0x1151   :  { %8378 = vmatpush3.bf16.msra.mxu0 %v9262_v17 }
0x1152   :  { %8379 = vmatprep.subr.bf16.mxu0 %v10148_v4 }
0x1155   :  { %8380 = vmatpush3.bf16.msra.mxu0 %v9266_v44 }
0x1156   :  { %8437 = vmatprep.subr.bf16.mxu0 %v10148_v4 }
0x120b   :  { %v8004_v3 = vpop.f32.mrb[28].mxu0 }
0x120c   :  { %v8005_v5 = vpop.f32.mrb[29].mxu0 }
0x120d   :  { %v8006_v6 = vadd.f32 %v8005_v5, %v8004_v3  ;;  %v8007_v7 = vpop.f32.mrb[30].mxu0 }
0x120e   :  { %v8008_v8 = vpop.f32.mrb[31].mxu0 }
0x120f   :  { %v2242_v10 = vadd.f32 %v8006_v6, %v10747_v49  ;;  %v8009_v11 = vadd.f32 %v8008_v8, %v8007_v7  ;;  %v7350_v6 = vld [vmem:[%s10200_s3 + $0x3] sm:$0x7]  ;;  %s10154_s3 = smov 112  }
0x1210   :  { %v2333_v7 = vrot.slane %v7350_v6, %v10458_v55 }
0x1211   :  { %v2243_v12 = vadd.f32 %v8009_v11, %v10749_v52  ;;  %v2251_v13 = vadd.f32 %v7315_v9, %v2242_v10  ;;  %v2337_v11 = vrot.slane %v7350_v6, %v10463_v58 }
0x1213   :  { %2255 = vadd.xlane.f32.xlu0 %v2251_v13  ;;  %v2252_v14 = vadd.f32 %v7315_v9, %v2243_v12  ;;  %v2341_v9 = vrot.slane %v7350_v6, %v359_v56  ;;  %v9884_v6 = vld [vmem:[%s10185_s21 + $0x10] sm:$0xff] }
0x1215   :  { %2257 = vadd.xlane.f32.xlu1 %v2252_v14 }
0x12a0   :  { %v2256_v49 = vpop.xlane.xlu0 %2255 }
0x12a1   :  { %v2259_v52 = vmul.f32 0.0078125, %v2256_v49 }
0x12a2   :  { %v2258_v24 = vpop.xlane.xlu1 %2257 }
0x12a3   :  { %v2260_v23 = vmul.f32 0.0078125, %v2258_v24  ;;  %v2261_v25 = vsub.f32 %v2251_v13, %v2259_v52 }
0x12a5   :  { %v2263_v15 = vmul.f32 %v2261_v25, %v2261_v25  ;;  %v2262_v18 = vsub.f32 %v2252_v14, %v2260_v23 }
0x12a7   :  { %2265 = vadd.xlane.f32.xlu0 %v2263_v15  ;;  %v2264_v26 = vmul.f32 %v2262_v18, %v2262_v18 }
0x12a9   :  { %2267 = vadd.xlane.f32.xlu1 %v2264_v26 }
0x1334   :  { %v2266_v45 = vpop.xlane.xlu0 %2265 }
0x1335   :  { %v2269_v46 = vmul.f32 0.0078125, %v2266_v45 }
0x1336   :  { %v2268_v47 = vpop.xlane.xlu1 %2267 }
0x1337   :  { %v2271_v41 = vadd.f32 1e-05, %v2269_v46  ;;  %v2270_v48 = vmul.f32 0.0078125, %v2268_v47 }
0x1339   :  { %9679 = vrsqrt.f32 %v2271_v41  ;;  %v2272_v57 = vadd.f32 1e-05, %v2270_v48 }
0x133b   :  { %9681 = vrsqrt.f32 %v2272_v57 }
0x1343   :  { %v9680_v53 = vpop.eup %9679 }
0x1344   :  { %v2275_v60 = vmul.f32 %v9680_v53, %v2261_v25 }
0x1345   :  { %v9682_v61 = vpop.eup %9681 }
0x1346   :  { %v2276_v62 = vmul.f32 %v9682_v61, %v2262_v18  ;;  %v2283_v63 = vmul.f32 %v7316_v59, %v2275_v60 }
0x1348   :  { %v2284_v1 = vmul.f32 %v7316_v59, %v2276_v62  ;;  %v10811_v2 = vadd.f32 %v7317_v0, %v2283_v63  ;;  %v9883_v63 = vld [vmem:[%s10185_s21] sm:$0xff] }
0x134a   :  { %v10813_v3 = vadd.f32 %v7317_v0, %v2284_v1 }
0x134c   :  { %v2326_v5 = vpack.c.bf16 %v10813_v3, %v10811_v2 }
0x134e   :  { %2506 = vmatmul.mubr.bf16.vlgmr.msra.gmra.mrb[32].mxu1 %v2326_v5  ;;  %8382 = vmatmul.mubr.bf16.vlgmr.msra.gmra.mrb[32].mxu0 %v2326_v5 }
0x134f   :  { %8453 = vmatprep.mubr.msk.bf16.mxu0 %vm10150_vm0, %v10148_v4 }
0x1421   :  { %v2507_v8 = vpop.f32.mrb[32].mxu1  ;;  %v2550_v10 = vpop.f32.mrb[32].mxu0 }
0x1422   :  { %v2509_v12 = vpop.f32.mrb[33].mxu1  ;;  %v8383_v13 = vpop.f32.mrb[33].mxu0  ;;  %v2508_v50 = vadd.f32 %v2507_v8, %v2333_v7  ;;  %v2551_v49 = vadd.f32 %v2550_v10, %v2341_v9  ;;  %v9885_v8 = vld [vmem:[%s10185_s21 + $0x8] sm:$0xff] }
0x1423   :  { %v2511_v14 = vpop.f32.mrb[34].mxu1  ;;  %v2553_v16 = vpop.f32.mrb[34].mxu0  ;;  %v2510_v52 = vadd.f32 %v2509_v12, %v2337_v11  ;;  %v9886_v12 = vld [vmem:[%s10185_s21 + $0x18] sm:$0xff] }
0x1424   :  { %v2512_v19 = vadd.f32 %v2511_v14, %v2333_v7  ;;  %v2554_v40 = vadd.f32 %v2553_v16, %v2341_v9  ;;  %v2513_v20 = vpop.f32.mrb[35].mxu1  ;;  %v8384_v21 = vpop.f32.mrb[35].mxu0 }
0x1425   :  { %v2514_v24 = vadd.f32 %v2513_v20, %v2337_v11  ;;  %v9887_v20 = vld [vmem:[%s10185_s21 + $0x20] sm:$0xff] }
0x1426   :  { %v2617_v23 = vpack.c.bf16 %v2512_v19, %v2508_v50  ;;  %v8894_v25 = vpack.i.bf16 %v2512_v19, %v2508_v50  ;;  %v2806_v56 = vpack.c.bf16 %v2554_v40, %v2551_v49  ;;  %v10825_v18 = vpack.i.bf16 %v2554_v40, %v2551_v49  ;;  %v9888_v49 = vld [vmem:[%s10185_s21 + $0x28] sm:$0xff] }
0x1427   :  { %v8879_v15 = vpack.i.bf16 %v2514_v24, %v2510_v52  ;;  %v2621_v54 = vpack.c.bf16 %v2514_v24, %v2510_v52 }
0x1428   :  { %8393 = vmatprep.mubr.msk.bf16.mxu1 %vm644_vm1, %v2617_v23  ;;  %v9889_v23 = vld [vmem:[%s10185_s21 + $0x38] sm:$0xff] }
0x1429   :  { %8880 = vrot.lane.b32.xlu1 %v8879_v15, %s10151_s5  ;;  %8875 = vrot.lane.b32.xlu0 %v8879_v15, %s10152_s19  ;;  %v2638_v26 = vsel %vm644_vm1, %v2621_v54, 0 }
0x142a   :  { %8681 = vmatprep.subr.msk.bf16.mxu1 %vm644_vm1, %v2621_v54  ;;  %v9890_v54 = vld [vmem:[%s10185_s21 + $0x30] sm:$0xff]  ;;  %s11674_s21 = sld [smem:[#allocation34_spill]] }
0x142b   :  { %8386 = vmatpush3.bf16.xpose.msra.mxu1 %v2638_v26 }
0x142d   :  { %8885 = vrot.lane.b32.xlu1 %v8879_v15, %s10153_s6  ;;  %8895 = vrot.lane.b32.xlu0 %v8894_v25, %s10151_s5 }
0x1431   :  { %8890 = vrot.lane.b32.xlu1 %v8894_v25, %s10152_s19 }
0x1435   :  { %8900 = vrot.lane.b32.xlu1 %v8894_v25, %s10153_s6 }
0x149b   :  { %v8881_v28 = vpop.permute.xlu1 %8880  ;;  %v8876_v29 = vpop.permute.xlu0 %8875 }
0x149c   :  { %v8878_v30 = vunpack.i.h.bf16 %v8876_v29  ;;  %v8877_v27 = vunpack.i.l.bf16 %v8876_v29  ;;  %v8883_v31 = vunpack.i.h.bf16 %v8881_v28  ;;  %v8882_v33 = vunpack.i.l.bf16 %v8881_v28 }
0x149e   :  { %v2622_v34 = vpack.c.bf16 %v8878_v30, %v8877_v27  ;;  %v2623_v35 = vpack.c.bf16 %v8883_v31, %v8882_v33 }
0x149f   :  { %v8886_v37 = vpop.permute.xlu1 %8885  ;;  %v8896_v22 = vpop.permute.xlu0 %8895 }
0x14a0   :  { %8682 = vmatprep.subr.msk.bf16.mxu1 %vm644_vm1, %v2622_v34  ;;  %v2641_v36 = vsel %vm644_vm1, %v2622_v34, 0  ;;  %v8888_v38 = vunpack.i.h.bf16 %v8886_v37  ;;  %v8887_v39 = vunpack.i.l.bf16 %v8886_v37  ;;  %v2644_v42 = vsel %vm644_vm1, %v2623_v35, 0 }
0x14a1   :  { %8388 = vmatpush3.bf16.xpose.msra.mxu1 %v2641_v36  ;;  %v8898_v46 = vunpack.i.h.bf16 %v8896_v22  ;;  %v8897_v47 = vunpack.i.l.bf16 %v8896_v22 }
0x14a2   :  { %8683 = vmatprep.subr.msk.bf16.mxu1 %vm644_vm1, %v2623_v35  ;;  %v2624_v51 = vpack.c.bf16 %v8888_v38, %v8887_v39 }
0x14a3   :  { %v8891_v17 = vpop.permute.xlu1 %8890  ;;  %v2619_v48 = vpack.c.bf16 %v8898_v46, %v8897_v47 }
0x14a4   :  { %v2647_v43 = vsel %vm644_vm1, %v2624_v51, 0  ;;  %v8893_v44 = vunpack.i.h.bf16 %v8891_v17  ;;  %v8892_v45 = vunpack.i.l.bf16 %v8891_v17 }
0x14a6   :  { %v2618_v41 = vpack.c.bf16 %v8893_v44, %v8892_v45 }
0x14a7   :  { %v8901_v57 = vpop.permute.xlu1 %8900 }
0x14a8   :  { %v8903_v53 = vunpack.i.h.bf16 %v8901_v57  ;;  %v8902_v59 = vunpack.i.l.bf16 %v8901_v57 }
0x14a9   :  { %8390 = vmatpush3.bf16.xpose.msra.mxu1 %v2644_v42 }
0x14aa   :  { %8684 = vmatprep.subr.msk.bf16.mxu1 %vm644_vm1, %v2624_v51  ;;  %v2620_v60 = vpack.c.bf16 %v8903_v53, %v8902_v59 }
0x14b1   :  { %8392 = vmatpush3.bf16.xpose.msra.mxu1 %v2647_v43 }
0x14b2   :  { %8401 = vmatprep.subr.bf16.mxu1 %v2806_v56 }
0x14b8   :  { %8394 = vmatmul.mubr.msk.bf16.vlgmr.msra.gmra.mrb[36].mxu1 %vm644_vm1, %v2618_v41 }
0x14b9   :  { %8397 = vmatprep.mubr.msk.bf16.mxu1 %vm644_vm1, %v2619_v48  ;;  %8402 = vmatpush3.bf16.msra.mxu1 %v2806_v56 }
0x14c0   :  { %8398 = vmatmul.mubr.msk.bf16.gmra.mrb[40].mxu1 %vm644_vm1, %v2620_v60 }
0x158b   :  { %v8395_v61 = vpop.f32.mrb[36].mxu1 }
0x158c   :  { %v2683_v62 = vpop.f32.mrb[37].mxu1  ;;  %v2692_v7 = vadd.f32 %v9884_v6, %v8395_v61 }
0x158d   :  { %v2684_v0 = vadd.f32 %v9883_v63, %v2683_v62  ;;  %v8396_v1 = vpop.f32.mrb[38].mxu1 }
0x158e   :  { %v2686_v5 = vpop.f32.mrb[39].mxu1  ;;  %v2695_v13 = vadd.f32 %v9886_v12, %v8396_v1  ;;  %v2720_v16 = vsel %vm734_vm2, %v2692_v7, -inf }
0x158f   :  { %v2687_v9 = vadd.f32 %v9885_v8, %v2686_v5  ;;  %v2714_v10 = vsel %vm734_vm2, %v2684_v0, -inf }
0x1590   :  { %2715 = vmax.xlane.f32.xlu0 %v2714_v10  ;;  %v2723_v24 = vsel %vm734_vm2, %v2695_v13, -inf }
0x1591   :  { %v2717_v11 = vsel %vm734_vm2, %v2687_v9, -inf }
0x1592   :  { %2718 = vmax.xlane.f32.xlu1 %v2717_v11 }
0x1593   :  { %v8399_v14 = vpop.f32.mrb[40].mxu1 }
0x1594   :  { %v2699_v50 = vpop.f32.mrb[41].mxu1  ;;  %2721 = vmax.xlane.f32.xlu0 %v2720_v16  ;;  %v2708_v56 = vadd.f32 %v9890_v54, %v8399_v14 }
0x1595   :  { %v8400_v19 = vpop.f32.mrb[42].mxu1  ;;  %v2700_v21 = vadd.f32 %v9887_v20, %v2699_v50 }
0x1596   :  { %v2702_v40 = vpop.f32.mrb[43].mxu1  ;;  %v2711_v25 = vadd.f32 %v9889_v23, %v8400_v19  ;;  %v2732_v29 = vsel %vm734_vm2, %v2708_v56, -inf }
0x1597   :  { %v10853_v52 = vadd.f32 %v9888_v49, %v2702_v40  ;;  %v2726_v26 = vsel %vm734_vm2, %v2700_v21, -inf }
0x1598   :  { %2724 = vmax.xlane.f32.xlu0 %v2723_v24  ;;  %v2735_v28 = vsel %vm734_vm2, %v2711_v25, -inf }
0x1599   :  { %v2729_v15 = vsel %vm734_vm2, %v10853_v52, -inf }
0x159a   :  { %2730 = vmax.xlane.f32.xlu1 %v2729_v15 }
0x159c   :  { %2727 = vmax.xlane.f32.xlu0 %v2726_v26 }
0x159e   :  { %2736 = vmax.xlane.f32.xlu1 %v2735_v28 }
0x15a0   :  { %2733 = vmax.xlane.f32.xlu0 %v2732_v29 }
0x161d   :  { %v2716_v30 = vpop.xlane.xlu0 %2715 }
0x161e   :  { %v2738_v27 = vsub.f32 %v2684_v0, %v2716_v30 }
0x161f   :  { %v2719_v31 = vpop.xlane.xlu1 %2718 }
0x1620   :  { %v2746_v35 = vmul.f32 1.442695, %v2738_v27  ;;  %v2739_v36 = vsub.f32 %v2687_v9, %v2719_v31 }
0x1621   :  { %v2722_v33 = vpop.xlane.xlu0 %2721 }
0x1622   :  { %v2740_v34 = vsub.f32 %v2692_v7, %v2722_v33  ;;  %v2748_v51 = vmul.f32 1.442695, %v2739_v36 }
0x1624   :  { %v2750_v37 = vmul.f32 1.442695, %v2740_v34 }
0x1625   :  { %v2725_v38 = vpop.xlane.xlu0 %2724 }
0x1626   :  { %9683 = vpow2.f32 %v2750_v37  ;;  %v2741_v39 = vsub.f32 %v2695_v13, %v2725_v38 }
0x1627   :  { %9685 = vpow2.f32 %v2746_v35  ;;  %v2731_v5 = vpop.xlane.xlu1 %2730 }
0x1628   :  { %v2752_v42 = vmul.f32 1.442695, %v2741_v39  ;;  %v2743_v8 = vsub.f32 %v10853_v52, %v2731_v5 }
0x1629   :  { %v2728_v17 = vpop.xlane.xlu0 %2727 }
0x162a   :  { %9687 = vpow2.f32 %v2752_v42  ;;  %v2742_v22 = vsub.f32 %v2700_v21, %v2728_v17  ;;  %v2756_v10 = vmul.f32 1.442695, %v2743_v8 }
0x162b   :  { %9689 = vpow2.f32 %v2748_v51  ;;  %v2737_v6 = vpop.xlane.xlu1 %2736 }
0x162c   :  { %v2754_v46 = vmul.f32 1.442695, %v2742_v22  ;;  %v2745_v7 = vsub.f32 %v2711_v25, %v2737_v6 }
0x162d   :  { %v2734_v43 = vpop.xlane.xlu0 %2733 }
0x162e   :  { %v2744_v44 = vsub.f32 %v2708_v56, %v2734_v43  ;;  %v2760_v9 = vmul.f32 1.442695, %v2745_v7 }
0x1630   :  { %v10863_v45 = vpop.eup %9683  ;;  %v2758_v47 = vmul.f32 1.442695, %v2744_v44 }
0x1631   :  { %v2768_v41 = vsel %vm734_vm2, %v10863_v45, 0.0  ;;  %v9686_v48 = vpop.eup %9685 }
0x1632   :  { %9691 = vpow2.f32 %v2758_v47  ;;  %2769 = vadd.xlane.f32.xlu0 %v2768_v41  ;;  %v2762_v53 = vsel %vm734_vm2, %v9686_v48, 0.0 }
0x1633   :  { %9693 = vpow2.f32 %v2754_v46 }
0x1634   :  { %v10867_v57 = vpop.eup %9687  ;;  %9695 = vpow2.f32 %v2760_v9  ;;  %v9274_v9 = vld [vmem:[%s10205_s8 + $0x78] sm:$0xff]  }
0x1635   :  { %v2771_v59 = vsel %vm734_vm2, %v10867_v57, 0.0  ;;  %v9690_v60 = vpop.eup %9689  ;;  %9697 = vpow2.f32 %v2756_v10 }
0x1636   :  { %2763 = vadd.xlane.f32.xlu0 %v2762_v53  ;;  %2772 = vadd.xlane.f32.xlu1 %v2771_v59  ;;  %v2765_v61 = vsel %vm734_vm2, %v9690_v60, 0.0  ;;  %v9267_v53 = vld [vmem:[%s10205_s8 + $0x40] sm:$0xff]   ;;  %v9268_v59 = vld [vmem:[%s10205_s8 + $0x48] sm:$0xff]  }
0x163a   :  { %2766 = vadd.xlane.f32.xlu1 %v2765_v61  ;;  %v9270_v61 = vld [vmem:[%s10205_s8 + $0x58] sm:$0xff]  }
0x163c   :  { %v10873_v62 = vpop.eup %9691 }
0x163d   :  { %v2780_v63 = vsel %vm734_vm2, %v10873_v62, 0.0  ;;  %v10877_v0 = vpop.eup %9693 }
0x163e   :  { %2781 = vadd.xlane.f32.xlu0 %v2780_v63  ;;  %v2774_v1 = vsel %vm734_vm2, %v10877_v0, 0.0  ;;  %v9696_v11 = vpop.eup %9695  ;;  %v9272_v63 = vld [vmem:[%s10205_s8 + $0x68] sm:$0xff]  }
0x163f   :  { %v2783_v12 = vsel %vm734_vm2, %v9696_v11, 0.0  ;;  %v9698_v13 = vpop.eup %9697 }
0x1640   :  { %v2777_v14 = vsel %vm734_vm2, %v9698_v13, 0.0 }
0x1642   :  { %2775 = vadd.xlane.f32.xlu0 %v2774_v1 }
0x164b   :  { %8910 = vrot.lane.b32.xlu1 %v10825_v18, %s10151_s5 }
0x1658   :  { %8905 = vrot.lane.b32.xlu0 %v10825_v18, %s10152_s19 }
0x166f   :  { %2784 = vadd.xlane.f32.xlu1 %v2783_v12 }
0x1673   :  { %2778 = vadd.xlane.f32.xlu1 %v2777_v14 }
0x1684   :  { %8915 = vrot.lane.b32.xlu1 %v10825_v18, %s10153_s6 }
0x16bf   :  { %v2770_v16 = vpop.xlane.xlu0 %2769 }
0x16c3   :  { %v2773_v50 = vpop.xlane.xlu1 %2772  ;;  %v2764_v19 = vpop.xlane.xlu0 %2763 }
0x16c4   :  { %9699 = vrcp.f32 %v2764_v19 }
0x16c7   :  { %v2767_v40 = vpop.xlane.xlu1 %2766 }
0x16c8   :  { %9701 = vrcp.f32 %v2767_v40 }
0x16c9   :  { %9703 = vrcp.f32 %v2773_v50 }
0x16ca   :  { %9705 = vrcp.f32 %v2770_v16 }
0x16cb   :  { %v2782_v20 = vpop.xlane.xlu0 %2781  ;;  %v8911_v52 = vpop.permute.xlu1 %8910 }
0x16cc   :  { %v8913_v54 = vunpack.i.h.bf16 %v8911_v52  ;;  %v8912_v56 = vunpack.i.l.bf16 %v8911_v52 }
0x16ce   :  { %v9700_v49 = vpop.eup %9699  ;;  %v2808_v30 = vpack.c.bf16 %v8913_v54, %v8912_v56 }
0x16cf   :  { %v2776_v21 = vpop.xlane.xlu0 %2775  ;;  %v2794_v25 = vmul.f32 %v9700_v49, %v9686_v48 }
0x16d0   :  { %9707 = vrcp.f32 %v2776_v21 }
0x16d2   :  { %v9702_v24 = vpop.eup %9701 }
0x16d3   :  { %v8906_v23 = vpop.permute.xlu0 %8905  ;;  %v2795_v15 = vmul.f32 %v9702_v24, %v9690_v60  ;;  %v9704_v33 = vpop.eup %9703  ;;  %v9269_v60 = vld [vmem:[%s10205_s8 + $0x50] sm:$0xff]  }
0x16d4   :  { %v8908_v26 = vunpack.i.h.bf16 %v8906_v23  ;;  %v8907_v28 = vunpack.i.l.bf16 %v8906_v23  ;;  %v9706_v37 = vpop.eup %9705  ;;  %v2797_v38 = vmul.f32 %v9704_v33, %v10867_v57 }
0x16d5   :  { %v2802_v29 = vpack.c.bf16 %v2795_v15, %v2794_v25  ;;  %v2796_v42 = vmul.f32 %v9706_v37, %v10863_v45 }
0x16d6   :  { %v2807_v18 = vpack.c.bf16 %v8908_v26, %v8907_v28 }
0x16d7   :  { %8409 = vmatprep.mubr.msk.bf16.mxu1 %vm734_vm2, %v2802_v29  ;;  %v2803_v22 = vpack.c.bf16 %v2797_v38, %v2796_v42  ;;  %v9275_v38 = vld [vmem:[%s10235_s12 + $0x80] ss:$8 sps:$4 sm:$0xff]   ;;  %v9283_v42 = vld [vmem:[%s10235_s12 + $0xa4] ss:$8 sps:$4 sm:$0xff]  }
0x16d8   :  { %8403 = vmatprep.subr.bf16.mxu1 %v2807_v18 }
0x16d9   :  { %8404 = vmatpush3.bf16.msra.mxu1 %v2807_v18 }
0x16da   :  { %8405 = vmatprep.subr.bf16.mxu1 %v2808_v30  ;;  %v9708_v51 = vpop.eup %9707 }
0x16db   :  { %v2798_v44 = vmul.f32 %v9708_v51, %v10877_v0  ;;  %v9273_v0 = vld [vmem:[%s10205_s8 + $0x70] sm:$0xff]  }
0x16dc   :  { %v9280_v51 = vld [vmem:[%s10235_s12 + $0x94] ss:$8 sps:$4 sm:$0xff]  }
0x16dd   :  { %8406 = vmatpush3.bf16.msra.mxu1 %v2808_v30  ;;  %v7408_v30 = vld [vmem:[%s10210_s14 + $0x1] ss:$0 sm:$0xff]  ;;  %s11677_s14 = sld [smem:[#allocation36_spill]] }
0x16fc   :  { %v2785_v27 = vpop.xlane.xlu1 %2784 }
0x1700   :  { %v2779_v31 = vpop.xlane.xlu1 %2778 }
0x1701   :  { %9709 = vrcp.f32 %v2779_v31 }
0x1702   :  { %9711 = vrcp.f32 %v2785_v27 }
0x1703   :  { %9713 = vrcp.f32 %v2782_v20 }
0x1704   :  { %v8916_v34 = vpop.permute.xlu1 %8915 }
0x1705   :  { %v8918_v35 = vunpack.i.h.bf16 %v8916_v34  ;;  %v8917_v36 = vunpack.i.l.bf16 %v8916_v34 }
0x1707   :  { %v2809_v39 = vpack.c.bf16 %v8918_v35, %v8917_v36 }
0x1709   :  { %8407 = vmatprep.subr.bf16.mxu1 %v2809_v39 }
0x170a   :  { %8408 = vmatpush3.bf16.msra.mxu1 %v2809_v39  ;;  %v9277_v39 = vld [vmem:[%s10235_s12 + $0x84] ss:$8 sps:$4 sm:$0xff]  }
0x170b   :  { %v9710_v17 = vpop.eup %9709  ;;  %8417 = vmatprep.subr.bf16.mxu1 %v10148_v4 }
0x170c   :  { %v9712_v43 = vpop.eup %9711  ;;  %v2799_v46 = vmul.f32 %v9710_v17, %v9698_v13  ;;  %v9299_v17 = vld [vmem:[%s10225_s30 + $0x40] sm:$0xff]  }
0x170d   :  { %8410 = vmatmul.mubr.msk.bf16.vlgmr.msra.gmra.mrb[44].mxu1 %vm734_vm2, %v2803_v22  ;;  %v9714_v47 = vpop.eup %9713  ;;  %v2801_v48 = vmul.f32 %v9712_v43, %v9696_v11  ;;  %8438 = vmatpush3.bf16.msra.mxu0 %v9299_v17  ;;  %v9286_v22 = vld [vmem:[%s10235_s12 + $0xb4] ss:$8 sps:$4 sm:$0xff]   ;;  %v9284_v43 = vld [vmem:[%s10235_s12 + $0xb0] ss:$8 sps:$4 sm:$0xff]  }
0x170e   :  { %v2804_v41 = vpack.c.bf16 %v2799_v46, %v2798_v44  ;;  %v2800_v45 = vmul.f32 %v9714_v47, %v10873_v62  ;;  %8418 = vmatpush3.bf16.msra.mxu1 %v9267_v53  ;;  %v9271_v62 = vld [vmem:[%s10205_s8 + $0x60] sm:$0xff]   ;;  %8439 = vmatprep.subr.bf16.mxu0 %v10148_v4  ;;  %v9292_v47 = vld [vmem:[%s10235_s12 + $0xd4] ss:$8 sps:$4 sm:$0xff]   ;;  %v9296_v53 = vld [vmem:[%s10235_s12 + $0xf0] ss:$8 sps:$4 sm:$0xff]   ;;  %s11676_s8 = sld [smem:[#allocation37_spill]] }
0x170f   :  { %8419 = vmatprep.subr.bf16.mxu1 %v10148_v4  ;;  %v9289_v44 = vld [vmem:[%s10235_s12 + $0xc4] ss:$8 sps:$4 sm:$0xff]   ;;  %v9287_v46 = vld [vmem:[%s10235_s12 + $0xc0] ss:$8 sps:$4 sm:$0xff]  }
0x1710   :  { %8413 = vmatprep.mubr.msk.bf16.mxu1 %vm734_vm2, %v2804_v41  ;;  %v2805_v57 = vpack.c.bf16 %v2801_v48, %v2800_v45  ;;  %v9290_v41 = vld [vmem:[%s10235_s12 + $0xd0] ss:$8 sps:$4 sm:$0xff]   ;;  %v9295_v48 = vld [vmem:[%s10235_s12 + $0xe4] ss:$8 sps:$4 sm:$0xff]   ;;  %v9293_v45 = vld [vmem:[%s10235_s12 + $0xe0] ss:$8 sps:$4 sm:$0xff]  }
0x1712   :  { %8420 = vmatpush3.bf16.msra.mxu1 %v9268_v59  ;;  %v9891_v59 = vld [vmem:[%s11660_s13] sm:$0xff]  }
0x1713   :  { %8421 = vmatprep.subr.bf16.mxu1 %v10148_v4 }
0x1715   :  { %8414 = vmatmul.mubr.msk.bf16.gmra.mrb[48].mxu1 %vm734_vm2, %v2805_v57  ;;  %v9298_v57 = vld [vmem:[%s10235_s12 + $0xf4] ss:$8 sps:$4 sm:$0xff]  }
0x1716   :  { %8433 = vmatprep.mubr.msk.bf16.mxu1 %vm10150_vm0, %v10148_v4  ;;  %8422 = vmatpush3.bf16.msra.mxu1 %v9269_v60 }
0x1717   :  { %8423 = vmatprep.subr.bf16.mxu1 %v10148_v4 }
0x171a   :  { %8424 = vmatpush3.bf16.msra.mxu1 %v9270_v61 }
0x171b   :  { %8425 = vmatprep.subr.bf16.mxu1 %v10148_v4 }
0x171e   :  { %8426 = vmatpush3.bf16.msra.mxu1 %v9271_v62 }
0x171f   :  { %8427 = vmatprep.subr.bf16.mxu1 %v10148_v4 }
0x1722   :  { %8428 = vmatpush3.bf16.msra.mxu1 %v9272_v63 }
0x1723   :  { %8429 = vmatprep.subr.bf16.mxu1 %v10148_v4 }
0x1726   :  { %8430 = vmatpush3.bf16.msra.mxu1 %v9273_v0 }
0x1727   :  { %8431 = vmatprep.subr.bf16.mxu1 %v10148_v4 }
0x172a   :  { %8432 = vmatpush3.bf16.msra.mxu1 %v9274_v9  ;;  %v9302_v9 = vld [vmem:[%s10225_s30 + $0x58] sm:$0xff]  }
0x172b   :  { %3303 = vmatprep.subr.bf16.mxu1 %v9277_v39 }
0x17e0   :  { %v8411_v1 = vpop.f32.mrb[44].mxu1 }
0x17e1   :  { %v2856_v5 = vpop.f32.mrb[45].mxu1 }
0x17e2   :  { %v8412_v6 = vpop.f32.mrb[46].mxu1 }
0x17e3   :  { %v8919_v7 = vpack.i.bf16 %v8412_v6, %v8411_v1  ;;  %v2859_v8 = vpop.f32.mrb[47].mxu1 }
0x17e5   :  { %8920 = vrot.lane.b32.xlu1 %v8919_v7, %s10153_s6  ;;  %v9300_v7 = vld [vmem:[%s10225_s30 + $0x48] sm:$0xff]  }
0x17e6   :  { %8440 = vmatpush3.bf16.msra.mxu0 %v9300_v7 }
0x17e7   :  { %8441 = vmatprep.subr.bf16.mxu0 %v10148_v4 }
0x17e8   :  { %v8415_v10 = vpop.f32.mrb[48].mxu1 }
0x17e9   :  { %v2872_v11 = vpop.f32.mrb[49].mxu1 }
0x17ea   :  { %v8416_v12 = vpop.f32.mrb[50].mxu1 }
0x17eb   :  { %v8929_v13 = vpack.i.bf16 %v8416_v12, %v8415_v10  ;;  %v2875_v14 = vpop.f32.mrb[51].mxu1  ;;  %v9303_v10 = vld [vmem:[%s10225_s30 + $0x60] sm:$0xff]   ;;  %v9305_v12 = vld [vmem:[%s10225_s30 + $0x70] sm:$0xff]  }
0x17ec   :  { %v8924_v16 = vpack.i.bf16 %v2875_v14, %v2872_v11  ;;  %v9304_v11 = vld [vmem:[%s10225_s30 + $0x68] sm:$0xff]   ;;  %v7455_v14 = vld [vmem:[%s11661_s26 + $0x2] sm:$0x3] }
0x17ed   :  { %8930 = vrot.lane.b32.xlu1 %v8929_v13, %s10152_s19  ;;  %v9306_v13 = vld [vmem:[%s10225_s30 + $0x78] sm:$0xff]  }
0x17ee   :  { %8925 = vrot.lane.b32.xlu0 %v8924_v16, %s10151_s5  ;;  %v3216_v16 = vrot.slane %v7455_v14, %v10458_v55 }
0x1857   :  { %v8921_v50 = vpop.permute.xlu1 %8920 }
0x1858   :  { %v8923_v19 = vunpack.i.h.bf16 %v8921_v50  ;;  %v8922_v40 = vunpack.i.l.bf16 %v8921_v50  ;;  %v3220_v50 = vrot.slane %v7455_v14, %v10463_v58 }
0x185a   :  { %v2911_v24 = vsel %vm644_vm1, %v2856_v5, %v8922_v40  ;;  %v2912_v23 = vsel %vm644_vm1, %v2859_v8, %v8923_v19  ;;  %v9301_v8 = vld [vmem:[%s10225_s30 + $0x50] sm:$0xff]   ;;  %s11678_s30 = sld [smem:[#allocation38_spill]] }
0x185b   :  { %8442 = vmatpush3.bf16.msra.mxu0 %v9301_v8 }
0x185c   :  { %8443 = vmatprep.subr.bf16.mxu0 %v10148_v4 }
0x185f   :  { %v8931_v20 = vpop.permute.xlu1 %8930  ;;  %8444 = vmatpush3.bf16.msra.mxu0 %v9302_v9 }
0x1860   :  { %v8926_v21 = vpop.permute.xlu0 %8925  ;;  %v8933_v25 = vunpack.i.h.bf16 %v8931_v20  ;;  %v8932_v15 = vunpack.i.l.bf16 %v8931_v20  ;;  %8445 = vmatprep.subr.bf16.mxu0 %v10148_v4 }
0x1861   :  { %v8928_v49 = vunpack.i.h.bf16 %v8926_v21  ;;  %v8927_v52 = vunpack.i.l.bf16 %v8926_v21 }
0x1863   :  { %v2914_v54 = vsel %vm734_vm2, %v2912_v23, %v8928_v49  ;;  %v2913_v56 = vsel %vm734_vm2, %v2911_v24, %v8927_v52  ;;  %8446 = vmatpush3.bf16.msra.mxu0 %v9303_v10 }
0x1864   :  { %v2916_v26 = vsel %vm936_vm3, %v2914_v54, %v8933_v25  ;;  %v2915_v28 = vsel %vm936_vm3, %v2913_v56, %v8932_v15  ;;  %8447 = vmatprep.subr.bf16.mxu0 %v10148_v4 }
0x1865   :  { %v2934_v29 = vpack.c.bf16 %v2916_v26, %v2915_v28 }
0x1867   :  { %8434 = vmatmul.mubr.bf16.vlgmr.msra.gmra.mrb[52].mxu1 %v2934_v29  ;;  %8448 = vmatpush3.bf16.msra.mxu0 %v9304_v11 }
0x1868   :  { %3335 = vmatprep.mubr.bf16.mxu1 %v10149_v32  ;;  %3304 = vmatpush1.bf16.msra.mxu1 %v9275_v38 }
0x1869   :  { %3305 = vmatprep.subr.bf16.mxu1 %v9280_v51  ;;  %8449 = vmatprep.subr.bf16.mxu0 %v10148_v4 }
0x186b   :  { %8450 = vmatpush3.bf16.msra.mxu0 %v9305_v12 }
0x186c   :  { %8451 = vmatprep.subr.bf16.mxu0 %v10148_v4 }
0x186f   :  { %8452 = vmatpush3.bf16.msra.mxu0 %v9306_v13 }
0x193a   :  { %v3017_v18 = vpop.f32.mrb[52].mxu1 }
0x193b   :  { %v3024_v27 = vadd.f32 %v3017_v18, %v10811_v2  ;;  %v8435_v31 = vpop.f32.mrb[53].mxu1  ;;  %v9278_v2 = vld [vmem:[%s10235_s12 + $0x90] ss:$8 sps:$4 sm:$0xff]  }
0x193c   :  { %v3020_v33 = vpop.f32.mrb[54].mxu1  ;;  %3306 = vmatpush1.bf16.msra.mxu1 %v9278_v2 }
0x193d   :  { %v3034_v34 = vadd.f32 %v7408_v30, %v3024_v27  ;;  %v3025_v35 = vadd.f32 %v3020_v33, %v10813_v3  ;;  %v8436_v36 = vpop.f32.mrb[55].mxu1  ;;  %v9281_v3 = vld [vmem:[%s10235_s12 + $0xa0] ss:$8 sps:$4 sm:$0xff]   ;;  %3307 = vmatprep.subr.bf16.mxu1 %v9283_v42  ;;  %s11679_s12 = sld [smem:[#allocation35_spill]] }
0x193e   :  { %v7411_v33 = vld [vmem:[%s11662_s28 + $0x1] ss:$0 sm:$0xff] }
0x193f   :  { %v3035_v37 = vadd.f32 %v7408_v30, %v3025_v35  ;;  %3040 = vadd.xlane.f32.xlu0 %v3034_v34 }
0x1940   :  { %3308 = vmatpush1.bf16.msra.mxu1 %v9281_v3 }
0x1941   :  { %3042 = vadd.xlane.f32.xlu1 %v3035_v37  ;;  %3309 = vmatprep.subr.bf16.mxu1 %v9286_v22 }
0x1944   :  { %3310 = vmatpush1.bf16.msra.mxu1 %v9284_v43 }
0x1945   :  { %3311 = vmatprep.subr.bf16.mxu1 %v9289_v44 }
0x1948   :  { %3312 = vmatpush1.bf16.msra.mxu1 %v9287_v46 }
0x1949   :  { %3313 = vmatprep.subr.bf16.mxu1 %v9292_v47 }
0x194c   :  { %3314 = vmatpush1.bf16.msra.mxu1 %v9290_v41 }
0x194d   :  { %3315 = vmatprep.subr.bf16.mxu1 %v9295_v48 }
0x1950   :  { %3316 = vmatpush1.bf16.msra.mxu1 %v9293_v45 }
0x1951   :  { %3317 = vmatprep.subr.bf16.mxu1 %v9298_v57 }
0x1954   :  { %3318 = vmatpush1.bf16.msra.mxu1 %v9296_v53 }
0x1957   :  { %3336 = vmatmul.mubr.bf16.vlgmr.msra.gmra.mrb[56].mxu1 %v9891_v59 }
0x19cc   :  { %v3041_v60 = vpop.xlane.xlu0 %3040 }
0x19cd   :  { %v3044_v61 = vmul.f32 0.0078125, %v3041_v60 }
0x19ce   :  { %v3043_v62 = vpop.xlane.xlu1 %3042 }
0x19cf   :  { %v3046_v63 = vsub.f32 %v3034_v34, %v3044_v61  ;;  %v3045_v0 = vmul.f32 0.0078125, %v3043_v62  ;;  %v7430_v62 = vld [vmem:[%s11664_s1 + $0x1] ss:$0 sm:$0xff] }
0x19d1   :  { %v3047_v1 = vsub.f32 %v3035_v37, %v3045_v0  ;;  %v3048_v5 = vmul.f32 %v3046_v63, %v3046_v63  ;;  %v7412_v37 = vld [vmem:[%s11663_s0 + $0x1] ss:$0 sm:$0xff] }
0x19d3   :  { %3050 = vadd.xlane.f32.xlu0 %v3048_v5  ;;  %v3049_v6 = vmul.f32 %v3047_v1, %v3047_v1 }
0x19d7   :  { %3052 = vadd.xlane.f32.xlu0 %v3049_v6 }
0x1a2a   :  { %v3337_v19 = vpop.f32.mrb[56].mxu1 }
0x1a2b   :  { %v3338_v40 = vadd.f32 %v3337_v19, %v3216_v16  ;;  %v3339_v20 = vpop.f32.mrb[57].mxu1 }
0x1a2c   :  { %v10964_v21 = vadd.f32 %v3339_v20, %v3220_v50  ;;  %v3341_v49 = vpop.f32.mrb[58].mxu1 }
0x1a2d   :  { %v3342_v52 = vadd.f32 %v3341_v49, %v3216_v16  ;;  %v3343_v24 = vpop.f32.mrb[59].mxu1 }
0x1a2e   :  { %v10966_v23 = vadd.f32 %v3343_v24, %v3220_v50 }
0x1a2f   :  { %v8934_v25 = vpack.i.bf16 %v3342_v52, %v3338_v40  ;;  %v3410_v15 = vpack.c.bf16 %v3342_v52, %v3338_v40 }
0x1a30   :  { %v3595_v54 = vpack.c.bf16 %v10966_v23, %v10964_v21 }
0x1a31   :  { %8935 = vrot.lane.b32.xlu0 %v8934_v25, %s10152_s19  ;;  %8940 = vrot.lane.b32.xlu1 %v8934_v25, %s10151_s5  ;;  %v3427_v42 = vsel %vm644_vm1, %v3410_v15, 0 }
0x1a32   :  { %8473 = vmatprep.subr.bf16.mxu1 %v3595_v54  ;;  %8685 = vmatprep.subr.msk.bf16.mxu0 %vm644_vm1, %v3410_v15  ;;  %v9892_v15 = vld [vmem:[%s11665_s2] sm:$0xff] }
0x1a33   :  { %8474 = vmatpush3.bf16.msra.mxu1 %v3595_v54 }
0x1a35   :  { %8945 = vrot.lane.b32.xlu1 %v8934_v25, %s10153_s6 }
0x1a60   :  { %v3051_v56 = vpop.xlane.xlu0 %3050 }
0x1a61   :  { %v3054_v26 = vmul.f32 0.0078125, %v3051_v56 }
0x1a63   :  { %v3056_v28 = vadd.f32 1e-05, %v3054_v26 }
0x1a64   :  { %v3053_v29 = vpop.xlane.xlu0 %3052 }
0x1a65   :  { %9715 = vrsqrt.f32 %v3056_v28  ;;  %v3055_v18 = vmul.f32 0.0078125, %v3053_v29  ;;  %v9893_v28 = vld [vmem:[%s11665_s2 + $0x10] sm:$0xff] }
0x1a67   :  { %v3057_v30 = vadd.f32 1e-05, %v3055_v18  ;;  %v9894_v18 = vld [vmem:[%s11665_s2 + $0x8] sm:$0xff] }
0x1a69   :  { %9717 = vrsqrt.f32 %v3057_v30 }
0x1a6f   :  { %v9716_v27 = vpop.eup %9715 }
0x1a70   :  { %v3060_v31 = vmul.f32 %v9716_v27, %v3046_v63 }
0x1a72   :  { %v3068_v36 = vmul.f32 %v7411_v33, %v3060_v31 }
0x1a73   :  { %v9718_v34 = vpop.eup %9717 }
0x1a74   :  { %v3061_v35 = vmul.f32 %v9718_v34, %v3047_v1  ;;  %v10976_v39 = vadd.f32 %v7412_v37, %v3068_v36 }
0x1a76   :  { %v3069_v38 = vmul.f32 %v7411_v33, %v3061_v35  ;;  %v9895_v33 = vld [vmem:[%s11665_s2 + $0x18] sm:$0xff] }
0x1a78   :  { %v10978_v51 = vadd.f32 %v7412_v37, %v3069_v38 }
0x1a7a   :  { %v3095_v2 = vpack.c.bf16 %v10978_v51, %v10976_v39 }
0x1a7c   :  { %8454 = vmatmul.mubr.bf16.vlgmr.msra.gmra.mrb[36].mxu0 %v3095_v2 }
0x1a7d   :  { %8458 = vmatpush3.bf16.xpose.msra.mxu0 %v3427_v42  ;;  %v9896_v42 = vld [vmem:[%s11665_s2 + $0x20] sm:$0xff] }
0x1aa3   :  { %v8936_v17 = vpop.permute.xlu0 %8935  ;;  %v8941_v3 = vpop.permute.xlu1 %8940 }
0x1aa4   :  { %v8938_v22 = vunpack.i.h.bf16 %v8936_v17  ;;  %v8937_v43 = vunpack.i.l.bf16 %v8936_v17  ;;  %v8943_v44 = vunpack.i.h.bf16 %v8941_v3  ;;  %v8942_v46 = vunpack.i.l.bf16 %v8941_v3  ;;  %v9897_v3 = vld [vmem:[%s11665_s2 + $0x28] sm:$0xff] }
0x1aa6   :  { %v3411_v47 = vpack.c.bf16 %v8938_v22, %v8937_v43  ;;  %v3412_v41 = vpack.c.bf16 %v8943_v44, %v8942_v46  ;;  %v9898_v44 = vld [vmem:[%s11665_s2 + $0x38] sm:$0xff] }
0x1aa7   :  { %v8946_v48 = vpop.permute.xlu1 %8945 }
0x1aa8   :  { %8686 = vmatprep.subr.msk.bf16.mxu0 %vm644_vm1, %v3411_v47  ;;  %v3430_v45 = vsel %vm644_vm1, %v3411_v47, 0  ;;  %v8948_v57 = vunpack.i.h.bf16 %v8946_v48  ;;  %v8947_v53 = vunpack.i.l.bf16 %v8946_v48  ;;  %v3433_v59 = vsel %vm644_vm1, %v3412_v41, 0 }
0x1aa9   :  { %8460 = vmatpush3.bf16.xpose.msra.mxu0 %v3430_v45 }
0x1aaa   :  { %8687 = vmatprep.subr.msk.bf16.mxu0 %vm644_vm1, %v3412_v41  ;;  %v3413_v60 = vpack.c.bf16 %v8948_v57, %v8947_v53  ;;  %v9899_v41 = vld [vmem:[%s11665_s2 + $0x30] sm:$0xff] }
0x1aac   :  { %v3436_v61 = vsel %vm644_vm1, %v3413_v60, 0 }
0x1ab1   :  { %8462 = vmatpush3.bf16.xpose.msra.mxu0 %v3433_v59 }
0x1ab2   :  { %8688 = vmatprep.subr.msk.bf16.mxu0 %vm644_vm1, %v3413_v60 }
0x1ab9   :  { %8464 = vmatpush3.bf16.xpose.msra.mxu0 %v3436_v61 }
0x1aba   :  { %8489 = vmatprep.subr.bf16.mxu0 %v10148_v4 }
0x1b4f   :  { %v3186_v63 = vpop.f32.mrb[36].mxu0 }
0x1b50   :  { %v8455_v0 = vpop.f32.mrb[37].mxu0  ;;  %v3187_v5 = vadd.f32 %v7430_v62, %v3186_v63 }
0x1b51   :  { %v3189_v1 = vpop.f32.mrb[38].mxu0 }
0x1b52   :  { %v3190_v6 = vadd.f32 %v7430_v62, %v3189_v1  ;;  %v8456_v7 = vpop.f32.mrb[39].mxu0 }
0x1b54   :  { %v3406_v8 = vpack.c.bf16 %v3190_v6, %v3187_v5  ;;  %v8949_v9 = vpack.i.bf16 %v3190_v6, %v3187_v5 }
0x1b56   :  { %8465 = vmatprep.mubr.msk.bf16.mxu0 %vm644_vm1, %v3406_v8  ;;  %8950 = vrot.lane.b32.xlu1 %v8949_v9, %s10152_s19 }
0x1b57   :  { %8955 = vrot.lane.b32.xlu0 %v8949_v9, %s10151_s5 }
0x1b5a   :  { %8960 = vrot.lane.b32.xlu1 %v8949_v9, %s10153_s6 }
0x1bc8   :  { %v8951_v10 = vpop.permute.xlu1 %8950 }
0x1bc9   :  { %v8953_v11 = vunpack.i.h.bf16 %v8951_v10  ;;  %v8952_v12 = vunpack.i.l.bf16 %v8951_v10  ;;  %v8956_v13 = vpop.permute.xlu0 %8955 }
0x1bca   :  { %v8958_v14 = vunpack.i.h.bf16 %v8956_v13  ;;  %v8957_v16 = vunpack.i.l.bf16 %v8956_v13 }
0x1bcb   :  { %v3407_v50 = vpack.c.bf16 %v8953_v11, %v8952_v12 }
0x1bcc   :  { %v3408_v19 = vpack.c.bf16 %v8958_v14, %v8957_v16  ;;  %v8961_v40 = vpop.permute.xlu1 %8960 }
0x1bcd   :  { %8466 = vmatmul.mubr.msk.bf16.vlgmr.msra.gmra.mrb[40].mxu0 %vm644_vm1, %v3407_v50  ;;  %v8963_v20 = vunpack.i.h.bf16 %v8961_v40  ;;  %v8962_v49 = vunpack.i.l.bf16 %v8961_v40 }
0x1bce   :  { %8469 = vmatprep.mubr.msk.bf16.mxu0 %vm644_vm1, %v3408_v19 }
0x1bcf   :  { %v3409_v52 = vpack.c.bf16 %v8963_v20, %v8962_v49 }
0x1bd5   :  { %8470 = vmatmul.mubr.msk.bf16.gmra.mrb[44].mxu0 %vm644_vm1, %v3409_v52 }
0x1bd6   :  { %8505 = vmatprep.mubr.msk.bf16.mxu0 %vm10150_vm0, %v10148_v4 }
0x1ca0   :  { %v8467_v24 = vpop.f32.mrb[40].mxu0 }
0x1ca1   :  { %v3472_v25 = vpop.f32.mrb[41].mxu0  ;;  %v3481_v29 = vadd.f32 %v9893_v28, %v8467_v24  ;;  %v8969_v28 = vpack.i.bf16 %v10966_v23, %v10964_v21 }
0x1ca2   :  { %v3473_v54 = vadd.f32 %v9892_v15, %v3472_v25  ;;  %v8468_v56 = vpop.f32.mrb[42].mxu0 }
0x1ca3   :  { %v3475_v26 = vpop.f32.mrb[43].mxu0  ;;  %v3484_v34 = vadd.f32 %v9895_v33, %v8468_v56  ;;  %v3509_v36 = vsel %vm734_vm2, %v3481_v29, -inf }
0x1ca4   :  { %v3476_v30 = vadd.f32 %v9894_v18, %v3475_v26  ;;  %v3503_v27 = vsel %vm734_vm2, %v3473_v54, -inf }
0x1ca5   :  { %3504 = vmax.xlane.f32.xlu0 %v3503_v27  ;;  %v3512_v43 = vsel %vm734_vm2, %v3484_v34, -inf }
0x1ca6   :  { %v3506_v31 = vsel %vm734_vm2, %v3476_v30, -inf }
0x1ca7   :  { %3507 = vmax.xlane.f32.xlu1 %v3506_v31 }
0x1ca8   :  { %v8471_v35 = vpop.f32.mrb[44].mxu0 }
0x1ca9   :  { %v3488_v37 = vpop.f32.mrb[45].mxu0  ;;  %3510 = vmax.xlane.f32.xlu0 %v3509_v36  ;;  %v3497_v48 = vadd.f32 %v9899_v41, %v8471_v35 }
0x1caa   :  { %v8472_v38 = vpop.f32.mrb[46].mxu0  ;;  %v3489_v17 = vadd.f32 %v9896_v42, %v3488_v37 }
0x1cab   :  { %v3491_v2 = vpop.f32.mrb[47].mxu0  ;;  %v3500_v46 = vadd.f32 %v9898_v44, %v8472_v38  ;;  %v3521_v53 = vsel %vm734_vm2, %v3497_v48, -inf }
0x1cac   :  { %v11009_v22 = vadd.f32 %v9897_v3, %v3491_v2  ;;  %v3515_v45 = vsel %vm734_vm2, %v3489_v17, -inf }
0x1cad   :  { %3513 = vmax.xlane.f32.xlu0 %v3512_v43  ;;  %v3524_v57 = vsel %vm734_vm2, %v3500_v46, -inf }
0x1cae   :  { %v3518_v47 = vsel %vm734_vm2, %v11009_v22, -inf }
0x1caf   :  { %3519 = vmax.xlane.f32.xlu1 %v3518_v47 }
0x1cb1   :  { %3516 = vmax.xlane.f32.xlu0 %v3515_v45 }
0x1cb3   :  { %3525 = vmax.xlane.f32.xlu1 %v3524_v57 }
0x1cb5   :  { %3522 = vmax.xlane.f32.xlu0 %v3521_v53 }
0x1d32   :  { %v3505_v59 = vpop.xlane.xlu0 %3504 }
0x1d33   :  { %v3527_v60 = vsub.f32 %v3473_v54, %v3505_v59 }
0x1d34   :  { %v3508_v61 = vpop.xlane.xlu1 %3507 }
0x1d35   :  { %v3535_v0 = vmul.f32 1.442695, %v3527_v60  ;;  %v3528_v1 = vsub.f32 %v3476_v30, %v3508_v61 }
0x1d36   :  { %v3511_v62 = vpop.xlane.xlu0 %3510 }
0x1d37   :  { %v3529_v63 = vsub.f32 %v3481_v29, %v3511_v62  ;;  %v3537_v8 = vmul.f32 1.442695, %v3528_v1 }
0x1d39   :  { %v3539_v5 = vmul.f32 1.442695, %v3529_v63 }
0x1d3a   :  { %v3514_v6 = vpop.xlane.xlu0 %3513 }
0x1d3b   :  { %9719 = vpow2.f32 %v3539_v5  ;;  %v3530_v7 = vsub.f32 %v3484_v34, %v3514_v6 }
0x1d3c   :  { %9721 = vpow2.f32 %v3535_v0  ;;  %v3520_v29 = vpop.xlane.xlu1 %3519 }
0x1d3d   :  { %v3541_v9 = vmul.f32 1.442695, %v3530_v7  ;;  %v3532_v27 = vsub.f32 %v11009_v22, %v3520_v29 }
0x1d3e   :  { %v3517_v10 = vpop.xlane.xlu0 %3516 }
0x1d3f   :  { %9723 = vpow2.f32 %v3541_v9  ;;  %v3531_v11 = vsub.f32 %v3489_v17, %v3517_v10  ;;  %v3545_v33 = vmul.f32 1.442695, %v3532_v27 }
0x1d40   :  { %9725 = vpow2.f32 %v3537_v8  ;;  %v3526_v18 = vpop.xlane.xlu1 %3525 }
0x1d41   :  { %v3543_v16 = vmul.f32 1.442695, %v3531_v11  ;;  %v3534_v30 = vsub.f32 %v3500_v46, %v3526_v18 }
0x1d42   :  { %v3523_v12 = vpop.xlane.xlu0 %3522 }
0x1d43   :  { %v3533_v13 = vsub.f32 %v3497_v48, %v3523_v12  ;;  %v3549_v31 = vmul.f32 1.442695, %v3534_v30 }
0x1d45   :  { %v11019_v14 = vpop.eup %9719  ;;  %v3547_v50 = vmul.f32 1.442695, %v3533_v13 }
0x1d46   :  { %v3557_v19 = vsel %vm734_vm2, %v11019_v14, 0.0  ;;  %v9722_v40 = vpop.eup %9721 }
0x1d47   :  { %9727 = vpow2.f32 %v3547_v50  ;;  %3558 = vadd.xlane.f32.xlu0 %v3557_v19  ;;  %v3551_v49 = vsel %vm734_vm2, %v9722_v40, 0.0 }
0x1d48   :  { %9729 = vpow2.f32 %v3543_v16 }
0x1d49   :  { %v11023_v20 = vpop.eup %9723  ;;  %9731 = vpow2.f32 %v3549_v31  ;;  %v9314_v31 = vld [vmem:[%s11666_s25 + $0x78] sm:$0xff]  }
0x1d4a   :  { %v3560_v52 = vsel %vm734_vm2, %v11023_v20, 0.0  ;;  %v9726_v24 = vpop.eup %9725  ;;  %9733 = vpow2.f32 %v3545_v33 }
0x1d4b   :  { %3552 = vadd.xlane.f32.xlu0 %v3551_v49  ;;  %3561 = vadd.xlane.f32.xlu1 %v3560_v52  ;;  %v3554_v25 = vsel %vm734_vm2, %v9726_v24, 0.0  ;;  %v9307_v52 = vld [vmem:[%s11666_s25 + $0x40] sm:$0xff]  }
0x1d4c   :  { %8490 = vmatpush3.bf16.msra.mxu0 %v9307_v52  ;;  %v9329_v52 = vld [vmem:[%s11668_s9 + $0xc4] ss:$8 sps:$4 sm:$0xff]  }
0x1d4d   :  { %8491 = vmatprep.subr.bf16.mxu0 %v10148_v4 }
0x1d4f   :  { %3555 = vadd.xlane.f32.xlu1 %v3554_v25  ;;  %v9309_v25 = vld [vmem:[%s11666_s25 + $0x50] sm:$0xff]  }
0x1d51   :  { %v11029_v15 = vpop.eup %9727 }
0x1d52   :  { %v3569_v54 = vsel %vm734_vm2, %v11029_v15, 0.0  ;;  %v11033_v56 = vpop.eup %9729 }
0x1d53   :  { %3570 = vadd.xlane.f32.xlu0 %v3569_v54  ;;  %v3563_v26 = vsel %vm734_vm2, %v11033_v56, 0.0  ;;  %v9732_v34 = vpop.eup %9731  ;;  %v9310_v54 = vld [vmem:[%s11666_s25 + $0x58] sm:$0xff]  }
0x1d54   :  { %v3572_v35 = vsel %vm734_vm2, %v9732_v34, 0.0  ;;  %v9734_v36 = vpop.eup %9733 }
0x1d55   :  { %v3566_v21 = vsel %vm734_vm2, %v9734_v36, 0.0 }
0x1d57   :  { %3564 = vadd.xlane.f32.xlu0 %v3563_v26  ;;  %v9313_v26 = vld [vmem:[%s11666_s25 + $0x70] sm:$0xff]  }
0x1d60   :  { %8970 = vrot.lane.b32.xlu1 %v8969_v28, %s10151_s5 }
0x1d6d   :  { %8965 = vrot.lane.b32.xlu0 %v8969_v28, %s10152_s19 }
0x1d84   :  { %3573 = vadd.xlane.f32.xlu1 %v3572_v35 }
0x1d88   :  { %3567 = vadd.xlane.f32.xlu1 %v3566_v21 }
0x1d99   :  { %8975 = vrot.lane.b32.xlu1 %v8969_v28, %s10153_s6 }
0x1dd4   :  { %v3559_v23 = vpop.xlane.xlu0 %3558 }
0x1dd8   :  { %v3562_v37 = vpop.xlane.xlu1 %3561  ;;  %v3553_v38 = vpop.xlane.xlu0 %3552 }
0x1dd9   :  { %9735 = vrcp.f32 %v3553_v38 }
0x1ddc   :  { %v3556_v2 = vpop.xlane.xlu1 %3555 }
0x1ddd   :  { %9737 = vrcp.f32 %v3556_v2 }
0x1dde   :  { %9739 = vrcp.f32 %v3562_v37 }
0x1ddf   :  { %9741 = vrcp.f32 %v3559_v23 }
0x1de0   :  { %v3571_v42 = vpop.xlane.xlu0 %3570  ;;  %v8971_v22 = vpop.permute.xlu1 %8970 }
0x1de1   :  { %v8973_v41 = vunpack.i.h.bf16 %v8971_v22  ;;  %v8972_v48 = vunpack.i.l.bf16 %v8971_v22 }
0x1de3   :  { %v9736_v3 = vpop.eup %9735  ;;  %v3597_v60 = vpack.c.bf16 %v8973_v41, %v8972_v48 }
0x1de4   :  { %v3565_v17 = vpop.xlane.xlu0 %3564  ;;  %v3583_v46 = vmul.f32 %v9736_v3, %v9722_v40 }
0x1de5   :  { %9743 = vrcp.f32 %v3565_v17 }
0x1de7   :  { %v9738_v43 = vpop.eup %9737 }
0x1de8   :  { %v8966_v44 = vpop.permute.xlu0 %8965  ;;  %v3584_v47 = vmul.f32 %v9738_v43, %v9726_v24  ;;  %v9740_v63 = vpop.eup %9739  ;;  %v9308_v24 = vld [vmem:[%s11666_s25 + $0x48] sm:$0xff]  }
0x1de9   :  { %v8968_v45 = vunpack.i.h.bf16 %v8966_v44  ;;  %v8967_v57 = vunpack.i.l.bf16 %v8966_v44  ;;  %v9742_v6 = vpop.eup %9741  ;;  %v3586_v7 = vmul.f32 %v9740_v63, %v11023_v20  ;;  %8492 = vmatpush3.bf16.msra.mxu0 %v9308_v24  ;;  %v9327_v24 = vld [vmem:[%s11668_s9 + $0xc0] ss:$8 sps:$4 sm:$0xff]  }
0x1dea   :  { %v3591_v53 = vpack.c.bf16 %v3584_v47, %v3583_v46  ;;  %v3585_v10 = vmul.f32 %v9742_v6, %v11019_v14  ;;  %8493 = vmatprep.subr.bf16.mxu0 %v10148_v4 }
0x1deb   :  { %v3596_v59 = vpack.c.bf16 %v8968_v45, %v8967_v57 }
0x1dec   :  { %8481 = vmatprep.mubr.msk.bf16.mxu1 %vm734_vm2, %v3591_v53  ;;  %v3592_v12 = vpack.c.bf16 %v3586_v7, %v3585_v10  ;;  %v9315_v7 = vld [vmem:[%s11668_s9 + $0x80] ss:$8 sps:$4 sm:$0xff]   ;;  %v9318_v10 = vld [vmem:[%s11668_s9 + $0x90] ss:$8 sps:$4 sm:$0xff]  }
0x1ded   :  { %8475 = vmatprep.subr.bf16.mxu1 %v3596_v59  ;;  %8494 = vmatpush3.bf16.msra.mxu0 %v9309_v25  ;;  %v9332_v25 = vld [vmem:[%s11668_s9 + $0xd4] ss:$8 sps:$4 sm:$0xff]  }
0x1dee   :  { %8476 = vmatpush3.bf16.msra.mxu1 %v3596_v59  ;;  %8495 = vmatprep.subr.bf16.mxu0 %v10148_v4 }
0x1def   :  { %8477 = vmatprep.subr.bf16.mxu1 %v3597_v60  ;;  %v9744_v9 = vpop.eup %9743 }
0x1df0   :  { %v3587_v16 = vmul.f32 %v9744_v9, %v11033_v56  ;;  %v9312_v56 = vld [vmem:[%s11666_s25 + $0x68] sm:$0xff]   ;;  %v9320_v9 = vld [vmem:[%s11668_s9 + $0x94] ss:$8 sps:$4 sm:$0xff]  }
0x1df1   :  { %8496 = vmatpush3.bf16.msra.mxu0 %v9310_v54  ;;  %v9330_v54 = vld [vmem:[%s11668_s9 + $0xd0] ss:$8 sps:$4 sm:$0xff]  }
0x1df2   :  { %8478 = vmatpush3.bf16.msra.mxu1 %v3597_v60  ;;  %8497 = vmatprep.subr.bf16.mxu0 %v10148_v4  ;;  %v7505_v60 = vld [vmem:[%s11667_s7 + $0x1] ss:$0 sm:$0xff] }
0x1e11   :  { %v3574_v61 = vpop.xlane.xlu1 %3573 }
0x1e15   :  { %v3568_v62 = vpop.xlane.xlu1 %3567 }
0x1e16   :  { %9745 = vrcp.f32 %v3568_v62 }
0x1e17   :  { %9747 = vrcp.f32 %v3574_v61 }
0x1e18   :  { %9749 = vrcp.f32 %v3571_v42 }
0x1e19   :  { %v8976_v0 = vpop.permute.xlu1 %8975 }
0x1e1a   :  { %v8978_v1 = vunpack.i.h.bf16 %v8976_v0  ;;  %v8977_v5 = vunpack.i.l.bf16 %v8976_v0 }
0x1e1c   :  { %v3598_v8 = vpack.c.bf16 %v8978_v1, %v8977_v5 }
0x1e1e   :  { %8479 = vmatprep.subr.bf16.mxu1 %v3598_v8 }
0x1e1f   :  { %8480 = vmatpush3.bf16.msra.mxu1 %v3598_v8  ;;  %v9317_v8 = vld [vmem:[%s11668_s9 + $0x84] ss:$8 sps:$4 sm:$0xff]  }
0x1e20   :  { %v9746_v11 = vpop.eup %9745  ;;  %3978 = vmatprep.subr.bf16.mxu1 %v9317_v8 }
0x1e21   :  { %v9748_v13 = vpop.eup %9747  ;;  %v3588_v50 = vmul.f32 %v9746_v11, %v9734_v36 }
0x1e22   :  { %8482 = vmatmul.mubr.msk.bf16.vlgmr.msra.gmra.mrb[60].mxu1 %vm734_vm2, %v3592_v12  ;;  %v9750_v19 = vpop.eup %9749  ;;  %v3590_v20 = vmul.f32 %v9748_v13, %v9732_v34 }
0x1e23   :  { %v3593_v40 = vpack.c.bf16 %v3588_v50, %v3587_v16  ;;  %v3589_v14 = vmul.f32 %v9750_v19, %v11029_v15  ;;  %v9311_v15 = vld [vmem:[%s11666_s25 + $0x60] sm:$0xff]   ;;  %3979 = vmatpush1.bf16.msra.mxu1 %v9315_v7 }
0x1e24   :  { %8498 = vmatpush3.bf16.msra.mxu0 %v9311_v15  ;;  %3980 = vmatprep.subr.bf16.mxu1 %v9320_v9  ;;  %v9335_v15 = vld [vmem:[%s11668_s9 + $0xe4] ss:$8 sps:$4 sm:$0xff]  }
0x1e25   :  { %8485 = vmatprep.mubr.msk.bf16.mxu1 %vm734_vm2, %v3593_v40  ;;  %v3594_v49 = vpack.c.bf16 %v3590_v20, %v3589_v14  ;;  %8499 = vmatprep.subr.bf16.mxu0 %v10148_v4  ;;  %v9323_v40 = vld [vmem:[%s11668_s9 + $0xa4] ss:$8 sps:$4 sm:$0xff]   ;;  %v9321_v20 = vld [vmem:[%s11668_s9 + $0xa0] ss:$8 sps:$4 sm:$0xff]   ;;  %v9326_v14 = vld [vmem:[%s11668_s9 + $0xb4] ss:$8 sps:$4 sm:$0xff]  }
0x1e27   :  { %3981 = vmatpush1.bf16.msra.mxu1 %v9318_v10 }
0x1e28   :  { %8500 = vmatpush3.bf16.msra.mxu0 %v9312_v56  ;;  %3982 = vmatprep.subr.bf16.mxu1 %v9323_v40  ;;  %v9333_v56 = vld [vmem:[%s11668_s9 + $0xe0] ss:$8 sps:$4 sm:$0xff]  }
0x1e29   :  { %8501 = vmatprep.subr.bf16.mxu0 %v10148_v4 }
0x1e2a   :  { %8486 = vmatmul.mubr.msk.bf16.gmra.mrb[64].mxu1 %vm734_vm2, %v3594_v49  ;;  %v9324_v49 = vld [vmem:[%s11668_s9 + $0xb0] ss:$8 sps:$4 sm:$0xff]  }
0x1e2b   :  { %4010 = vmatprep.mubr.bf16.mxu1 %v10149_v32  ;;  %3983 = vmatpush1.bf16.msra.mxu1 %v9321_v20 }
0x1e2c   :  { %8502 = vmatpush3.bf16.msra.mxu0 %v9313_v26  ;;  %3984 = vmatprep.subr.bf16.mxu1 %v9326_v14  ;;  %v9336_v26 = vld [vmem:[%s11668_s9 + $0xf0] ss:$8 sps:$4 sm:$0xff]  }
0x1e2d   :  { %8503 = vmatprep.subr.bf16.mxu0 %v10148_v4 }
0x1e2f   :  { %3985 = vmatpush1.bf16.msra.mxu1 %v9324_v49 }
0x1e30   :  { %8504 = vmatpush3.bf16.msra.mxu0 %v9314_v31  ;;  %3986 = vmatprep.subr.bf16.mxu1 %v9329_v52 }
0x1e33   :  { %3987 = vmatpush1.bf16.msra.mxu1 %v9327_v24 }
0x1e34   :  { %3988 = vmatprep.subr.bf16.mxu1 %v9332_v25 }
0x1e37   :  { %3989 = vmatpush1.bf16.msra.mxu1 %v9330_v54 }
0x1e38   :  { %3990 = vmatprep.subr.bf16.mxu1 %v9335_v15 }
0x1e3b   :  { %3991 = vmatpush1.bf16.msra.mxu1 %v9333_v56 }
0x1ef5   :  { %v8483_v28 = vpop.f32.mrb[60].mxu1 }
0x1ef6   :  { %v3645_v29 = vpop.f32.mrb[61].mxu1 }
0x1ef7   :  { %v8484_v18 = vpop.f32.mrb[62].mxu1 }
0x1ef8   :  { %v8979_v30 = vpack.i.bf16 %v8484_v18, %v8483_v28  ;;  %v3648_v27 = vpop.f32.mrb[63].mxu1  ;;  %v9338_v28 = vld [vmem:[%s11668_s9 + $0xf4] ss:$8 sps:$4 sm:$0xff]  }
0x1ef9   :  { %3992 = vmatprep.subr.bf16.mxu1 %v9338_v28 }
0x1efa   :  { %8980 = vrot.lane.b32.xlu1 %v8979_v30, %s10153_s6  ;;  %3993 = vmatpush1.bf16.msra.mxu1 %v9336_v26 }
0x1efb   :  { %8509 = vmatprep.subr.bf16.mxu1 %v10148_v4 }
0x1efd   :  { %v8487_v33 = vpop.f32.mrb[64].mxu1 }
0x1efe   :  { %v3661_v34 = vpop.f32.mrb[65].mxu1 }
0x1eff   :  { %v8488_v35 = vpop.f32.mrb[66].mxu1 }
0x1f00   :  { %v8989_v36 = vpack.i.bf16 %v8488_v35, %v8487_v33  ;;  %v3664_v21 = vpop.f32.mrb[67].mxu1 }
0x1f01   :  { %v8984_v23 = vpack.i.bf16 %v3664_v21, %v3661_v34 }
0x1f02   :  { %8990 = vrot.lane.b32.xlu1 %v8989_v36, %s10152_s19  ;;  %v7508_v36 = vld [vmem:[%s11669_s10 + $0x1] ss:$0 sm:$0xff] }
0x1f03   :  { %8985 = vrot.lane.b32.xlu0 %v8984_v23, %s10151_s5 }
0x1f6c   :  { %v8981_v37 = vpop.permute.xlu1 %8980 }
0x1f6d   :  { %v8983_v38 = vunpack.i.h.bf16 %v8981_v37  ;;  %v8982_v2 = vunpack.i.l.bf16 %v8981_v37 }
0x1f6f   :  { %v3700_v43 = vsel %vm644_vm1, %v3645_v29, %v8982_v2  ;;  %v3701_v44 = vsel %vm644_vm1, %v3648_v27, %v8983_v38  ;;  %v7509_v38 = vld [vmem:[%s11670_s11 + $0x1] ss:$0 sm:$0xff] }
0x1f74   :  { %v8991_v42 = vpop.permute.xlu1 %8990 }
0x1f75   :  { %v8986_v17 = vpop.permute.xlu0 %8985  ;;  %v8993_v46 = vunpack.i.h.bf16 %v8991_v42  ;;  %v8992_v47 = vunpack.i.l.bf16 %v8991_v42 }
0x1f76   :  { %v8988_v3 = vunpack.i.h.bf16 %v8986_v17  ;;  %v8987_v22 = vunpack.i.l.bf16 %v8986_v17 }
0x1f78   :  { %v3703_v41 = vsel %vm734_vm2, %v3701_v44, %v8988_v3  ;;  %v3702_v48 = vsel %vm734_vm2, %v3700_v43, %v8987_v22  ;;  %v9339_v22 = vld [vmem:[%s11671_s15 + $0xc0] sm:$0xff]   ;;  %v9341_v44 = vld [vmem:[%s11671_s15 + $0xc8] sm:$0xff]  }
0x1f79   :  { %v3705_v45 = vsel %vm936_vm3, %v3703_v41, %v8993_v46  ;;  %v3704_v57 = vsel %vm936_vm3, %v3702_v48, %v8992_v47  ;;  %v9340_v43 = vld [vmem:[%s11671_s15 + $0x80] sm:$0xff]   ;;  %8078 = vmatprep.subr.bf16.mxu0 %v9339_v22  ;;  %v9342_v46 = vld [vmem:[%s11671_s15 + $0x88] sm:$0xff]   ;;  %v9343_v47 = vld [vmem:[%s11671_s15 + $0xd0] sm:$0xff]  }
0x1f7a   :  { %v3723_v53 = vpack.c.bf16 %v3705_v45, %v3704_v57  ;;  %v9344_v41 = vld [vmem:[%s11671_s15 + $0x90] sm:$0xff]   ;;  %v9345_v48 = vld [vmem:[%s11671_s15 + $0xd8] sm:$0xff]   ;;  %v9347_v57 = vld [vmem:[%s11671_s15 + $0xe0] sm:$0xff]  }
0x1f7b   :  { %v9346_v45 = vld [vmem:[%s11671_s15 + $0x98] sm:$0xff]  }
0x1f7c   :  { %8506 = vmatmul.mubr.bf16.vlgmr.msra.gmra.mrb[48].mxu0 %v3723_v53  ;;  %v9348_v53 = vld [vmem:[%s11671_s15 + $0xa0] sm:$0xff]  }
0x1f7d   :  { %8079 = vmatpush3.bf16.msra.mxu0 %v9340_v43 }
0x1f7e   :  { %8080 = vmatprep.subr.bf16.mxu0 %v9341_v44 }
0x1f81   :  { %8081 = vmatpush3.bf16.msra.mxu0 %v9342_v46 }
0x1f82   :  { %8082 = vmatprep.subr.bf16.mxu0 %v9343_v47 }
0x1f85   :  { %8083 = vmatpush3.bf16.msra.mxu0 %v9344_v41 }
0x1f86   :  { %8084 = vmatprep.subr.bf16.mxu0 %v9345_v48 }
0x1f89   :  { %8085 = vmatpush3.bf16.msra.mxu0 %v9346_v45 }
0x1f8a   :  { %8086 = vmatprep.subr.bf16.mxu0 %v9347_v57 }
0x1f8d   :  { %8087 = vmatpush3.bf16.msra.mxu0 %v9348_v53 }
0x204f   :  { %v3806_v59 = vpop.f32.mrb[48].mxu0 }
0x2050   :  { %v3813_v61 = vadd.f32 %v3806_v59, %v10976_v39  ;;  %v8507_v62 = vpop.f32.mrb[49].mxu0  ;;  %v9349_v59 = vld [vmem:[%s11671_s15 + $0xe8] sm:$0xff]  }
0x2051   :  { %v3809_v63 = vpop.f32.mrb[50].mxu0  ;;  %8088 = vmatprep.subr.bf16.mxu0 %v9349_v59  ;;  %v9352_v62 = vld [vmem:[%s11671_s15 + $0xb0] sm:$0xff]   ;;  %v7592_v59 = vld [vmem:[%s11673_s22 + $0x1] ss:$0 sm:$0xff] }
0x2052   :  { %v3823_v0 = vadd.f32 %v7505_v60, %v3813_v61  ;;  %v3814_v1 = vadd.f32 %v3809_v63, %v10978_v51  ;;  %v8508_v5 = vpop.f32.mrb[51].mxu0  ;;  %v9351_v61 = vld [vmem:[%s11671_s15 + $0xf0] sm:$0xff]   ;;  %v9353_v63 = vld [vmem:[%s11671_s15 + $0xf8] sm:$0xff]  }
0x2054   :  { %v3824_v6 = vadd.f32 %v7505_v60, %v3814_v1  ;;  %3829 = vadd.xlane.f32.xlu0 %v3823_v0  ;;  %v9350_v60 = vld [vmem:[%s11671_s15 + $0xa8] sm:$0xff]   ;;  %v7526_v1 = vld [vmem:[%s11672_s18 + $0x2] sm:$0x3] }
0x2055   :  { %8089 = vmatpush3.bf16.msra.mxu0 %v9350_v60  ;;  %v3891_v5 = vrot.slane %v7526_v1, %v10458_v55 }
0x2056   :  { %3831 = vadd.xlane.f32.xlu1 %v3824_v6  ;;  %8090 = vmatprep.subr.bf16.mxu0 %v9351_v61 }
0x2059   :  { %8091 = vmatpush3.bf16.msra.mxu0 %v9352_v62 }
0x205a   :  { %8092 = vmatprep.subr.bf16.mxu0 %v9353_v63 }
0x20e1   :  { %v3830_v39 = vpop.xlane.xlu0 %3829 }
0x20e2   :  { %v3833_v11 = vmul.f32 0.0078125, %v3830_v39 }
0x20e3   :  { %v3832_v12 = vpop.xlane.xlu1 %3831 }
0x20e4   :  { %v3835_v51 = vsub.f32 %v3823_v0, %v3833_v11  ;;  %v3834_v13 = vmul.f32 0.0078125, %v3832_v12  ;;  %v9354_v0 = vld [vmem:[%s11671_s15 + $0xb8] sm:$0xff]  }
0x20e5   :  { %8093 = vmatpush3.bf16.msra.mxu0 %v9354_v0 }
0x20e6   :  { %v3836_v16 = vsub.f32 %v3824_v6, %v3834_v13  ;;  %v3837_v50 = vmul.f32 %v3835_v51, %v3835_v51  ;;  %v3895_v6 = vrot.slane %v7526_v1, %v10463_v58  ;;  %v9355_v1 = vld [vmem:[%s11674_s21] sm:$0xff]  }
0x20e8   :  { %3839 = vadd.xlane.f32.xlu0 %v3837_v50  ;;  %v3838_v19 = vmul.f32 %v3836_v16, %v3836_v16 }
0x20ec   :  { %3841 = vadd.xlane.f32.xlu0 %v3838_v19 }
0x2175   :  { %v3840_v29 = vpop.xlane.xlu0 %3839 }
0x2176   :  { %v3843_v18 = vmul.f32 0.0078125, %v3840_v29 }
0x2178   :  { %v3845_v30 = vadd.f32 1e-05, %v3843_v18 }
0x2179   :  { %v3842_v27 = vpop.xlane.xlu0 %3841 }
0x217a   :  { %9751 = vrsqrt.f32 %v3845_v30  ;;  %v3844_v31 = vmul.f32 0.0078125, %v3842_v27 }
0x217c   :  { %v3846_v33 = vadd.f32 1e-05, %v3844_v31 }
0x217e   :  { %9753 = vrsqrt.f32 %v3846_v33 }
0x2184   :  { %v9752_v34 = vpop.eup %9751 }
0x2185   :  { %v3849_v35 = vmul.f32 %v9752_v34, %v3835_v51 }
0x2187   :  { %v3857_v23 = vmul.f32 %v7508_v36, %v3849_v35 }
0x2188   :  { %v9754_v21 = vpop.eup %9753 }
0x2189   :  { %v3850_v37 = vmul.f32 %v9754_v21, %v3836_v16  ;;  %v11100_v42 = vadd.f32 %v7509_v38, %v3857_v23 }
0x218b   :  { %v3858_v2 = vmul.f32 %v7508_v36, %v3850_v37 }
0x218d   :  { %v11102_v17 = vadd.f32 %v7509_v38, %v3858_v2 }
0x218f   :  { %v3884_v3 = vpack.c.bf16 %v11102_v17, %v11100_v42 }
0x2191   :  { %4011 = vmatmul.mubr.bf16.vlgmr.msra.gmra.mrb[68].mxu1 %v3884_v3 }
0x2192   :  { %8525 = vmatprep.mubr.msk.bf16.mxu1 %vm10150_vm0, %v10148_v4  ;;  %8510 = vmatpush3.bf16.msra.mxu1 %v9355_v1  ;;  %v9394_v1 = vld [vmem:[%s11675_s29 + $0xb0] ss:$12 sps:$4 sm:$0xff]  }
0x2193   :  { %8511 = vmatprep.subr.bf16.mxu1 %v10148_v4 }
0x2264   :  { %v4012_v7 = vpop.f32.mrb[68].mxu1 }
0x2265   :  { %v4013_v8 = vadd.f32 %v4012_v7, %v3891_v5  ;;  %v4014_v9 = vpop.f32.mrb[69].mxu1 }
0x2266   :  { %v4015_v10 = vadd.f32 %v4014_v9, %v3895_v6  ;;  %v4016_v39 = vpop.f32.mrb[70].mxu1 }
0x2267   :  { %v4021_v11 = vmul.f32 %v4013_v8, %v4013_v8  ;;  %v4017_v12 = vadd.f32 %v4016_v39, %v3891_v5  ;;  %v4018_v51 = vpop.f32.mrb[71].mxu1  ;;  %v9356_v5 = vld [vmem:[%s11674_s21 + $0x8] sm:$0xff]  }
0x2268   :  { %v4022_v13 = vmul.f32 %v4015_v10, %v4015_v10  ;;  %v4019_v16 = vadd.f32 %v4018_v51, %v3895_v6  ;;  %8512 = vmatpush3.bf16.msra.mxu1 %v9356_v5  ;;  %v9359_v51 = vld [vmem:[%s11674_s21 + $0x20] sm:$0xff]  }
0x2269   :  { %v4025_v50 = vmul.f32 %v4021_v11, %v4013_v8  ;;  %v4023_v19 = vmul.f32 %v4017_v12, %v4017_v12  ;;  %8513 = vmatprep.subr.bf16.mxu1 %v10148_v4  ;;  %v9357_v11 = vld [vmem:[%s11674_s21 + $0x10] sm:$0xff]  }
0x226a   :  { %v4026_v40 = vmul.f32 %v4022_v13, %v4015_v10  ;;  %v4024_v20 = vmul.f32 %v4019_v16, %v4019_v16  ;;  %v9360_v13 = vld [vmem:[%s11674_s21 + $0x28] sm:$0xff]  }
0x226b   :  { %v4029_v14 = vmul.f32 0.044715, %v4025_v50  ;;  %v4027_v49 = vmul.f32 %v4023_v19, %v4017_v12  ;;  %v9362_v50 = vld [vmem:[%s11674_s21 + $0x38] sm:$0xff]  }
0x226c   :  { %v4030_v52 = vmul.f32 0.044715, %v4026_v40  ;;  %v4028_v55 = vmul.f32 %v4024_v20, %v4019_v16  ;;  %8514 = vmatpush3.bf16.msra.mxu1 %v9357_v11  ;;  %v7603_v11 = vld [vmem:[#allocation10] ss:$0 sm:$0xff] }
0x226d   :  { %v4033_v24 = vadd.f32 %v4029_v14, %v4013_v8  ;;  %v4031_v58 = vmul.f32 0.044715, %v4027_v49  ;;  %8515 = vmatprep.subr.bf16.mxu1 %v10148_v4 }
0x226e   :  { %v4034_v25 = vadd.f32 %v4030_v52, %v4015_v10  ;;  %v4032_v54 = vmul.f32 0.044715, %v4028_v55 }
0x226f   :  { %v4037_v15 = vmul.f32 0.7978846, %v4033_v24  ;;  %v4035_v56 = vadd.f32 %v4031_v58, %v4017_v12  ;;  %v7593_v24 = vld [vmem:[#allocation7 + $0x1] ss:$0 sm:$0xff] }
0x2270   :  { %v4038_v26 = vmul.f32 0.7978846, %v4034_v25  ;;  %v4036_v28 = vadd.f32 %v4032_v54, %v4019_v16 }
0x2271   :  { %9755 = vtanh.f32 %v4037_v15  ;;  %v4039_v29 = vmul.f32 0.7978846, %v4035_v56  ;;  %v7594_v56 = vld [vmem:[#allocation8 + $0x1] ss:$0 sm:$0xff] }
0x2272   :  { %9757 = vtanh.f32 %v4038_v26  ;;  %v4040_v18 = vmul.f32 0.7978846, %v4036_v28 }
0x2273   :  { %9759 = vtanh.f32 %v4039_v29 }
0x2274   :  { %9761 = vtanh.f32 %v4040_v18 }
0x227b   :  { %v9756_v30 = vpop.eup %9755 }
0x227c   :  { %v9758_v27 = vpop.eup %9757  ;;  %v4045_v31 = vadd.f32 1.0, %v9756_v30  ;;  %v9363_v30 = vld [vmem:[%s11675_s29] ss:$12 sps:$4 sm:$0xff]  }
0x227d   :  { %v9760_v33 = vpop.eup %9759  ;;  %v4046_v34 = vadd.f32 1.0, %v9758_v27  ;;  %v9365_v27 = vld [vmem:[%s11675_s29 + $0x4] ss:$12 sps:$4 sm:$0xff]  }
0x227e   :  { %v9762_v35 = vpop.eup %9761  ;;  %v4049_v36 = vmul.f32 0.5, %v4045_v31  ;;  %v4047_v21 = vadd.f32 1.0, %v9760_v33  ;;  %v9366_v31 = vld [vmem:[%s11675_s29 + $0x8] ss:$12 sps:$4 sm:$0xff]   ;;  %4587 = vmatprep.subr.bf16.mxu0 %v9365_v27 }
0x227f   :  { %v4048_v23 = vadd.f32 1.0, %v9762_v35  ;;  %v4050_v37 = vmul.f32 0.5, %v4046_v34  ;;  %v9369_v33 = vld [vmem:[%s11675_s29 + $0x1c] ss:$12 sps:$4 sm:$0xff]   ;;  %v9370_v34 = vld [vmem:[%s11675_s29 + $0x20] ss:$12 sps:$4 sm:$0xff]  }
0x2280   :  { %v4051_v38 = vmul.f32 0.5, %v4047_v21  ;;  %v4053_v3 = vmul.f32 %v4049_v36, %v4013_v8  ;;  %v9367_v35 = vld [vmem:[%s11675_s29 + $0x18] ss:$12 sps:$4 sm:$0xff]   ;;  %v9373_v36 = vld [vmem:[%s11675_s29 + $0x34] ss:$12 sps:$4 sm:$0xff]  }
0x2281   :  { %v4052_v2 = vmul.f32 0.5, %v4048_v23  ;;  %v4054_v43 = vmul.f32 %v4050_v37, %v4015_v10  ;;  %v9371_v21 = vld [vmem:[%s11675_s29 + $0x30] ss:$12 sps:$4 sm:$0xff]  }
0x2282   :  { %v4055_v22 = vmul.f32 %v4051_v38, %v4017_v12  ;;  %v9358_v12 = vld [vmem:[%s11674_s21 + $0x18] sm:$0xff]  }
0x2283   :  { %v4056_v44 = vmul.f32 %v4052_v2, %v4019_v16  ;;  %8516 = vmatpush3.bf16.msra.mxu1 %v9358_v12  ;;  %v9361_v16 = vld [vmem:[%s11674_s21 + $0x30] sm:$0xff]  }
0x2284   :  { %v4090_v46 = vpack.c.bf16 %v4055_v22, %v4053_v3  ;;  %8517 = vmatprep.subr.bf16.mxu1 %v10148_v4 }
0x2285   :  { %v4091_v47 = vpack.c.bf16 %v4056_v44, %v4054_v43  ;;  %v9374_v43 = vld [vmem:[%s11675_s29 + $0x38] ss:$12 sps:$4 sm:$0xff]  }
0x2286   :  { %v9377_v44 = vld [vmem:[%s11675_s29 + $0x4c] ss:$12 sps:$4 sm:$0xff]  }
0x2287   :  { %4220 = vmatprep.mubr.bf16.mxu0 %v4091_v47  ;;  %8518 = vmatpush3.bf16.msra.mxu1 %v9359_v51  ;;  %v9378_v47 = vld [vmem:[%s11675_s29 + $0x50] ss:$12 sps:$4 sm:$0xff]  }
0x2288   :  { %4221 = vmatmul.mubr.bf16.vlgmr.msra.gmra.mrb[52].mxu0 %v4090_v46  ;;  %8519 = vmatprep.subr.bf16.mxu1 %v10148_v4  ;;  %v9375_v46 = vld [vmem:[%s11675_s29 + $0x48] ss:$12 sps:$4 sm:$0xff]  }
0x2289   :  { %4619 = vmatprep.mubr.bf16.mxu0 %v10149_v32  ;;  %4588 = vmatpush1.bf16.msra.mxu0 %v9363_v30 }
0x228a   :  { %4589 = vmatprep.subr.bf16.mxu0 %v9369_v33 }
0x228b   :  { %8520 = vmatpush3.bf16.msra.mxu1 %v9360_v13 }
0x228c   :  { %8521 = vmatprep.subr.bf16.mxu1 %v10148_v4 }
0x228d   :  { %4590 = vmatpush1.bf16.msra.mxu0 %v9367_v35 }
0x228e   :  { %4591 = vmatprep.subr.bf16.mxu0 %v9373_v36 }
0x228f   :  { %8522 = vmatpush3.bf16.msra.mxu1 %v9361_v16 }
0x2290   :  { %8523 = vmatprep.subr.bf16.mxu1 %v10148_v4 }
0x2291   :  { %4592 = vmatpush1.bf16.msra.mxu0 %v9371_v21 }
0x2292   :  { %4593 = vmatprep.subr.bf16.mxu0 %v9377_v44 }
0x2293   :  { %8524 = vmatpush3.bf16.msra.mxu1 %v9362_v50 }
0x2294   :  { %8529 = vmatprep.subr.bf16.mxu1 %v10148_v4 }
0x2295   :  { %4594 = vmatpush1.bf16.msra.mxu0 %v9375_v46 }
0x235b   :  { %v8094_v41 = vpop.f32.mrb[52].mxu0 }
0x235c   :  { %v8095_v48 = vpop.f32.mrb[53].mxu0 }
0x235d   :  { %v8096_v45 = vadd.f32 %v8095_v48, %v8094_v41  ;;  %v8097_v57 = vpop.f32.mrb[54].mxu0  ;;  %v9379_v41 = vld [vmem:[%s11675_s29 + $0x60] ss:$12 sps:$4 sm:$0xff]   ;;  %v9381_v48 = vld [vmem:[%s11675_s29 + $0x64] ss:$12 sps:$4 sm:$0xff]  }
0x235e   :  { %v8098_v53 = vpop.f32.mrb[55].mxu0  ;;  %4595 = vmatprep.subr.bf16.mxu0 %v9381_v48 }
0x235f   :  { %v4229_v60 = vadd.f32 %v8096_v45, %v11100_v42  ;;  %v8099_v61 = vadd.f32 %v8098_v53, %v8097_v57  ;;  %v9382_v45 = vld [vmem:[%s11675_s29 + $0x68] ss:$12 sps:$4 sm:$0xff]   ;;  %4596 = vmatpush1.bf16.msra.mxu0 %v9379_v41  ;;  %v9383_v53 = vld [vmem:[%s11675_s29 + $0x78] ss:$12 sps:$4 sm:$0xff]  }
0x2360   :  { %v9385_v57 = vld [vmem:[%s11675_s29 + $0x7c] ss:$12 sps:$4 sm:$0xff]  }
0x2361   :  { %v4230_v62 = vadd.f32 %v8099_v61, %v11102_v17  ;;  %v4239_v63 = vadd.f32 %v7592_v59, %v4229_v60  ;;  %4597 = vmatprep.subr.bf16.mxu0 %v9385_v57  ;;  %v9389_v60 = vld [vmem:[%s11675_s29 + $0x94] ss:$12 sps:$4 sm:$0xff]   ;;  %v9387_v61 = vld [vmem:[%s11675_s29 + $0x90] ss:$12 sps:$4 sm:$0xff]  }
0x2363   :  { %4245 = vadd.xlane.f32.xlu0 %v4239_v63  ;;  %v4240_v0 = vadd.f32 %v7592_v59, %v4230_v62  ;;  %v9386_v59 = vld [vmem:[%s11675_s29 + $0x80] ss:$12 sps:$4 sm:$0xff]   ;;  %4598 = vmatpush1.bf16.msra.mxu0 %v9383_v53  ;;  %v9390_v62 = vld [vmem:[%s11675_s29 + $0x98] ss:$12 sps:$4 sm:$0xff]  }
0x2364   :  { %4599 = vmatprep.subr.bf16.mxu0 %v9389_v60 }
0x2365   :  { %4247 = vadd.xlane.f32.xlu1 %v4240_v0 }
0x2367   :  { %4600 = vmatpush1.bf16.msra.mxu0 %v9387_v61 }
0x23f0   :  { %v4246_v6 = vpop.xlane.xlu0 %4245 }
0x23f1   :  { %v4249_v42 = vmul.f32 0.0078125, %v4246_v6 }
0x23f2   :  { %v4248_v7 = vpop.xlane.xlu1 %4247 }
0x23f3   :  { %v4251_v8 = vsub.f32 %v4239_v63, %v4249_v42  ;;  %v4250_v17 = vmul.f32 0.0078125, %v4248_v7  ;;  %v9393_v63 = vld [vmem:[%s11675_s29 + $0xac] ss:$12 sps:$4 sm:$0xff]  }
0x23f4   :  { %4601 = vmatprep.subr.bf16.mxu0 %v9393_v63 }
0x23f5   :  { %v4252_v9 = vsub.f32 %v4240_v0, %v4250_v17  ;;  %v4253_v10 = vmul.f32 %v4251_v8, %v4251_v8  ;;  %v9391_v0 = vld [vmem:[%s11675_s29 + $0xa8] ss:$12 sps:$4 sm:$0xff]  }
0x23f6   :  { %4602 = vmatpush1.bf16.msra.mxu0 %v9391_v0 }
0x23f7   :  { %4255 = vadd.xlane.f32.xlu0 %v4253_v10  ;;  %v4254_v39 = vmul.f32 %v4252_v9, %v4252_v9 }
0x23f9   :  { %4257 = vadd.xlane.f32.xlu1 %v4254_v39 }
0x2484   :  { %v4256_v19 = vpop.xlane.xlu0 %4255 }
0x2485   :  { %v4259_v40 = vmul.f32 0.0078125, %v4256_v19 }
0x2486   :  { %v4258_v20 = vpop.xlane.xlu1 %4257 }
0x2487   :  { %v4261_v14 = vadd.f32 1e-05, %v4259_v40  ;;  %v4260_v49 = vmul.f32 0.0078125, %v4258_v20 }
0x2489   :  { %9763 = vrsqrt.f32 %v4261_v14  ;;  %v4262_v52 = vadd.f32 1e-05, %v4260_v49 }
0x248b   :  { %9765 = vrsqrt.f32 %v4262_v52 }
0x2493   :  { %v9764_v55 = vpop.eup %9763 }
0x2494   :  { %v4265_v58 = vmul.f32 %v9764_v55, %v4251_v8 }
0x2495   :  { %v9766_v25 = vpop.eup %9765 }
0x2496   :  { %v4266_v54 = vmul.f32 %v9766_v25, %v4252_v9  ;;  %v4273_v15 = vmul.f32 %v7593_v24, %v4265_v58 }
0x2498   :  { %v4274_v26 = vmul.f32 %v7593_v24, %v4266_v54  ;;  %v4281_v28 = vadd.f32 %v7594_v56, %v4273_v15  ;;  %v4399_v54 = vld [vmem:[%s11676_s8] sm:$0xff] }
0x249a   :  { %v4282_v29 = vadd.f32 %v7594_v56, %v4274_v26  ;;  %v4397_v56 = vld [vmem:[%s11677_s14] sm:$0xff]  ;;  %v4400_v26 = vld [vmem:[%s11676_s8 + $0x8] sm:$0xff] }
0x249c   :  { %v4299_v18 = vpack.c.bf16 %v4282_v29, %v4281_v28  ;;  %v4398_v29 = vld [vmem:[%s11677_s14 + $0x8] sm:$0xff] }
0x249e   :  { %8526 = vmatmul.mubr.bf16.vlgmr.msra.gmra.mrb[72].mxu1 %v4299_v18 }
0x249f   :  { %8545 = vmatprep.mubr.msk.bf16.mxu1 %vm10150_vm0, %v10148_v4  ;;  %8530 = vmatpush3.bf16.msra.mxu1 %v9366_v31  ;;  %v4401_v31 = vld [vmem:[%s11678_s30] sm:$0xff] }
0x24a0   :  { %8531 = vmatprep.subr.bf16.mxu1 %v10148_v4 }
0x24a3   :  { %8532 = vmatpush3.bf16.msra.mxu1 %v9370_v34  ;;  %v4402_v34 = vld [vmem:[%s11678_s30 + $0x8] sm:$0xff] }
0x24a4   :  { %8533 = vmatprep.subr.bf16.mxu1 %v10148_v4 }
0x24a7   :  { %8534 = vmatpush3.bf16.msra.mxu1 %v9374_v43 }
0x24a8   :  { %8535 = vmatprep.subr.bf16.mxu1 %v10148_v4 }
0x24ab   :  { %8536 = vmatpush3.bf16.msra.mxu1 %v9378_v47 }
0x24ac   :  { %8537 = vmatprep.subr.bf16.mxu1 %v10148_v4 }
0x24af   :  { %8538 = vmatpush3.bf16.msra.mxu1 %v9382_v45 }
0x24b0   :  { %8539 = vmatprep.subr.bf16.mxu1 %v10148_v4 }
0x24b3   :  { %8540 = vmatpush3.bf16.msra.mxu1 %v9386_v59 }
0x24b4   :  { %8541 = vmatprep.subr.bf16.mxu1 %v10148_v4 }
0x24b7   :  { %8542 = vmatpush3.bf16.msra.mxu1 %v9390_v62 }
0x24b8   :  { %8543 = vmatprep.subr.bf16.mxu1 %v10148_v4 }
0x24bb   :  { %8544 = vmatpush3.bf16.msra.mxu1 %v9394_v1 }
0x2571   :  { %v11159_v23 = vpop.f32.mrb[72].mxu1 }
0x2572   :  { %v4404_v37 = vmul.f32 %v11159_v23, %v11159_v23  ;;  %v8527_v38 = vpop.f32.mrb[73].mxu1 }
0x2573   :  { %v11163_v2 = vpop.f32.mrb[74].mxu1 }
0x2574   :  { %v4405_v3 = vmul.f32 %v11163_v2, %v11163_v2  ;;  %4406 = vadd.xlane.f32.xlu0 %v4404_v37  ;;  %v8528_v22 = vpop.f32.mrb[75].mxu1 }
0x2576   :  { %4408 = vadd.xlane.f32.xlu1 %v4405_v3 }
0x2601   :  { %v4407_v5 = vpop.xlane.xlu0 %4406 }
0x2602   :  { %v4410_v6 = vmul.f32 0.0078125, %v4407_v5 }
0x2603   :  { %v4409_v42 = vpop.xlane.xlu1 %4408 }
0x2604   :  { %v4412_v7 = vadd.f32 1e-06, %v4410_v6  ;;  %v4411_v8 = vmul.f32 0.0078125, %v4409_v42 }
0x2606   :  { %9767 = vrsqrt.f32 %v4412_v7  ;;  %v4413_v17 = vadd.f32 1e-06, %v4411_v8 }
0x2608   :  { %9769 = vrsqrt.f32 %v4413_v17 }
0x2610   :  { %v9768_v9 = vpop.eup %9767 }
0x2611   :  { %v4416_v10 = vmul.f32 %v9768_v9, %v11159_v23 }
0x2612   :  { %v9770_v39 = vpop.eup %9769 }
0x2613   :  { %v4417_v12 = vmul.f32 %v9770_v39, %v11163_v2  ;;  %v4424_v51 = vmul.f32 %v7603_v11, %v4416_v10 }
0x2615   :  { %v4425_v13 = vmul.f32 %v7603_v11, %v4417_v12 }
0x2617   :  { %v4458_v16 = vpack.c.bf16 %v4425_v13, %v4424_v51 }
0x2619   :  { %4620 = vmatmul.mubr.bf16.vlgmr.msra.gmra.mrb[56].mxu0 %v4458_v16  ;;  %8546 = vmatmul.mubr.bf16.vlgmr.msra.gmra.mrb[76].mxu1 %v4458_v16 }
0x26ec   :  { %v4621_v50 = vpop.f32.mrb[56].mxu0  ;;  %v4664_v19 = vpop.f32.mrb[76].mxu1 }
0x26ed   :  { %v4623_v40 = vpop.f32.mrb[57].mxu0  ;;  %v8547_v20 = vpop.f32.mrb[77].mxu1  ;;  %v4671_v57 = vmul.f32 %v4621_v50, %v4397_v56 }
0x26ee   :  { %4699 = vrot.lane.b32.xlu1 %v4623_v40, %s10154_s3  ;;  %4691 = vrot.lane.b32.xlu0 %v4623_v40, %s10142_s16  ;;  %v4625_v14 = vpop.f32.mrb[58].mxu0  ;;  %v4667_v49 = vpop.f32.mrb[78].mxu1  ;;  %v4689_v30 = vmul.f32 %v4623_v40, %v4397_v56 }
0x26ef   :  { %v11192_v52 = vpack.i.bf16 %v4667_v49, %v4664_v19  ;;  %v4627_v55 = vpop.f32.mrb[59].mxu0  ;;  %v8548_v24 = vpop.f32.mrb[79].mxu1  ;;  %v4956_v58 = vpack.c.bf16 %v4667_v49, %v4664_v19  ;;  %v4672_v53 = vmul.f32 %v4625_v14, %v4398_v29 }
0x26f0   :  { %v4690_v35 = vmul.f32 %v4627_v55, %v4398_v29 }
0x26f1   :  { %8565 = vmatprep.subr.bf16.mxu1 %v4956_v58 }
0x26f2   :  { %4673 = vrot.lane.b32.xlu0 %v4621_v50, %s10142_s16  ;;  %4693 = vrot.lane.b32.xlu1 %v4627_v55, %s10142_s16 }
0x26f3   :  { %8566 = vmatpush3.bf16.msra.mxu1 %v4956_v58 }
0x26f6   :  { %4681 = vrot.lane.b32.xlu0 %v4621_v50, %s10154_s3  ;;  %4701 = vrot.lane.b32.xlu1 %v4627_v55, %s10154_s3 }
0x26fa   :  { %4675 = vrot.lane.b32.xlu1 %v4625_v14, %s10142_s16 }
0x26fe   :  { %4683 = vrot.lane.b32.xlu1 %v4625_v14, %s10154_s3 }
0x2760   :  { %v4700_v25 = vpop.permute.xlu1 %4699  ;;  %v4692_v15 = vpop.permute.xlu0 %4691 }
0x2761   :  { %v4695_v28 = vmul.f32 %v4692_v15, %v4399_v54  ;;  %v4703_v37 = vmul.f32 %v4700_v25, %v4401_v31 }
0x2763   :  { %v4697_v36 = vadd.f32 %v4695_v28, %v4689_v30 }
0x2764   :  { %v4694_v18 = vpop.permute.xlu1 %4693  ;;  %v4674_v33 = vpop.permute.xlu0 %4673 }
0x2765   :  { %v4696_v27 = vmul.f32 %v4694_v18, %v4400_v26  ;;  %v4705_v22 = vadd.f32 %v4703_v37, %v4697_v36  ;;  %v4677_v44 = vmul.f32 %v4674_v33, %v4399_v54  ;;  %v4389_v18 = vld [vmem:[%s11679_s12] sm:$0xff]  ;;  %v4390_v33 = vld [vmem:[%s11679_s12 + $0x8] sm:$0xff] }
0x2767   :  { %v4698_v38 = vadd.f32 %v4696_v27, %v4690_v35  ;;  %v4679_v62 = vadd.f32 %v4677_v44, %v4671_v57  ;;  %v4391_v27 = vld [vmem:[%s11679_s12 + $0x10] sm:$0xff]  ;;  %v4396_v57 = vld [vmem:[%s11679_s12 + $0x38] sm:$0xff] }
0x2768   :  { %v4702_v21 = vpop.permute.xlu1 %4701  ;;  %v4682_v46 = vpop.permute.xlu0 %4681 }
0x2769   :  { %v4704_v3 = vmul.f32 %v4702_v21, %v4402_v34  ;;  %v4685_v59 = vmul.f32 %v4682_v46, %v4401_v31 }
0x276b   :  { %v4706_v43 = vadd.f32 %v4704_v3, %v4698_v38  ;;  %v4687_v1 = vadd.f32 %v4685_v59, %v4679_v62  ;;  %v4392_v3 = vld [vmem:[%s11679_s12 + $0x18] sm:$0xff]  ;;  %v4395_v62 = vld [vmem:[%s11679_s12 + $0x30] sm:$0xff] }
0x276c   :  { %v4676_v47 = vpop.permute.xlu1 %4675 }
0x276d   :  { %v4678_v41 = vmul.f32 %v4676_v47, %v4400_v26  ;;  %v8999_v48 = vpack.i.bf16 %v4706_v43, %v4705_v22  ;;  %v4771_v45 = vpack.c.bf16 %v4706_v43, %v4705_v22 }
0x276f   :  { %9000 = vrot.lane.b32.xlu1 %v8999_v48, %s10151_s5  ;;  %8995 = vrot.lane.b32.xlu0 %v8999_v48, %s10152_s19  ;;  %v4788_v60 = vsel %vm644_vm1, %v4771_v45, 0  ;;  %v4680_v63 = vadd.f32 %v4678_v41, %v4672_v53  ;;  %v4393_v41 = vld [vmem:[%s11679_s12 + $0x20] sm:$0xff] }
0x2770   :  { %8689 = vmatprep.subr.msk.bf16.mxu0 %vm644_vm1, %v4771_v45  ;;  %v4684_v61 = vpop.permute.xlu1 %4683 }
0x2771   :  { %v4686_v0 = vmul.f32 %v4684_v61, %v4402_v34  ;;  %8550 = vmatpush3.bf16.xpose.msra.mxu0 %v4788_v60 }
0x2773   :  { %v4688_v5 = vadd.f32 %v4686_v0, %v4680_v63  ;;  %9005 = vrot.lane.b32.xlu0 %v8999_v48, %s10153_s6  ;;  %v4394_v48 = vld [vmem:[%s11679_s12 + $0x28] sm:$0xff] }
0x2775   :  { %v4767_v6 = vpack.c.bf16 %v4688_v5, %v4687_v1  ;;  %v9009_v42 = vpack.i.bf16 %v4688_v5, %v4687_v1 }
0x2777   :  { %8557 = vmatprep.mubr.msk.bf16.mxu0 %vm644_vm1, %v4767_v6  ;;  %9010 = vrot.lane.b32.xlu1 %v9009_v42, %s10152_s19 }
0x2778   :  { %9015 = vrot.lane.b32.xlu0 %v9009_v42, %s10151_s5 }
0x277b   :  { %9020 = vrot.lane.b32.xlu1 %v9009_v42, %s10153_s6 }
0x27e1   :  { %v9001_v7 = vpop.permute.xlu1 %9000  ;;  %v8996_v8 = vpop.permute.xlu0 %8995 }
0x27e2   :  { %v9003_v17 = vunpack.i.h.bf16 %v9001_v7  ;;  %v9002_v9 = vunpack.i.l.bf16 %v9001_v7  ;;  %v8998_v10 = vunpack.i.h.bf16 %v8996_v8  ;;  %v8997_v39 = vunpack.i.l.bf16 %v8996_v8 }
0x27e4   :  { %v4772_v11 = vpack.c.bf16 %v8998_v10, %v8997_v39  ;;  %v4773_v12 = vpack.c.bf16 %v9003_v17, %v9002_v9 }
0x27e5   :  { %v9006_v13 = vpop.permute.xlu0 %9005 }
0x27e6   :  { %8690 = vmatprep.subr.msk.bf16.mxu0 %vm644_vm1, %v4772_v11  ;;  %v4791_v51 = vsel %vm644_vm1, %v4772_v11, 0  ;;  %v9008_v16 = vunpack.i.h.bf16 %v9006_v13  ;;  %v9007_v50 = vunpack.i.l.bf16 %v9006_v13  ;;  %v4794_v40 = vsel %vm644_vm1, %v4773_v12, 0 }
0x27e7   :  { %8552 = vmatpush3.bf16.xpose.msra.mxu0 %v4791_v51 }
0x27e8   :  { %8691 = vmatprep.subr.msk.bf16.mxu0 %vm644_vm1, %v4773_v12  ;;  %v4774_v19 = vpack.c.bf16 %v9008_v16, %v9007_v50 }
0x27e9   :  { %v9011_v20 = vpop.permute.xlu1 %9010 }
0x27ea   :  { %v9016_v14 = vpop.permute.xlu0 %9015  ;;  %v4797_v49 = vsel %vm644_vm1, %v4774_v19, 0  ;;  %v9013_v55 = vunpack.i.h.bf16 %v9011_v20  ;;  %v9012_v24 = vunpack.i.l.bf16 %v9011_v20 }
0x27eb   :  { %v9018_v58 = vunpack.i.h.bf16 %v9016_v14  ;;  %v9017_v25 = vunpack.i.l.bf16 %v9016_v14 }
0x27ec   :  { %v4768_v54 = vpack.c.bf16 %v9013_v55, %v9012_v24 }
0x27ed   :  { %v4769_v15 = vpack.c.bf16 %v9018_v58, %v9017_v25  ;;  %v9021_v56 = vpop.permute.xlu1 %9020 }
0x27ee   :  { %v9023_v26 = vunpack.i.h.bf16 %v9021_v56  ;;  %v9022_v28 = vunpack.i.l.bf16 %v9021_v56 }
0x27ef   :  { %8554 = vmatpush3.bf16.xpose.msra.mxu0 %v4794_v40 }
0x27f0   :  { %8692 = vmatprep.subr.msk.bf16.mxu0 %vm644_vm1, %v4774_v19  ;;  %v4770_v29 = vpack.c.bf16 %v9023_v26, %v9022_v28 }
0x27f7   :  { %8556 = vmatpush3.bf16.xpose.msra.mxu0 %v4797_v49 }
0x27fe   :  { %8558 = vmatmul.mubr.msk.bf16.vlgmr.msra.gmra.mrb[60].mxu0 %vm644_vm1, %v4768_v54 }
0x27ff   :  { %8561 = vmatprep.mubr.msk.bf16.mxu0 %vm644_vm1, %v4769_v15 }
0x2806   :  { %8562 = vmatmul.mubr.msk.bf16.gmra.mrb[64].mxu0 %vm644_vm1, %v4770_v29 }
0x2807   :  { %5423 = vmatprep.mubr.bf16.mxu0 %v10149_v32 }
0x28d1   :  { %v8559_v30 = vpop.f32.mrb[60].mxu0 }
0x28d2   :  { %v4833_v31 = vpop.f32.mrb[61].mxu0  ;;  %v4842_v21 = vadd.f32 %v8559_v30, %v4391_v27 }
0x28d3   :  { %v4834_v34 = vadd.f32 %v4833_v31, %v4389_v18  ;;  %v8560_v35 = vpop.f32.mrb[62].mxu0 }
0x28d4   :  { %v4836_v36 = vpop.f32.mrb[63].mxu0  ;;  %v4845_v43 = vadd.f32 %v8560_v35, %v4392_v3  ;;  %v4870_v46 = vsel %vm734_vm2, %v4842_v21, -inf }
0x28d5   :  { %v4837_v37 = vadd.f32 %v4836_v36, %v4390_v33  ;;  %v4864_v38 = vsel %vm734_vm2, %v4834_v34, -inf }
0x28d6   :  { %4865 = vmax.xlane.f32.xlu0 %v4864_v38  ;;  %v4873_v61 = vsel %vm734_vm2, %v4845_v43, -inf }
0x28d7   :  { %v4867_v22 = vsel %vm734_vm2, %v4837_v37, -inf }
0x28d8   :  { %4868 = vmax.xlane.f32.xlu1 %v4867_v22 }
0x28d9   :  { %v8563_v44 = vpop.f32.mrb[64].mxu0 }
0x28da   :  { %v4849_v47 = vpop.f32.mrb[65].mxu0  ;;  %4871 = vmax.xlane.f32.xlu0 %v4870_v46  ;;  %v4858_v1 = vadd.f32 %v8563_v44, %v4395_v62 }
0x28db   :  { %v8564_v45 = vpop.f32.mrb[66].mxu0  ;;  %v4850_v59 = vadd.f32 %v4849_v47, %v4393_v41 }
0x28dc   :  { %v4852_v53 = vpop.f32.mrb[67].mxu0  ;;  %v4861_v63 = vadd.f32 %v8564_v45, %v4396_v57  ;;  %v4882_v42 = vsel %vm734_vm2, %v4858_v1, -inf }
0x28dd   :  { %v11235_v60 = vadd.f32 %v4852_v53, %v4394_v48  ;;  %v4876_v5 = vsel %vm734_vm2, %v4850_v59, -inf }
0x28de   :  { %4874 = vmax.xlane.f32.xlu0 %v4873_v61  ;;  %v4885_v6 = vsel %vm734_vm2, %v4861_v63, -inf }
0x28df   :  { %v4879_v0 = vsel %vm734_vm2, %v11235_v60, -inf }
0x28e0   :  { %4880 = vmax.xlane.f32.xlu1 %v4879_v0 }
0x28e2   :  { %4877 = vmax.xlane.f32.xlu0 %v4876_v5 }
0x28e4   :  { %4886 = vmax.xlane.f32.xlu1 %v4885_v6 }
0x28e6   :  { %4883 = vmax.xlane.f32.xlu0 %v4882_v42 }
0x2963   :  { %v4866_v7 = vpop.xlane.xlu0 %4865 }
0x2964   :  { %v4888_v8 = vsub.f32 %v4834_v34, %v4866_v7 }
0x2965   :  { %v4869_v17 = vpop.xlane.xlu1 %4868 }
0x2966   :  { %v4896_v39 = vmul.f32 1.442695, %v4888_v8  ;;  %v4889_v11 = vsub.f32 %v4837_v37, %v4869_v17 }
0x2967   :  { %v4872_v9 = vpop.xlane.xlu0 %4871 }
0x2968   :  { %v4890_v10 = vsub.f32 %v4842_v21, %v4872_v9  ;;  %v4898_v16 = vmul.f32 1.442695, %v4889_v11 }
0x296a   :  { %v4900_v12 = vmul.f32 1.442695, %v4890_v10 }
0x296b   :  { %v4875_v51 = vpop.xlane.xlu0 %4874 }
0x296c   :  { %9771 = vpow2.f32 %v4900_v12  ;;  %v4891_v13 = vsub.f32 %v4845_v43, %v4875_v51 }
0x296d   :  { %9773 = vpow2.f32 %v4896_v39  ;;  %v4881_v31 = vpop.xlane.xlu1 %4880 }
0x296e   :  { %v4902_v50 = vmul.f32 1.442695, %v4891_v13  ;;  %v4893_v35 = vsub.f32 %v11235_v60, %v4881_v31 }
0x296f   :  { %v4878_v19 = vpop.xlane.xlu0 %4877 }
0x2970   :  { %9775 = vpow2.f32 %v4902_v50  ;;  %v4892_v40 = vsub.f32 %v4850_v59, %v4878_v19  ;;  %v4906_v21 = vmul.f32 1.442695, %v4893_v35 }
0x2971   :  { %9777 = vpow2.f32 %v4898_v16  ;;  %v4887_v33 = vpop.xlane.xlu1 %4886 }
0x2972   :  { %v4904_v55 = vmul.f32 1.442695, %v4892_v40  ;;  %v4895_v34 = vsub.f32 %v4861_v63, %v4887_v33 }
0x2973   :  { %v4884_v20 = vpop.xlane.xlu0 %4883 }
0x2974   :  { %v4894_v14 = vsub.f32 %v4858_v1, %v4884_v20  ;;  %v4910_v36 = vmul.f32 1.442695, %v4895_v34  ;;  %v9402_v34 = vld [vmem:[%s11680_s27 + $0x38] sm:$0xff]  }
0x2976   :  { %v11244_v49 = vpop.eup %9771  ;;  %v4908_v24 = vmul.f32 1.442695, %v4894_v14 }
0x2977   :  { %v4918_v58 = vsel %vm734_vm2, %v11244_v49, 0.0  ;;  %v9774_v25 = vpop.eup %9773 }
0x2978   :  { %9779 = vpow2.f32 %v4908_v24  ;;  %4919 = vadd.xlane.f32.xlu0 %v4918_v58  ;;  %v4912_v15 = vsel %vm734_vm2, %v9774_v25, 0.0 }
0x2979   :  { %9781 = vpow2.f32 %v4904_v55 }
0x297a   :  { %v11248_v54 = vpop.eup %9775  ;;  %9783 = vpow2.f32 %v4910_v36 }
0x297b   :  { %v4921_v56 = vsel %vm734_vm2, %v11248_v54, 0.0  ;;  %v9778_v26 = vpop.eup %9777  ;;  %9785 = vpow2.f32 %v4906_v21 }
0x297c   :  { %4913 = vadd.xlane.f32.xlu0 %v4912_v15  ;;  %4922 = vadd.xlane.f32.xlu1 %v4921_v56  ;;  %v4915_v28 = vsel %vm734_vm2, %v9778_v26, 0.0  ;;  %v9397_v15 = vld [vmem:[%s11680_s27 + $0x10] sm:$0xff]   ;;  %v9398_v56 = vld [vmem:[%s11680_s27 + $0x18] sm:$0xff]  }
0x2980   :  { %4916 = vadd.xlane.f32.xlu1 %v4915_v28  ;;  %v9400_v28 = vld [vmem:[%s11680_s27 + $0x28] sm:$0xff]  }
0x2982   :  { %v11254_v29 = vpop.eup %9779 }
0x2983   :  { %v4930_v18 = vsel %vm734_vm2, %v11254_v29, 0.0  ;;  %v11258_v30 = vpop.eup %9781 }
0x2984   :  { %4931 = vadd.xlane.f32.xlu0 %v4930_v18  ;;  %v4924_v27 = vsel %vm734_vm2, %v11258_v30, 0.0  ;;  %v9784_v37 = vpop.eup %9783 }
0x2985   :  { %v4933_v38 = vsel %vm734_vm2, %v9784_v37, 0.0  ;;  %v9786_v3 = vpop.eup %9785 }
0x2986   :  { %v4927_v22 = vsel %vm734_vm2, %v9786_v3, 0.0 }
0x2988   :  { %4925 = vadd.xlane.f32.xlu0 %v4924_v27 }
0x2991   :  { %9030 = vrot.lane.b32.xlu1 %v11192_v52, %s10151_s5 }
0x299e   :  { %9025 = vrot.lane.b32.xlu0 %v11192_v52, %s10152_s19 }
0x29b5   :  { %4934 = vadd.xlane.f32.xlu1 %v4933_v38 }
0x29b9   :  { %4928 = vadd.xlane.f32.xlu1 %v4927_v22 }
0x29ca   :  { %9035 = vrot.lane.b32.xlu1 %v11192_v52, %s10153_s6 }
0x2a05   :  { %v4920_v43 = vpop.xlane.xlu0 %4919 }
0x2a09   :  { %v4923_v44 = vpop.xlane.xlu1 %4922  ;;  %v4914_v46 = vpop.xlane.xlu0 %4913 }
0x2a0a   :  { %9787 = vrcp.f32 %v4914_v46 }
0x2a0d   :  { %v4917_v47 = vpop.xlane.xlu1 %4916 }
0x2a0e   :  { %9789 = vrcp.f32 %v4917_v47 }
0x2a0f   :  { %9791 = vrcp.f32 %v4923_v44 }
0x2a10   :  { %9793 = vrcp.f32 %v4920_v43 }
0x2a11   :  { %v4932_v41 = vpop.xlane.xlu0 %4931  ;;  %v9031_v57 = vpop.permute.xlu1 %9030 }
0x2a12   :  { %v9033_v62 = vunpack.i.h.bf16 %v9031_v57  ;;  %v9032_v63 = vunpack.i.l.bf16 %v9031_v57 }
0x2a14   :  { %v9788_v45 = vpop.eup %9787  ;;  %v4958_v6 = vpack.c.bf16 %v9033_v62, %v9032_v63 }
0x2a15   :  { %v4926_v48 = vpop.xlane.xlu0 %4925  ;;  %v4944_v60 = vmul.f32 %v9788_v45, %v9774_v25  ;;  %v9395_v25 = vld [vmem:[%s11680_s27] sm:$0xff]  }
0x2a16   :  { %9795 = vrcp.f32 %v4926_v48 }
0x2a18   :  { %v9790_v53 = vpop.eup %9789 }
0x2a19   :  { %v9026_v59 = vpop.permute.xlu0 %9025  ;;  %v4945_v61 = vmul.f32 %v9790_v53, %v9778_v26  ;;  %v9792_v8 = vpop.eup %9791  ;;  %v9399_v26 = vld [vmem:[%s11680_s27 + $0x20] sm:$0xff]  }
0x2a1a   :  { %v9028_v0 = vunpack.i.h.bf16 %v9026_v59  ;;  %v9027_v1 = vunpack.i.l.bf16 %v9026_v59  ;;  %v9794_v39 = vpop.eup %9793  ;;  %v4947_v11 = vmul.f32 %v9792_v8, %v11248_v54  ;;  %v9396_v54 = vld [vmem:[%s11680_s27 + $0x8] sm:$0xff]   ;;  %v9409_v8 = vld [vmem:[%s11681_s4 + $0x20] ss:$16 sps:$4 sm:$0xff]  }
0x2a1b   :  { %v4952_v5 = vpack.c.bf16 %v4945_v61, %v4944_v60  ;;  %v4946_v13 = vmul.f32 %v9794_v39, %v11244_v49  ;;  %v9415_v39 = vld [vmem:[%s11681_s4 + $0x40] ss:$16 sps:$4 sm:$0xff]  }
0x2a1c   :  { %v4957_v52 = vpack.c.bf16 %v9028_v0, %v9027_v1  ;;  %v9403_v1 = vld [vmem:[%s11681_s4] ss:$16 sps:$4 sm:$0xff]  }
0x2a1d   :  { %8573 = vmatprep.mubr.msk.bf16.mxu1 %vm734_vm2, %v4952_v5  ;;  %v4953_v50 = vpack.c.bf16 %v4947_v11, %v4946_v13  ;;  %v9405_v5 = vld [vmem:[%s11681_s4 + $0x4] ss:$16 sps:$4 sm:$0xff]   ;;  %v9418_v11 = vld [vmem:[%s11681_s4 + $0x48] ss:$16 sps:$4 sm:$0xff]  }
0x2a1e   :  { %8567 = vmatprep.subr.bf16.mxu1 %v4957_v52  ;;  %5391 = vmatprep.subr.bf16.mxu0 %v9405_v5  ;;  %v9460_v5 = vld [vmem:[%s10345_s24 + $0x20] sm:$0xff]  }
0x2a1f   :  { %8568 = vmatpush3.bf16.msra.mxu1 %v4957_v52  ;;  %v9406_v52 = vld [vmem:[%s11681_s4 + $0x8] ss:$16 sps:$4 sm:$0xff]   ;;  %5392 = vmatpush1.bf16.msra.mxu0 %v9403_v1  ;;  %v9459_v1 = vld [vmem:[%s10345_s24 + $0x60] sm:$0xff]  }
0x2a20   :  { %8569 = vmatprep.subr.bf16.mxu1 %v4958_v6  ;;  %v9796_v51 = vpop.eup %9795 }
0x2a21   :  { %v4948_v40 = vmul.f32 %v9796_v51, %v11258_v30 }
0x2a23   :  { %8570 = vmatpush3.bf16.msra.mxu1 %v4958_v6  ;;  %v9408_v6 = vld [vmem:[%s11681_s4 + $0xc] ss:$16 sps:$4 sm:$0xff]  }
0x2a42   :  { %v4935_v42 = vpop.xlane.xlu1 %4934 }
0x2a46   :  { %v4929_v7 = vpop.xlane.xlu1 %4928 }
0x2a47   :  { %9797 = vrcp.f32 %v4929_v7  ;;  %v9414_v7 = vld [vmem:[%s11681_s4 + $0x2c] ss:$16 sps:$4 sm:$0xff]  }
0x2a48   :  { %9799 = vrcp.f32 %v4935_v42  ;;  %v9411_v42 = vld [vmem:[%s11681_s4 + $0x24] ss:$16 sps:$4 sm:$0xff]  }
0x2a49   :  { %9801 = vrcp.f32 %v4932_v41  ;;  %5393 = vmatprep.subr.bf16.mxu0 %v9411_v42  ;;  %v9463_v42 = vld [vmem:[%s10345_s24 + $0x70] sm:$0xff]  }
0x2a4a   :  { %v9036_v17 = vpop.permute.xlu1 %9035  ;;  %5394 = vmatpush1.bf16.msra.mxu0 %v9409_v8  ;;  %v9465_v8 = vld [vmem:[%s10345_s24 + $0x78] sm:$0xff]  }
0x2a4b   :  { %v9038_v9 = vunpack.i.h.bf16 %v9036_v17  ;;  %v9037_v10 = vunpack.i.l.bf16 %v9036_v17  ;;  %v9412_v17 = vld [vmem:[%s11681_s4 + $0x28] ss:$16 sps:$4 sm:$0xff]  }
0x2a4d   :  { %v4959_v12 = vpack.c.bf16 %v9038_v9, %v9037_v10  ;;  %v9417_v9 = vld [vmem:[%s11681_s4 + $0x44] ss:$16 sps:$4 sm:$0xff]   ;;  %v9420_v10 = vld [vmem:[%s11681_s4 + $0x4c] ss:$16 sps:$4 sm:$0xff]  }
0x2a4e   :  { %5395 = vmatprep.subr.bf16.mxu0 %v9417_v9 }
0x2a4f   :  { %8571 = vmatprep.subr.bf16.mxu1 %v4959_v12  ;;  %5396 = vmatpush1.bf16.msra.mxu0 %v9415_v39 }
0x2a50   :  { %8572 = vmatpush3.bf16.msra.mxu1 %v4959_v12 }
0x2a51   :  { %v9798_v16 = vpop.eup %9797  ;;  %8581 = vmatprep.subr.bf16.mxu1 %v10148_v4 }
0x2a52   :  { %v9800_v19 = vpop.eup %9799  ;;  %v4949_v20 = vmul.f32 %v9798_v16, %v9786_v3 }
0x2a53   :  { %8574 = vmatmul.mubr.msk.bf16.vlgmr.msra.gmra.mrb[80].mxu1 %vm734_vm2, %v4953_v50  ;;  %v9802_v14 = vpop.eup %9801  ;;  %v4951_v24 = vmul.f32 %v9800_v19, %v9784_v37 }
0x2a54   :  { %v4954_v55 = vpack.c.bf16 %v4949_v20, %v4948_v40  ;;  %v4950_v49 = vmul.f32 %v9802_v14, %v11254_v29  ;;  %8582 = vmatpush3.bf16.msra.mxu1 %v9395_v25  ;;  %v9401_v29 = vld [vmem:[%s11680_s27 + $0x30] sm:$0xff]   ;;  %v9426_v14 = vld [vmem:[%s11681_s4 + $0x6c] ss:$16 sps:$4 sm:$0xff]   ;;  %v9430_v25 = vld [vmem:[%s11681_s4 + $0x88] ss:$16 sps:$4 sm:$0xff]  }
0x2a55   :  { %8583 = vmatprep.subr.bf16.mxu1 %v10148_v4 }
0x2a56   :  { %8577 = vmatprep.mubr.msk.bf16.mxu1 %vm734_vm2, %v4954_v55  ;;  %v4955_v58 = vpack.c.bf16 %v4951_v24, %v4950_v49  ;;  %v9421_v55 = vld [vmem:[%s11681_s4 + $0x60] ss:$16 sps:$4 sm:$0xff]   ;;  %v9424_v24 = vld [vmem:[%s11681_s4 + $0x68] ss:$16 sps:$4 sm:$0xff]   ;;  %v9432_v49 = vld [vmem:[%s11681_s4 + $0x8c] ss:$16 sps:$4 sm:$0xff]  }
0x2a58   :  { %8584 = vmatpush3.bf16.msra.mxu1 %v9396_v54  ;;  %v9435_v54 = vld [vmem:[%s11681_s4 + $0xa4] ss:$16 sps:$4 sm:$0xff]  }
0x2a59   :  { %8585 = vmatprep.subr.bf16.mxu1 %v10148_v4 }
0x2a5b   :  { %8578 = vmatmul.mubr.msk.bf16.gmra.mrb[84].mxu1 %vm734_vm2, %v4955_v58  ;;  %v9427_v58 = vld [vmem:[%s11681_s4 + $0x80] ss:$16 sps:$4 sm:$0xff]  }
0x2a5c   :  { %8597 = vmatprep.mubr.msk.bf16.mxu1 %vm10150_vm0, %v10148_v4  ;;  %8586 = vmatpush3.bf16.msra.mxu1 %v9397_v15  ;;  %v9438_v15 = vld [vmem:[%s11681_s4 + $0xac] ss:$16 sps:$4 sm:$0xff]  }
0x2a5d   :  { %8587 = vmatprep.subr.bf16.mxu1 %v10148_v4 }
0x2a60   :  { %8588 = vmatpush3.bf16.msra.mxu1 %v9398_v56  ;;  %v9433_v56 = vld [vmem:[%s11681_s4 + $0xa0] ss:$16 sps:$4 sm:$0xff]  }
0x2a61   :  { %8589 = vmatprep.subr.bf16.mxu1 %v10148_v4 }
0x2a64   :  { %8590 = vmatpush3.bf16.msra.mxu1 %v9399_v26  ;;  %v9436_v26 = vld [vmem:[%s11681_s4 + $0xa8] ss:$16 sps:$4 sm:$0xff]  }
0x2a65   :  { %8591 = vmatprep.subr.bf16.mxu1 %v10148_v4 }
0x2a68   :  { %8592 = vmatpush3.bf16.msra.mxu1 %v9400_v28  ;;  %v9441_v28 = vld [vmem:[%s11681_s4 + $0xc4] ss:$16 sps:$4 sm:$0xff]  }
0x2a69   :  { %8593 = vmatprep.subr.bf16.mxu1 %v10148_v4 }
0x2a6c   :  { %8594 = vmatpush3.bf16.msra.mxu1 %v9401_v29  ;;  %v9444_v29 = vld [vmem:[%s11681_s4 + $0xcc] ss:$16 sps:$4 sm:$0xff]  }
0x2a6d   :  { %8595 = vmatprep.subr.bf16.mxu1 %v10148_v4 }
0x2a70   :  { %8596 = vmatpush3.bf16.msra.mxu1 %v9402_v34  ;;  %v9450_v34 = vld [vmem:[%s11681_s4 + $0xec] ss:$16 sps:$4 sm:$0xff]  }
0x2a71   :  { %5434 = vmatprep.subr.bf16.mxu1 %v9408_v6  ;;  %v9462_v6 = vld [vmem:[%s10345_s24 + $0x28] sm:$0xff]  }
0x2b26   :  { %v8575_v18 = vpop.f32.mrb[80].mxu1 }
0x2b27   :  { %v5006_v30 = vpop.f32.mrb[81].mxu1 }
0x2b28   :  { %v8576_v27 = vpop.f32.mrb[82].mxu1 }
0x2b29   :  { %v9039_v31 = vpack.i.bf16 %v8576_v27, %v8575_v18  ;;  %v5009_v33 = vpop.f32.mrb[83].mxu1  ;;  %v9439_v18 = vld [vmem:[%s11681_s4 + $0xc0] ss:$16 sps:$4 sm:$0xff]  }
0x2b2a   :  { %v9445_v27 = vld [vmem:[%s11681_s4 + $0xe0] ss:$16 sps:$4 sm:$0xff]  }
0x2b2b   :  { %9040 = vrot.lane.b32.xlu1 %v9039_v31, %s10153_s6  ;;  %v9447_v31 = vld [vmem:[%s11681_s4 + $0xe4] ss:$16 sps:$4 sm:$0xff]  }
0x2b2e   :  { %v8579_v35 = vpop.f32.mrb[84].mxu1 }
0x2b2f   :  { %v5022_v36 = vpop.f32.mrb[85].mxu1 }
0x2b30   :  { %v8580_v21 = vpop.f32.mrb[86].mxu1 }
0x2b31   :  { %v9049_v37 = vpack.i.bf16 %v8580_v21, %v8579_v35  ;;  %v5025_v38 = vpop.f32.mrb[87].mxu1 }
0x2b32   :  { %v9044_v3 = vpack.i.bf16 %v5025_v38, %v5022_v36 }
0x2b33   :  { %9050 = vrot.lane.b32.xlu1 %v9049_v37, %s10152_s19 }
0x2b34   :  { %9045 = vrot.lane.b32.xlu0 %v9044_v3, %s10151_s5 }
0x2b9d   :  { %v9041_v22 = vpop.permute.xlu1 %9040 }
0x2b9e   :  { %v9043_v43 = vunpack.i.h.bf16 %v9041_v22  ;;  %v9042_v44 = vunpack.i.l.bf16 %v9041_v22 }
0x2ba0   :  { %v5061_v45 = vsel %vm644_vm1, %v5006_v30, %v9042_v44  ;;  %v5062_v57 = vsel %vm644_vm1, %v5009_v33, %v9043_v43  ;;  %v9442_v30 = vld [vmem:[%s11681_s4 + $0xc8] ss:$16 sps:$4 sm:$0xff]  }
0x2ba1   :  { %v9448_v33 = vld [vmem:[%s11681_s4 + $0xe8] ss:$16 sps:$4 sm:$0xff]  }
0x2ba5   :  { %v9051_v46 = vpop.permute.xlu1 %9050 }
0x2ba6   :  { %v9046_v47 = vpop.permute.xlu0 %9045  ;;  %v9053_v53 = vunpack.i.h.bf16 %v9051_v46  ;;  %v9052_v59 = vunpack.i.l.bf16 %v9051_v46  ;;  %v7644_v46 = vld [vmem:[#allocation11] ss:$0 sm:$0xff] }
0x2ba7   :  { %v9048_v41 = vunpack.i.h.bf16 %v9046_v47  ;;  %v9047_v48 = vunpack.i.l.bf16 %v9046_v47 }
0x2ba9   :  { %v5064_v60 = vsel %vm734_vm2, %v5062_v57, %v9048_v41  ;;  %v5063_v61 = vsel %vm734_vm2, %v5061_v45, %v9047_v48  ;;  %v9451_v57 = vld [vmem:[%s10345_s24 + $0x40] sm:$0xff]  }
0x2baa   :  { %v5066_v62 = vsel %vm936_vm3, %v5064_v60, %v9053_v53  ;;  %v5065_v63 = vsel %vm936_vm3, %v5063_v61, %v9052_v59  ;;  %v9452_v53 = vld [vmem:[%s10345_s24] sm:$0xff]   ;;  %v9453_v59 = vld [vmem:[%s10345_s24 + $0x48] sm:$0xff]   ;;  %v9455_v61 = vld [vmem:[%s10345_s24 + $0x50] sm:$0xff]  }
0x2bab   :  { %v5083_v0 = vpack.c.bf16 %v5066_v62, %v5065_v63  ;;  %v9454_v60 = vld [vmem:[%s10345_s24 + $0x8] sm:$0xff]   ;;  %v9456_v62 = vld [vmem:[%s10345_s24 + $0x10] sm:$0xff]   ;;  %v9457_v63 = vld [vmem:[%s10345_s24 + $0x58] sm:$0xff]  }
0x2bad   :  { %8598 = vmatmul.mubr.bf16.vlgmr.msra.gmra.mrb[88].mxu1 %v5083_v0  ;;  %v9458_v0 = vld [vmem:[%s10345_s24 + $0x18] sm:$0xff]  }
0x2bae   :  { %5466 = vmatprep.mubr.bf16.mxu1 %v10149_v32  ;;  %5435 = vmatpush1.bf16.msra.mxu1 %v9406_v52  ;;  %v9461_v52 = vld [vmem:[%s10345_s24 + $0x68] sm:$0xff]  }
0x2baf   :  { %5436 = vmatprep.subr.bf16.mxu1 %v9414_v7  ;;  %v9464_v7 = vld [vmem:[%s10345_s24 + $0x30] sm:$0xff]  }
0x2bb2   :  { %5437 = vmatpush1.bf16.msra.mxu1 %v9412_v17  ;;  %v9466_v17 = vld [vmem:[%s10345_s24 + $0x38] sm:$0xff]  }
0x2bb3   :  { %5438 = vmatprep.subr.bf16.mxu1 %v9420_v10 }
0x2bb6   :  { %5439 = vmatpush1.bf16.msra.mxu1 %v9418_v11 }
0x2bb7   :  { %5440 = vmatprep.subr.bf16.mxu1 %v9426_v14 }
0x2bba   :  { %5441 = vmatpush1.bf16.msra.mxu1 %v9424_v24 }
0x2bbb   :  { %5442 = vmatprep.subr.bf16.mxu1 %v9432_v49 }
0x2bbe   :  { %5443 = vmatpush1.bf16.msra.mxu1 %v9430_v25 }
0x2bbf   :  { %5444 = vmatprep.subr.bf16.mxu1 %v9438_v15 }
0x2bc2   :  { %5445 = vmatpush1.bf16.msra.mxu1 %v9436_v26 }
0x2bc3   :  { %5446 = vmatprep.subr.bf16.mxu1 %v9444_v29 }
0x2bc6   :  { %5447 = vmatpush1.bf16.msra.mxu1 %v9442_v30 }
0x2bc7   :  { %5448 = vmatprep.subr.bf16.mxu1 %v9450_v34 }
0x2bca   :  { %5449 = vmatpush1.bf16.msra.mxu1 %v9448_v33 }
0x2c80   :  { %v5166_v12 = vpop.f32.mrb[88].mxu1 }
0x2c81   :  { %v11320_v51 = vadd.f32 %v5166_v12, %v11159_v23  ;;  %v8599_v13 = vpop.f32.mrb[89].mxu1  ;;  %v9423_v23 = vld [vmem:[%s11681_s4 + $0x64] ss:$16 sps:$4 sm:$0xff]  }
0x2c82   :  { %v5169_v16 = vpop.f32.mrb[90].mxu1  ;;  %5397 = vmatprep.subr.bf16.mxu0 %v9423_v23 }
0x2c83   :  { %v11323_v50 = vadd.f32 %v5169_v16, %v11163_v2  ;;  %v8600_v19 = vpop.f32.mrb[91].mxu1  ;;  %v5176_v40 = vmul.f32 %v11320_v51, %v11320_v51  ;;  %5398 = vmatpush1.bf16.msra.mxu0 %v9421_v55  ;;  %v9429_v2 = vld [vmem:[%s11681_s4 + $0x84] ss:$16 sps:$4 sm:$0xff]  }
0x2c84   :  { %5399 = vmatprep.subr.bf16.mxu0 %v9429_v2 }
0x2c85   :  { %5178 = vadd.xlane.f32.xlu0 %v5176_v40  ;;  %v5177_v20 = vmul.f32 %v11323_v50, %v11323_v50 }
0x2c87   :  { %5180 = vadd.xlane.f32.xlu1 %v5177_v20  ;;  %5400 = vmatpush1.bf16.msra.mxu0 %v9427_v58 }
0x2c88   :  { %5401 = vmatprep.subr.bf16.mxu0 %v9435_v54 }
0x2c8b   :  { %5402 = vmatpush1.bf16.msra.mxu0 %v9433_v56 }
0x2c8c   :  { %5403 = vmatprep.subr.bf16.mxu0 %v9441_v28 }
0x2c8f   :  { %5404 = vmatpush1.bf16.msra.mxu0 %v9439_v18 }
0x2c90   :  { %5405 = vmatprep.subr.bf16.mxu0 %v9447_v31 }
0x2c93   :  { %5406 = vmatpush1.bf16.msra.mxu0 %v9445_v27 }
0x2c94   :  { %8143 = vmatprep.subr.bf16.mxu0 %v9451_v57 }
0x2d12   :  { %v5179_v35 = vpop.xlane.xlu0 %5178 }
0x2d13   :  { %v5182_v36 = vmul.f32 0.0078125, %v5179_v35 }
0x2d14   :  { %v5181_v21 = vpop.xlane.xlu1 %5180 }
0x2d15   :  { %v5184_v37 = vadd.f32 1e-06, %v5182_v36  ;;  %v5183_v38 = vmul.f32 0.0078125, %v5181_v21 }
0x2d17   :  { %9803 = vrsqrt.f32 %v5184_v37  ;;  %v5185_v3 = vadd.f32 1e-06, %v5183_v38  ;;  %v9467_v38 = vld [vmem:[%s11675_s29 + $0xc0] ss:$12 sps:$4 sm:$0xff]  }
0x2d19   :  { %9805 = vrsqrt.f32 %v5185_v3  ;;  %v9469_v3 = vld [vmem:[%s11675_s29 + $0xc4] ss:$12 sps:$4 sm:$0xff]  }
0x2d1a   :  { %5868 = vmatprep.subr.bf16.mxu1 %v9469_v3  ;;  %v9901_v3 = vld [vmem:[%s11677_s14] sm:$0xff] }
0x2d21   :  { %v9804_v22 = vpop.eup %9803 }
0x2d22   :  { %v5188_v43 = vmul.f32 %v9804_v22, %v11320_v51  ;;  %v9470_v22 = vld [vmem:[%s11675_s29 + $0xc8] ss:$12 sps:$4 sm:$0xff]  }
0x2d23   :  { %v9806_v44 = vpop.eup %9805 }
0x2d24   :  { %v5189_v47 = vmul.f32 %v9806_v44, %v11323_v50  ;;  %v5196_v41 = vmul.f32 %v7644_v46, %v5188_v43  ;;  %v9473_v43 = vld [vmem:[%s11675_s29 + $0xdc] ss:$12 sps:$4 sm:$0xff]   ;;  %v9474_v44 = vld [vmem:[%s11675_s29 + $0xe0] ss:$12 sps:$4 sm:$0xff]  }
0x2d26   :  { %v5197_v48 = vmul.f32 %v7644_v46, %v5189_v47  ;;  %v9471_v46 = vld [vmem:[%s11675_s29 + $0xd8] ss:$12 sps:$4 sm:$0xff]  }
0x2d28   :  { %v5230_v45 = vpack.c.bf16 %v5197_v48, %v5196_v41 }
0x2d2a   :  { %5424 = vmatmul.mubr.bf16.vlgmr.msra.gmra.mrb[68].mxu0 %v5230_v45  ;;  %5467 = vmatmul.mubr.bf16.vlgmr.msra.gmra.mrb[92].mxu1 %v5230_v45 }
0x2d2b   :  { %5900 = vmatprep.mubr.bf16.mxu1 %v10149_v32  ;;  %8144 = vmatpush3.bf16.msra.mxu0 %v9452_v53 }
0x2d2c   :  { %8145 = vmatprep.subr.bf16.mxu0 %v9453_v59  ;;  %5869 = vmatpush1.bf16.msra.mxu1 %v9467_v38 }
0x2d2d   :  { %5870 = vmatprep.subr.bf16.mxu1 %v9473_v43  ;;  %v9902_v43 = vld [vmem:[%s11676_s8 + $0x8] sm:$0xff] }
0x2d2f   :  { %8146 = vmatpush3.bf16.msra.mxu0 %v9454_v60 }
0x2d30   :  { %8147 = vmatprep.subr.bf16.mxu0 %v9455_v61  ;;  %5871 = vmatpush1.bf16.msra.mxu1 %v9471_v46 }
0x2d33   :  { %8148 = vmatpush3.bf16.msra.mxu0 %v9456_v62 }
0x2d34   :  { %8149 = vmatprep.subr.bf16.mxu0 %v9457_v63  ;;  %v9477_v63 = vld [vmem:[%s11675_s29 + $0xf4] ss:$12 sps:$4 sm:$0xff]  }
0x2d35   :  { %5872 = vmatprep.subr.bf16.mxu1 %v9477_v63 }
0x2d37   :  { %8150 = vmatpush3.bf16.msra.mxu0 %v9458_v0  ;;  %v9475_v0 = vld [vmem:[%s11675_s29 + $0xf0] ss:$12 sps:$4 sm:$0xff]  }
0x2d38   :  { %8151 = vmatprep.subr.bf16.mxu0 %v9459_v1  ;;  %5873 = vmatpush1.bf16.msra.mxu1 %v9475_v0  ;;  %v9479_v1 = vld [vmem:[%s11675_s29 + $0x108] ss:$12 sps:$4 sm:$0xff]  }
0x2d3b   :  { %8152 = vmatpush3.bf16.msra.mxu0 %v9460_v5  ;;  %v9482_v5 = vld [vmem:[%s11675_s29 + $0x110] ss:$12 sps:$4 sm:$0xff]  }
0x2d3c   :  { %8153 = vmatprep.subr.bf16.mxu0 %v9461_v52  ;;  %v9483_v52 = vld [vmem:[%s11675_s29 + $0x120] ss:$12 sps:$4 sm:$0xff]  }
0x2d3f   :  { %8154 = vmatpush3.bf16.msra.mxu0 %v9462_v6  ;;  %v9485_v6 = vld [vmem:[%s11675_s29 + $0x124] ss:$12 sps:$4 sm:$0xff]  }
0x2d40   :  { %8155 = vmatprep.subr.bf16.mxu0 %v9463_v42  ;;  %v9486_v42 = vld [vmem:[%s11675_s29 + $0x128] ss:$12 sps:$4 sm:$0xff]  }
0x2d43   :  { %8156 = vmatpush3.bf16.msra.mxu0 %v9464_v7  ;;  %v9489_v7 = vld [vmem:[%s11675_s29 + $0x13c] ss:$12 sps:$4 sm:$0xff]  }
0x2d44   :  { %8157 = vmatprep.subr.bf16.mxu0 %v9465_v8  ;;  %v9487_v8 = vld [vmem:[%s11675_s29 + $0x138] ss:$12 sps:$4 sm:$0xff]  }
0x2d47   :  { %8158 = vmatpush3.bf16.msra.mxu0 %v9466_v17  ;;  %v9490_v17 = vld [vmem:[%s11675_s29 + $0x140] ss:$12 sps:$4 sm:$0xff]  }
0x2d48   :  { %8601 = vmatprep.subr.bf16.mxu0 %v10148_v4 }
0x2dfd   :  { %v5425_v9 = vpop.f32.mrb[68].mxu0  ;;  %v5468_v10 = vpop.f32.mrb[92].mxu1 }
0x2dfe   :  { %v7677_v39 = vmul.f32 -1.442695, %v5425_v9  ;;  %v5427_v11 = vpop.f32.mrb[69].mxu0  ;;  %v5470_v12 = vpop.f32.mrb[93].mxu1 }
0x2dff   :  { %v7678_v13 = vmul.f32 -1.442695, %v5427_v11  ;;  %v5429_v16 = vpop.f32.mrb[70].mxu0  ;;  %v5472_v19 = vpop.f32.mrb[94].mxu1 }
0x2e00   :  { %9807 = vpow2.f32 %v7677_v39  ;;  %v7679_v40 = vmul.f32 -1.442695, %v5429_v16  ;;  %v5431_v20 = vpop.f32.mrb[71].mxu0  ;;  %v5474_v23 = vpop.f32.mrb[95].mxu1  ;;  %v9494_v39 = vld [vmem:[%s11675_s29 + $0x158] ss:$12 sps:$4 sm:$0xff]  }
0x2e01   :  { %9809 = vpow2.f32 %v7678_v13  ;;  %v7680_v14 = vmul.f32 -1.442695, %v5431_v20  ;;  %v9498_v13 = vld [vmem:[%s11675_s29 + $0x170] ss:$12 sps:$4 sm:$0xff]  }
0x2e02   :  { %9811 = vpow2.f32 %v7679_v40 }
0x2e03   :  { %9813 = vpow2.f32 %v7680_v14 }
0x2e0a   :  { %v9808_v55 = vpop.eup %9807 }
0x2e0b   :  { %v9810_v24 = vpop.eup %9809  ;;  %v5489_v2 = vadd.f32 1.0, %v9808_v55 }
0x2e0c   :  { %v9812_v49 = vpop.eup %9811  ;;  %v5490_v58 = vadd.f32 1.0, %v9810_v24 }
0x2e0d   :  { %v9814_v25 = vpop.eup %9813  ;;  %9815 = vrcp.f32 %v5489_v2  ;;  %v5491_v54 = vadd.f32 1.0, %v9812_v49  ;;  %v7697_v49 = vld [vmem:[#allocation10 + $0x1] ss:$0 sm:$0xff] }
0x2e0e   :  { %9817 = vrcp.f32 %v5490_v58  ;;  %v5492_v15 = vadd.f32 1.0, %v9814_v25 }
0x2e0f   :  { %9819 = vrcp.f32 %v5491_v54 }
0x2e10   :  { %9821 = vrcp.f32 %v5492_v15 }
0x2e17   :  { %v9816_v56 = vpop.eup %9815 }
0x2e18   :  { %v9818_v26 = vpop.eup %9817  ;;  %v5501_v28 = vmul.f32 %v9816_v56, %v5425_v9  ;;  %v9493_v9 = vld [vmem:[%s11675_s29 + $0x154] ss:$12 sps:$4 sm:$0xff]  }
0x2e19   :  { %v9820_v29 = vpop.eup %9819  ;;  %v5502_v18 = vmul.f32 %v9818_v26, %v5427_v11  ;;  %v9497_v11 = vld [vmem:[%s11675_s29 + $0x16c] ss:$12 sps:$4 sm:$0xff]  }
0x2e1a   :  { %v9822_v30 = vpop.eup %9821  ;;  %v5505_v27 = vmul.f32 %v5501_v28, %v5468_v10  ;;  %v5503_v31 = vmul.f32 %v9820_v29, %v5429_v16  ;;  %v9491_v10 = vld [vmem:[%s11675_s29 + $0x150] ss:$12 sps:$4 sm:$0xff]  }
0x2e1b   :  { %v5506_v33 = vmul.f32 %v5502_v18, %v5470_v12  ;;  %v5504_v34 = vmul.f32 %v9822_v30, %v5431_v20  ;;  %v9495_v12 = vld [vmem:[%s11675_s29 + $0x168] ss:$12 sps:$4 sm:$0xff]  }
0x2e1c   :  { %v5507_v35 = vmul.f32 %v5503_v31, %v5472_v19 }
0x2e1d   :  { %v5508_v36 = vmul.f32 %v5504_v34, %v5474_v23 }
0x2e1e   :  { %v5541_v21 = vpack.c.bf16 %v5507_v35, %v5505_v27 }
0x2e1f   :  { %v5542_v37 = vpack.c.bf16 %v5508_v36, %v5506_v33 }
0x2e21   :  { %5671 = vmatprep.mubr.bf16.mxu0 %v5542_v37 }
0x2e22   :  { %5672 = vmatmul.mubr.bf16.vlgmr.msra.gmra.mrb[72].mxu0 %v5541_v21  ;;  %v9900_v21 = vld [vmem:[%s11676_s8] sm:$0xff] }
0x2e23   :  { %8617 = vmatprep.mubr.msk.bf16.mxu0 %vm10150_vm0, %v10148_v4  ;;  %8602 = vmatpush3.bf16.msra.mxu0 %v9470_v22 }
0x2e24   :  { %8603 = vmatprep.subr.bf16.mxu0 %v10148_v4 }
0x2e27   :  { %8604 = vmatpush3.bf16.msra.mxu0 %v9474_v44 }
0x2e28   :  { %8605 = vmatprep.subr.bf16.mxu0 %v10148_v4 }
0x2ef5   :  { %v8159_v47 = vpop.f32.mrb[72].mxu0 }
0x2ef6   :  { %v8160_v41 = vpop.f32.mrb[73].mxu0 }
0x2ef7   :  { %v8161_v48 = vadd.f32 %v8160_v41, %v8159_v47  ;;  %v8162_v45 = vpop.f32.mrb[74].mxu0  ;;  %v9903_v47 = vld [vmem:[%s11677_s14 + $0x8] sm:$0xff] }
0x2ef8   :  { %v8163_v57 = vpop.f32.mrb[75].mxu0 }
0x2ef9   :  { %v11380_v53 = vadd.f32 %v8161_v48, %v11320_v51  ;;  %v8164_v59 = vadd.f32 %v8163_v57, %v8162_v45  ;;  %v9478_v51 = vld [vmem:[%s11675_s29 + $0xf8] ss:$12 sps:$4 sm:$0xff]  }
0x2efa   :  { %8606 = vmatpush3.bf16.msra.mxu0 %v9478_v51  ;;  %v9904_v57 = vld [vmem:[%s11678_s30] sm:$0xff] }
0x2efb   :  { %v11383_v60 = vadd.f32 %v8164_v59, %v11323_v50  ;;  %v5684_v61 = vmul.f32 %v11380_v53, %v11380_v53  ;;  %v9481_v50 = vld [vmem:[%s11675_s29 + $0x10c] ss:$12 sps:$4 sm:$0xff]   ;;  %8607 = vmatprep.subr.bf16.mxu0 %v10148_v4 }
0x2efc   :  { %5874 = vmatprep.subr.bf16.mxu1 %v9481_v50 }
0x2efd   :  { %5686 = vadd.xlane.f32.xlu0 %v5684_v61  ;;  %v5685_v62 = vmul.f32 %v11383_v60, %v11383_v60  ;;  %5875 = vmatpush1.bf16.msra.mxu1 %v9479_v1 }
0x2efe   :  { %8608 = vmatpush3.bf16.msra.mxu0 %v9482_v5  ;;  %5876 = vmatprep.subr.bf16.mxu1 %v9485_v6 }
0x2eff   :  { %8609 = vmatprep.subr.bf16.mxu0 %v10148_v4 }
0x2f01   :  { %5688 = vadd.xlane.f32.xlu0 %v5685_v62  ;;  %5877 = vmatpush1.bf16.msra.mxu1 %v9483_v52  ;;  %v9905_v62 = vld [vmem:[%s11678_s30 + $0x8] sm:$0xff] }
0x2f02   :  { %8610 = vmatpush3.bf16.msra.mxu0 %v9486_v42  ;;  %5878 = vmatprep.subr.bf16.mxu1 %v9489_v7 }
0x2f03   :  { %8611 = vmatprep.subr.bf16.mxu0 %v10148_v4 }
0x2f05   :  { %5879 = vmatpush1.bf16.msra.mxu1 %v9487_v8 }
0x2f06   :  { %8612 = vmatpush3.bf16.msra.mxu0 %v9490_v17  ;;  %5880 = vmatprep.subr.bf16.mxu1 %v9493_v9 }
0x2f07   :  { %8613 = vmatprep.subr.bf16.mxu0 %v10148_v4 }
0x2f09   :  { %5881 = vmatpush1.bf16.msra.mxu1 %v9491_v10 }
0x2f0a   :  { %8614 = vmatpush3.bf16.msra.mxu0 %v9494_v39  ;;  %5882 = vmatprep.subr.bf16.mxu1 %v9497_v11 }
0x2f0b   :  { %8615 = vmatprep.subr.bf16.mxu0 %v10148_v4 }
0x2f0d   :  { %5883 = vmatpush1.bf16.msra.mxu1 %v9495_v12 }
0x2f0e   :  { %8616 = vmatpush3.bf16.msra.mxu0 %v9498_v13 }
0x2f8a   :  { %v5687_v16 = vpop.xlane.xlu0 %5686 }
0x2f8b   :  { %v5690_v19 = vmul.f32 0.0078125, %v5687_v16 }
0x2f8d   :  { %v5692_v40 = vadd.f32 1e-06, %v5690_v19 }
0x2f8e   :  { %v5689_v20 = vpop.xlane.xlu0 %5688 }
0x2f8f   :  { %9823 = vrsqrt.f32 %v5692_v40  ;;  %v5691_v23 = vmul.f32 0.0078125, %v5689_v20 }
0x2f91   :  { %v5693_v14 = vadd.f32 1e-06, %v5691_v23 }
0x2f93   :  { %9825 = vrsqrt.f32 %v5693_v14 }
0x2f99   :  { %v9824_v55 = vpop.eup %9823 }
0x2f9a   :  { %v5696_v24 = vmul.f32 %v9824_v55, %v11380_v53 }
0x2f9c   :  { %v5704_v25 = vmul.f32 %v7697_v49, %v5696_v24 }
0x2f9d   :  { %v9826_v2 = vpop.eup %9825 }
0x2f9e   :  { %v5697_v58 = vmul.f32 %v9826_v2, %v11383_v60 }
0x2fa0   :  { %v5705_v54 = vmul.f32 %v7697_v49, %v5697_v58 }
0x2fa2   :  { %v5739_v15 = vpack.c.bf16 %v5705_v54, %v5704_v25 }
0x2fa4   :  { %5901 = vmatmul.mubr.bf16.vlgmr.msra.gmra.mrb[96].mxu1 %v5739_v15  ;;  %8618 = vmatmul.mubr.bf16.vlgmr.msra.gmra.mrb[76].mxu0 %v5739_v15 }
0x3077   :  { %v5902_v56 = vpop.f32.mrb[96].mxu1  ;;  %v5945_v26 = vpop.f32.mrb[76].mxu0 }
0x3078   :  { %v5904_v28 = vpop.f32.mrb[97].mxu1  ;;  %v8619_v29 = vpop.f32.mrb[77].mxu0  ;;  %v5952_v7 = vmul.f32 %v9901_v3, %v5902_v56 }
0x3079   :  { %v5948_v18 = vpop.f32.mrb[78].mxu0  ;;  %5980 = vrot.lane.b32.xlu1 %v5904_v28, %s10154_s3  ;;  %5972 = vrot.lane.b32.xlu0 %v5904_v28, %s10142_s16  ;;  %v5906_v30 = vpop.f32.mrb[98].mxu1  ;;  %v5970_v22 = vmul.f32 %v9901_v3, %v5904_v28 }
0x307a   :  { %v11416_v27 = vpack.i.bf16 %v5948_v18, %v5945_v26  ;;  %v5908_v31 = vpop.f32.mrb[99].mxu1  ;;  %v8620_v33 = vpop.f32.mrb[79].mxu0  ;;  %v6237_v34 = vpack.c.bf16 %v5948_v18, %v5945_v26  ;;  %v5953_v8 = vmul.f32 %v9903_v47, %v5906_v30 }
0x307b   :  { %v5971_v41 = vmul.f32 %v9903_v47, %v5908_v31 }
0x307c   :  { %8637 = vmatprep.subr.bf16.mxu0 %v6237_v34 }
0x307d   :  { %5954 = vrot.lane.b32.xlu0 %v5902_v56, %s10142_s16  ;;  %8638 = vmatpush3.bf16.msra.mxu0 %v6237_v34 }
0x307e   :  { %5974 = vrot.lane.b32.xlu1 %v5908_v31, %s10142_s16 }
0x3081   :  { %5962 = vrot.lane.b32.xlu0 %v5902_v56, %s10154_s3 }
0x3082   :  { %5982 = vrot.lane.b32.xlu1 %v5908_v31, %s10154_s3 }
0x3086   :  { %5956 = vrot.lane.b32.xlu1 %v5906_v30, %s10142_s16 }
0x308a   :  { %5964 = vrot.lane.b32.xlu1 %v5906_v30, %s10154_s3 }
0x30eb   :  { %v5981_v35 = vpop.permute.xlu1 %5980  ;;  %v5973_v36 = vpop.permute.xlu0 %5972 }
0x30ec   :  { %v5976_v37 = vmul.f32 %v9900_v21, %v5973_v36  ;;  %v5984_v59 = vmul.f32 %v9904_v57, %v5981_v35 }
0x30ee   :  { %v5978_v48 = vadd.f32 %v5976_v37, %v5970_v22 }
0x30ef   :  { %v5955_v46 = vpop.permute.xlu0 %5954 }
0x30f0   :  { %v5975_v38 = vpop.permute.xlu1 %5974  ;;  %v5986_v0 = vadd.f32 %v5984_v59, %v5978_v48  ;;  %v5958_v50 = vmul.f32 %v9900_v21, %v5955_v46  ;;  %v9906_v46 = vld [vmem:[%s11679_s12] sm:$0xff]  ;;  %v9908_v59 = vld [vmem:[%s11679_s12 + $0x8] sm:$0xff] }
0x30f1   :  { %v5977_v44 = vmul.f32 %v9902_v43, %v5975_v38 }
0x30f2   :  { %v5960_v39 = vadd.f32 %v5958_v50, %v5952_v7 }
0x30f3   :  { %v5979_v61 = vadd.f32 %v5977_v44, %v5971_v41  ;;  %v5963_v1 = vpop.permute.xlu0 %5962 }
0x30f4   :  { %v5983_v45 = vpop.permute.xlu1 %5982  ;;  %v5966_v17 = vmul.f32 %v9904_v57, %v5963_v1 }
0x30f5   :  { %v5985_v63 = vmul.f32 %v9905_v62, %v5983_v45  ;;  %v9907_v45 = vld [vmem:[%s11679_s12 + $0x10] sm:$0xff] }
0x30f6   :  { %v5968_v13 = vadd.f32 %v5966_v17, %v5960_v39 }
0x30f7   :  { %v5987_v51 = vadd.f32 %v5985_v63, %v5979_v61 }
0x30f8   :  { %v5957_v5 = vpop.permute.xlu1 %5956 }
0x30f9   :  { %v5959_v52 = vmul.f32 %v9902_v43, %v5957_v5  ;;  %v9059_v6 = vpack.i.bf16 %v5987_v51, %v5986_v0  ;;  %v6052_v42 = vpack.c.bf16 %v5987_v51, %v5986_v0  ;;  %v9909_v0 = vld [vmem:[%s11679_s12 + $0x18] sm:$0xff] }
0x30fb   :  { %9060 = vrot.lane.b32.xlu1 %v9059_v6, %s10151_s5  ;;  %9055 = vrot.lane.b32.xlu0 %v9059_v6, %s10152_s19  ;;  %v6069_v9 = vsel %vm644_vm1, %v6052_v42, 0  ;;  %v5961_v11 = vadd.f32 %v5959_v52, %v5953_v8  ;;  %v9911_v8 = vld [vmem:[%s11679_s12 + $0x28] sm:$0xff] }
0x30fc   :  { %8693 = vmatprep.subr.msk.bf16.mxu1 %vm644_vm1, %v6052_v42  ;;  %v5965_v10 = vpop.permute.xlu1 %5964  ;;  %v9910_v42 = vld [vmem:[%s11679_s12 + $0x20] sm:$0xff] }
0x30fd   :  { %v5967_v12 = vmul.f32 %v9905_v62, %v5965_v10  ;;  %8622 = vmatpush3.bf16.xpose.msra.mxu1 %v6069_v9  ;;  %v9912_v10 = vld [vmem:[%s11679_s12 + $0x38] sm:$0xff] }
0x30ff   :  { %v5969_v16 = vadd.f32 %v5967_v12, %v5961_v11  ;;  %9065 = vrot.lane.b32.xlu0 %v9059_v6, %s10153_s6  ;;  %v9913_v12 = vld [vmem:[%s11679_s12 + $0x30] sm:$0xff] }
0x3101   :  { %v6048_v19 = vpack.c.bf16 %v5969_v16, %v5968_v13  ;;  %v9069_v40 = vpack.i.bf16 %v5969_v16, %v5968_v13 }
0x3103   :  { %8629 = vmatprep.mubr.msk.bf16.mxu1 %vm644_vm1, %v6048_v19  ;;  %9070 = vrot.lane.b32.xlu1 %v9069_v40, %s10152_s19 }
0x3104   :  { %9075 = vrot.lane.b32.xlu0 %v9069_v40, %s10151_s5 }
0x3107   :  { %9080 = vrot.lane.b32.xlu1 %v9069_v40, %s10153_s6 }
0x316d   :  { %v9061_v20 = vpop.permute.xlu1 %9060  ;;  %v9056_v23 = vpop.permute.xlu0 %9055 }
0x316e   :  { %v9063_v14 = vunpack.i.h.bf16 %v9061_v20  ;;  %v9062_v55 = vunpack.i.l.bf16 %v9061_v20  ;;  %v9058_v24 = vunpack.i.h.bf16 %v9056_v23  ;;  %v9057_v2 = vunpack.i.l.bf16 %v9056_v23 }
0x3170   :  { %v6053_v49 = vpack.c.bf16 %v9058_v24, %v9057_v2  ;;  %v6054_v58 = vpack.c.bf16 %v9063_v14, %v9062_v55 }
0x3171   :  { %v9066_v54 = vpop.permute.xlu0 %9065 }
0x3172   :  { %8694 = vmatprep.subr.msk.bf16.mxu1 %vm644_vm1, %v6053_v49  ;;  %v6072_v25 = vsel %vm644_vm1, %v6053_v49, 0  ;;  %v9068_v15 = vunpack.i.h.bf16 %v9066_v54  ;;  %v9067_v56 = vunpack.i.l.bf16 %v9066_v54  ;;  %v6075_v28 = vsel %vm644_vm1, %v6054_v58, 0 }
0x3173   :  { %8624 = vmatpush3.bf16.xpose.msra.mxu1 %v6072_v25 }
0x3174   :  { %8695 = vmatprep.subr.msk.bf16.mxu1 %vm644_vm1, %v6054_v58  ;;  %v6055_v26 = vpack.c.bf16 %v9068_v15, %v9067_v56 }
0x3175   :  { %v9071_v29 = vpop.permute.xlu1 %9070 }
0x3176   :  { %v9076_v18 = vpop.permute.xlu0 %9075  ;;  %v6078_v30 = vsel %vm644_vm1, %v6055_v26, 0  ;;  %v9073_v31 = vunpack.i.h.bf16 %v9071_v29  ;;  %v9072_v33 = vunpack.i.l.bf16 %v9071_v29 }
0x3177   :  { %v9078_v34 = vunpack.i.h.bf16 %v9076_v18  ;;  %v9077_v35 = vunpack.i.l.bf16 %v9076_v18 }
0x3178   :  { %v6049_v36 = vpack.c.bf16 %v9073_v31, %v9072_v33 }
0x3179   :  { %v6050_v21 = vpack.c.bf16 %v9078_v34, %v9077_v35  ;;  %v9081_v37 = vpop.permute.xlu1 %9080 }
0x317a   :  { %v9083_v38 = vunpack.i.h.bf16 %v9081_v37  ;;  %v9082_v3 = vunpack.i.l.bf16 %v9081_v37 }
0x317b   :  { %8626 = vmatpush3.bf16.xpose.msra.mxu1 %v6075_v28 }
0x317c   :  { %8696 = vmatprep.subr.msk.bf16.mxu1 %vm644_vm1, %v6055_v26  ;;  %v6051_v22 = vpack.c.bf16 %v9083_v38, %v9082_v3 }
0x3183   :  { %8628 = vmatpush3.bf16.xpose.msra.mxu1 %v6078_v30 }
0x318a   :  { %8630 = vmatmul.mubr.msk.bf16.vlgmr.msra.gmra.mrb[100].mxu1 %vm644_vm1, %v6049_v36 }
0x318b   :  { %8633 = vmatprep.mubr.msk.bf16.mxu1 %vm644_vm1, %v6050_v21 }
0x3192   :  { %8634 = vmatmul.mubr.msk.bf16.gmra.mrb[104].mxu1 %vm644_vm1, %v6051_v22 }
0x3193   :  { %6707 = vmatprep.mubr.bf16.mxu1 %v10149_v32 }
0x325d   :  { %v8631_v43 = vpop.f32.mrb[100].mxu1 }
0x325e   :  { %v6114_v44 = vpop.f32.mrb[101].mxu1  ;;  %v6123_v57 = vadd.f32 %v9907_v45, %v8631_v43 }
0x325f   :  { %v6115_v47 = vadd.f32 %v9906_v46, %v6114_v44  ;;  %v8632_v41 = vpop.f32.mrb[102].mxu1 }
0x3260   :  { %v6117_v48 = vpop.f32.mrb[103].mxu1  ;;  %v6126_v51 = vadd.f32 %v9909_v0, %v8632_v41  ;;  %v6151_v1 = vsel %vm734_vm2, %v6123_v57, -inf }
0x3261   :  { %v6118_v61 = vadd.f32 %v9908_v59, %v6117_v48  ;;  %v6145_v62 = vsel %vm734_vm2, %v6115_v47, -inf }
0x3262   :  { %6146 = vmax.xlane.f32.xlu0 %v6145_v62  ;;  %v6154_v9 = vsel %vm734_vm2, %v6126_v51, -inf }
0x3263   :  { %v6148_v63 = vsel %vm734_vm2, %v6118_v61, -inf }
0x3264   :  { %6149 = vmax.xlane.f32.xlu1 %v6148_v63 }
0x3265   :  { %v8635_v50 = vpop.f32.mrb[104].mxu1 }
0x3266   :  { %v6130_v5 = vpop.f32.mrb[105].mxu1  ;;  %6152 = vmax.xlane.f32.xlu0 %v6151_v1  ;;  %v6139_v13 = vadd.f32 %v9913_v12, %v8635_v50 }
0x3267   :  { %v8636_v52 = vpop.f32.mrb[106].mxu1  ;;  %v6131_v7 = vadd.f32 %v9910_v42, %v6130_v5 }
0x3268   :  { %v6133_v6 = vpop.f32.mrb[107].mxu1  ;;  %v6142_v39 = vadd.f32 %v9912_v10, %v8636_v52  ;;  %v6163_v40 = vsel %vm734_vm2, %v6139_v13, -inf }
0x3269   :  { %v11458_v17 = vadd.f32 %v9911_v8, %v6133_v6  ;;  %v6157_v16 = vsel %vm734_vm2, %v6131_v7, -inf }
0x326a   :  { %6155 = vmax.xlane.f32.xlu0 %v6154_v9  ;;  %v6166_v19 = vsel %vm734_vm2, %v6142_v39, -inf }
0x326b   :  { %v6160_v11 = vsel %vm734_vm2, %v11458_v17, -inf }
0x326c   :  { %6161 = vmax.xlane.f32.xlu1 %v6160_v11 }
0x326e   :  { %6158 = vmax.xlane.f32.xlu0 %v6157_v16 }
0x3270   :  { %6167 = vmax.xlane.f32.xlu1 %v6166_v19 }
0x3272   :  { %6164 = vmax.xlane.f32.xlu0 %v6163_v40 }
0x32ef   :  { %v6147_v20 = vpop.xlane.xlu0 %6146 }
0x32f0   :  { %v6169_v23 = vsub.f32 %v6115_v47, %v6147_v20 }
0x32f1   :  { %v6150_v14 = vpop.xlane.xlu1 %6149 }
0x32f2   :  { %v6177_v2 = vmul.f32 1.442695, %v6169_v23  ;;  %v6170_v49 = vsub.f32 %v6118_v61, %v6150_v14 }
0x32f3   :  { %v6153_v55 = vpop.xlane.xlu0 %6152 }
0x32f4   :  { %v6171_v24 = vsub.f32 %v6123_v57, %v6153_v55  ;;  %v6179_v15 = vmul.f32 1.442695, %v6170_v49 }
0x32f6   :  { %v6181_v58 = vmul.f32 1.442695, %v6171_v24 }
0x32f7   :  { %v6156_v25 = vpop.xlane.xlu0 %6155 }
0x32f8   :  { %9827 = vpow2.f32 %v6181_v58  ;;  %v6172_v54 = vsub.f32 %v6126_v51, %v6156_v25 }
0x32f9   :  { %9829 = vpow2.f32 %v6177_v2  ;;  %v6162_v47 = vpop.xlane.xlu1 %6161 }
0x32fa   :  { %v6183_v56 = vmul.f32 1.442695, %v6172_v54  ;;  %v6174_v45 = vsub.f32 %v11458_v17, %v6162_v47 }
0x32fb   :  { %v6159_v26 = vpop.xlane.xlu0 %6158 }
0x32fc   :  { %9831 = vpow2.f32 %v6183_v56  ;;  %v6173_v28 = vsub.f32 %v6131_v7, %v6159_v26  ;;  %v6187_v59 = vmul.f32 1.442695, %v6174_v45 }
0x32fd   :  { %9833 = vpow2.f32 %v6179_v15  ;;  %v6168_v41 = vpop.xlane.xlu1 %6167 }
0x32fe   :  { %v6185_v31 = vmul.f32 1.442695, %v6173_v28  ;;  %v6176_v48 = vsub.f32 %v6142_v39, %v6168_v41 }
0x32ff   :  { %v6165_v29 = vpop.xlane.xlu0 %6164 }
0x3300   :  { %v6175_v18 = vsub.f32 %v6139_v13, %v6165_v29  ;;  %v6191_v57 = vmul.f32 1.442695, %v6176_v48  ;;  %v9506_v48 = vld [vmem:[%s11680_s27 + $0x78] sm:$0xff]  }
0x3302   :  { %v11468_v30 = vpop.eup %9827  ;;  %v6189_v33 = vmul.f32 1.442695, %v6175_v18 }
0x3303   :  { %v6199_v34 = vsel %vm734_vm2, %v11468_v30, 0.0  ;;  %v9830_v35 = vpop.eup %9829 }
0x3304   :  { %9835 = vpow2.f32 %v6189_v33  ;;  %6200 = vadd.xlane.f32.xlu0 %v6199_v34  ;;  %v6193_v21 = vsel %vm734_vm2, %v9830_v35, 0.0 }
0x3305   :  { %9837 = vpow2.f32 %v6185_v31 }
0x3306   :  { %v11472_v36 = vpop.eup %9831  ;;  %9839 = vpow2.f32 %v6191_v57 }
0x3307   :  { %v6202_v37 = vsel %vm734_vm2, %v11472_v36, 0.0  ;;  %v9834_v38 = vpop.eup %9833  ;;  %9841 = vpow2.f32 %v6187_v59 }
0x3308   :  { %6194 = vadd.xlane.f32.xlu0 %v6193_v21  ;;  %6203 = vadd.xlane.f32.xlu1 %v6202_v37  ;;  %v6196_v3 = vsel %vm734_vm2, %v9834_v38, 0.0  ;;  %v9501_v21 = vld [vmem:[%s11680_s27 + $0x50] sm:$0xff]   ;;  %v9502_v37 = vld [vmem:[%s11680_s27 + $0x58] sm:$0xff]  }
0x330c   :  { %6197 = vadd.xlane.f32.xlu1 %v6196_v3  ;;  %v9504_v3 = vld [vmem:[%s11680_s27 + $0x68] sm:$0xff]  }
0x330e   :  { %v11478_v22 = vpop.eup %9835 }
0x330f   :  { %v6211_v43 = vsel %vm734_vm2, %v11478_v22, 0.0  ;;  %v11482_v44 = vpop.eup %9837 }
0x3310   :  { %6212 = vadd.xlane.f32.xlu0 %v6211_v43  ;;  %v6205_v46 = vsel %vm734_vm2, %v11482_v44, 0.0  ;;  %v9840_v61 = vpop.eup %9839 }
0x3311   :  { %v6214_v62 = vsel %vm734_vm2, %v9840_v61, 0.0  ;;  %v9842_v63 = vpop.eup %9841 }
0x3312   :  { %v6208_v0 = vsel %vm734_vm2, %v9842_v63, 0.0 }
0x3314   :  { %6206 = vadd.xlane.f32.xlu0 %v6205_v46 }
0x331d   :  { %9090 = vrot.lane.b32.xlu1 %v11416_v27, %s10151_s5 }
0x332a   :  { %9085 = vrot.lane.b32.xlu0 %v11416_v27, %s10152_s19 }
0x3341   :  { %6215 = vadd.xlane.f32.xlu1 %v6214_v62 }
0x3345   :  { %6209 = vadd.xlane.f32.xlu1 %v6208_v0 }
0x3356   :  { %9095 = vrot.lane.b32.xlu1 %v11416_v27, %s10153_s6 }
0x3391   :  { %v6201_v51 = vpop.xlane.xlu0 %6200 }
0x3395   :  { %v6204_v50 = vpop.xlane.xlu1 %6203  ;;  %v6195_v1 = vpop.xlane.xlu0 %6194 }
0x3396   :  { %9843 = vrcp.f32 %v6195_v1 }
0x3399   :  { %v6198_v5 = vpop.xlane.xlu1 %6197 }
0x339a   :  { %9845 = vrcp.f32 %v6198_v5 }
0x339b   :  { %9847 = vrcp.f32 %v6204_v50 }
0x339c   :  { %9849 = vrcp.f32 %v6201_v51 }
0x339d   :  { %v6213_v52 = vpop.xlane.xlu0 %6212  ;;  %v9091_v7 = vpop.permute.xlu1 %9090 }
0x339e   :  { %v9093_v39 = vunpack.i.h.bf16 %v9091_v7  ;;  %v9092_v11 = vunpack.i.l.bf16 %v9091_v7 }
0x33a0   :  { %v9844_v42 = vpop.eup %9843  ;;  %v6239_v19 = vpack.c.bf16 %v9093_v39, %v9092_v11 }
0x33a1   :  { %v6207_v6 = vpop.xlane.xlu0 %6206  ;;  %v6225_v9 = vmul.f32 %v9844_v42, %v9830_v35  ;;  %v9499_v35 = vld [vmem:[%s11680_s27 + $0x40] sm:$0xff]  }
0x33a2   :  { %9851 = vrcp.f32 %v6207_v6 }
0x33a4   :  { %v9846_v8 = vpop.eup %9845 }
0x33a5   :  { %v9086_v17 = vpop.permute.xlu0 %9085  ;;  %v6226_v10 = vmul.f32 %v9846_v8, %v9834_v38  ;;  %v9848_v23 = vpop.eup %9847  ;;  %v9503_v38 = vld [vmem:[%s11680_s27 + $0x60] sm:$0xff]  }
0x33a6   :  { %v9088_v12 = vunpack.i.h.bf16 %v9086_v17  ;;  %v9087_v13 = vunpack.i.l.bf16 %v9086_v17  ;;  %v9850_v2 = vpop.eup %9849  ;;  %v6228_v49 = vmul.f32 %v9848_v23, %v11472_v36  ;;  %v9500_v36 = vld [vmem:[%s11680_s27 + $0x48] sm:$0xff]  }
0x33a7   :  { %v6233_v16 = vpack.c.bf16 %v6226_v10, %v6225_v9  ;;  %v6227_v54 = vmul.f32 %v9850_v2, %v11468_v30  ;;  %v9516_v23 = vld [vmem:[%s11681_s4 + $0x128] ss:$16 sps:$4 sm:$0xff]  }
0x33a8   :  { %v6238_v27 = vpack.c.bf16 %v9088_v12, %v9087_v13  ;;  %v9507_v12 = vld [vmem:[%s11681_s4 + $0x100] ss:$16 sps:$4 sm:$0xff]   ;;  %v9509_v13 = vld [vmem:[%s11681_s4 + $0x104] ss:$16 sps:$4 sm:$0xff]   ;;  %v9522_v2 = vld [vmem:[%s11681_s4 + $0x148] ss:$16 sps:$4 sm:$0xff]  }
0x33a9   :  { %8645 = vmatprep.mubr.msk.bf16.mxu0 %vm734_vm2, %v6233_v16  ;;  %v6234_v56 = vpack.c.bf16 %v6228_v49, %v6227_v54  ;;  %v9510_v16 = vld [vmem:[%s11681_s4 + $0x108] ss:$16 sps:$4 sm:$0xff]   ;;  %6675 = vmatprep.subr.bf16.mxu1 %v9509_v13 }
0x33aa   :  { %8639 = vmatprep.subr.bf16.mxu0 %v6238_v27  ;;  %6676 = vmatpush1.bf16.msra.mxu1 %v9507_v12  ;;  %v9565_v12 = vld [vmem:[%s10345_s24 + $0xe8] sm:$0xff]  }
0x33ab   :  { %8640 = vmatpush3.bf16.msra.mxu0 %v6238_v27  ;;  %v9512_v27 = vld [vmem:[%s11681_s4 + $0x10c] ss:$16 sps:$4 sm:$0xff]  }
0x33ac   :  { %8641 = vmatprep.subr.bf16.mxu0 %v6239_v19  ;;  %v9852_v25 = vpop.eup %9851  ;;  %v9566_v13 = vld [vmem:[%s10345_s24 + $0xa8] sm:$0xff]  }
0x33ad   :  { %v6229_v28 = vmul.f32 %v9852_v25, %v11482_v44 }
0x33af   :  { %8642 = vmatpush3.bf16.msra.mxu0 %v6239_v19  ;;  %v9515_v19 = vld [vmem:[%s11681_s4 + $0x124] ss:$16 sps:$4 sm:$0xff]  }
0x33b0   :  { %6677 = vmatprep.subr.bf16.mxu1 %v9515_v19  ;;  %v9569_v19 = vld [vmem:[%s10345_s24 + $0xf8] sm:$0xff]  }
0x33ce   :  { %v6216_v40 = vpop.xlane.xlu1 %6215 }
0x33d2   :  { %v6210_v20 = vpop.xlane.xlu1 %6209 }
0x33d3   :  { %9853 = vrcp.f32 %v6210_v20  ;;  %v9513_v20 = vld [vmem:[%s11681_s4 + $0x120] ss:$16 sps:$4 sm:$0xff]  }
0x33d4   :  { %9855 = vrcp.f32 %v6216_v40  ;;  %v9518_v40 = vld [vmem:[%s11681_s4 + $0x12c] ss:$16 sps:$4 sm:$0xff]   ;;  %6678 = vmatpush1.bf16.msra.mxu1 %v9513_v20 }
0x33d5   :  { %9857 = vrcp.f32 %v6213_v52 }
0x33d6   :  { %v9096_v14 = vpop.permute.xlu1 %9095 }
0x33d7   :  { %v9098_v55 = vunpack.i.h.bf16 %v9096_v14  ;;  %v9097_v24 = vunpack.i.l.bf16 %v9096_v14  ;;  %v9521_v14 = vld [vmem:[%s11681_s4 + $0x144] ss:$16 sps:$4 sm:$0xff]  }
0x33d8   :  { %6679 = vmatprep.subr.bf16.mxu1 %v9521_v14 }
0x33d9   :  { %v6240_v58 = vpack.c.bf16 %v9098_v55, %v9097_v24  ;;  %v9524_v55 = vld [vmem:[%s11681_s4 + $0x14c] ss:$16 sps:$4 sm:$0xff]   ;;  %v9519_v24 = vld [vmem:[%s11681_s4 + $0x140] ss:$16 sps:$4 sm:$0xff]  }
0x33da   :  { %6680 = vmatpush1.bf16.msra.mxu1 %v9519_v24 }
0x33db   :  { %8643 = vmatprep.subr.bf16.mxu0 %v6240_v58 }
0x33dc   :  { %8644 = vmatpush3.bf16.msra.mxu0 %v6240_v58 }
0x33dd   :  { %v9854_v15 = vpop.eup %9853  ;;  %8653 = vmatprep.subr.bf16.mxu0 %v10148_v4 }
0x33de   :  { %v9856_v26 = vpop.eup %9855  ;;  %v6230_v29 = vmul.f32 %v9854_v15, %v9842_v63 }
0x33df   :  { %8646 = vmatmul.mubr.msk.bf16.vlgmr.msra.gmra.mrb[80].mxu0 %vm734_vm2, %v6234_v56  ;;  %v9858_v18 = vpop.eup %9857  ;;  %v6232_v33 = vmul.f32 %v9856_v26, %v9840_v61 }
0x33e0   :  { %v6235_v31 = vpack.c.bf16 %v6230_v29, %v6229_v28  ;;  %v6231_v30 = vmul.f32 %v9858_v18, %v11478_v22  ;;  %8654 = vmatpush3.bf16.msra.mxu0 %v9499_v35  ;;  %v9505_v22 = vld [vmem:[%s11680_s27 + $0x70] sm:$0xff]   ;;  %v9530_v29 = vld [vmem:[%s11681_s4 + $0x16c] ss:$16 sps:$4 sm:$0xff]  }
0x33e1   :  { %8655 = vmatprep.subr.bf16.mxu0 %v10148_v4  ;;  %v9525_v18 = vld [vmem:[%s11681_s4 + $0x160] ss:$16 sps:$4 sm:$0xff]   ;;  %v9539_v35 = vld [vmem:[%s11681_s4 + $0x1a4] ss:$16 sps:$4 sm:$0xff]  }
0x33e2   :  { %8649 = vmatprep.mubr.msk.bf16.mxu0 %vm734_vm2, %v6235_v31  ;;  %v6236_v34 = vpack.c.bf16 %v6232_v33, %v6231_v30  ;;  %v9528_v31 = vld [vmem:[%s11681_s4 + $0x168] ss:$16 sps:$4 sm:$0xff]   ;;  %v9536_v33 = vld [vmem:[%s11681_s4 + $0x18c] ss:$16 sps:$4 sm:$0xff]   ;;  %v9531_v30 = vld [vmem:[%s11681_s4 + $0x180] ss:$16 sps:$4 sm:$0xff]  }
0x33e4   :  { %8656 = vmatpush3.bf16.msra.mxu0 %v9500_v36  ;;  %v9542_v36 = vld [vmem:[%s11681_s4 + $0x1ac] ss:$16 sps:$4 sm:$0xff]  }
0x33e5   :  { %8657 = vmatprep.subr.bf16.mxu0 %v10148_v4 }
0x33e7   :  { %8650 = vmatmul.mubr.msk.bf16.gmra.mrb[84].mxu0 %vm734_vm2, %v6236_v34  ;;  %v9534_v34 = vld [vmem:[%s11681_s4 + $0x188] ss:$16 sps:$4 sm:$0xff]  }
0x33e8   :  { %8669 = vmatprep.mubr.msk.bf16.mxu0 %vm10150_vm0, %v10148_v4  ;;  %8658 = vmatpush3.bf16.msra.mxu0 %v9501_v21  ;;  %v9537_v21 = vld [vmem:[%s11681_s4 + $0x1a0] ss:$16 sps:$4 sm:$0xff]  }
0x33e9   :  { %8659 = vmatprep.subr.bf16.mxu0 %v10148_v4 }
0x33ec   :  { %8660 = vmatpush3.bf16.msra.mxu0 %v9502_v37  ;;  %v9540_v37 = vld [vmem:[%s11681_s4 + $0x1a8] ss:$16 sps:$4 sm:$0xff]  }
0x33ed   :  { %8661 = vmatprep.subr.bf16.mxu0 %v10148_v4 }
0x33f0   :  { %8662 = vmatpush3.bf16.msra.mxu0 %v9503_v38  ;;  %v9545_v38 = vld [vmem:[%s11681_s4 + $0x1c4] ss:$16 sps:$4 sm:$0xff]  }
0x33f1   :  { %8663 = vmatprep.subr.bf16.mxu0 %v10148_v4 }
0x33f4   :  { %8664 = vmatpush3.bf16.msra.mxu0 %v9504_v3  ;;  %v9548_v3 = vld [vmem:[%s11681_s4 + $0x1cc] ss:$16 sps:$4 sm:$0xff]  }
0x33f5   :  { %8665 = vmatprep.subr.bf16.mxu0 %v10148_v4 }
0x33f8   :  { %8666 = vmatpush3.bf16.msra.mxu0 %v9505_v22  ;;  %v9543_v22 = vld [vmem:[%s11681_s4 + $0x1c0] ss:$16 sps:$4 sm:$0xff]  }
0x33f9   :  { %8667 = vmatprep.subr.bf16.mxu0 %v10148_v4 }
0x33fc   :  { %8668 = vmatpush3.bf16.msra.mxu0 %v9506_v48 }
0x33fd   :  { %6718 = vmatprep.subr.bf16.mxu0 %v9512_v27  ;;  %v9568_v27 = vld [vmem:[%s10345_s24 + $0xb0] sm:$0xff]  }
0x34b2   :  { %v8647_v43 = vpop.f32.mrb[80].mxu0 }
0x34b3   :  { %v6287_v44 = vpop.f32.mrb[81].mxu0 }
0x34b4   :  { %v8648_v46 = vpop.f32.mrb[82].mxu0 }
0x34b5   :  { %v9099_v47 = vpack.i.bf16 %v8648_v46, %v8647_v43  ;;  %v6290_v41 = vpop.f32.mrb[83].mxu0  ;;  %v9546_v43 = vld [vmem:[%s11681_s4 + $0x1c8] ss:$16 sps:$4 sm:$0xff]   ;;  %v9554_v46 = vld [vmem:[%s11681_s4 + $0x1ec] ss:$16 sps:$4 sm:$0xff]  }
0x34b7   :  { %9100 = vrot.lane.b32.xlu1 %v9099_v47, %s10153_s6  ;;  %v9549_v47 = vld [vmem:[%s11681_s4 + $0x1e0] ss:$16 sps:$4 sm:$0xff]  }
0x34ba   :  { %v8651_v45 = vpop.f32.mrb[84].mxu0 }
0x34bb   :  { %v6303_v57 = vpop.f32.mrb[85].mxu0 }
0x34bc   :  { %v8652_v59 = vpop.f32.mrb[86].mxu0 }
0x34bd   :  { %v9109_v61 = vpack.i.bf16 %v8652_v59, %v8651_v45  ;;  %v6306_v62 = vpop.f32.mrb[87].mxu0 }
0x34be   :  { %v9104_v63 = vpack.i.bf16 %v6306_v62, %v6303_v57 }
0x34bf   :  { %9110 = vrot.lane.b32.xlu1 %v9109_v61, %s10152_s19 }
0x34c0   :  { %9105 = vrot.lane.b32.xlu0 %v9104_v63, %s10151_s5 }
0x3529   :  { %v9101_v0 = vpop.permute.xlu1 %9100 }
0x352a   :  { %v9103_v51 = vunpack.i.h.bf16 %v9101_v0  ;;  %v9102_v50 = vunpack.i.l.bf16 %v9101_v0 }
0x352c   :  { %v6342_v6 = vsel %vm644_vm1, %v6287_v44, %v9102_v50  ;;  %v6343_v42 = vsel %vm644_vm1, %v6290_v41, %v9103_v51  ;;  %v9551_v44 = vld [vmem:[%s11681_s4 + $0x1e4] ss:$16 sps:$4 sm:$0xff]   ;;  %v9552_v41 = vld [vmem:[%s11681_s4 + $0x1e8] ss:$16 sps:$4 sm:$0xff]  }
0x352d   :  { %v7786_v50 = vld [vmem:[#allocation11 + $0x1] ss:$0 sm:$0xff] }
0x3531   :  { %v9111_v4 = vpop.permute.xlu1 %9110 }
0x3532   :  { %v9106_v1 = vpop.permute.xlu0 %9105  ;;  %v9113_v7 = vunpack.i.h.bf16 %v9111_v4  ;;  %v9112_v8 = vunpack.i.l.bf16 %v9111_v4 }
0x3533   :  { %v9108_v5 = vunpack.i.h.bf16 %v9106_v1  ;;  %v9107_v52 = vunpack.i.l.bf16 %v9106_v1 }
0x3535   :  { %v6345_v17 = vsel %vm734_vm2, %v6343_v42, %v9108_v5  ;;  %v6344_v9 = vsel %vm734_vm2, %v6342_v6, %v9107_v52  ;;  %v9555_v6 = vld [vmem:[%s10345_s24 + $0xc0] sm:$0xff]  }
0x3536   :  { %v6347_v10 = vsel %vm936_vm3, %v6345_v17, %v9113_v7  ;;  %v6346_v39 = vsel %vm936_vm3, %v6344_v9, %v9112_v8  ;;  %v9556_v42 = vld [vmem:[%s10345_s24 + $0x80] sm:$0xff]   ;;  %v9557_v7 = vld [vmem:[%s10345_s24 + $0xc8] sm:$0xff]   ;;  %v9559_v17 = vld [vmem:[%s10345_s24 + $0xd0] sm:$0xff]  }
0x3537   :  { %v6365_v11 = vpack.c.bf16 %v6347_v10, %v6346_v39  ;;  %v9558_v8 = vld [vmem:[%s10345_s24 + $0x88] sm:$0xff]   ;;  %v9560_v9 = vld [vmem:[%s10345_s24 + $0x90] sm:$0xff]   ;;  %v9561_v10 = vld [vmem:[%s10345_s24 + $0xd8] sm:$0xff]  }
0x3538   :  { %v9563_v39 = vld [vmem:[%s10345_s24 + $0xe0] sm:$0xff]  }
0x3539   :  { %8670 = vmatmul.mubr.bf16.vlgmr.msra.gmra.mrb[88].mxu0 %v6365_v11  ;;  %v9564_v11 = vld [vmem:[%s10345_s24 + $0xa0] sm:$0xff]  }
0x353a   :  { %6750 = vmatprep.mubr.bf16.mxu0 %v10149_v32  ;;  %6719 = vmatpush1.bf16.msra.mxu0 %v9510_v16  ;;  %v9567_v16 = vld [vmem:[%s10345_s24 + $0xf0] sm:$0xff]  }
0x353b   :  { %6720 = vmatprep.subr.bf16.mxu0 %v9518_v40  ;;  %v9570_v40 = vld [vmem:[%s10345_s24 + $0xb8] sm:$0xff]  }
0x353e   :  { %6721 = vmatpush1.bf16.msra.mxu0 %v9516_v23 }
0x353f   :  { %6722 = vmatprep.subr.bf16.mxu0 %v9524_v55 }
0x3542   :  { %6723 = vmatpush1.bf16.msra.mxu0 %v9522_v2 }
0x3543   :  { %6724 = vmatprep.subr.bf16.mxu0 %v9530_v29 }
0x3546   :  { %6725 = vmatpush1.bf16.msra.mxu0 %v9528_v31 }
0x3547   :  { %6726 = vmatprep.subr.bf16.mxu0 %v9536_v33 }
0x354a   :  { %6727 = vmatpush1.bf16.msra.mxu0 %v9534_v34 }
0x354b   :  { %6728 = vmatprep.subr.bf16.mxu0 %v9542_v36 }
0x354e   :  { %6729 = vmatpush1.bf16.msra.mxu0 %v9540_v37 }
0x354f   :  { %6730 = vmatprep.subr.bf16.mxu0 %v9548_v3 }
0x3552   :  { %6731 = vmatpush1.bf16.msra.mxu0 %v9546_v43 }
0x3553   :  { %6732 = vmatprep.subr.bf16.mxu0 %v9554_v46 }
0x3556   :  { %6733 = vmatpush1.bf16.msra.mxu0 %v9552_v41 }
0x360c   :  { %v6448_v49 = vpop.f32.mrb[88].mxu0 }
0x360d   :  { %v11544_v58 = vadd.f32 %v6448_v49, %v11380_v53  ;;  %v8671_v25 = vpop.f32.mrb[89].mxu0  ;;  %v9527_v53 = vld [vmem:[%s11681_s4 + $0x164] ss:$16 sps:$4 sm:$0xff]  }
0x360e   :  { %v6451_v54 = vpop.f32.mrb[90].mxu0  ;;  %6681 = vmatprep.subr.bf16.mxu1 %v9527_v53 }
0x360f   :  { %v11547_v15 = vadd.f32 %v6451_v54, %v11383_v60  ;;  %v8672_v56 = vpop.f32.mrb[91].mxu0  ;;  %v6459_v26 = vmul.f32 %v11544_v58, %v11544_v58  ;;  %6682 = vmatpush1.bf16.msra.mxu1 %v9525_v18  ;;  %v9533_v60 = vld [vmem:[%s11681_s4 + $0x184] ss:$16 sps:$4 sm:$0xff]  }
0x3610   :  { %6683 = vmatprep.subr.bf16.mxu1 %v9533_v60 }
0x3611   :  { %6461 = vadd.xlane.f32.xlu0 %v6459_v26  ;;  %v6460_v28 = vmul.f32 %v11547_v15, %v11547_v15 }
0x3613   :  { %6463 = vadd.xlane.f32.xlu1 %v6460_v28  ;;  %6684 = vmatpush1.bf16.msra.mxu1 %v9531_v30 }
0x3614   :  { %6685 = vmatprep.subr.bf16.mxu1 %v9539_v35 }
0x3617   :  { %6686 = vmatpush1.bf16.msra.mxu1 %v9537_v21 }
0x3618   :  { %6687 = vmatprep.subr.bf16.mxu1 %v9545_v38 }
0x361b   :  { %6688 = vmatpush1.bf16.msra.mxu1 %v9543_v22 }
0x361c   :  { %6689 = vmatprep.subr.bf16.mxu1 %v9551_v44 }
0x361f   :  { %6690 = vmatpush1.bf16.msra.mxu1 %v9549_v47 }
0x3620   :  { %8199 = vmatprep.subr.bf16.mxu1 %v9555_v6 }
0x369e   :  { %v6462_v48 = vpop.xlane.xlu0 %6461 }
0x369f   :  { %v6465_v45 = vmul.f32 0.0078125, %v6462_v48 }
0x36a0   :  { %v6464_v57 = vpop.xlane.xlu1 %6463 }
0x36a1   :  { %v6467_v59 = vadd.f32 1e-06, %v6465_v45  ;;  %v6466_v61 = vmul.f32 0.0078125, %v6464_v57  ;;  %v9571_v57 = vld [vmem:[%s10355_s17] ss:$8 sps:$4 sm:$0xff]  }
0x36a3   :  { %9859 = vrsqrt.f32 %v6467_v59  ;;  %v6468_v62 = vadd.f32 1e-06, %v6466_v61  ;;  %v9573_v59 = vld [vmem:[%s10355_s17 + $0x4] ss:$8 sps:$4 sm:$0xff]   ;;  %v9576_v61 = vld [vmem:[%s10355_s17 + $0x14] ss:$8 sps:$4 sm:$0xff]  }
0x36a4   :  { %7087 = vmatprep.subr.bf16.mxu0 %v9573_v59 }
0x36a5   :  { %9861 = vrsqrt.f32 %v6468_v62  ;;  %v9574_v62 = vld [vmem:[%s10355_s17 + $0x10] ss:$8 sps:$4 sm:$0xff]  }
0x36ad   :  { %v9860_v63 = vpop.eup %9859 }
0x36ae   :  { %v6471_v0 = vmul.f32 %v9860_v63, %v11544_v58 }
0x36af   :  { %v9862_v51 = vpop.eup %9861 }
0x36b0   :  { %v6472_v4 = vmul.f32 %v9862_v51, %v11547_v15  ;;  %v6479_v5 = vmul.f32 %v7786_v50, %v6471_v0 }
0x36b2   :  { %v6480_v1 = vmul.f32 %v7786_v50, %v6472_v4 }
0x36b4   :  { %v6514_v52 = vpack.c.bf16 %v6480_v1, %v6479_v5 }
0x36b6   :  { %6708 = vmatmul.mubr.bf16.vlgmr.msra.gmra.mrb[108].mxu1 %v6514_v52  ;;  %6751 = vmatmul.mubr.bf16.vlgmr.msra.gmra.mrb[92].mxu0 %v6514_v52 }
0x36b7   :  { %7119 = vmatprep.mubr.bf16.mxu0 %v10149_v32  ;;  %8200 = vmatpush3.bf16.msra.mxu1 %v9556_v42  ;;  %v9562_v32 = vld [vmem:[%s10345_s24 + $0x98] sm:$0xff]  }
0x36b8   :  { %8201 = vmatprep.subr.bf16.mxu1 %v9557_v7  ;;  %7088 = vmatpush1.bf16.msra.mxu0 %v9571_v57  ;;  %v9579_v7 = vld [vmem:[%s10355_s17 + $0x24] ss:$8 sps:$4 sm:$0xff]  }
0x36b9   :  { %7089 = vmatprep.subr.bf16.mxu0 %v9576_v61 }
0x36bb   :  { %8202 = vmatpush3.bf16.msra.mxu1 %v9558_v8  ;;  %v9577_v8 = vld [vmem:[%s10355_s17 + $0x20] ss:$8 sps:$4 sm:$0xff]  }
0x36bc   :  { %8203 = vmatprep.subr.bf16.mxu1 %v9559_v17  ;;  %7090 = vmatpush1.bf16.msra.mxu0 %v9574_v62  ;;  %v9582_v17 = vld [vmem:[%s10355_s17 + $0x34] ss:$8 sps:$4 sm:$0xff]  }
0x36bd   :  { %7091 = vmatprep.subr.bf16.mxu0 %v9579_v7 }
0x36bf   :  { %8204 = vmatpush3.bf16.msra.mxu1 %v9560_v9  ;;  %v9580_v9 = vld [vmem:[%s10355_s17 + $0x30] ss:$8 sps:$4 sm:$0xff]  }
0x36c0   :  { %8205 = vmatprep.subr.bf16.mxu1 %v9561_v10  ;;  %7092 = vmatpush1.bf16.msra.mxu0 %v9577_v8  ;;  %v9585_v10 = vld [vmem:[%s10355_s17 + $0x44] ss:$8 sps:$4 sm:$0xff]  }
0x36c1   :  { %7093 = vmatprep.subr.bf16.mxu0 %v9582_v17 }
0x36c3   :  { %8206 = vmatpush3.bf16.msra.mxu1 %v9562_v32  ;;  %v9586_v32 = vld [vmem:[%s10355_s17 + $0x50] ss:$8 sps:$4 sm:$0xff]  }
0x36c4   :  { %8207 = vmatprep.subr.bf16.mxu1 %v9563_v39  ;;  %7094 = vmatpush1.bf16.msra.mxu0 %v9580_v9  ;;  %v9591_v39 = vld [vmem:[%s10355_s17 + $0x64] ss:$8 sps:$4 sm:$0xff]  }
0x36c5   :  { %7095 = vmatprep.subr.bf16.mxu0 %v9585_v10 }
0x36c7   :  { %8208 = vmatpush3.bf16.msra.mxu1 %v9564_v11  ;;  %v9589_v11 = vld [vmem:[%s10355_s17 + $0x60] ss:$8 sps:$4 sm:$0xff]  }
0x36c8   :  { %8209 = vmatprep.subr.bf16.mxu1 %v9565_v12  ;;  %v9594_v12 = vld [vmem:[%s10355_s17 + $0x74] ss:$8 sps:$4 sm:$0xff]  }
0x36cb   :  { %8210 = vmatpush3.bf16.msra.mxu1 %v9566_v13  ;;  %v9592_v13 = vld [vmem:[%s10355_s17 + $0x70] ss:$8 sps:$4 sm:$0xff]  }
0x36cc   :  { %8211 = vmatprep.subr.bf16.mxu1 %v9567_v16 }
0x36cf   :  { %8212 = vmatpush3.bf16.msra.mxu1 %v9568_v27 }
0x36d0   :  { %8213 = vmatprep.subr.bf16.mxu1 %v9569_v19 }
0x36d3   :  { %8214 = vmatpush3.bf16.msra.mxu1 %v9570_v40 }
0x3789   :  { %v6709_v20 = vpop.f32.mrb[108].mxu1  ;;  %v6752_v23 = vpop.f32.mrb[92].mxu0 }
0x378a   :  { %v7851_v14 = vmul.f32 -1.442695, %v6709_v20  ;;  %v6711_v55 = vpop.f32.mrb[109].mxu1  ;;  %v6754_v24 = vpop.f32.mrb[93].mxu0 }
0x378b   :  { %v7852_v2 = vmul.f32 -1.442695, %v6711_v55  ;;  %v6713_v49 = vpop.f32.mrb[110].mxu1  ;;  %v6756_v25 = vpop.f32.mrb[94].mxu0 }
0x378c   :  { %9863 = vpow2.f32 %v7851_v14  ;;  %v7853_v54 = vmul.f32 -1.442695, %v6713_v49  ;;  %v6715_v56 = vpop.f32.mrb[111].mxu1  ;;  %v6758_v26 = vpop.f32.mrb[95].mxu0 }
0x378d   :  { %9865 = vpow2.f32 %v7852_v2  ;;  %v7854_v28 = vmul.f32 -1.442695, %v6715_v56  ;;  %v7903_v2 = vld [vmem:[#allocation13] ss:$0 sm:$0xff] }
0x378e   :  { %9867 = vpow2.f32 %v7853_v54 }
0x378f   :  { %9869 = vpow2.f32 %v7854_v28 }
0x3796   :  { %v9864_v53 = vpop.eup %9863 }
0x3797   :  { %v9866_v29 = vpop.eup %9865  ;;  %v6773_v18 = vadd.f32 1.0, %v9864_v53 }
0x3798   :  { %v9868_v31 = vpop.eup %9867  ;;  %v6774_v60 = vadd.f32 1.0, %v9866_v29 }
0x3799   :  { %v9870_v33 = vpop.eup %9869  ;;  %9871 = vrcp.f32 %v6773_v18  ;;  %v6775_v30 = vadd.f32 1.0, %v9868_v31 }
0x379a   :  { %9873 = vrcp.f32 %v6774_v60  ;;  %v6776_v34 = vadd.f32 1.0, %v9870_v33 }
0x379b   :  { %9875 = vrcp.f32 %v6775_v30 }
0x379c   :  { %9877 = vrcp.f32 %v6776_v34 }
0x37a3   :  { %v9872_v35 = vpop.eup %9871 }
0x37a4   :  { %v9874_v36 = vpop.eup %9873  ;;  %v6785_v21 = vmul.f32 %v9872_v35, %v6709_v20 }
0x37a5   :  { %v9876_v37 = vpop.eup %9875  ;;  %v6786_v38 = vmul.f32 %v9874_v36, %v6711_v55 }
0x37a6   :  { %v9878_v3 = vpop.eup %9877  ;;  %v6789_v22 = vmul.f32 %v6785_v21, %v6752_v23  ;;  %v6787_v43 = vmul.f32 %v9876_v37, %v6713_v49 }
0x37a7   :  { %v6790_v44 = vmul.f32 %v6786_v38, %v6754_v24  ;;  %v6788_v46 = vmul.f32 %v9878_v3, %v6715_v56 }
0x37a8   :  { %v6791_v47 = vmul.f32 %v6787_v43, %v6756_v25 }
0x37a9   :  { %v6792_v41 = vmul.f32 %v6788_v46, %v6758_v26 }
0x37aa   :  { %v6826_v48 = vpack.c.bf16 %v6791_v47, %v6789_v22 }
0x37ab   :  { %v6827_v45 = vpack.c.bf16 %v6792_v41, %v6790_v44 }
0x37ad   :  { %6956 = vmatprep.mubr.bf16.mxu1 %v6827_v45 }
0x37ae   :  { %6957 = vmatmul.mubr.bf16.vlgmr.msra.gmra.mrb[112].mxu1 %v6826_v48 }
0x3881   :  { %v8215_v63 = vpop.f32.mrb[112].mxu1 }
0x3882   :  { %v8216_v0 = vpop.f32.mrb[113].mxu1 }
0x3883   :  { %v8217_v51 = vadd.f32 %v8216_v0, %v8215_v63  ;;  %v8218_v50 = vpop.f32.mrb[114].mxu1 }
0x3884   :  { %v8219_v4 = vpop.f32.mrb[115].mxu1 }
0x3885   :  { %v6965_v1 = vadd.f32 %v8217_v51, %v11544_v58  ;;  %v8220_v5 = vadd.f32 %v8219_v4, %v8218_v50  ;;  %v9583_v58 = vld [vmem:[%s10355_s17 + $0x40] ss:$8 sps:$4 sm:$0xff]  }
0x3886   :  { %7096 = vmatpush1.bf16.msra.mxu0 %v9583_v58 }
0x3887   :  { %v6966_v52 = vadd.f32 %v8220_v5, %v11547_v15  ;;  %v6968_v6 = vmul.f32 %v6965_v1, %v6965_v1  ;;  %v9588_v15 = vld [vmem:[%s10355_s17 + $0x54] ss:$8 sps:$4 sm:$0xff]   ;;  %s10155_s17 = smov [#allocation14]  }
0x3888   :  { %7097 = vmatprep.subr.bf16.mxu0 %v9588_v15  ;;  %s7139_s24 = sshll.u32 %s10155_s17, 4  ;;  %s7140_s24 = int_to_ptr.vmem [resolvable:$true] %s7139_s24 }
0x3889   :  { %6970 = vadd.xlane.f32.xlu0 %v6968_v6  ;;  %v6969_v42 = vmul.f32 %v6966_v52, %v6966_v52  ;;  %s10068_s23 = scalar_lea.vmem %s7140_s24, 512  ;;  %p10073_p1 = scmp.lt.s32.totalorder %s7140_s24, %s7140_s24 }
0x388a   :  { %7098 = vmatpush1.bf16.msra.mxu0 %v9586_v32  ;;  %p10069_p0 = scmp.ne.s32.totalorder %s7140_s24, %s10068_s23  ;;  %p10074_p2 = scmp.lt.s32.totalorder %s10068_s23, %s10068_s23 }
0x388b   :  { %7099 = vmatprep.subr.bf16.mxu0 %v9591_v39 }
0x388c   :  { %p10075_p3 = por %p10074_p2, %p10073_p1 }
0x388d   :  { %6972 = vadd.xlane.f32.xlu0 %v6969_v42 }
0x388e   :  { %7100 = vmatpush1.bf16.msra.mxu0 %v9589_v11  ;;  %p10076_p4 = pnand %p10075_p3, %p10069_p0 }
0x388f   :  { %7101 = vmatprep.subr.bf16.mxu0 %v9594_v12 }
0x3892   :  { %7102 = vmatpush1.bf16.msra.mxu0 %v9592_v13 }
0x3916   :  { %v6971_v16 = vpop.xlane.xlu0 %6970 }
0x3917   :  { %v6974_v27 = vmul.f32 0.0078125, %v6971_v16 }
0x3919   :  { %v6976_v19 = vadd.f32 1e-06, %v6974_v27 }
0x391a   :  { %v6973_v40 = vpop.xlane.xlu0 %6972 }
0x391b   :  { %9879 = vrsqrt.f32 %v6976_v19  ;;  %v6975_v20 = vmul.f32 0.0078125, %v6973_v40 }
0x391d   :  { %v6977_v23 = vadd.f32 1e-06, %v6975_v20 }
0x391f   :  { %9881 = vrsqrt.f32 %v6977_v23 }
0x3925   :  { %v9880_v14 = vpop.eup %9879 }
0x3926   :  { %v6980_v55 = vmul.f32 %v9880_v14, %v6965_v1 }
0x3928   :  { %v6988_v25 = vmul.f32 %v7903_v2, %v6980_v55 }
0x3929   :  { %v9882_v24 = vpop.eup %9881 }
0x392a   :  { %v6981_v49 = vmul.f32 %v9882_v24, %v6966_v52 }
0x392c   :  { %v6989_v54 = vmul.f32 %v7903_v2, %v6981_v49 }
0x392e   :  { %v7006_v56 = vpack.c.bf16 %v6989_v54, %v6988_v25 }
0x3930   :  { %7120 = vmatmul.mubr.bf16.vlgmr.msra.gmra.mrb[96].mxu0 %v7006_v56 }
0x3a03   :  { %v7121_v26 = vpop.f32.mrb[96].mxu0 }
0x3a04   :  { %7130 = vst [vmem:[#allocation14] sm:$0xff] %v7121_v26  ;;  %v7123_v28 = vpop.f32.mrb[97].mxu0 }
0x3a05   :  { %7131 = vst [vmem:[#allocation14 + $0x8] sm:$0xff] %v7123_v28  ;;  %v7125_v53 = vpop.f32.mrb[98].mxu0 }
0x3a06   :  { %7132 = vst [vmem:[#allocation14 + $0x10] sm:$0xff] %v7125_v53  ;;  %v7127_v29 = vpop.f32.mrb[99].mxu0 }
0x3a07   :  { %7133 = vst [vmem:[#allocation14 + $0x18] sm:$0xff] %v7127_v29 }
0x3a08   :  { %10079 = shalt.err (!%p10076_p4)
}
0x3a09   :  { %s10080_s5 = scalar_lea.hbm %s10360_s20, 512 }
0x3a0a   :  { %p10081_p5 = scmp.ne.s32.totalorder %s10360_s20, %s10080_s5  ;;  %p10084_p6 = scmp.lt.u32.totalorder %s10080_s5, %s10360_s20 }
0x3a0c   :  { %p10086_p7 = pnand %p10084_p6, %p10081_p5 }
0x3a0e   :  { %10089 = shalt.err (!%p10086_p7)
}
0x3a0f   :  { %s10156_s19 = smov 256  }
0x3a10   :  { %7145 = dma.vmem_to_hbm [thread:$0]  %s7140_s24, 512, %s10360_s20, [#allocation4], %s10156_s19, %s10156_s19, %s10142_s16  }
0x3a11   :  { %10098 = dma.done.wait [#allocation4], 512  }
0x3a12   :  { %10099 = vsyncadd [#allocation4], 4294966784 }
0x3a13   :  { %7149 = vsyncpa [#allocation3], 1 }
0x3a14   :  { %7150 = vsyncpa [#allocation6], 1 }
0x3a15   :  { %7151 = vsyncpa [#allocation9], 1 }
0x3a16   :  { %7152 = vsyncpa [#allocation12], 1 }
0x3a17   :  { %7153 = vsyncpa [#allocation4], 1 }

</bundles_post_ra>
